<compile_context>
chip_gen: v7x
topology: tpu7x:2x2x1
jax: 0.10.0
libtpu: 0.0.40
codegen_flags: <defaults>
</compile_context>

<pallas_src>
import jax
import jax.numpy as jnp
from jax.experimental import pallas as pl
from jax.experimental.pallas import tpu as pltpu

N_EMBD = 384
HIDDEN = 4 * N_EMBD            # 1536
HIDDEN_CHUNK = 384             # 4 chunks; 384 = 3 * 128 (lane aligned)
assert HIDDEN % HIDDEN_CHUNK == 0
N_CHUNKS = HIDDEN // HIDDEN_CHUNK


def ffn_kernel(x_ref, w1_ref, b1_ref, w2_ref, b2_ref, o_ref):
    # In-kernel bf16 cast of the activations (avoids a separate XLA pass that
    # would re-stream the whole activation through HBM before the kernel).
    x = x_ref[...].astype(jnp.bfloat16)                             # (TILE, C)

    # Chunk the hidden dim so the (TILE, 4C) f32 intermediate never exists.
    acc = None
    for c in range(N_CHUNKS):                                       # static unroll (4)
        lo = c * HIDDEN_CHUNK
        h = jnp.dot(x, w1_ref[:, lo:lo + HIDDEN_CHUNK],
                    preferred_element_type=jnp.float32)             # (TILE, CHUNK) f32
        h = jnp.maximum(h + b1_ref[:, lo:lo + HIDDEN_CHUNK], 0.0)
        part = jnp.dot(h.astype(jnp.bfloat16),
                       w2_ref[lo:lo + HIDDEN_CHUNK, :],
                       preferred_element_type=jnp.float32)          # (TILE, C) f32
        acc = part if acc is None else acc + part

    # TODO(synk): nn.Dropout(p=0.2) omitted — identity in eval/inference mode.
    o_ref[...] = (acc + b2_ref[...]).astype(o_ref.dtype)


def _choose_tile_rows(n_rows: int) -> int:
    """>=2 grid steps (v7x megacore), <=1024 rows/step, multiple of 8 (sublane)."""
    t = min(1024, max(8, n_rows // 2))
    return max(8, (t // 8) * 8)


def feed_forward(x, params):
    """x: (B, T, C) float32 -> (B, T, C) float32 (matches PyTorch FeedForward.forward)."""
    B, T, C = x.shape
    assert C == N_EMBD

    n_rows = B * T
    tile_rows = _choose_tile_rows(n_rows)

    xr = x.reshape(n_rows, C)                     # free layout view
    pad = (-n_rows) % tile_rows
    if pad:                                       # only for ragged row counts
        xr = jnp.pad(xr, ((0, pad), (0, 0)))
    padded_rows = n_rows + pad
    grid = (padded_rows // tile_rows,)

    # bf16 matmul operands for the weights (halves DMA bytes + VMEM); biases f32.
    w1 = params["w1"].astype(jnp.bfloat16)
    w2 = params["w2"].astype(jnp.bfloat16)
    b1 = params["b1"].astype(jnp.float32).reshape(1, HIDDEN)
    b2 = params["b2"].astype(jnp.float32).reshape(1, C)

    cost = pl.CostEstimate(
        flops=4 * padded_rows * C * HIDDEN,               # two matmuls, 2 flops/MAC
        transcendentals=0,
        bytes_accessed=(padded_rows * C * 4               # x in  (f32)
                        + padded_rows * C * 4             # out   (f32)
                        + 2 * C * HIDDEN * 2              # w1+w2 (bf16)
                        + (HIDDEN + C) * 4),              # biases (f32)
    )

    out = pl.pallas_call(
        ffn_kernel,
        out_shape=jax.ShapeDtypeStruct((padded_rows, C), jnp.float32),
        grid_spec=pltpu.PrefetchScalarGridSpec(
            num_scalar_prefetch=0,
            grid=grid,
            in_specs=[
                # activations: tiled over rows, double-buffered (default)
                pl.BlockSpec((tile_rows, C), lambda i: (i, 0)),
                # grid-invariant operands: single buffer (no wasted 2nd copy)
                pl.BlockSpec((C, HIDDEN), lambda i: (0, 0),
                             pipeline_mode=pl.Buffered(1)),
                pl.BlockSpec((1, HIDDEN), lambda i: (0, 0),
                             pipeline_mode=pl.Buffered(1)),
                pl.BlockSpec((HIDDEN, C), lambda i: (0, 0),
                             pipeline_mode=pl.Buffered(1)),
                pl.BlockSpec((1, C), lambda i: (0, 0),
                             pipeline_mode=pl.Buffered(1)),
            ],
            out_specs=pl.BlockSpec((tile_rows, C), lambda i: (i, 0)),
        ),
        compiler_params=pltpu.CompilerParams(
            dimension_semantics=("parallel",),     # rows independent -> megacore on v7x
        ),
        cost_estimate=cost,
    )(xr, w1, b1, w2, b2)

    return out[:n_rows].reshape(B, T, C)


def init_params(key):
    C = N_EMBD
    ks = jax.random.split(key, 4)
    scale = 0.02
    return {
        "w1": jax.random.normal(ks[0], (C, HIDDEN), jnp.float32) * scale,  # y = x @ W + b
        "b1": jax.random.normal(ks[1], (HIDDEN,), jnp.float32) * scale,
        "w2": jax.random.normal(ks[2], (HIDDEN, C), jnp.float32) * scale,
        "b2": jax.random.normal(ks[3], (C,), jnp.float32) * scale,
    }


def reference_ffn_f32(x, p):
    """Pure-JAX f32 reference of the PyTorch module (dropout = identity in eval)."""
    h = jnp.maximum(x @ p["w1"] + p["b1"], 0.0)
    return h @ p["w2"] + p["b2"]


def reference_ffn_bf16(x, p):
    """Reference with the same bf16-operand / f32-accumulate quantization as the kernel."""
    xb = x.astype(jnp.bfloat16)
    w1 = p["w1"].astype(jnp.bfloat16)
    w2 = p["w2"].astype(jnp.bfloat16)
    h = jnp.dot(xb, w1, preferred_element_type=jnp.float32) + p["b1"]
    h = jnp.maximum(h, 0.0)
    y = jnp.dot(h.astype(jnp.bfloat16), w2, preferred_element_type=jnp.float32) + p["b2"]
    return y


if __name__ == "__main__":
    key = jax.random.PRNGKey(0)
    kx, kp = jax.random.split(key)

    B, T, C = 8, 64, N_EMBD                       # small shapes consistent with the module
    x = jax.random.normal(kx, (B, T, C), jnp.float32)
    params = init_params(kp)

    out = feed_forward(x, params)
    out = jax.block_until_ready(out)

    assert out.shape == (B, T, C)
    assert bool(jnp.all(jnp.isfinite(out)))

    # Tight check vs. a reference with identical bf16-input / f32-accum quantization.
    ref_q = reference_ffn_bf16(x, params)
    assert bool(jnp.allclose(out, ref_q, atol=5e-3, rtol=5e-3))

    # Looser check vs. the full-f32 PyTorch-equivalent math.
    ref = reference_ffn_f32(x, params)
    assert bool(jnp.allclose(out, ref, atol=5e-2, rtol=5e-2))

    print("KERNEL_OK")
</pallas_src>

<mosaic_0001>
module attributes {stable_mosaic.version = 11 : i64} {
  func.func @ffn_kernel(%arg0: i32, %arg1: memref<256x384xf32, #tpu.memory_space<vmem>>, %arg2: memref<384x1536xbf16, #tpu.memory_space<vmem>>, %arg3: memref<1x1536xf32, #tpu.memory_space<vmem>>, %arg4: memref<1536x384xbf16, #tpu.memory_space<vmem>>, %arg5: memref<1x384xf32, #tpu.memory_space<vmem>>, %arg6: memref<256x384xf32, #tpu.memory_space<vmem>>) attributes {dimension_semantics = [#tpu.dimension_semantics<parallel>], iteration_bounds = array<i64: 2>, scalar_prefetch = 0 : i64, scratch_operands = 0 : i64, tpu.core_type = #tpu.core_type<tc>, window_params = [{transform_indices = @transform_0, window_bounds = array<i64: 256, 384>}, {pipeline_mode = #tpu.pipeline_mode<synchronous>, transform_indices = @transform_1, window_bounds = array<i64: 384, 1536>}, {pipeline_mode = #tpu.pipeline_mode<synchronous>, transform_indices = @transform_2, window_bounds = array<i64: 1, 1536>}, {pipeline_mode = #tpu.pipeline_mode<synchronous>, transform_indices = @transform_3, window_bounds = array<i64: 1536, 384>}, {pipeline_mode = #tpu.pipeline_mode<synchronous>, transform_indices = @transform_4, window_bounds = array<i64: 1, 384>}, {transform_indices = @transform_5, window_bounds = array<i64: 256, 384>}]} {
    %c0 = arith.constant 0 : index
    %c0_0 = arith.constant 0 : index
    %0 = vector.load %arg1[%c0, %c0_0] : memref<256x384xf32, #tpu.memory_space<vmem>>, vector<256x384xf32>
    %1 = arith.truncf %0 : vector<256x384xf32> to vector<256x384xbf16>
    %c0_1 = arith.constant 0 : index
    %c0_2 = arith.constant 0 : index
    %2 = vector.load %arg2[%c0_1, %c0_2] : memref<384x1536xbf16, #tpu.memory_space<vmem>>, vector<384x384xbf16>
    %cst = arith.constant dense<0.000000e+00> : vector<256x384xf32>
    %3 = tpu.matmul %1, %2, %cst {dimension_numbers = #tpu.dot_dimension_numbers<[1], [0], [0], [1], [0, 0, 1, 1], [], []>} : vector<256x384xbf16>, vector<384x384xbf16>, vector<256x384xf32> -> vector<256x384xf32>
    %c0_3 = arith.constant 0 : index
    %c0_4 = arith.constant 0 : index
    %4 = vector.load %arg3[%c0_3, %c0_4] : memref<1x1536xf32, #tpu.memory_space<vmem>>, vector<1x384xf32>
    %5 = vector.broadcast %4 : vector<1x384xf32> to vector<256x384xf32>
    %6 = arith.addf %3, %5 : vector<256x384xf32>
    %cst_5 = arith.constant 0.000000e+00 : f32
    %7 = vector.broadcast %cst_5 : f32 to vector<256x384xf32>
    %8 = arith.maximumf %6, %7 : vector<256x384xf32>
    %9 = arith.truncf %8 : vector<256x384xf32> to vector<256x384xbf16>
    %c0_6 = arith.constant 0 : index
    %c0_7 = arith.constant 0 : index
    %10 = vector.load %arg4[%c0_6, %c0_7] : memref<1536x384xbf16, #tpu.memory_space<vmem>>, vector<384x384xbf16>
    %cst_8 = arith.constant dense<0.000000e+00> : vector<256x384xf32>
    %11 = tpu.matmul %9, %10, %cst_8 {dimension_numbers = #tpu.dot_dimension_numbers<[1], [0], [0], [1], [0, 0, 1, 1], [], []>} : vector<256x384xbf16>, vector<384x384xbf16>, vector<256x384xf32> -> vector<256x384xf32>
    %c0_9 = arith.constant 0 : index
    %c384 = arith.constant 384 : index
    %12 = vector.load %arg2[%c0_9, %c384] : memref<384x1536xbf16, #tpu.memory_space<vmem>>, vector<384x384xbf16>
    %cst_10 = arith.constant dense<0.000000e+00> : vector<256x384xf32>
    %13 = tpu.matmul %1, %12, %cst_10 {dimension_numbers = #tpu.dot_dimension_numbers<[1], [0], [0], [1], [0, 0, 1, 1], [], []>} : vector<256x384xbf16>, vector<384x384xbf16>, vector<256x384xf32> -> vector<256x384xf32>
    %c0_11 = arith.constant 0 : index
    %c384_12 = arith.constant 384 : index
    %14 = vector.load %arg3[%c0_11, %c384_12] : memref<1x1536xf32, #tpu.memory_space<vmem>>, vector<1x384xf32>
    %15 = vector.broadcast %14 : vector<1x384xf32> to vector<256x384xf32>
    %16 = arith.addf %13, %15 : vector<256x384xf32>
    %cst_13 = arith.constant 0.000000e+00 : f32
    %17 = vector.broadcast %cst_13 : f32 to vector<256x384xf32>
    %18 = arith.maximumf %16, %17 : vector<256x384xf32>
    %19 = arith.truncf %18 : vector<256x384xf32> to vector<256x384xbf16>
    %c384_14 = arith.constant 384 : index
    %c0_15 = arith.constant 0 : index
    %20 = vector.load %arg4[%c384_14, %c0_15] : memref<1536x384xbf16, #tpu.memory_space<vmem>>, vector<384x384xbf16>
    %cst_16 = arith.constant dense<0.000000e+00> : vector<256x384xf32>
    %21 = tpu.matmul %19, %20, %cst_16 {dimension_numbers = #tpu.dot_dimension_numbers<[1], [0], [0], [1], [0, 0, 1, 1], [], []>} : vector<256x384xbf16>, vector<384x384xbf16>, vector<256x384xf32> -> vector<256x384xf32>
    %22 = arith.addf %11, %21 : vector<256x384xf32>
    %c0_17 = arith.constant 0 : index
    %c768 = arith.constant 768 : index
    %23 = vector.load %arg2[%c0_17, %c768] : memref<384x1536xbf16, #tpu.memory_space<vmem>>, vector<384x384xbf16>
    %cst_18 = arith.constant dense<0.000000e+00> : vector<256x384xf32>
    %24 = tpu.matmul %1, %23, %cst_18 {dimension_numbers = #tpu.dot_dimension_numbers<[1], [0], [0], [1], [0, 0, 1, 1], [], []>} : vector<256x384xbf16>, vector<384x384xbf16>, vector<256x384xf32> -> vector<256x384xf32>
    %c0_19 = arith.constant 0 : index
    %c768_20 = arith.constant 768 : index
    %25 = vector.load %arg3[%c0_19, %c768_20] : memref<1x1536xf32, #tpu.memory_space<vmem>>, vector<1x384xf32>
    %26 = vector.broadcast %25 : vector<1x384xf32> to vector<256x384xf32>
    %27 = arith.addf %24, %26 : vector<256x384xf32>
    %cst_21 = arith.constant 0.000000e+00 : f32
    %28 = vector.broadcast %cst_21 : f32 to vector<256x384xf32>
    %29 = arith.maximumf %27, %28 : vector<256x384xf32>
    %30 = arith.truncf %29 : vector<256x384xf32> to vector<256x384xbf16>
    %c768_22 = arith.constant 768 : index
    %c0_23 = arith.constant 0 : index
    %31 = vector.load %arg4[%c768_22, %c0_23] : memref<1536x384xbf16, #tpu.memory_space<vmem>>, vector<384x384xbf16>
    %cst_24 = arith.constant dense<0.000000e+00> : vector<256x384xf32>
    %32 = tpu.matmul %30, %31, %cst_24 {dimension_numbers = #tpu.dot_dimension_numbers<[1], [0], [0], [1], [0, 0, 1, 1], [], []>} : vector<256x384xbf16>, vector<384x384xbf16>, vector<256x384xf32> -> vector<256x384xf32>
    %33 = arith.addf %22, %32 : vector<256x384xf32>
    %c0_25 = arith.constant 0 : index
    %c1152 = arith.constant 1152 : index
    %34 = vector.load %arg2[%c0_25, %c1152] : memref<384x1536xbf16, #tpu.memory_space<vmem>>, vector<384x384xbf16>
    %cst_26 = arith.constant dense<0.000000e+00> : vector<256x384xf32>
    %35 = tpu.matmul %1, %34, %cst_26 {dimension_numbers = #tpu.dot_dimension_numbers<[1], [0], [0], [1], [0, 0, 1, 1], [], []>} : vector<256x384xbf16>, vector<384x384xbf16>, vector<256x384xf32> -> vector<256x384xf32>
    %c0_27 = arith.constant 0 : index
    %c1152_28 = arith.constant 1152 : index
    %36 = vector.load %arg3[%c0_27, %c1152_28] : memref<1x1536xf32, #tpu.memory_space<vmem>>, vector<1x384xf32>
    %37 = vector.broadcast %36 : vector<1x384xf32> to vector<256x384xf32>
    %38 = arith.addf %35, %37 : vector<256x384xf32>
    %cst_29 = arith.constant 0.000000e+00 : f32
    %39 = vector.broadcast %cst_29 : f32 to vector<256x384xf32>
    %40 = arith.maximumf %38, %39 : vector<256x384xf32>
    %41 = arith.truncf %40 : vector<256x384xf32> to vector<256x384xbf16>
    %c1152_30 = arith.constant 1152 : index
    %c0_31 = arith.constant 0 : index
    %42 = vector.load %arg4[%c1152_30, %c0_31] : memref<1536x384xbf16, #tpu.memory_space<vmem>>, vector<384x384xbf16>
    %cst_32 = arith.constant dense<0.000000e+00> : vector<256x384xf32>
    %43 = tpu.matmul %41, %42, %cst_32 {dimension_numbers = #tpu.dot_dimension_numbers<[1], [0], [0], [1], [0, 0, 1, 1], [], []>} : vector<256x384xbf16>, vector<384x384xbf16>, vector<256x384xf32> -> vector<256x384xf32>
    %44 = arith.addf %33, %43 : vector<256x384xf32>
    %c0_33 = arith.constant 0 : index
    %c0_34 = arith.constant 0 : index
    %45 = vector.load %arg5[%c0_33, %c0_34] : memref<1x384xf32, #tpu.memory_space<vmem>>, vector<1x384xf32>
    %46 = vector.broadcast %45 : vector<1x384xf32> to vector<256x384xf32>
    %47 = arith.addf %44, %46 : vector<256x384xf32>
    %c0_35 = arith.constant 0 : index
    %c0_36 = arith.constant 0 : index
    %48 = vector.load %arg6[%c0_35, %c0_36] : memref<256x384xf32, #tpu.memory_space<vmem>>, vector<256x384xf32>
    tpu.vector_store %arg6[%c0_35, %c0_36], %47 {strides = array<i32>} : memref<256x384xf32, #tpu.memory_space<vmem>>, vector<256x384xf32>,
    return
  }
  func.func @transform_0(%arg0: i32) -> (i32, i32) {
    %c0_i32 = arith.constant 0 : i32
    %c0_i32_0 = arith.constant 0 : i32
    return %arg0, %c0_i32 : i32, i32
  }
  func.func @transform_1(%arg0: i32) -> (i32, i32) {
    %c0_i32 = arith.constant 0 : i32
    %c0_i32_0 = arith.constant 0 : i32
    %c0_i32_1 = arith.constant 0 : i32
    return %c0_i32, %c0_i32_0 : i32, i32
  }
  func.func @transform_2(%arg0: i32) -> (i32, i32) {
    %c0_i32 = arith.constant 0 : i32
    %c0_i32_0 = arith.constant 0 : i32
    %c0_i32_1 = arith.constant 0 : i32
    return %c0_i32, %c0_i32_0 : i32, i32
  }
  func.func @transform_3(%arg0: i32) -> (i32, i32) {
    %c0_i32 = arith.constant 0 : i32
    %c0_i32_0 = arith.constant 0 : i32
    %c0_i32_1 = arith.constant 0 : i32
    return %c0_i32, %c0_i32_0 : i32, i32
  }
  func.func @transform_4(%arg0: i32) -> (i32, i32) {
    %c0_i32 = arith.constant 0 : i32
    %c0_i32_0 = arith.constant 0 : i32
    %c0_i32_1 = arith.constant 0 : i32
    return %c0_i32, %c0_i32_0 : i32, i32
  }
  func.func @transform_5(%arg0: i32) -> (i32, i32) {
    %c0_i32 = arith.constant 0 : i32
    %c0_i32_0 = arith.constant 0 : i32
    return %arg0, %c0_i32 : i32, i32
  }
}

</mosaic_0001>

<bundles_post_ra>
// kernel: tpu_custom_call.1
= control target key start
LH: loop header
LB: loop body
LE: loop exit
PB: predicated region body
PF: predicated region fallthrough
CT: control target
= control target key end

     0   :  { %10 = vsyncpa [#allocation3], 0  ;;  %s18444_s0 = inlined_call_operand.hbm [shape: f32[512,384], index: 0, kind: input, shape index: {}]   ;;  %s18445_s1 = inlined_call_operand.hbm [shape: bf16[384,1536], index: 1, kind: input, shape index: {}]   ;;  %s18446_s2 = inlined_call_operand.hbm [shape: f32[1,1536], index: 2, kind: input, shape index: {}]   ;;  %s18447_s3 = inlined_call_operand.hbm [shape: bf16[1536,384], index: 3, kind: input, shape index: {}]   ;;  %s18448_s4 = inlined_call_operand.hbm [shape: f32[1,384], index: 4, kind: input, shape index: {}]   ;;  %s18449_s5 = inlined_call_operand.hbm [shape: f32[512,384], index: 5, kind: output, shape index: {}]  }
   0x1   :  { %12 = vsyncpa [#allocation3 + $0x1], 0 }
   0x2   :  { %13 = vsyncpa [#allocation6], 0 }
   0x3   :  { %14 = vsyncpa [#allocation9], 0 }
   0x4   :  { %15 = vsyncpa [#allocation4], 0 }
   0x5   :  { %17 = vsyncpa [#allocation4 + $0x1], 0  ;;  %s15535_s18 = smov 0   ;;  %s15537_s19 = smov 0  }
   0x6   :  { %s15539_s20 = smov 0   ;;  %s15541_s21 = smov 0  }
   0x7 LB: > { %s15556_s22 = sadd.s32 4294967295, %s15488_s21   ;;  %s11120_s23 = sadd.s32 4294967294, %s15488_s21   ;;  %s15488_s21 = sphi %s15541_s21, %s19038_s21   ;;  %s15484_s20 = sphi %s15539_s20, %s19037_s20   ;;  %s15480_s19 = sphi %s15537_s19, %s19036_s19   ;;  %s15476_s18 = sphi %s15535_s18, %s19035_s18  }
   0x8   : > { %p43_p0 = scmp.ne.s32.totalorder %s15480_s19, %s15476_s18  ;;  %p18450_p1 = scmp.eq.s32.totalorder %s15556_s22, 0 }
   0x9   : > { %p157_p3 = scmp.eq.s32.totalorder %s11120_s23, 1  ;;  %p11121_p5 = scmp.ge.s32.totalorder %s15488_s21, 1 }
   0xa   : > { %p15565_p4 = por %p18450_p1, %p43_p0  ;;  %p164_p7 = scmp.lt.s32.totalorder %s15488_s21, 3 }
   0xb   : > { %p15570_p6 = por %p157_p3, %p43_p0  ;;  %s15490_s27 = smov [#allocation5]  }
   0xc   : > { %s18633_s24 = scalar_select %p15565_p4, 1, 0 }
   0xd   : > { %s18634_s25 = scalar_select %p15570_p6, 1, 0 }
   0xe   : > { %p15575_p8 = pnand %p11121_p5, %p164_p7  ;;  %s176_s28 = sshll.u32 %s15490_s27, 4  ;;  %s15579_s28 = int_to_ptr.vmem [resolvable:$true] %s176_s28 }
   0xf   : > { %s15491_s30 = smov [#allocation8]   ;;  %s15272_s9 = scalar_lea.hbm %s18445_s1, 36864 }
  0x10   : > { %s18635_s26 = scalar_select %p15575_p8, 1, 0 }
  0x11   : > { %p14412_p9 = pneg %p15575_p8  ;;  %s200_s6 = sshll.u32 %s15491_s30, 4  ;;  %s15590_s6 = int_to_ptr.vmem [resolvable:$true] %s200_s6 }
  0x12   : > { %p15273_p12 = scmp.ne.s32.totalorder %s18445_s1, %s15272_s9  ;;  %p15279_p5 = scmp.lt.u32.totalorder %s15272_s9, %s18445_s1 }
  0x13   : > { %p15586_p11 = pnand %p14412_p9, %p18450_p1 }
  0x15   : > { %p15600_p13 = pneg %p15586_p11 }
  0x17   : > { %p15275_p0 = pnand %p15600_p13, %p15273_p12 }
  0x19   : > { %p15276_p3 = pneg %p15275_p0 }
  0x1b   : > { %p15281_p7 = pnand %p15279_p5, %p15276_p3 }
  0x1d   : > { %15284 = shalt.err (!%p15281_p7)
}
  0x1e   : > { %s15285_s15 = scalar_lea.vmem %s15579_s28, 36864  ;;  %p15293_p2 = scmp.lt.s32.totalorder %s15579_s28, %s15579_s28 }
  0x1f   : > { %p15286_p9 = scmp.ne.s32.totalorder %s15579_s28, %s15285_s15  ;;  %p15294_p6 = scmp.lt.s32.totalorder %s15285_s15, %s15285_s15 }
  0x21   : > { %p15288_p10 = pnand %p15286_p9, %p15600_p13  ;;  %p15295_p12 = por %p15294_p6, %p15293_p2 }
  0x23   : > { %p15289_p1 = pneg %p15288_p10 }
  0x25   : > { %p15296_p0 = pnand %p15295_p12, %p15289_p1 }
  0x27   : > { %15299 = shalt.err (!%p15296_p0)
}
  0x28   : > { %s15492_s16 = smov 768   ;;  %s15493_s17 = smov 48  }
  0x29   : > { %14415 = dma.hbm_to_vmem [thread:$0]  (!%p15586_p11), %s18445_s1, 36864, %s15579_s28, [#allocation6], %s15492_s16, %s15492_s16, %s15493_s17  }
  0x2a   : > { %s15300_s8 = scalar_lea.hbm %s18447_s3, 36864 }
  0x2b   : > { %p15301_p2 = scmp.ne.s32.totalorder %s18447_s3, %s15300_s8  ;;  %p15307_p10 = scmp.lt.u32.totalorder %s15300_s8, %s18447_s3 }
  0x2d   : > { %p15303_p1 = pnand %p15301_p2, %p15600_p13 }
  0x2f   : > { %p15304_p6 = pneg %p15303_p1 }
  0x31   : > { %p15309_p3 = pnand %p15307_p10, %p15304_p6 }
  0x33   : > { %15312 = shalt.err (!%p15309_p3)
}
  0x34   : > { %s15313_s28 = scalar_lea.vmem %s15590_s6, 36864  ;;  %p15321_p12 = scmp.lt.s32.totalorder %s15590_s6, %s15590_s6 }
  0x35   : > { %p15314_p5 = scmp.ne.s32.totalorder %s15590_s6, %s15313_s28  ;;  %p15322_p0 = scmp.lt.s32.totalorder %s15313_s28, %s15313_s28 }
  0x37   : > { %p15316_p7 = pnand %p15314_p5, %p15600_p13  ;;  %p15323_p2 = por %p15322_p0, %p15321_p12 }
  0x39   : > { %p15317_p9 = pneg %p15316_p7 }
  0x3b   : > { %p15324_p1 = pnand %p15323_p2, %p15317_p9 }
  0x3d   : > { %15327 = shalt.err (!%p15324_p1)
}
  0x3e   : > { %s15494_s14 = smov 192   ;;  %s15495_s15 = smov 12  }
  0x3f   : > { %14421 = dma.hbm_to_vmem [thread:$0]  (!%p15586_p11), %s18447_s3, 36864, %s15590_s6, [#allocation9], %s15494_s14, %s15494_s14, %s15495_s15  }
  0x40   : > { %s15496_s23 = smov [#allocation7]   ;;  %s15497_s30 = smov [#allocation10]  }
  0x41   : > { %s190_s27 = sshll.u32 %s15496_s23, 4  ;;  %s214_s7 = sshll.u32 %s15497_s30, 4  ;;  %s191_s27 = int_to_ptr.vmem [resolvable:$true] %s190_s27  ;;  %s15644_s7 = int_to_ptr.vmem [resolvable:$true] %s214_s7 }
  0x42   : > { %s15328_s10 = scalar_lea.hbm %s18446_s2, 192 }
  0x43   : > { %p15329_p6 = scmp.ne.s32.totalorder %s18446_s2, %s15328_s10  ;;  %p15335_p5 = scmp.lt.u32.totalorder %s15328_s10, %s18446_s2 }
  0x45   : > { %p15331_p10 = pnand %p15329_p6, %p15600_p13 }
  0x47   : > { %p15332_p3 = pneg %p15331_p10 }
  0x49   : > { %p15337_p7 = pnand %p15335_p5, %p15332_p3 }
  0x4b   : > { %15340 = shalt.err (!%p15337_p7)
}
  0x4c   : > { %s15341_s14 = scalar_lea.vmem %s191_s27, 192  ;;  %p15349_p2 = scmp.lt.s32.totalorder %s191_s27, %s191_s27 }
  0x4d   : > { %p15342_p9 = scmp.ne.s32.totalorder %s191_s27, %s15341_s14  ;;  %p15350_p1 = scmp.lt.s32.totalorder %s15341_s14, %s15341_s14 }
  0x4f   : > { %p15344_p12 = pnand %p15342_p9, %p15600_p13  ;;  %p15351_p4 = por %p15350_p1, %p15349_p2 }
  0x51   : > { %p15345_p0 = pneg %p15344_p12 }
  0x53   : > { %p15352_p8 = pnand %p15351_p4, %p15345_p0 }
  0x55   : > { %15355 = shalt.err (!%p15352_p8)
}
  0x56   : > { %14418 = dma.hbm_to_vmem [thread:$0]  (!%p15586_p11), %s18446_s2, 192, %s191_s27, [#allocation6]  }
  0x57   : > { %s15356_s30 = scalar_lea.hbm %s18448_s4, 48 }
  0x58   : > { %p15357_p6 = scmp.ne.s32.totalorder %s18448_s4, %s15356_s30  ;;  %p15363_p4 = scmp.lt.u32.totalorder %s15356_s30, %s18448_s4 }
  0x5a   : > { %p15359_p10 = pnand %p15357_p6, %p15600_p13 }
  0x5c   : > { %p15360_p3 = pneg %p15359_p10 }
  0x5e   : > { %p15365_p8 = pnand %p15363_p4, %p15360_p3 }
  0x60   : > { %15368 = shalt.err (!%p15365_p8)
}
  0x61   : > { %s15369_s27 = scalar_lea.vmem %s15644_s7, 48  ;;  %s15376_s13 = scalar_lea.vmem %s15644_s7, 64 }
  0x62   : > { %p15370_p5 = scmp.ne.s32.totalorder %s15644_s7, %s15369_s27  ;;  %p15377_p12 = scmp.lt.s32.totalorder %s15644_s7, %s15644_s7 }
  0x63   : > { %p15378_p0 = scmp.lt.s32.totalorder %s15376_s13, %s15369_s27 }
  0x64   : > { %p15372_p7 = pnand %p15370_p5, %p15600_p13 }
  0x65   : > { %p15379_p2 = por %p15378_p0, %p15377_p12 }
  0x66   : > { %p15373_p9 = pneg %p15372_p7 }
  0x68   : > { %p15380_p1 = pnand %p15379_p2, %p15373_p9 }
  0x6a   : > { %15383 = shalt.err (!%p15380_p1)
}
  0x6b   : > { %14424 = dma.hbm_to_vmem [thread:$0]  (!%p15586_p11), %s18448_s4, 48, %s15644_s7, [#allocation9]  }
  0x6c   : > { %s15689_s12 = sadd.s32 1, %s15488_s21   ;;  %s30_s14 = sadd.s32 1, %s15484_s20 }
  0x6d   : > { %s27_s29 = ssub.s32 %s15488_s21, %s15689_s12  ;;  %p37_p6 = scmp.ne.s32.totalorder %s15484_s20, %s15480_s19 }
  0x6e   : > { %p28_p13 = scmp.eq.s32.totalorder %s27_s29, 0  ;;  %p38_p10 = scmp.eq.s32.totalorder %s15488_s21, 0 }
  0x6f   : > { %p18638_p4 = scmp.eq.s32.totalorder %s15556_s22, 1  ;;  %p14437_p5 = scmp.lt.s32.totalorder %s15488_s21, 2 }
  0x70   : > { %s15698_s15 = scalar_select %p28_p13, %s15484_s20, %s30_s14  }
  0x71   : > { %p39_p3 = por %p38_p10, %p37_p6  ;;  %p15702_p8 = por %p18638_p4, %p37_p6 }
  0x72   : > { %s225_s17 = sand.u32 1, %s15484_s20   ;;  %s14389_s7 = smul.u32 12288, %s15488_s21 }
  0x73   : > { %s14388_s23 = smul.u32 768, %s225_s17  ;;  %p15709_p11 = pnand %p14437_p5, %p39_p3 }
  0x74   : > { %s15716_s10 = scalar_lea.hbm %s18444_s0, %s14389_s7  ;;  %s15720_s13 = scalar_lea.sflag [#allocation3], %s225_s17 }
  0x75   : > { %s229_s11 = scalar_lea.vmem [#allocation2], %s14388_s23  ;;  %s15384_s28 = scalar_lea.hbm %s15716_s10, 12288 }
  0x76   : > { %s237_s27 = sshll.u32 %s229_s11, 4  ;;  %p15385_p7 = scmp.ne.s32.totalorder %s15716_s10, %s15384_s28  ;;  %s15718_s27 = int_to_ptr.vmem [resolvable:$true] %s237_s27 }
  0x77   : > { %p15386_p9 = pneg %p15709_p11  ;;  %s15389_s14 = scalar_lea.hbm %s18444_s0, 24576 }
  0x78   : > { %p15390_p2 = scmp.lt.u32.totalorder %s15716_s10, %s18444_s0  ;;  %p15391_p1 = scmp.lt.u32.totalorder %s15389_s14, %s15384_s28 }
  0x79   : > { %p15387_p12 = pnand %p15386_p9, %p15385_p7  ;;  %p15393_p6 = scmp.lt.u32.totalorder %s15384_s28, %s15716_s10 }
  0x7a   : > { %p15392_p13 = por %p15391_p1, %p15390_p2 }
  0x7b   : > { %p15388_p0 = pneg %p15387_p12 }
  0x7c   : > { %p15394_p10 = por %p15393_p6, %p15392_p13 }
  0x7e   : > { %p15395_p3 = pnand %p15394_p10, %p15388_p0 }
  0x80   : > { %15398 = shalt.err (!%p15395_p3)
}
  0x81   : > { %s15399_s17 = scalar_lea.vmem %s15718_s27, 12288  ;;  %s15498_s23 = smov [#allocation2]  }
  0x82   : > { %p15400_p4 = scmp.ne.s32.totalorder %s15718_s27, %s15399_s17  ;;  %s15404_s9 = sshll.u32 %s15498_s23, 4  ;;  %s15405_s9 = int_to_ptr.vmem [resolvable:$false] %s15404_s9 }
  0x83   : > { %s15406_s11 = scalar_lea.vmem %s15405_s9, 24576  ;;  %p15407_p12 = scmp.lt.s32.totalorder %s15718_s27, %s15405_s9 }
  0x84   : > { %p15402_p5 = pnand %p15400_p4, %p15386_p9  ;;  %p15408_p2 = scmp.lt.s32.totalorder %s15406_s11, %s15399_s17 }
  0x86   : > { %p15403_p7 = pneg %p15402_p5  ;;  %p15409_p1 = por %p15408_p2, %p15407_p12 }
  0x88   : > { %p15410_p13 = pnand %p15409_p1, %p15403_p7 }
  0x8a   : > { %15413 = shalt.err (!%p15410_p13)
}
  0x8b   : > { %s15499_s28 = smov 384   ;;  %s15500_s6 = smov 24  }
  0x8c   : > { %14428 = dma.hbm_to_vmem [thread:$0]  (!%p15709_p11), %s15716_s10, 12288, %s15718_s27, %s15720_s13, %s15499_s28, %s15499_s28, %s15500_s6  }
  0x8d   : > { %p18641_p9 = scmp.ne.s32.totalorder %s18635_s26, 0 }
  0x8f   : > { %249 = sbr.rel (%p18641_p9) target bundleno = 2509 (0x9cd), region = 40 }
  0x96   : > { %s15751_s29 = sand.u32 1, %s15480_s19   ;;  %p18642_p0 = scmp.ne.s32.totalorder %s18633_s24, 0 }
  0x97   : > { %s14390_s14 = smul.u32 768, %s15751_s29  ;;  %s252_s7 = scalar_lea.sflag [#allocation3], %s15751_s29 }
  0x99   : > { %s15757_s8 = scalar_lea.vmem [#allocation2], %s14390_s14 }
  0x9a   : > { %15459 = dma.done.wait (%p18642_p0), %s252_s7, 12288  }
  0x9b   : > { %15461 = vsyncadd (%p18642_p0), %s252_s7, 4294955008  ;;  %p18643_p11 = scmp.eq.s32.totalorder %s15556_s22, 0 }
  0x9d   : > { %15463 = dma.done.wait (%p18643_p11), [#allocation6], 37056   ;;  %p18644_p6 = pmov %p18643_p11 }
  0x9f   : > { %15465 = vsyncadd (%p18644_p6), [#allocation6], 4294930240  ;;  %p18645_p10 = pmov %p18644_p6 }
  0xa0   : > { %p18646_p3 = pmov %p18644_p6 }
  0xa1   : > { %15467 = dma.done.wait (%p18645_p10), [#allocation9], 36912  }
  0xa2   : > { %15469 = vsyncadd (%p18646_p3), [#allocation9], 4294930384  ;;  %v14488_v0 = vld [vmem:[#allocation5 + $0x4] ss:$48 sps:$4 sm:$0xff]   ;;  %v15771_v1 = vld [vmem:[#allocation5 + $0x308] ss:$48 sps:$4 sm:$0xff]  }
  0xa3   : > { %942 = vmatprep.subr.bf16.mxu0 %v14488_v0  ;;  %v14491_v2 = vld [vmem:[#allocation5] ss:$48 sps:$4 sm:$0xff]   ;;  %13188 = vmatprep.subr.bf16.mxu1 %v15771_v1  ;;  %v14492_v3 = vld [vmem:[#allocation5 + $0x8] ss:$48 sps:$4 sm:$0xff]   ;;  %v14493_v4 = vld [vmem:[#allocation5 + $0x64] ss:$48 sps:$4 sm:$0xff]  }
  0xa4   : > { %943 = vmatpush1.bf16.msra.mxu0 %v14491_v2  ;;  %13196 = vmatpush3.bf16.msra.mxu1 %v14492_v3  ;;  %v14495_v5 = vld [vmem:[#allocation5 + $0x368] ss:$48 sps:$4 sm:$0xff]   ;;  %v14496_v6 = vld [vmem:[#allocation5 + $0x60] ss:$48 sps:$4 sm:$0xff]   ;;  %v14498_v8 = vld [vmem:[#allocation5 + $0xc4] ss:$48 sps:$4 sm:$0xff]  }
  0xa5   : > { %944 = vmatprep.subr.bf16.mxu0 %v14493_v4  ;;  %v14497_v7 = vld [vmem:[#allocation5 + $0x68] ss:$48 sps:$4 sm:$0xff]   ;;  %13189 = vmatprep.subr.bf16.mxu1 %v14495_v5  ;;  %v14501_v10 = vld [vmem:[#allocation5 + $0xc0] ss:$48 sps:$4 sm:$0xff]   ;;  %v14503_v12 = vld [vmem:[#allocation5 + $0x124] ss:$48 sps:$4 sm:$0xff]  }
  0xa6   : > { %v14500_v9 = vld [vmem:[#allocation5 + $0x3c8] ss:$48 sps:$4 sm:$0xff]   ;;  %v14506_v14 = vld [vmem:[#allocation5 + $0x120] ss:$48 sps:$4 sm:$0xff]   ;;  %v14508_v16 = vld [vmem:[#allocation5 + $0x184] ss:$48 sps:$4 sm:$0xff]  }
  0xa7   : > { %v14502_v11 = vld [vmem:[#allocation5 + $0xc8] ss:$48 sps:$4 sm:$0xff]   ;;  %v14511_v18 = vld [vmem:[#allocation5 + $0x180] ss:$48 sps:$4 sm:$0xff]   ;;  %v14513_v20 = vld [vmem:[#allocation5 + $0x1e4] ss:$48 sps:$4 sm:$0xff]  }
  0xa8   : > { %945 = vmatpush1.bf16.msra.mxu0 %v14496_v6  ;;  %13197 = vmatpush3.bf16.msra.mxu1 %v14497_v7  ;;  %v14505_v13 = vld [vmem:[#allocation5 + $0x428] ss:$48 sps:$4 sm:$0xff]   ;;  %v14516_v22 = vld [vmem:[#allocation5 + $0x1e0] ss:$48 sps:$4 sm:$0xff]   ;;  %v14518_v24 = vld [vmem:[#allocation5 + $0x244] ss:$48 sps:$4 sm:$0xff]  }
  0xa9   : > { %946 = vmatprep.subr.bf16.mxu0 %v14498_v8  ;;  %13190 = vmatprep.subr.bf16.mxu1 %v14500_v9  ;;  %v14507_v15 = vld [vmem:[#allocation5 + $0x128] ss:$48 sps:$4 sm:$0xff]   ;;  %v14521_v26 = vld [vmem:[#allocation5 + $0x240] ss:$48 sps:$4 sm:$0xff]   ;;  %v14523_v28 = vld [vmem:[#allocation5 + $0x2a4] ss:$48 sps:$4 sm:$0xff]  }
  0xaa   : > { %v14510_v17 = vld [vmem:[#allocation5 + $0x488] ss:$48 sps:$4 sm:$0xff]   ;;  %v14526_v30 = vld [vmem:[#allocation5 + $0x2a0] ss:$48 sps:$4 sm:$0xff]   ;;  %v14528_v35 = vld [vmem:[#allocation5 + $0x304] ss:$48 sps:$4 sm:$0xff]  }
  0xab   : > { %v14512_v19 = vld [vmem:[#allocation5 + $0x188] ss:$48 sps:$4 sm:$0xff]   ;;  %v341_v32 = vld [vmem:[%s15757_s8 + $0x140] sm:$0xff]  ;;  %v347_v39 = vld [vmem:[%s15757_s8 + $0x170] sm:$0xff]  ;;  %s18171_s24 = scalar_lea.vmem [#allocation11], %s14390_s14  ;;  %s14391_s26 = smul.u32 12288, %s15556_s22 }
  0xac   : > { %947 = vmatpush1.bf16.msra.mxu0 %v14501_v10  ;;  %13198 = vmatpush3.bf16.msra.mxu1 %v14502_v11  ;;  %v14515_v21 = vld [vmem:[#allocation5 + $0x4e8] ss:$48 sps:$4 sm:$0xff]   ;;  %v337_v36 = vld [vmem:[%s15757_s8 + $0x120] sm:$0xff]  ;;  %v343_v46 = vld [vmem:[%s15757_s8 + $0x150] sm:$0xff]  ;;  %s11009_s30 = sshll.u32 %s18171_s24, 4  ;;  %s10995_s22 = scalar_lea.sflag [#allocation4], %s15751_s29  ;;  %s18396_s30 = int_to_ptr.vmem [resolvable:$true] %s11009_s30 }
  0xad   : > { %948 = vmatprep.subr.bf16.mxu0 %v14503_v12  ;;  %13191 = vmatprep.subr.bf16.mxu1 %v14505_v13  ;;  %v14517_v23 = vld [vmem:[#allocation5 + $0x1e8] ss:$48 sps:$4 sm:$0xff]   ;;  %v14530_v41 = vld [vmem:[#allocation5 + $0x300] ss:$48 sps:$4 sm:$0xff]   ;;  %v14531_v42 = vld [vmem:[#allocation5 + $0x364] ss:$48 sps:$4 sm:$0xff]   ;;  %s18394_s13 = scalar_lea.hbm %s18449_s5, %s14391_s26 }
  0xae   : > { %v14520_v25 = vld [vmem:[#allocation5 + $0x548] ss:$48 sps:$4 sm:$0xff]   ;;  %v14533_v44 = vld [vmem:[#allocation5 + $0x360] ss:$48 sps:$4 sm:$0xff]   ;;  %v14534_v45 = vld [vmem:[#allocation5 + $0x3c4] ss:$48 sps:$4 sm:$0xff]  }
  0xaf   : > { %v14522_v27 = vld [vmem:[#allocation5 + $0x248] ss:$48 sps:$4 sm:$0xff]   ;;  %v353_v49 = vld [vmem:[%s15757_s8 + $0x1a0] sm:$0xff]  ;;  %v359_v62 = vld [vmem:[%s15757_s8 + $0x1d0] sm:$0xff]  ;;  %s15414_s17 = scalar_lea.vmem %s18396_s30, 12288  ;;  %s15502_s23 = smov [#allocation11]  }
  0xb0   : > { %949 = vmatpush1.bf16.msra.mxu0 %v14506_v14  ;;  %13199 = vmatpush3.bf16.msra.mxu1 %v14507_v15  ;;  %v14525_v29 = vld [vmem:[#allocation5 + $0x5a8] ss:$48 sps:$4 sm:$0xff]   ;;  %v14536_v51 = vld [vmem:[#allocation5 + $0x3c0] ss:$48 sps:$4 sm:$0xff]   ;;  %v14537_v52 = vld [vmem:[#allocation5 + $0x424] ss:$48 sps:$4 sm:$0xff]   ;;  %p15415_p4 = scmp.ne.s32.totalorder %s18396_s30, %s15414_s17 }
  0xb1   : > { %950 = vmatprep.subr.bf16.mxu0 %v14508_v16  ;;  %13192 = vmatprep.subr.bf16.mxu1 %v14510_v17  ;;  %v338_v31 = vld [vmem:[%s15757_s8 + $0x128] sm:$0xff]  ;;  %v340_v37 = vld [vmem:[%s15757_s8 + $0x138] sm:$0xff]  ;;  %v305_v55 = vld [vmem:[%s15757_s8 + $0x20] sm:$0xff]  ;;  %s15418_s9 = sshll.u32 %s15502_s23, 4  ;;  %s15419_s9 = int_to_ptr.vmem [resolvable:$false] %s15418_s9 }
  0xb2   : > { %v14527_v33 = vld [vmem:[#allocation5 + $0x2a8] ss:$48 sps:$4 sm:$0xff]   ;;  %v15776_v34 = vpack.c.bf16 %v341_v32, %v338_v31  ;;  %v15783_v40 = vpack.c.bf16 %v340_v37, %v337_v36  ;;  %v14539_v56 = vld [vmem:[#allocation5 + $0x420] ss:$48 sps:$4 sm:$0xff]   ;;  %v14540_v57 = vld [vmem:[#allocation5 + $0x484] ss:$48 sps:$4 sm:$0xff]   ;;  %p15416_p5 = pnand %p15415_p4, %p15702_p8  ;;  %p15421_p12 = scmp.lt.s32.totalorder %s18396_s30, %s15419_s9 }
  0xb3   : > { %v344_v38 = vld [vmem:[%s15757_s8 + $0x158] sm:$0xff]  ;;  %v346_v47 = vld [vmem:[%s15757_s8 + $0x168] sm:$0xff]  ;;  %v349_v59 = vld [vmem:[%s15757_s8 + $0x180] sm:$0xff]  ;;  %s15420_s11 = scalar_lea.vmem %s15419_s9, 24576 }
  0xb4   : > { %951 = vmatpush1.bf16.msra.mxu0 %v14511_v18  ;;  %13200 = vmatpush3.bf16.msra.mxu1 %v14512_v19  ;;  %18647 = vst [vmem:[#allocation16_spill] sm:$0xff] %v15776_v34  ;;  %18648 = vst [vmem:[#allocation17_spill] sm:$0xff] %v15783_v40  ;;  %v15785_v43 = vpack.c.bf16 %v347_v39, %v344_v38  ;;  %v350_v48 = vld [vmem:[%s15757_s8 + $0x188] sm:$0xff]  ;;  %v15793_v50 = vpack.c.bf16 %v346_v47, %v343_v46  ;;  %v352_v60 = vld [vmem:[%s15757_s8 + $0x198] sm:$0xff]  ;;  %p15417_p7 = pneg %p15416_p5  ;;  %p15422_p2 = scmp.lt.s32.totalorder %s15420_s11, %s15414_s17 }
  0xb5   : > { %952 = vmatprep.subr.bf16.mxu0 %v14513_v20  ;;  %13193 = vmatprep.subr.bf16.mxu1 %v14515_v21  ;;  %v15795_v53 = vpack.c.bf16 %v353_v49, %v350_v48  ;;  %v302_v54 = vld [vmem:[%s15757_s8 + $0x8] sm:$0xff]  ;;  %v356_v61 = vld [vmem:[%s15757_s8 + $0x1b8] sm:$0xff]  ;;  %v15808_v63 = vpack.c.bf16 %v352_v60, %v349_v59  ;;  %v14542_v0 = vld [vmem:[#allocation5 + $0x480] ss:$48 sps:$4 sm:$0xff]  }
  0xb6   : > { %1408 = vmatprep.mubr.bf16.mxu1 %v15776_v34  ;;  %18649 = vst [vmem:[#allocation18_spill] sm:$0xff] %v15785_v43  ;;  %18650 = vst [vmem:[#allocation19_spill] sm:$0xff] %v15793_v50  ;;  %v15800_v58 = vpack.c.bf16 %v305_v55, %v302_v54  ;;  %v14543_v2 = vld [vmem:[#allocation5 + $0x4e4] ss:$48 sps:$4 sm:$0xff]   ;;  %v15810_v3 = vpack.c.bf16 %v359_v62, %v356_v61  ;;  %v14545_v4 = vld [vmem:[#allocation5 + $0x4e0] ss:$48 sps:$4 sm:$0xff]   ;;  %p15423_p1 = por %p15422_p2, %p15421_p12 }
  0xb7   : > { %18651 = vst [vmem:[#allocation20_spill] sm:$0xff] %v15795_v53  ;;  %18653 = vst [vmem:[#allocation22_spill] sm:$0xff] %v15808_v63  ;;  %v14546_v5 = vld [vmem:[#allocation5 + $0x544] ss:$48 sps:$4 sm:$0xff]   ;;  %v358_v7 = vld [vmem:[%s15757_s8 + $0x1c8] sm:$0xff] }
  0xb8   : > { %953 = vmatpush1.bf16.msra.mxu0 %v14516_v22  ;;  %13201 = vmatpush3.bf16.msra.mxu1 %v14517_v23  ;;  %18652 = vst [vmem:[#allocation21_spill] sm:$0xff] %v15800_v58  ;;  %18654 = vst [vmem:[#allocation23_spill] sm:$0xff] %v15810_v3  ;;  %v355_v6 = vld [vmem:[%s15757_s8 + $0x1b0] sm:$0xff]  ;;  %v362_v8 = vld [vmem:[%s15757_s8 + $0x1e8] sm:$0xff]  ;;  %p15424_p13 = pnand %p15423_p1, %p15417_p7 }
  0xb9   : > { %954 = vmatprep.subr.bf16.mxu0 %v14518_v24  ;;  %13194 = vmatprep.subr.bf16.mxu1 %v14520_v25  ;;  %v365_v9 = vld [vmem:[%s15757_s8 + $0x200] sm:$0xff]  ;;  %v14558_v10 = vld [vmem:[#allocation5 + $0x608] ss:$48 sps:$4 sm:$0xff]   ;;  %v15818_v12 = vpack.c.bf16 %v358_v7, %v355_v6  ;;  %v311_v24 = vld [vmem:[%s15757_s8 + $0x50] sm:$0xff] }
  0xba   : > { %974 = vmatprep.mubr.bf16.mxu0 %v15800_v58  ;;  %v14559_v11 = vld [vmem:[#allocation5 + $0x668] ss:$48 sps:$4 sm:$0xff]   ;;  %v14548_v13 = vld [vmem:[#allocation5 + $0x540] ss:$48 sps:$4 sm:$0xff]   ;;  %v14549_v14 = vld [vmem:[#allocation5 + $0x5a4] ss:$48 sps:$4 sm:$0xff]   ;;  %v15820_v15 = vpack.c.bf16 %v365_v9, %v362_v8 }
  0xbb   : > { %18655 = vst [vmem:[#allocation24_spill] sm:$0xff] %v15818_v12  ;;  %v14551_v16 = vld [vmem:[#allocation5 + $0x5a0] ss:$48 sps:$4 sm:$0xff]   ;;  %v304_v18 = vld [vmem:[%s15757_s8 + $0x18] sm:$0xff]  ;;  %v14554_v20 = vld [vmem:[#allocation5 + $0x604] ss:$48 sps:$4 sm:$0xff]  }
  0xbc   : > { %955 = vmatpush1.bf16.msra.mxu0 %v14521_v26  ;;  %13202 = vmatpush3.bf16.msra.mxu1 %v14522_v27  ;;  %18656 = vst [vmem:[#allocation25_spill] sm:$0xff] %v15820_v15  ;;  %v301_v17 = vld [vmem:[%s15757_s8] sm:$0xff]  ;;  %v14560_v19 = vld [vmem:[#allocation5 + $0x6c8] ss:$48 sps:$4 sm:$0xff]   ;;  %v371_v26 = vld [vmem:[%s15757_s8 + $0x230] sm:$0xff] }
  0xbd   : > { %956 = vmatprep.subr.bf16.mxu0 %v14523_v28  ;;  %13195 = vmatprep.subr.bf16.mxu1 %v14525_v29  ;;  %v361_v21 = vld [vmem:[%s15757_s8 + $0x1e0] sm:$0xff]  ;;  %v364_v22 = vld [vmem:[%s15757_s8 + $0x1f8] sm:$0xff]  ;;  %v15832_v27 = vpack.c.bf16 %v304_v18, %v301_v17  ;;  %v367_v37 = vld [vmem:[%s15757_s8 + $0x210] sm:$0xff] }
  0xbe   : > { %v308_v23 = vld [vmem:[%s15757_s8 + $0x38] sm:$0xff]  ;;  %v14552_v29 = vld [vmem:[#allocation5 + $0x600] ss:$48 sps:$4 sm:$0xff]   ;;  %v14557_v36 = vld [vmem:[#allocation5 + $0x664] ss:$48 sps:$4 sm:$0xff]  }
  0xbf   : > { %v368_v25 = vld [vmem:[%s15757_s8 + $0x218] sm:$0xff]  ;;  %18657 = vst [vmem:[#allocation26_spill] sm:$0xff] %v15832_v27  ;;  %v15836_v31 = vpack.c.bf16 %v311_v24, %v308_v23  ;;  %v370_v38 = vld [vmem:[%s15757_s8 + $0x228] sm:$0xff]  ;;  %v377_v47 = vld [vmem:[%s15757_s8 + $0x260] sm:$0xff] }
  0xc0   : > { %957 = vmatpush1.bf16.msra.mxu0 %v14526_v30  ;;  %13203 = vmatpush3.bf16.msra.mxu1 %v14527_v33  ;;  %v14561_v28 = vld [vmem:[#allocation5 + $0x728] ss:$48 sps:$4 sm:$0xff]   ;;  %v15834_v30 = vpack.c.bf16 %v364_v22, %v361_v21  ;;  %v15838_v32 = vpack.c.bf16 %v371_v26, %v368_v25  ;;  %v307_v33 = vld [vmem:[%s15757_s8 + $0x30] sm:$0xff]  ;;  %v373_v60 = vld [vmem:[%s15757_s8 + $0x240] sm:$0xff] }
  0xc1   : > { %958 = vmatprep.subr.bf16.mxu0 %v14528_v35  ;;  %12804 = vmatprep.subr.bf16.mxu1 %v14558_v10  ;;  %18659 = vst [vmem:[#allocation28_spill] sm:$0xff] %v15836_v31  ;;  %v310_v35 = vld [vmem:[%s15757_s8 + $0x48] sm:$0xff]  ;;  %v14562_v55 = vld [vmem:[#allocation5 + $0x6c0] ss:$48 sps:$4 sm:$0xff]   ;;  %v14571_v59 = vld [vmem:[#allocation5 + $0x724] ss:$48 sps:$4 sm:$0xff]  }
  0xc2   : > { %18658 = vst [vmem:[#allocation27_spill] sm:$0xff] %v15834_v30  ;;  %18660 = vst [vmem:[#allocation29_spill] sm:$0xff] %v15838_v32  ;;  %v314_v39 = vld [vmem:[%s15757_s8 + $0x68] sm:$0xff]  ;;  %v15852_v48 = vpack.c.bf16 %v310_v35, %v307_v33  ;;  %v376_v62 = vld [vmem:[%s15757_s8 + $0x258] sm:$0xff] }
  0xc3   : > { %1409 = vmatmul.mubr.bf16.vlgmr.msra.gmra.mrb[0].mxu1 %v15783_v40  ;;  %v374_v46 = vld [vmem:[%s15757_s8 + $0x248] sm:$0xff]  ;;  %v383_v6 = vld [vmem:[%s15757_s8 + $0x290] sm:$0xff]  ;;  %v15874_v9 = vpack.c.bf16 %v376_v62, %v373_v60  ;;  %v329_v22 = vld [vmem:[%s15757_s8 + $0xe0] sm:$0xff] }
  0xc4   : > { %959 = vmatpush1.bf16.msra.mxu0 %v14530_v41  ;;  %1416 = vmatprep.mubr.bf16.mxu1 %v15785_v43  ;;  %v14565_v41 = vld [vmem:[#allocation5 + $0x788] ss:$48 sps:$4 sm:$0xff]   ;;  %18661 = vst [vmem:[#allocation30_spill] sm:$0xff] %v15852_v48  ;;  %v15858_v54 = vpack.c.bf16 %v377_v47, %v374_v46  ;;  %v14574_v18 = vld [vmem:[#allocation5 + $0x10] ss:$48 sps:$4 sm:$0xff]  }
  0xc5   : > { %960 = vmatprep.subr.bf16.mxu0 %v14531_v42  ;;  %12805 = vmatpush3.bf16.msra.mxu1 %v14558_v10  ;;  %v317_v42 = vld [vmem:[%s15757_s8 + $0x80] sm:$0xff]  ;;  %v14566_v49 = vld [vmem:[#allocation5 + $0x7e8] ss:$48 sps:$4 sm:$0xff]   ;;  %18666 = vst [vmem:[#allocation35_spill] sm:$0xff] %v15874_v9 }
  0xc6   : > { %12806 = vmatprep.subr.bf16.mxu1 %v14559_v11  ;;  %18664 = vst [vmem:[#allocation33_spill] sm:$0xff] %v15858_v54  ;;  %v14567_v61 = vld [vmem:[#allocation5 + $0x848] ss:$48 sps:$4 sm:$0xff]   ;;  %v389_v24 = vld [vmem:[%s15757_s8 + $0x2c0] sm:$0xff] }
  0xc7   : > { %v14568_v8 = vld [vmem:[#allocation5 + $0x8a8] ss:$48 sps:$4 sm:$0xff]   ;;  %v325_v33 = vld [vmem:[%s15757_s8 + $0xc0] sm:$0xff] }
  0xc8   : > { %961 = vmatpush1.bf16.msra.mxu0 %v14533_v44  ;;  %v14555_v44 = vld [vmem:[#allocation5 + $0x660] ss:$48 sps:$4 sm:$0xff]   ;;  %v322_v17 = vld [vmem:[%s15757_s8 + $0xa8] sm:$0xff]  ;;  %v328_v35 = vld [vmem:[%s15757_s8 + $0xd8] sm:$0xff] }
  0xc9   : > { %962 = vmatprep.subr.bf16.mxu0 %v14534_v45  ;;  %12807 = vmatpush3.bf16.msra.mxu1 %v14559_v11  ;;  %v14564_v45 = vld [vmem:[#allocation5 + $0x6c4] ss:$48 sps:$4 sm:$0xff]   ;;  %v326_v21 = vld [vmem:[%s15757_s8 + $0xc8] sm:$0xff]  ;;  %v15912_v46 = vpack.c.bf16 %v328_v35, %v325_v33  ;;  %v14614_v60 = vld [vmem:[#allocation5 + $0x840] ss:$48 sps:$4 sm:$0xff]  }
  0xca   : > { %12808 = vmatprep.subr.bf16.mxu1 %v14560_v19  ;;  %v386_v23 = vld [vmem:[%s15757_s8 + $0x2a8] sm:$0xff]  ;;  %v324_v33 = vld [vmem:[%s15757_s8 + $0xb8] sm:$0xff]  ;;  %v14580_v35 = vld [vmem:[#allocation5 + $0xd0] ss:$48 sps:$4 sm:$0xff]  }
  0xcb   : > { %1417 = vmatmul.mubr.bf16.gmra.mrb[4].mxu1 %v15793_v50  ;;  %18673 = vst [vmem:[#allocation42_spill] sm:$0xff] %v15912_v46  ;;  %v394_v62 = vld [vmem:[%s15757_s8 + $0x2e8] sm:$0xff] }
  0xcc   : > { %963 = vmatpush1.bf16.msra.mxu0 %v14536_v51  ;;  %1424 = vmatprep.mubr.bf16.mxu1 %v15795_v53  ;;  %v15854_v51 = vpack.c.bf16 %v370_v38, %v367_v37  ;;  %v385_v37 = vld [vmem:[%s15757_s8 + $0x2a0] sm:$0xff]  ;;  %v388_v38 = vld [vmem:[%s15757_s8 + $0x2b8] sm:$0xff] }
  0xcd   : > { %964 = vmatprep.subr.bf16.mxu0 %v14537_v52  ;;  %12809 = vmatpush3.bf16.msra.mxu1 %v14560_v19  ;;  %v15856_v52 = vpack.c.bf16 %v317_v42, %v314_v39  ;;  %v379_v19 = vld [vmem:[%s15757_s8 + $0x270] sm:$0xff]  ;;  %v15914_v47 = vpack.c.bf16 %v388_v38, %v385_v37  ;;  %v330_v37 = vld [vmem:[%s15757_s8 + $0xe8] sm:$0xff] }
  0xce   : > { %12810 = vmatprep.subr.bf16.mxu1 %v14561_v28  ;;  %18662 = vst [vmem:[#allocation31_spill] sm:$0xff] %v15854_v51  ;;  %v14601_v39 = vld [vmem:[#allocation5 + $0x7e4] ss:$48 sps:$4 sm:$0xff]  }
  0xcf   : > { %18663 = vst [vmem:[#allocation32_spill] sm:$0xff] %v15856_v52  ;;  %v335_v42 = vld [vmem:[%s15757_s8 + $0x110] sm:$0xff]  ;;  %18674 = vst [vmem:[#allocation43_spill] sm:$0xff] %v15914_v47 }
  0xd0   : > { %965 = vmatpush1.bf16.msra.mxu0 %v14539_v56  ;;  %v313_v56 = vld [vmem:[%s15757_s8 + $0x60] sm:$0xff] }
  0xd1   : > { %966 = vmatprep.subr.bf16.mxu0 %v14540_v57  ;;  %12811 = vmatpush3.bf16.msra.mxu1 %v14561_v28  ;;  %v316_v57 = vld [vmem:[%s15757_s8 + $0x78] sm:$0xff]  ;;  %v15896_v28 = vpack.c.bf16 %v329_v22, %v326_v21  ;;  %v14577_v21 = vld [vmem:[#allocation5 + $0x70] ss:$48 sps:$4 sm:$0xff]  }
  0xd2   : > { %12812 = vmatprep.subr.bf16.mxu1 %v14565_v41  ;;  %v15872_v7 = vpack.c.bf16 %v316_v57, %v313_v56  ;;  %v331_v56 = vld [vmem:[%s15757_s8 + $0xf0] sm:$0xff]  ;;  %v334_v57 = vld [vmem:[%s15757_s8 + $0x108] sm:$0xff] }
  0xd3   : > { %1425 = vmatmul.mubr.bf16.gmra.mrb[8].mxu1 %v15808_v63  ;;  %18671 = vst [vmem:[#allocation40_spill] sm:$0xff] %v15896_v28 }
  0xd4   : > { %967 = vmatpush1.bf16.msra.mxu0 %v14542_v0  ;;  %1432 = vmatprep.mubr.bf16.mxu1 %v15810_v3  ;;  %v320_v0 = vld [vmem:[%s15757_s8 + $0x98] sm:$0xff]  ;;  %18665 = vst [vmem:[#allocation34_spill] sm:$0xff] %v15872_v7 }
  0xd5   : > { %968 = vmatprep.subr.bf16.mxu0 %v14543_v2  ;;  %12813 = vmatpush3.bf16.msra.mxu1 %v14565_v41  ;;  %v323_v2 = vld [vmem:[%s15757_s8 + $0xb0] sm:$0xff]  ;;  %v332_v41 = vld [vmem:[%s15757_s8 + $0xf8] sm:$0xff] }
  0xd6   : > { %12814 = vmatprep.subr.bf16.mxu1 %v14566_v49  ;;  %v15876_v10 = vpack.c.bf16 %v323_v2, %v320_v0  ;;  %v303_v0 = vld [vmem:[%s15757_s8 + $0x10] sm:$0xff]  ;;  %v306_v2 = vld [vmem:[%s15757_s8 + $0x28] sm:$0xff] }
  0xd8   : > { %969 = vmatpush1.bf16.msra.mxu0 %v14545_v4  ;;  %v14569_v4 = vld [vmem:[#allocation5 + $0x720] ss:$48 sps:$4 sm:$0xff]   ;;  %18667 = vst [vmem:[#allocation36_spill] sm:$0xff] %v15876_v10 }
  0xd9   : > { %970 = vmatprep.subr.bf16.mxu0 %v14546_v5  ;;  %v380_v5 = vld [vmem:[%s15757_s8 + $0x278] sm:$0xff]  ;;  %12815 = vmatpush3.bf16.msra.mxu1 %v14566_v49  ;;  %v15916_v49 = vpack.c.bf16 %v335_v42, %v332_v41 }
  0xda   : > { %12816 = vmatprep.subr.bf16.mxu1 %v14567_v61  ;;  %v15878_v11 = vpack.c.bf16 %v383_v6, %v380_v5  ;;  %v15934_v6 = vpack.c.bf16 %v306_v2, %v303_v0  ;;  %v14581_v42 = vld [vmem:[#allocation5 + $0x12c] ss:$48 sps:$4 sm:$0xff]  }
  0xdb   : > { %1433 = vmatmul.mubr.bf16.gmra.mrb[12].mxu1 %v15818_v12  ;;  %18675 = vst [vmem:[#allocation44_spill] sm:$0xff] %v15916_v49  ;;  %v14590_v2 = vld [vmem:[#allocation5 + $0x1ec] ss:$48 sps:$4 sm:$0xff]  }
  0xdc   : > { %971 = vmatpush1.bf16.msra.mxu0 %v14548_v13  ;;  %1440 = vmatprep.mubr.bf16.mxu1 %v15820_v15  ;;  %18668 = vst [vmem:[#allocation37_spill] sm:$0xff] %v15878_v11  ;;  %v14586_v13 = vld [vmem:[#allocation5 + $0x784] ss:$48 sps:$4 sm:$0xff]   ;;  %18679 = vst [vmem:[#allocation48_spill] sm:$0xff] %v15934_v6 }
  0xdd   : > { %972 = vmatprep.subr.bf16.mxu0 %v14549_v14  ;;  %v319_v14 = vld [vmem:[%s15757_s8 + $0x90] sm:$0xff]  ;;  %12817 = vmatpush3.bf16.msra.mxu1 %v14567_v61 }
  0xde   : > { %12818 = vmatprep.subr.bf16.mxu1 %v14568_v8  ;;  %v15892_v25 = vpack.c.bf16 %v322_v17, %v319_v14  ;;  %v14616_v61 = vld [vmem:[#allocation5 + $0x844] ss:$48 sps:$4 sm:$0xff]   ;;  %v14629_v17 = vld [vmem:[#allocation5 + $0x8a0] ss:$48 sps:$4 sm:$0xff]  }
  0xdf   : > { %v315_v14 = vld [vmem:[%s15757_s8 + $0x70] sm:$0xff] }
  0xe0   : > { %973 = vmatpush1.bf16.msra.mxu0 %v14551_v16  ;;  %v14584_v16 = vld [vmem:[#allocation5 + $0x780] ss:$48 sps:$4 sm:$0xff]   ;;  %18669 = vst [vmem:[#allocation38_spill] sm:$0xff] %v15892_v25 }
  0xe1   : > { %1135 = vmatprep.subr.bf16.mxu0 %v14554_v20  ;;  %v382_v20 = vld [vmem:[%s15757_s8 + $0x288] sm:$0xff]  ;;  %12819 = vmatpush3.bf16.msra.mxu1 %v14568_v8  ;;  %v309_v8 = vld [vmem:[%s15757_s8 + $0x40] sm:$0xff] }
  0xe2   : > { %2387 = vmatprep.subr.bf16.mxu1 %v14574_v18  ;;  %v15894_v26 = vpack.c.bf16 %v382_v20, %v379_v19  ;;  %v14631_v18 = vld [vmem:[#allocation5 + $0x8a4] ss:$48 sps:$4 sm:$0xff]   ;;  %v14572_v19 = vld [vmem:[#allocation5 + $0xc] ss:$48 sps:$4 sm:$0xff]  }
  0xe3   : > { %975 = vmatmul.mubr.bf16.vlgmr.msra.gmra.mrb[0].mxu0 %v15832_v27  ;;  %1441 = vmatmul.mubr.bf16.gmra.mrb[16].mxu1 %v15834_v30 }
  0xe4   : > { %1136 = vmatpush1.bf16.msra.mxu0 %v14552_v29  ;;  %984 = vmatprep.mubr.bf16.mxu0 %v15836_v31  ;;  %18670 = vst [vmem:[#allocation39_spill] sm:$0xff] %v15894_v26  ;;  %v15898_v29 = vpack.c.bf16 %v389_v24, %v386_v23  ;;  %v14575_v23 = vld [vmem:[#allocation5 + $0x6c] ss:$48 sps:$4 sm:$0xff]   ;;  %v321_v24 = vld [vmem:[%s15757_s8 + $0xa0] sm:$0xff] }
  0xe5   : > { %1448 = vmatprep.mubr.bf16.mxu1 %v15838_v32  ;;  %1137 = vmatprep.subr.bf16.mxu0 %v14557_v36  ;;  %v14599_v36 = vld [vmem:[#allocation5 + $0x7e0] ss:$48 sps:$4 sm:$0xff]   ;;  %v15957_v38 = vpack.c.bf16 %v324_v33, %v321_v24  ;;  %v14596_v24 = vld [vmem:[#allocation5 + $0x2ac] ss:$48 sps:$4 sm:$0xff]  }
  0xe6   : > { %18672 = vst [vmem:[#allocation41_spill] sm:$0xff] %v15898_v29  ;;  %v357_v33 = vld [vmem:[%s15757_s8 + $0x1c0] sm:$0xff] }
  0xe7   : > { %18682 = vst [vmem:[#allocation51_spill] sm:$0xff] %v15957_v38 }
  0xe8   : > { %1138 = vmatpush1.bf16.msra.mxu0 %v14555_v44  ;;  %v392_v44 = vld [vmem:[%s15757_s8 + $0x2d8] sm:$0xff] }
  0xe9   : > { %1139 = vmatprep.subr.bf16.mxu0 %v14564_v45  ;;  %v395_v45 = vld [vmem:[%s15757_s8 + $0x2f0] sm:$0xff] }
  0xeb   : > { %985 = vmatmul.mubr.bf16.gmra.mrb[4].mxu0 %v15852_v48  ;;  %1449 = vmatmul.mubr.bf16.gmra.mrb[20].mxu1 %v15854_v51 }
  0xec   : > { %994 = vmatprep.mubr.bf16.mxu0 %v15856_v52  ;;  %1456 = vmatprep.mubr.bf16.mxu1 %v15858_v54 }
  0xed   : > { %1140 = vmatpush1.bf16.msra.mxu0 %v14562_v55  ;;  %v15918_v55 = vpack.c.bf16 %v395_v45, %v392_v44  ;;  %v333_v44 = vld [vmem:[%s15757_s8 + $0x100] sm:$0xff]  ;;  %v336_v45 = vld [vmem:[%s15757_s8 + $0x118] sm:$0xff] }
  0xee   : > { %1141 = vmatprep.subr.bf16.mxu0 %v14571_v59  ;;  %v391_v59 = vld [vmem:[%s15757_s8 + $0x2d0] sm:$0xff] }
  0xef   : > { %18676 = vst [vmem:[#allocation45_spill] sm:$0xff] %v15918_v55  ;;  %v15932_v5 = vpack.c.bf16 %v394_v62, %v391_v59  ;;  %v342_v59 = vld [vmem:[%s15757_s8 + $0x148] sm:$0xff]  ;;  %v14592_v62 = vld [vmem:[#allocation5 + $0x1f0] ss:$48 sps:$4 sm:$0xff]  }
  0xf1   : > { %1142 = vmatpush1.bf16.msra.mxu0 %v14569_v4  ;;  %v15930_v4 = vpack.c.bf16 %v334_v57, %v331_v56  ;;  %18678 = vst [vmem:[#allocation47_spill] sm:$0xff] %v15932_v5  ;;  %v14589_v56 = vld [vmem:[#allocation5 + $0x190] ss:$48 sps:$4 sm:$0xff]  }
  0xf2   : > { %1143 = vmatprep.subr.bf16.mxu0 %v14586_v13  ;;  %v312_v13 = vld [vmem:[%s15757_s8 + $0x58] sm:$0xff]  ;;  %v339_v57 = vld [vmem:[%s15757_s8 + $0x130] sm:$0xff] }
  0xf3   : > { %995 = vmatmul.mubr.bf16.gmra.mrb[8].mxu0 %v15872_v7  ;;  %1457 = vmatmul.mubr.bf16.gmra.mrb[24].mxu1 %v15874_v9  ;;  %18677 = vst [vmem:[#allocation46_spill] sm:$0xff] %v15930_v4  ;;  %v15944_v20 = vpack.c.bf16 %v312_v13, %v309_v8  ;;  %v15971_v0 = vpack.c.bf16 %v342_v59, %v339_v57  ;;  %v345_v8 = vld [vmem:[%s15757_s8 + $0x160] sm:$0xff]  ;;  %v348_v13 = vld [vmem:[%s15757_s8 + $0x178] sm:$0xff] }
  0xf4   : > { %1004 = vmatprep.mubr.bf16.mxu0 %v15876_v10  ;;  %1464 = vmatprep.mubr.bf16.mxu1 %v15878_v11  ;;  %v369_v57 = vld [vmem:[%s15757_s8 + $0x220] sm:$0xff]  ;;  %v372_v59 = vld [vmem:[%s15757_s8 + $0x238] sm:$0xff] }
  0xf5   : > { %1144 = vmatpush1.bf16.msra.mxu0 %v14584_v16  ;;  %v318_v16 = vld [vmem:[%s15757_s8 + $0x88] sm:$0xff]  ;;  %18680 = vst [vmem:[#allocation49_spill] sm:$0xff] %v15944_v20  ;;  %18685 = vst [vmem:[#allocation54_spill] sm:$0xff] %v15971_v0 }
  0xf6   : > { %1145 = vmatprep.subr.bf16.mxu0 %v14601_v39  ;;  %v15946_v22 = vpack.c.bf16 %v318_v16, %v315_v14  ;;  %v14583_v39 = vld [vmem:[#allocation5 + $0x130] ss:$48 sps:$4 sm:$0xff]  }
  0xf7   : > { %v14595_v14 = vld [vmem:[#allocation5 + $0x250] ss:$48 sps:$4 sm:$0xff]  }
  0xf8   : > { %18681 = vst [vmem:[#allocation50_spill] sm:$0xff] %v15946_v22  ;;  %v351_v16 = vld [vmem:[%s15757_s8 + $0x190] sm:$0xff] }
  0xf9   : > { %1146 = vmatpush1.bf16.msra.mxu0 %v14599_v36  ;;  %v327_v36 = vld [vmem:[%s15757_s8 + $0xd0] sm:$0xff] }
  0xfa   : > { %1147 = vmatprep.subr.bf16.mxu0 %v14616_v61  ;;  %v15959_v41 = vpack.c.bf16 %v330_v37, %v327_v36  ;;  %v15969_v61 = vpack.c.bf16 %v336_v45, %v333_v44  ;;  %v14604_v36 = vld [vmem:[#allocation5 + $0x310] ss:$48 sps:$4 sm:$0xff]  }
  0xfb   : > { %1005 = vmatmul.mubr.bf16.gmra.mrb[12].mxu0 %v15892_v25  ;;  %1465 = vmatmul.mubr.bf16.gmra.mrb[28].mxu1 %v15894_v26  ;;  %v363_v37 = vld [vmem:[%s15757_s8 + $0x1f0] sm:$0xff] }
  0xfc   : > { %1014 = vmatprep.mubr.bf16.mxu0 %v15896_v28  ;;  %1472 = vmatprep.mubr.bf16.mxu1 %v15898_v29  ;;  %18683 = vst [vmem:[#allocation52_spill] sm:$0xff] %v15959_v41  ;;  %18684 = vst [vmem:[#allocation53_spill] sm:$0xff] %v15969_v61  ;;  %v14607_v44 = vld [vmem:[#allocation5 + $0x370] ss:$48 sps:$4 sm:$0xff]  }
  0xfd   : > { %1148 = vmatpush1.bf16.msra.mxu0 %v14614_v60  ;;  %v14587_v60 = vld [vmem:[#allocation5 + $0x18c] ss:$48 sps:$4 sm:$0xff]  }
  0xfe   : > { %1149 = vmatprep.subr.bf16.mxu0 %v14631_v18  ;;  %v14593_v18 = vld [vmem:[#allocation5 + $0x24c] ss:$48 sps:$4 sm:$0xff]  }
 0x101   : > { %1150 = vmatpush1.bf16.msra.mxu0 %v14629_v17  ;;  %v354_v17 = vld [vmem:[%s15757_s8 + $0x1a8] sm:$0xff] }
 0x102   : > { %11716 = vmatprep.subr.bf16.mxu0 %v15771_v1  ;;  %v14578_v1 = vld [vmem:[#allocation5 + $0xcc] ss:$48 sps:$4 sm:$0xff]  }
 0x103   : > { %1015 = vmatmul.mubr.bf16.gmra.mrb[16].mxu0 %v15912_v46  ;;  %1473 = vmatmul.mubr.bf16.gmra.mrb[32].mxu1 %v15914_v47 }
 0x104   : > { %1024 = vmatprep.mubr.bf16.mxu0 %v15916_v49  ;;  %1480 = vmatprep.mubr.bf16.mxu1 %v15918_v55 }
 0x10b   : > { %1025 = vmatmul.mubr.bf16.gmra.mrb[20].mxu0 %v15930_v4  ;;  %1481 = vmatmul.mubr.bf16.gmra.mrb[36].mxu1 %v15932_v5 }
 0x10c   : > { %1034 = vmatprep.mubr.bf16.mxu0 %v15776_v34  ;;  %12820 = vmatprep.mubr.bf16.mxu1 %v15934_v6 }
 0x113   : > { %1035 = vmatmul.mubr.bf16.gmra.mrb[24].mxu0 %v15783_v40  ;;  %12821 = vmatmul.mubr.bf16.vlgmr.msra.gmra.mrb[40].mxu1 %v15944_v20 }
 0x114   : > { %1044 = vmatprep.mubr.bf16.mxu0 %v15785_v43  ;;  %2388 = vmatpush1.bf16.msra.mxu1 %v14572_v19  ;;  %v15981_v19 = vpack.c.bf16 %v348_v13, %v345_v8  ;;  %v14608_v8 = vld [vmem:[#allocation5 + $0x3cc] ss:$48 sps:$4 sm:$0xff]   ;;  %v16005_v13 = vpack.c.bf16 %v372_v59, %v369_v57  ;;  %v14625_v59 = vld [vmem:[#allocation5 + $0x550] ss:$48 sps:$4 sm:$0xff]  }
 0x115   : > { %12824 = vmatprep.mubr.bf16.mxu1 %v15946_v22  ;;  %2389 = vmatprep.subr.bf16.mxu1 %v14577_v21  ;;  %v14598_v21 = vld [vmem:[#allocation5 + $0x2b0] ss:$48 sps:$4 sm:$0xff]   ;;  %v396_v57 = vld [vmem:[%s15757_s8 + $0x2f8] sm:$0xff] }
 0x116   : > { %18686 = vst [vmem:[#allocation55_spill] sm:$0xff] %v15981_v19  ;;  %18690 = vst [vmem:[#allocation59_spill] sm:$0xff] %v16005_v13 }
 0x118   : > { %2390 = vmatpush1.bf16.msra.mxu1 %v14575_v23  ;;  %v15983_v23 = vpack.c.bf16 %v354_v17, %v351_v16  ;;  %v14611_v17 = vld [vmem:[#allocation5 + $0x42c] ss:$48 sps:$4 sm:$0xff]  }
 0x119   : > { %2391 = vmatprep.subr.bf16.mxu1 %v14580_v35  ;;  %v360_v35 = vld [vmem:[%s15757_s8 + $0x1d8] sm:$0xff] }
 0x11a   : > { %18687 = vst [vmem:[#allocation56_spill] sm:$0xff] %v15983_v23 }
 0x11b   : > { %1045 = vmatmul.mubr.bf16.gmra.mrb[28].mxu0 %v15793_v50  ;;  %12825 = vmatmul.mubr.bf16.gmra.mrb[44].mxu1 %v15957_v38 }
 0x11c   : > { %1054 = vmatprep.mubr.bf16.mxu0 %v15795_v53  ;;  %2392 = vmatpush1.bf16.msra.mxu1 %v14578_v1  ;;  %v366_v1 = vld [vmem:[%s15757_s8 + $0x208] sm:$0xff] }
 0x11d   : > { %12828 = vmatprep.mubr.bf16.mxu1 %v15959_v41  ;;  %2393 = vmatprep.subr.bf16.mxu1 %v14583_v39  ;;  %v14602_v39 = vld [vmem:[#allocation5 + $0x30c] ss:$48 sps:$4 sm:$0xff]   ;;  %v15995_v45 = vpack.c.bf16 %v366_v1, %v363_v37 }
 0x11f   : > { %18689 = vst [vmem:[#allocation58_spill] sm:$0xff] %v15995_v45 }
 0x120   : > { %2394 = vmatpush1.bf16.msra.mxu1 %v14581_v42  ;;  %v15993_v42 = vpack.c.bf16 %v360_v35, %v357_v33  ;;  %v387_v33 = vld [vmem:[%s15757_s8 + $0x2b0] sm:$0xff]  ;;  %v390_v35 = vld [vmem:[%s15757_s8 + $0x2c8] sm:$0xff] }
 0x121   : > { %2395 = vmatprep.subr.bf16.mxu1 %v14589_v56  ;;  %v14605_v56 = vld [vmem:[#allocation5 + $0x36c] ss:$48 sps:$4 sm:$0xff]   ;;  %v16019_v1 = vpack.c.bf16 %v390_v35, %v387_v33  ;;  %v14643_v35 = vld [vmem:[#allocation5 + $0x730] ss:$48 sps:$4 sm:$0xff]  }
 0x122   : > { %18688 = vst [vmem:[#allocation57_spill] sm:$0xff] %v15993_v42  ;;  %v14638_v33 = vld [vmem:[#allocation5 + $0x6cc] ss:$48 sps:$4 sm:$0xff]  }
 0x123   : > { %1055 = vmatmul.mubr.bf16.gmra.mrb[32].mxu0 %v15808_v63  ;;  %12829 = vmatmul.mubr.bf16.gmra.mrb[48].mxu1 %v15969_v61  ;;  %18693 = vst [vmem:[#allocation62_spill] sm:$0xff] %v16019_v1 }
 0x124   : > { %1064 = vmatprep.mubr.bf16.mxu0 %v15810_v3  ;;  %2396 = vmatpush1.bf16.msra.mxu1 %v14587_v60  ;;  %v14610_v60 = vld [vmem:[#allocation5 + $0x3d0] ss:$48 sps:$4 sm:$0xff]  }
 0x125   : > { %12832 = vmatprep.mubr.bf16.mxu1 %v15971_v0  ;;  %2397 = vmatprep.subr.bf16.mxu1 %v14592_v62  ;;  %v375_v62 = vld [vmem:[%s15757_s8 + $0x250] sm:$0xff] }
 0x128   : > { %2398 = vmatpush1.bf16.msra.mxu1 %v14590_v2  ;;  %v378_v2 = vld [vmem:[%s15757_s8 + $0x268] sm:$0xff] }
 0x129   : > { %2399 = vmatprep.subr.bf16.mxu1 %v14595_v14  ;;  %v14613_v14 = vld [vmem:[#allocation5 + $0x430] ss:$48 sps:$4 sm:$0xff]   ;;  %v16007_v16 = vpack.c.bf16 %v378_v2, %v375_v62 }
 0x12a   : > { %v14628_v2 = vld [vmem:[#allocation5 + $0x5b0] ss:$48 sps:$4 sm:$0xff]  }
 0x12b   : > { %1065 = vmatmul.mubr.bf16.gmra.mrb[36].mxu0 %v15818_v12  ;;  %12833 = vmatmul.mubr.bf16.gmra.mrb[52].mxu1 %v15981_v19  ;;  %18691 = vst [vmem:[#allocation60_spill] sm:$0xff] %v16007_v16 }
 0x12c   : > { %1074 = vmatprep.mubr.bf16.mxu0 %v15820_v15  ;;  %2400 = vmatpush1.bf16.msra.mxu1 %v14593_v18  ;;  %v381_v18 = vld [vmem:[%s15757_s8 + $0x280] sm:$0xff] }
 0x12d   : > { %12836 = vmatprep.mubr.bf16.mxu1 %v15983_v23  ;;  %2401 = vmatprep.subr.bf16.mxu1 %v14598_v21  ;;  %v384_v21 = vld [vmem:[%s15757_s8 + $0x298] sm:$0xff] }
 0x12e   : > { %v16017_v37 = vpack.c.bf16 %v384_v21, %v381_v18  ;;  %v14637_v18 = vld [vmem:[#allocation5 + $0x670] ss:$48 sps:$4 sm:$0xff]   ;;  %v14635_v21 = vld [vmem:[#allocation5 + $0x66c] ss:$48 sps:$4 sm:$0xff]  }
 0x130   : > { %2402 = vmatpush1.bf16.msra.mxu1 %v14596_v24  ;;  %v14619_v24 = vld [vmem:[#allocation5 + $0x490] ss:$48 sps:$4 sm:$0xff]   ;;  %18692 = vst [vmem:[#allocation61_spill] sm:$0xff] %v16017_v37 }
 0x131   : > { %2403 = vmatprep.subr.bf16.mxu1 %v14604_v36  ;;  %v14617_v36 = vld [vmem:[#allocation5 + $0x48c] ss:$48 sps:$4 sm:$0xff]  }
 0x133   : > { %1075 = vmatmul.mubr.bf16.gmra.mrb[40].mxu0 %v15834_v30  ;;  %12837 = vmatmul.mubr.bf16.gmra.mrb[56].mxu1 %v15993_v42 }
 0x134   : > { %1084 = vmatprep.mubr.bf16.mxu0 %v15838_v32  ;;  %2404 = vmatpush1.bf16.msra.mxu1 %v14602_v39  ;;  %v14622_v39 = vld [vmem:[#allocation5 + $0x4f0] ss:$48 sps:$4 sm:$0xff]  }
 0x135   : > { %12840 = vmatprep.mubr.bf16.mxu1 %v15995_v45  ;;  %2405 = vmatprep.subr.bf16.mxu1 %v14607_v44  ;;  %v14620_v44 = vld [vmem:[#allocation5 + $0x4ec] ss:$48 sps:$4 sm:$0xff]  }
 0x138   : > { %2406 = vmatpush1.bf16.msra.mxu1 %v14605_v56  ;;  %v393_v56 = vld [vmem:[%s15757_s8 + $0x2e0] sm:$0xff] }
 0x139   : > { %2407 = vmatprep.subr.bf16.mxu1 %v14610_v60  ;;  %v14623_v60 = vld [vmem:[#allocation5 + $0x54c] ss:$48 sps:$4 sm:$0xff]   ;;  %v16027_v62 = vpack.c.bf16 %v396_v57, %v393_v56  ;;  %v14649_v57 = vld [vmem:[#allocation5 + $0x7f0] ss:$48 sps:$4 sm:$0xff]  }
 0x13a   : > { %v14644_v56 = vld [vmem:[#allocation5 + $0x78c] ss:$48 sps:$4 sm:$0xff]  }
 0x13b   : > { %1085 = vmatmul.mubr.bf16.gmra.mrb[44].mxu0 %v15854_v51  ;;  %12841 = vmatmul.mubr.bf16.gmra.mrb[60].mxu1 %v16005_v13  ;;  %18694 = vst [vmem:[#allocation63_spill] sm:$0xff] %v16027_v62 }
 0x13c   : > { %1094 = vmatprep.mubr.bf16.mxu0 %v15858_v54  ;;  %2408 = vmatpush1.bf16.msra.mxu1 %v14608_v8  ;;  %v14626_v8 = vld [vmem:[#allocation5 + $0x5ac] ss:$48 sps:$4 sm:$0xff]  }
 0x13d   : > { %12844 = vmatprep.mubr.bf16.mxu1 %v16007_v16  ;;  %2409 = vmatprep.subr.bf16.mxu1 %v14613_v14  ;;  %v14634_v14 = vld [vmem:[#allocation5 + $0x610] ss:$48 sps:$4 sm:$0xff]  }
 0x140   : > { %2410 = vmatpush1.bf16.msra.mxu1 %v14611_v17  ;;  %v14632_v17 = vld [vmem:[#allocation5 + $0x60c] ss:$48 sps:$4 sm:$0xff]  }
 0x141   : > { %2411 = vmatprep.subr.bf16.mxu1 %v14619_v24  ;;  %v14640_v24 = vld [vmem:[#allocation5 + $0x6d0] ss:$48 sps:$4 sm:$0xff]  }
 0x143   : > { %1095 = vmatmul.mubr.bf16.gmra.mrb[48].mxu0 %v15874_v9  ;;  %12845 = vmatmul.mubr.bf16.gmra.mrb[64].mxu1 %v16017_v37 }
 0x144   : > { %1104 = vmatprep.mubr.bf16.mxu0 %v15878_v11  ;;  %2412 = vmatpush1.bf16.msra.mxu1 %v14617_v36  ;;  %v14641_v36 = vld [vmem:[#allocation5 + $0x72c] ss:$48 sps:$4 sm:$0xff]  }
 0x145   : > { %12848 = vmatprep.mubr.bf16.mxu1 %v16019_v1  ;;  %2413 = vmatprep.subr.bf16.mxu1 %v14622_v39  ;;  %v18485_v39 = vmov 0  }
 0x148   : > { %2414 = vmatpush1.bf16.msra.mxu1 %v14620_v44  ;;  %v14646_v44 = vld [vmem:[#allocation5 + $0x790] ss:$48 sps:$4 sm:$0xff]  }
 0x149   : > { %2415 = vmatprep.subr.bf16.mxu1 %v14625_v59  ;;  %v15256_v59 = vld [vmem:[#allocation5 + $0x8] ss:$48 sps:$4 sm:$0xff]  }
 0x14b   : > { %1105 = vmatmul.mubr.bf16.gmra.mrb[52].mxu0 %v15894_v26  ;;  %12849 = vmatmul.mubr.bf16.gmra.mrb[68].mxu1 %v16027_v62 }
 0x14c   : > { %1114 = vmatprep.mubr.bf16.mxu0 %v15898_v29  ;;  %2416 = vmatpush1.bf16.msra.mxu1 %v14623_v60  ;;  %v14647_v60 = vld [vmem:[#allocation5 + $0x7ec] ss:$48 sps:$4 sm:$0xff]  }
 0x14d   : > { %2419 = vmatprep.mubr.bf16.mxu1 %v15800_v58  ;;  %2417 = vmatprep.subr.bf16.mxu1 %v14628_v2  ;;  %v15257_v2 = vld [vmem:[#allocation5 + $0x368] ss:$48 sps:$4 sm:$0xff]  }
 0x150   : > { %2418 = vmatpush1.bf16.msra.mxu1 %v14626_v8  ;;  %v14652_v8 = vld [vmem:[#allocation5 + $0x850] ss:$48 sps:$4 sm:$0xff]  }
 0x151   : > { %2580 = vmatprep.subr.bf16.mxu1 %v14634_v14  ;;  %v15258_v14 = vld [vmem:[#allocation5 + $0x68] ss:$48 sps:$4 sm:$0xff]  }
 0x153   : > { %1115 = vmatmul.mubr.bf16.gmra.mrb[56].mxu0 %v15914_v47  ;;  %2420 = vmatmul.mubr.bf16.vlgmr.msra.gmra.mrb[72].mxu1 %v15832_v27 }
 0x154   : > { %1124 = vmatprep.mubr.bf16.mxu0 %v15918_v55  ;;  %2429 = vmatprep.mubr.bf16.mxu1 %v15836_v31 }
 0x155   : > { %2581 = vmatpush1.bf16.msra.mxu1 %v14632_v17  ;;  %v14650_v17 = vld [vmem:[#allocation5 + $0x84c] ss:$48 sps:$4 sm:$0xff]  }
 0x156   : > { %2582 = vmatprep.subr.bf16.mxu1 %v14637_v18  ;;  %v15259_v18 = vld [vmem:[#allocation5 + $0x3c8] ss:$48 sps:$4 sm:$0xff]  }
 0x159   : > { %2583 = vmatpush1.bf16.msra.mxu1 %v14635_v21  ;;  %v14655_v21 = vld [vmem:[#allocation5 + $0x8b0] ss:$48 sps:$4 sm:$0xff]  }
 0x15a   : > { %2584 = vmatprep.subr.bf16.mxu1 %v14640_v24  ;;  %v14653_v24 = vld [vmem:[#allocation5 + $0x8ac] ss:$48 sps:$4 sm:$0xff]  }
 0x15b   : > { %1125 = vmatmul.mubr.bf16.gmra.mrb[60].mxu0 %v15932_v5  ;;  %2430 = vmatmul.mubr.bf16.gmra.mrb[76].mxu1 %v15852_v48 }
 0x15c   : > { %1167 = vmatprep.mubr.bf16.mxu0 %v18485_v39  ;;  %2439 = vmatprep.mubr.bf16.mxu1 %v15856_v52 }
 0x15d   : > { %2585 = vmatpush1.bf16.msra.mxu1 %v14638_v33  ;;  %v15260_v33 = vld [vmem:[#allocation5 + $0xc8] ss:$48 sps:$4 sm:$0xff]  }
 0x15e   : > { %2586 = vmatprep.subr.bf16.mxu1 %v14643_v35  ;;  %v15261_v35 = vld [vmem:[#allocation5 + $0x428] ss:$48 sps:$4 sm:$0xff]  }
 0x161   : > { %2587 = vmatpush1.bf16.msra.mxu1 %v14641_v36  ;;  %v15262_v36 = vld [vmem:[#allocation5 + $0x128] ss:$48 sps:$4 sm:$0xff]  }
 0x162   : > { %2588 = vmatprep.subr.bf16.mxu1 %v14646_v44  ;;  %v15263_v44 = vld [vmem:[#allocation5 + $0x488] ss:$48 sps:$4 sm:$0xff]  }
 0x163   : > { %1168 = vmatmul.mubr.bf16.vlgmr.msra.gmra.mrb[0].mxu0 %v15934_v6  ;;  %2440 = vmatmul.mubr.bf16.gmra.mrb[80].mxu1 %v15872_v7 }
 0x164   : > { %11717 = vmatpush3.bf16.msra.mxu0 %v15256_v59  ;;  %1177 = vmatprep.mubr.bf16.mxu0 %v18485_v39  ;;  %v15266_v59 = vld [vmem:[#allocation5 + $0x1e8] ss:$48 sps:$4 sm:$0xff]  }
 0x165   : > { %2449 = vmatprep.mubr.bf16.mxu1 %v15876_v10  ;;  %11718 = vmatprep.subr.bf16.mxu0 %v15257_v2  ;;  %v14656_v2 = vld [vmem:[#allocation5 + $0x314] ss:$48 sps:$4 sm:$0xff]  }
 0x166   : > { %2589 = vmatpush1.bf16.msra.mxu1 %v14644_v56  ;;  %v15264_v56 = vld [vmem:[#allocation5 + $0x188] ss:$48 sps:$4 sm:$0xff]  }
 0x167   : > { %2590 = vmatprep.subr.bf16.mxu1 %v14649_v57  ;;  %v15265_v57 = vld [vmem:[#allocation5 + $0x4e8] ss:$48 sps:$4 sm:$0xff]  }
 0x168   : > { %11719 = vmatpush3.bf16.msra.mxu0 %v15258_v14  ;;  %v15269_v14 = vld [vmem:[#allocation5 + $0x5a8] ss:$48 sps:$4 sm:$0xff]  }
 0x169   : > { %11720 = vmatprep.subr.bf16.mxu0 %v15259_v18 }
 0x16a   : > { %2591 = vmatpush1.bf16.msra.mxu1 %v14647_v60  ;;  %v15267_v60 = vld [vmem:[#allocation5 + $0x548] ss:$48 sps:$4 sm:$0xff]  }
 0x16b   : > { %1178 = vmatmul.mubr.bf16.gmra.mrb[4].mxu0 %v15944_v20  ;;  %2592 = vmatprep.subr.bf16.mxu1 %v14652_v8  ;;  %v15268_v8 = vld [vmem:[#allocation5 + $0x248] ss:$48 sps:$4 sm:$0xff]  }
 0x16c   : > { %2450 = vmatmul.mubr.bf16.gmra.mrb[84].mxu1 %v15892_v25  ;;  %1187 = vmatprep.mubr.bf16.mxu0 %v18485_v39 }
 0x16d   : > { %2459 = vmatprep.mubr.bf16.mxu1 %v15896_v28  ;;  %11721 = vmatpush3.bf16.msra.mxu0 %v15260_v33 }
 0x16e   : > { %11722 = vmatprep.subr.bf16.mxu0 %v15261_v35  ;;  %2593 = vmatpush1.bf16.msra.mxu1 %v14650_v17  ;;  %v15270_v17 = vld [vmem:[#allocation5 + $0x2a8] ss:$48 sps:$4 sm:$0xff]  }
 0x16f   : > { %2594 = vmatprep.subr.bf16.mxu1 %v14655_v21 }
 0x171   : > { %11723 = vmatpush3.bf16.msra.mxu0 %v15262_v36 }
 0x172   : > { %11724 = vmatprep.subr.bf16.mxu0 %v15263_v44  ;;  %2595 = vmatpush1.bf16.msra.mxu1 %v14653_v24 }
 0x173   : > { %1188 = vmatmul.mubr.bf16.gmra.mrb[8].mxu0 %v15946_v22 }
 0x174   : > { %2460 = vmatmul.mubr.bf16.gmra.mrb[88].mxu1 %v15912_v46  ;;  %1197 = vmatprep.mubr.bf16.mxu0 %v18485_v39 }
 0x175   : > { %2469 = vmatprep.mubr.bf16.mxu1 %v15916_v49  ;;  %11725 = vmatpush3.bf16.msra.mxu0 %v15264_v56 }
 0x176   : > { %11726 = vmatprep.subr.bf16.mxu0 %v15265_v57 }
 0x179   : > { %11727 = vmatpush3.bf16.msra.mxu0 %v15266_v59 }
 0x17a   : > { %11728 = vmatprep.subr.bf16.mxu0 %v15267_v60 }
 0x17b   : > { %1198 = vmatmul.mubr.bf16.gmra.mrb[12].mxu0 %v15957_v38 }
 0x17c   : > { %2470 = vmatmul.mubr.bf16.gmra.mrb[92].mxu1 %v15930_v4  ;;  %1207 = vmatprep.mubr.bf16.mxu0 %v18485_v39 }
 0x17d   : > { %2479 = vmatprep.mubr.bf16.mxu1 %v15776_v34  ;;  %11729 = vmatpush3.bf16.msra.mxu0 %v15268_v8 }
 0x17e   : > { %11730 = vmatprep.subr.bf16.mxu0 %v15269_v14 }
 0x181   : > { %11731 = vmatpush3.bf16.msra.mxu0 %v15270_v17 }
 0x182   : > { %11852 = vmatprep.subr.bf16.mxu0 %v14656_v2 }
 0x183   : > { %1208 = vmatmul.mubr.bf16.gmra.mrb[16].mxu0 %v15959_v41 }
 0x184   : > { %2480 = vmatmul.mubr.bf16.gmra.mrb[96].mxu1 %v15783_v40  ;;  %1217 = vmatprep.mubr.bf16.mxu0 %v18485_v39 }
 0x185   : > { %2489 = vmatprep.mubr.bf16.mxu1 %v15785_v43 }
 0x18b   : > { %1218 = vmatmul.mubr.bf16.gmra.mrb[20].mxu0 %v15969_v61 }
 0x18c   : > { %2490 = vmatmul.mubr.bf16.gmra.mrb[100].mxu1 %v15793_v50  ;;  %1227 = vmatprep.mubr.bf16.mxu0 %v18485_v39 }
 0x18d   : > { %2499 = vmatprep.mubr.bf16.mxu1 %v15795_v53 }
 0x193   : > { %1228 = vmatmul.mubr.bf16.gmra.mrb[24].mxu0 %v15971_v0 }
 0x194   : > { %2500 = vmatmul.mubr.bf16.gmra.mrb[104].mxu1 %v15808_v63  ;;  %1237 = vmatprep.mubr.bf16.mxu0 %v18485_v39  ;;  %v14661_v63 = vld [vmem:[#allocation5 + $0xd4] ss:$48 sps:$4 sm:$0xff]  }
 0x195   : > { %2509 = vmatprep.mubr.bf16.mxu1 %v15810_v3 }
 0x196   : > { %v11768_v18 = vpop.f32.mrb[0].mxu1 }
 0x197   : > { %v11769_v21 = vpop.f32.mrb[1].mxu1 }
 0x198   : > { %v16069_v24 = vadd.f32 %v11769_v21, %v11768_v18  ;;  %v11771_v33 = vpop.f32.mrb[2].mxu1 }
 0x199   : > { %v11772_v35 = vpop.f32.mrb[3].mxu1 }
 0x19a   : > { %v16072_v36 = vadd.f32 %v11772_v35, %v11771_v33 }
 0x19b   : > { %1238 = vmatmul.mubr.bf16.gmra.mrb[28].mxu0 %v15981_v19 }
 0x19c   : > { %2510 = vmatmul.mubr.bf16.gmra.mrb[108].mxu1 %v15818_v12  ;;  %1247 = vmatprep.mubr.bf16.mxu0 %v18485_v39 }
 0x19d   : > { %2519 = vmatprep.mubr.bf16.mxu1 %v15820_v15 }
 0x19e   : > { %v11774_v44 = vpop.f32.mrb[4].mxu1 }
 0x19f   : > { %v11775_v56 = vpop.f32.mrb[5].mxu1 }
 0x1a0   : > { %v16077_v57 = vadd.f32 %v11775_v56, %v11774_v44  ;;  %v11777_v59 = vpop.f32.mrb[6].mxu1 }
 0x1a1   : > { %v11778_v60 = vpop.f32.mrb[7].mxu1 }
 0x1a2   : > { %v16080_v2 = vadd.f32 %v11778_v60, %v11777_v59 }
 0x1a3   : > { %1248 = vmatmul.mubr.bf16.gmra.mrb[32].mxu0 %v15983_v23 }
 0x1a4   : > { %2520 = vmatmul.mubr.bf16.gmra.mrb[112].mxu1 %v15834_v30  ;;  %1257 = vmatprep.mubr.bf16.mxu0 %v18485_v39 }
 0x1a5   : > { %2529 = vmatprep.mubr.bf16.mxu1 %v15838_v32 }
 0x1a6   : > { %v11780_v8 = vpop.f32.mrb[8].mxu1 }
 0x1a7   : > { %v11781_v14 = vpop.f32.mrb[9].mxu1 }
 0x1a8   : > { %v16085_v17 = vadd.f32 %v11781_v14, %v11780_v8  ;;  %v11783_v18 = vpop.f32.mrb[10].mxu1 }
 0x1a9   : > { %v11784_v21 = vpop.f32.mrb[11].mxu1 }
 0x1aa   : > { %v16088_v33 = vadd.f32 %v11784_v21, %v11783_v18 }
 0x1ab   : > { %1258 = vmatmul.mubr.bf16.gmra.mrb[36].mxu0 %v15993_v42 }
 0x1ac   : > { %2530 = vmatmul.mubr.bf16.gmra.mrb[116].mxu1 %v15854_v51  ;;  %1267 = vmatprep.mubr.bf16.mxu0 %v18485_v39 }
 0x1ad   : > { %2539 = vmatprep.mubr.bf16.mxu1 %v15858_v54 }
 0x1ae   : > { %v11786_v35 = vpop.f32.mrb[12].mxu1 }
 0x1af   : > { %v11787_v44 = vpop.f32.mrb[13].mxu1 }
 0x1b0   : > { %v16093_v56 = vadd.f32 %v11787_v44, %v11786_v35  ;;  %v11789_v59 = vpop.f32.mrb[14].mxu1 }
 0x1b1   : > { %v11790_v60 = vpop.f32.mrb[15].mxu1 }
 0x1b2   : > { %v16096_v8 = vadd.f32 %v11790_v60, %v11789_v59 }
 0x1b3   : > { %1268 = vmatmul.mubr.bf16.gmra.mrb[40].mxu0 %v15995_v45 }
 0x1b4   : > { %2540 = vmatmul.mubr.bf16.gmra.mrb[120].mxu1 %v15874_v9  ;;  %1277 = vmatprep.mubr.bf16.mxu0 %v18485_v39 }
 0x1b5   : > { %2549 = vmatprep.mubr.bf16.mxu1 %v15878_v11 }
 0x1b6   : > { %v11792_v14 = vpop.f32.mrb[16].mxu1 }
 0x1b7   : > { %v11793_v18 = vpop.f32.mrb[17].mxu1 }
 0x1b8   : > { %v16101_v21 = vadd.f32 %v11793_v18, %v11792_v14  ;;  %v11795_v54 = vpop.f32.mrb[18].mxu1 }
 0x1b9   : > { %v11796_v51 = vpop.f32.mrb[19].mxu1 }
 0x1ba   : > { %v16104_v35 = vadd.f32 %v11796_v51, %v11795_v54 }
 0x1bb   : > { %1278 = vmatmul.mubr.bf16.gmra.mrb[44].mxu0 %v16005_v13 }
 0x1bc   : > { %2550 = vmatmul.mubr.bf16.gmra.mrb[124].mxu1 %v15894_v26  ;;  %1287 = vmatprep.mubr.bf16.mxu0 %v18485_v39 }
 0x1bd   : > { %2559 = vmatprep.mubr.bf16.mxu1 %v15898_v29 }
 0x1be   : > { %v11798_v44 = vpop.f32.mrb[20].mxu1 }
 0x1bf   : > { %v11799_v59 = vpop.f32.mrb[21].mxu1 }
 0x1c0   : > { %v16109_v60 = vadd.f32 %v11799_v59, %v11798_v44  ;;  %v11801_v11 = vpop.f32.mrb[22].mxu1 }
 0x1c1   : > { %v11802_v9 = vpop.f32.mrb[23].mxu1 }
 0x1c2   : > { %v16112_v14 = vadd.f32 %v11802_v9, %v11801_v11 }
 0x1c3   : > { %1288 = vmatmul.mubr.bf16.gmra.mrb[48].mxu0 %v16007_v16 }
 0x1c4   : > { %2560 = vmatmul.mubr.bf16.gmra.mrb[128].mxu1 %v15914_v47  ;;  %1297 = vmatprep.mubr.bf16.mxu0 %v18485_v39 }
 0x1c5   : > { %2569 = vmatprep.mubr.bf16.mxu1 %v15918_v55 }
 0x1c6   : > { %v11804_v51 = vpop.f32.mrb[24].mxu1 }
 0x1c7   : > { %v11805_v54 = vpop.f32.mrb[25].mxu1 }
 0x1c8   : > { %v16117_v18 = vadd.f32 %v11805_v54, %v11804_v51  ;;  %v11807_v29 = vpop.f32.mrb[26].mxu1 }
 0x1c9   : > { %v11808_v26 = vpop.f32.mrb[27].mxu1 }
 0x1ca   : > { %v16120_v44 = vadd.f32 %v11808_v26, %v11807_v29  ;;  %v543_v26 = vlaneseq }
 0x1cb   : > { %1298 = vmatmul.mubr.bf16.gmra.mrb[52].mxu0 %v16017_v37 }
 0x1cc   : > { %2570 = vmatmul.mubr.bf16.gmra.mrb[132].mxu1 %v15932_v5  ;;  %1307 = vmatprep.mubr.bf16.mxu0 %v18485_v39 }
 0x1cd   : > { %2612 = vmatprep.mubr.bf16.mxu1 %v18485_v39 }
 0x1ce   : > { %v11810_v9 = vpop.f32.mrb[28].mxu1 }
 0x1cf   : > { %v11811_v11 = vpop.f32.mrb[29].mxu1 }
 0x1d0   : > { %v16125_v59 = vadd.f32 %v11811_v11, %v11810_v9  ;;  %v11813_v55 = vpop.f32.mrb[30].mxu1  ;;  %v16135_v9 = vshrl.u32 %v543_v26, 7 }
 0x1d1   : > { %v11814_v47 = vpop.f32.mrb[31].mxu1 }
 0x1d2   : > { %v16128_v51 = vadd.f32 %v11814_v47, %v11813_v55  ;;  %v16142_v47 = vld [vmem:[#allocation7] sm:$0x7]  ;;  %v16146_v55 = vsub.s32 2, %v16135_v9 }
 0x1d3   : > { %1308 = vmatmul.mubr.bf16.gmra.mrb[56].mxu0 %v16019_v1 }
 0x1d4   : > { %2613 = vmatmul.mubr.bf16.vlgmr.msra.gmra.mrb[72].mxu1 %v15934_v6  ;;  %1317 = vmatprep.mubr.bf16.mxu0 %v18485_v39  ;;  %18695 = vst [vmem:[#allocation64_spill] sm:$0xff] %v16146_v55 }
 0x1d5   : > { %2622 = vmatprep.mubr.bf16.mxu1 %v18485_v39 }
 0x1d6   : > { %v11816_v29 = vpop.f32.mrb[32].mxu1 }
 0x1d7   : > { %v11817_v54 = vpop.f32.mrb[33].mxu1 }
 0x1d8   : > { %v16133_v5 = vadd.f32 %v11817_v54, %v11816_v29  ;;  %v11819_v32 = vpop.f32.mrb[34].mxu1  ;;  %v14657_v29 = vld [vmem:[#allocation5 + $0x14] ss:$48 sps:$4 sm:$0xff]  }
 0x1d9   : > { %v11820_v11 = vpop.f32.mrb[35].mxu1  ;;  %v14658_v54 = vld [vmem:[#allocation5 + $0x374] ss:$48 sps:$4 sm:$0xff]  }
 0x1da   : > { %v16138_v30 = vadd.f32 %v11820_v11, %v11819_v32  ;;  %v16150_v32 = vrot.slane %v16142_v47, %v16146_v55  ;;  %v14659_v11 = vld [vmem:[#allocation5 + $0x74] ss:$48 sps:$4 sm:$0xff]   ;;  %v18696_v55 = vmov 0  }
 0x1db   : > { %1318 = vmatmul.mubr.bf16.gmra.mrb[60].mxu0 %v16027_v62 }
 0x1dc   : > { %2623 = vmatmul.mubr.bf16.gmra.mrb[76].mxu1 %v15944_v20  ;;  %1360 = vmatprep.mubr.bf16.mxu0 %v15800_v58 }
 0x1dd   : > { %2632 = vmatprep.mubr.bf16.mxu1 %v18485_v39 }
 0x1de   : > { %v11822_v26 = vpop.f32.mrb[36].mxu1 }
 0x1df   : > { %v11823_v6 = vpop.f32.mrb[37].mxu1 }
 0x1e0   : > { %v11824_v15 = vadd.f32 %v11823_v6, %v11822_v26  ;;  %v11825_v12 = vpop.f32.mrb[38].mxu1  ;;  %v14660_v6 = vld [vmem:[#allocation5 + $0x3d4] ss:$48 sps:$4 sm:$0xff]  }
 0x1e1   : > { %v11826_v20 = vpop.f32.mrb[39].mxu1 }
 0x1e2   : > { %v11827_v3 = vadd.f32 %v11826_v20, %v11825_v12  ;;  %v16154_v39 = vadd.f32 %v11824_v15, %v16150_v32  ;;  %v14662_v15 = vld [vmem:[#allocation5 + $0x434] ss:$48 sps:$4 sm:$0xff]  }
 0x1e3   : > { %1361 = vmatmul.mubr.bf16.vlgmr.msra.gmra.mrb[64].mxu0 %v15832_v27 }
 0x1e4   : > { %2633 = vmatmul.mubr.bf16.gmra.mrb[80].mxu1 %v15946_v22  ;;  %11853 = vmatpush3.bf16.msra.mxu0 %v14657_v29  ;;  %v16159_v26 = vadd.f32 %v11827_v3, %v16150_v32  ;;  %v14664_v22 = vld [vmem:[#allocation5 + $0x494] ss:$48 sps:$4 sm:$0xff]  }
 0x1e5   : > { %11854 = vmatprep.subr.bf16.mxu0 %v14658_v54  ;;  %1368 = vmatprep.mubr.bf16.mxu0 %v15836_v31  ;;  %v14663_v54 = vld [vmem:[#allocation5 + $0x134] ss:$48 sps:$4 sm:$0xff]  }
 0x1e6   : > { %2642 = vmatprep.mubr.bf16.mxu1 %v18696_v55  ;;  %v16162_v53 = vpop.f32.mrb[40].mxu1 }
 0x1e7   : > { %18697 = vst [vmem:[#allocation65_spill] sm:$0xff] %v16162_v53  ;;  %v16164_v12 = vpop.f32.mrb[41].mxu1  ;;  %v14665_v53 = vld [vmem:[#allocation5 + $0x194] ss:$48 sps:$4 sm:$0xff]  }
 0x1e8   : > { %11855 = vmatpush3.bf16.msra.mxu0 %v14659_v11  ;;  %18698 = vst [vmem:[#allocation66_spill] sm:$0xff] %v16164_v12  ;;  %v16166_v20 = vpop.f32.mrb[42].mxu1 }
 0x1e9   : > { %11856 = vmatprep.subr.bf16.mxu0 %v14660_v6  ;;  %18699 = vst [vmem:[#allocation67_spill] sm:$0xff] %v16166_v20  ;;  %v16168_v29 = vpop.f32.mrb[43].mxu1  ;;  %v14680_v6 = vld [vmem:[#allocation8 + $0x244] ss:$12 sps:$4 sm:$0xff]  }
 0x1ea   : > { %18700 = vst [vmem:[#allocation68_spill] sm:$0xff] %v16168_v29  ;;  %v14678_v29 = vld [vmem:[#allocation8 + $0x240] ss:$12 sps:$4 sm:$0xff]   ;;  %3719 = vmatprep.subr.bf16.mxu1 %v14680_v6 }
 0x1eb   : > { %1369 = vmatmul.mubr.bf16.gmra.mrb[68].mxu0 %v15852_v48  ;;  %3720 = vmatpush1.bf16.msra.mxu1 %v14678_v29 }
 0x1ec   : > { %2643 = vmatmul.mubr.bf16.gmra.mrb[84].mxu1 %v15957_v38  ;;  %11857 = vmatpush3.bf16.msra.mxu0 %v14661_v63  ;;  %v14666_v38 = vld [vmem:[#allocation5 + $0x4f4] ss:$48 sps:$4 sm:$0xff]  }
 0x1ed   : > { %1376 = vmatprep.mubr.bf16.mxu0 %v15856_v52  ;;  %2652 = vmatprep.mubr.bf16.mxu1 %v18696_v55  ;;  %v14684_v63 = vld [vmem:[#allocation8 + $0x25c] ss:$12 sps:$4 sm:$0xff]  }
 0x1ee   : > { %11858 = vmatprep.subr.bf16.mxu0 %v14662_v15  ;;  %v16174_v3 = vpop.f32.mrb[44].mxu1  ;;  %v14667_v15 = vld [vmem:[#allocation5 + $0x1f4] ss:$48 sps:$4 sm:$0xff]   ;;  %3721 = vmatprep.subr.bf16.mxu1 %v14684_v63 }
 0x1ef   : > { %18701 = vst [vmem:[#allocation69_spill] sm:$0xff] %v16174_v3  ;;  %v16176_v11 = vpop.f32.mrb[45].mxu1  ;;  %v14687_v3 = vld [vmem:[#allocation8 + $0x274] ss:$12 sps:$4 sm:$0xff]   ;;  %v14671_v63 = vld [vmem:[#allocation5 + $0x2b4] ss:$48 sps:$4 sm:$0xff]  }
 0x1f0   : > { %11859 = vmatpush3.bf16.msra.mxu0 %v14663_v54  ;;  %18702 = vst [vmem:[#allocation70_spill] sm:$0xff] %v16176_v11  ;;  %v16178_v20 = vpop.f32.mrb[46].mxu1  ;;  %v14682_v54 = vld [vmem:[#allocation8 + $0x258] ss:$12 sps:$4 sm:$0xff]   ;;  %v14685_v11 = vld [vmem:[#allocation8 + $0x270] ss:$12 sps:$4 sm:$0xff]  }
 0x1f1   : > { %18703 = vst [vmem:[#allocation71_spill] sm:$0xff] %v16178_v20  ;;  %11860 = vmatprep.subr.bf16.mxu0 %v14664_v22  ;;  %v16180_v12 = vpop.f32.mrb[47].mxu1  ;;  %v14668_v22 = vld [vmem:[#allocation5 + $0x554] ss:$48 sps:$4 sm:$0xff]   ;;  %3722 = vmatpush1.bf16.msra.mxu1 %v14682_v54  ;;  %v1419_v54 = vadd.f32 %v16077_v57, %v16150_v32  ;;  %v1414_v57 = vadd.f32 %v16072_v36, %v16150_v32 }
 0x1f2   : > { %18704 = vst [vmem:[#allocation72_spill] sm:$0xff] %v16180_v12  ;;  %v14669_v12 = vld [vmem:[#allocation5 + $0x254] ss:$48 sps:$4 sm:$0xff]   ;;  %3723 = vmatprep.subr.bf16.mxu1 %v14687_v3 }
 0x1f3   : > { %1377 = vmatmul.mubr.bf16.gmra.mrb[72].mxu0 %v15872_v7 }
 0x1f4   : > { %2653 = vmatmul.mubr.bf16.gmra.mrb[88].mxu1 %v15959_v41  ;;  %1384 = vmatprep.mubr.bf16.mxu0 %v15876_v10 }
 0x1f5   : > { %2662 = vmatprep.mubr.bf16.mxu1 %v18696_v55  ;;  %11861 = vmatpush3.bf16.msra.mxu0 %v14665_v53  ;;  %v14670_v53 = vld [vmem:[#allocation5 + $0x5b4] ss:$48 sps:$4 sm:$0xff]  }
 0x1f6   : > { %11862 = vmatprep.subr.bf16.mxu0 %v14666_v38  ;;  %v16186_v20 = vpop.f32.mrb[48].mxu1  ;;  %3724 = vmatpush1.bf16.msra.mxu1 %v14685_v11  ;;  %v14690_v38 = vld [vmem:[#allocation8 + $0x28c] ss:$12 sps:$4 sm:$0xff]   ;;  %v1411_v11 = vadd.f32 %v16069_v24, %v16150_v32 }
 0x1f7   : > { %18705 = vst [vmem:[#allocation73_spill] sm:$0xff] %v16186_v20  ;;  %v16188_v6 = vpop.f32.mrb[49].mxu1  ;;  %3725 = vmatprep.subr.bf16.mxu1 %v14690_v38 }
 0x1f8   : > { %18706 = vst [vmem:[#allocation74_spill] sm:$0xff] %v16188_v6  ;;  %v16190_v29 = vpop.f32.mrb[50].mxu1 }
 0x1f9   : > { %18707 = vst [vmem:[#allocation75_spill] sm:$0xff] %v16190_v29  ;;  %11863 = vmatpush3.bf16.msra.mxu0 %v14667_v15  ;;  %v16192_v41 = vpop.f32.mrb[51].mxu1  ;;  %v14688_v15 = vld [vmem:[#allocation8 + $0x288] ss:$12 sps:$4 sm:$0xff]  }
 0x1fa   : > { %18708 = vst [vmem:[#allocation76_spill] sm:$0xff] %v16192_v41  ;;  %11864 = vmatprep.subr.bf16.mxu0 %v14668_v22  ;;  %v16200_v22 = vld [vmem:[#allocation5 + $0x614] ss:$48 sps:$4 sm:$0xff]   ;;  %3726 = vmatpush1.bf16.msra.mxu1 %v14688_v15  ;;  %v1422_v41 = vadd.f32 %v16080_v2, %v16150_v32 }
 0x1fb   : > { %1385 = vmatmul.mubr.bf16.gmra.mrb[76].mxu0 %v15892_v25  ;;  %v14697_v2 = vld [vmem:[#allocation8 + $0x2bc] ss:$12 sps:$4 sm:$0xff]  }
 0x1fc   : > { %2663 = vmatmul.mubr.bf16.gmra.mrb[92].mxu1 %v15969_v61  ;;  %1392 = vmatprep.mubr.bf16.mxu0 %v15896_v28 }
 0x1fd   : > { %2672 = vmatprep.mubr.bf16.mxu1 %v18696_v55  ;;  %11865 = vmatpush3.bf16.msra.mxu0 %v14669_v12  ;;  %v14693_v12 = vld [vmem:[#allocation8 + $0x2a4] ss:$12 sps:$4 sm:$0xff]  }
 0x1fe   : > { %11866 = vmatprep.subr.bf16.mxu0 %v14670_v53  ;;  %v12834_v3 = vpop.f32.mrb[52].mxu1  ;;  %v14691_v53 = vld [vmem:[#allocation8 + $0x2a0] ss:$12 sps:$4 sm:$0xff]   ;;  %3727 = vmatprep.subr.bf16.mxu1 %v14693_v12 }
 0x1ff   : > { %v1580_v29 = vadd.f32 %v12834_v3, %v1419_v54  ;;  %v1571_v20 = vpop.f32.mrb[53].mxu1  ;;  %3728 = vmatpush1.bf16.msra.mxu1 %v14691_v53 }
 0x200   : > { %v1572_v6 = vadd.f32 %v1571_v20, %v1411_v11  ;;  %v12835_v61 = vpop.f32.mrb[54].mxu1  ;;  %3729 = vmatprep.subr.bf16.mxu1 %v14697_v2 }
 0x201   : > { %11867 = vmatpush3.bf16.msra.mxu0 %v14671_v63  ;;  %v1583_v62 = vadd.f32 %v12835_v61, %v1422_v41  ;;  %v1574_v38 = vpop.f32.mrb[55].mxu1  ;;  %v1694_v15 = vmax.f32 %v1580_v29, 0.0  ;;  %v14695_v41 = vld [vmem:[#allocation8 + $0x2b8] ss:$12 sps:$4 sm:$0xff]   ;;  %v1435_v63 = vadd.f32 %v16093_v56, %v16150_v32  ;;  %v14698_v56 = vld [vmem:[#allocation8 + $0x2d0] ss:$12 sps:$4 sm:$0xff]  }
 0x202   : > { %12852 = vmatprep.subr.bf16.mxu0 %v16200_v22  ;;  %v1575_v24 = vadd.f32 %v1574_v38, %v1414_v57  ;;  %v1688_v20 = vmax.f32 %v1572_v6, 0.0  ;;  %v1438_v6 = vadd.f32 %v16096_v8, %v16150_v32  ;;  %v14700_v57 = vld [vmem:[#allocation8 + $0x2d4] ss:$12 sps:$4 sm:$0xff]   ;;  %v14703_v8 = vld [vmem:[#allocation8 + $0x2ec] ss:$12 sps:$4 sm:$0xff]  }
 0x203   : > { %1393 = vmatmul.mubr.bf16.gmra.mrb[80].mxu0 %v15912_v46  ;;  %v1697_v54 = vmax.f32 %v1583_v62, 0.0  ;;  %v1427_v62 = vadd.f32 %v16085_v17, %v16150_v32  ;;  %3730 = vmatpush1.bf16.msra.mxu1 %v14695_v41 }
 0x204   : > { %2673 = vmatmul.mubr.bf16.gmra.mrb[96].mxu1 %v15971_v0  ;;  %1400 = vmatprep.mubr.bf16.mxu0 %v15916_v49  ;;  %v1691_v36 = vmax.f32 %v1575_v24, 0.0  ;;  %v1430_v24 = vadd.f32 %v16088_v33, %v16150_v32  ;;  %v14701_v33 = vld [vmem:[#allocation8 + $0x2e8] ss:$12 sps:$4 sm:$0xff]  }
 0x205   : > { %2682 = vmatprep.mubr.bf16.mxu1 %v18696_v55  ;;  %v16213_v61 = vpack.c.bf16 %v1697_v54, %v1694_v15  ;;  %3731 = vmatprep.subr.bf16.mxu1 %v14700_v57 }
 0x206   : > { %v12838_v3 = vpop.f32.mrb[56].mxu1  ;;  %v16219_v29 = vpack.c.bf16 %v1691_v36, %v1688_v20 }
 0x207   : > { %18709 = vst [vmem:[#allocation77_spill] sm:$0xff] %v16213_v61  ;;  %v1596_v11 = vadd.f32 %v12838_v3, %v1435_v63  ;;  %v1587_v12 = vpop.f32.mrb[57].mxu1  ;;  %3732 = vmatpush1.bf16.msra.mxu1 %v14698_v56  ;;  %v1451_v3 = vadd.f32 %v16109_v60, %v16150_v32  ;;  %v14704_v60 = vld [vmem:[#allocation8 + $0x300] ss:$12 sps:$4 sm:$0xff]  }
 0x208   : > { %18710 = vst [vmem:[#allocation78_spill] sm:$0xff] %v16219_v29  ;;  %v1588_v53 = vadd.f32 %v1587_v12, %v1427_v62  ;;  %v12839_v38 = vpop.f32.mrb[58].mxu1  ;;  %3733 = vmatprep.subr.bf16.mxu1 %v14703_v8 }
 0x209   : > { %v1599_v15 = vadd.f32 %v12839_v38, %v1438_v6  ;;  %v1590_v54 = vpop.f32.mrb[59].mxu1  ;;  %v1706_v17 = vmax.f32 %v1596_v11, 0.0  ;;  %v1443_v11 = vadd.f32 %v16101_v21, %v16150_v32  ;;  %v14706_v38 = vld [vmem:[#allocation8 + $0x304] ss:$12 sps:$4 sm:$0xff]  }
 0x20a   : > { %v1591_v2 = vadd.f32 %v1590_v54, %v1430_v24  ;;  %v1700_v36 = vmax.f32 %v1588_v53, 0.0  ;;  %v1454_v53 = vadd.f32 %v16112_v14, %v16150_v32  ;;  %v14709_v14 = vld [vmem:[#allocation8 + $0x31c] ss:$12 sps:$4 sm:$0xff]  }
 0x20b   : > { %1401 = vmatmul.mubr.bf16.gmra.mrb[84].mxu0 %v15930_v4  ;;  %v1709_v20 = vmax.f32 %v1599_v15, 0.0  ;;  %3734 = vmatpush1.bf16.msra.mxu1 %v14701_v33  ;;  %v1446_v15 = vadd.f32 %v16104_v35, %v16150_v32  ;;  %v14674_v35 = vld [vmem:[#allocation5 + $0x6d4] ss:$48 sps:$4 sm:$0xff]  }
 0x20c   : > { %2683 = vmatmul.mubr.bf16.gmra.mrb[100].mxu1 %v15981_v19  ;;  %2805 = vmatprep.mubr.bf16.mxu0 %v15800_v58  ;;  %v1703_v41 = vmax.f32 %v1591_v2, 0.0  ;;  %v14707_v33 = vld [vmem:[#allocation8 + $0x318] ss:$12 sps:$4 sm:$0xff]  }
 0x20d   : > { %2692 = vmatprep.mubr.bf16.mxu1 %v18696_v55  ;;  %v16229_v63 = vpack.c.bf16 %v1709_v20, %v1706_v17  ;;  %v14673_v17 = vld [vmem:[#allocation5 + $0x674] ss:$48 sps:$4 sm:$0xff]   ;;  %3735 = vmatprep.subr.bf16.mxu1 %v14706_v38  ;;  %v1470_v38 = vadd.f32 %v16128_v51, %v16150_v32 }
 0x20e   : > { %v12842_v62 = vpop.f32.mrb[60].mxu1  ;;  %v16235_v12 = vpack.c.bf16 %v1703_v41, %v1700_v36  ;;  %v14715_v51 = vld [vmem:[#allocation8 + $0x34c] ss:$12 sps:$4 sm:$0xff]  }
 0x20f   : > { %18711 = vst [vmem:[#allocation79_spill] sm:$0xff] %v16229_v63  ;;  %v1612_v6 = vadd.f32 %v12842_v62, %v1451_v3  ;;  %v1603_v57 = vpop.f32.mrb[61].mxu1  ;;  %3736 = vmatpush1.bf16.msra.mxu1 %v14704_v60  ;;  %v1467_v62 = vadd.f32 %v16125_v59, %v16150_v32  ;;  %v1462_v59 = vadd.f32 %v16120_v44, %v16150_v32  ;;  %v14710_v60 = vld [vmem:[#allocation8 + $0x330] ss:$12 sps:$4 sm:$0xff]   ;;  %v14713_v44 = vld [vmem:[#allocation8 + $0x348] ss:$12 sps:$4 sm:$0xff]  }
 0x210   : > { %18712 = vst [vmem:[#allocation80_spill] sm:$0xff] %v16235_v12  ;;  %v1604_v24 = vadd.f32 %v1603_v57, %v1443_v11  ;;  %v12843_v56 = vpop.f32.mrb[62].mxu1  ;;  %3737 = vmatprep.subr.bf16.mxu1 %v14709_v14 }
 0x211   : > { %v1615_v54 = vadd.f32 %v12843_v56, %v1454_v53  ;;  %v1606_v2 = vpop.f32.mrb[63].mxu1  ;;  %v1718_v20 = vmax.f32 %v1612_v6, 0.0 }
 0x212   : > { %v1607_v21 = vadd.f32 %v1606_v2, %v1446_v15  ;;  %v1712_v36 = vmax.f32 %v1604_v24, 0.0  ;;  %v14712_v24 = vld [vmem:[#allocation8 + $0x334] ss:$12 sps:$4 sm:$0xff]  }
 0x213   : > { %2806 = vmatmul.mubr.bf16.vlgmr.msra.gmra.mrb[88].mxu0 %v15832_v27  ;;  %v1721_v8 = vmax.f32 %v1615_v54, 0.0  ;;  %3738 = vmatpush1.bf16.msra.mxu1 %v14707_v33 }
 0x214   : > { %2693 = vmatmul.mubr.bf16.gmra.mrb[104].mxu1 %v15983_v23  ;;  %12853 = vmatpush3.bf16.msra.mxu0 %v16200_v22  ;;  %v1715_v41 = vmax.f32 %v1607_v21, 0.0  ;;  %v1459_v22 = vadd.f32 %v16117_v18, %v16150_v32  ;;  %v14675_v18 = vld [vmem:[#allocation5 + $0x734] ss:$48 sps:$4 sm:$0xff]  }
 0x215   : > { %2702 = vmatprep.mubr.bf16.mxu1 %v18696_v55  ;;  %2813 = vmatprep.mubr.bf16.mxu0 %v15836_v31  ;;  %v16246_v3 = vpack.c.bf16 %v1721_v8, %v1718_v20 }
 0x216   : > { %12854 = vmatprep.subr.bf16.mxu0 %v14673_v17  ;;  %v12846_v11 = vpop.f32.mrb[64].mxu1  ;;  %v16252_v6 = vpack.c.bf16 %v1715_v41, %v1712_v36  ;;  %3739 = vmatprep.subr.bf16.mxu1 %v14712_v24  ;;  %v14676_v41 = vld [vmem:[#allocation5 + $0x794] ss:$48 sps:$4 sm:$0xff]  }
 0x217   : > { %18713 = vst [vmem:[#allocation81_spill] sm:$0xff] %v16246_v3  ;;  %v1628_v57 = vadd.f32 %v12846_v11, %v1467_v62  ;;  %v1619_v53 = vpop.f32.mrb[65].mxu1  ;;  %3740 = vmatpush1.bf16.msra.mxu1 %v14710_v60  ;;  %v1475_v62 = vadd.f32 %v16133_v5, %v16150_v32  ;;  %v14677_v5 = vld [vmem:[#allocation5 + $0x7f4] ss:$48 sps:$4 sm:$0xff]  }
 0x218   : > { %18714 = vst [vmem:[#allocation82_spill] sm:$0xff] %v16252_v6  ;;  %12855 = vmatpush3.bf16.msra.mxu0 %v14673_v17  ;;  %v1620_v56 = vadd.f32 %v1619_v53, %v1459_v22  ;;  %v12847_v15 = vpop.f32.mrb[66].mxu1  ;;  %3741 = vmatprep.subr.bf16.mxu1 %v14715_v51  ;;  %v14718_v53 = vld [vmem:[#allocation8 + $0x364] ss:$12 sps:$4 sm:$0xff]   ;;  %v14724_v51 = vld [vmem:[#allocation8 + $0x394] ss:$12 sps:$4 sm:$0xff]  }
 0x219   : > { %12856 = vmatprep.subr.bf16.mxu0 %v14674_v35  ;;  %v1631_v54 = vadd.f32 %v12847_v15, %v1470_v38  ;;  %v1622_v2 = vpop.f32.mrb[67].mxu1  ;;  %v1730_v20 = vmax.f32 %v1628_v57, 0.0 }
 0x21a   : > { %v1623_v21 = vadd.f32 %v1622_v2, %v1462_v59  ;;  %v1724_v17 = vmax.f32 %v1620_v56, 0.0  ;;  %v14716_v56 = vld [vmem:[#allocation8 + $0x360] ss:$12 sps:$4 sm:$0xff]   ;;  %v14721_v2 = vld [vmem:[#allocation8 + $0x37c] ss:$12 sps:$4 sm:$0xff]  }
 0x21b   : > { %2814 = vmatmul.mubr.bf16.gmra.mrb[92].mxu0 %v15852_v48  ;;  %v1733_v8 = vmax.f32 %v1631_v54, 0.0  ;;  %3742 = vmatpush1.bf16.msra.mxu1 %v14713_v44  ;;  %v14727_v44 = vld [vmem:[#allocation8 + $0x3ac] ss:$12 sps:$4 sm:$0xff]  }
 0x21c   : > { %2703 = vmatmul.mubr.bf16.gmra.mrb[108].mxu1 %v15993_v42  ;;  %2821 = vmatprep.mubr.bf16.mxu0 %v15856_v52  ;;  %v1727_v14 = vmax.f32 %v1623_v21, 0.0 }
 0x21d   : > { %2712 = vmatprep.mubr.bf16.mxu1 %v18696_v55  ;;  %12857 = vmatpush3.bf16.msra.mxu0 %v14674_v35  ;;  %v16262_v36 = vpack.c.bf16 %v1733_v8, %v1730_v20  ;;  %v1478_v35 = vadd.f32 %v16138_v30, %v16150_v32  ;;  %v14681_v20 = vld [vmem:[#allocation5 + $0x854] ss:$48 sps:$4 sm:$0xff]  }
 0x21e   : > { %12858 = vmatprep.subr.bf16.mxu0 %v14675_v18  ;;  %v12850_v33 = vpop.f32.mrb[68].mxu1  ;;  %v16266_v11 = vpack.c.bf16 %v1727_v14, %v1724_v17  ;;  %3743 = vmatprep.subr.bf16.mxu1 %v14718_v53  ;;  %v14722_v17 = vld [vmem:[#allocation8 + $0x390] ss:$12 sps:$4 sm:$0xff]   ;;  %v14694_v14 = vld [vmem:[#allocation5 + $0x8b4] ss:$48 sps:$4 sm:$0xff]  }
 0x21f   : > { %18715 = vst [vmem:[#allocation83_spill] sm:$0xff] %v16262_v36  ;;  %v1644_v22 = vadd.f32 %v12850_v33, %v16154_v39  ;;  %v1635_v57 = vpop.f32.mrb[69].mxu1  ;;  %3744 = vmatpush1.bf16.msra.mxu1 %v14716_v56  ;;  %v16285_v33 = vsub.s32 0, %v16135_v9 }
 0x220   : > { %18716 = vst [vmem:[#allocation84_spill] sm:$0xff] %v16266_v11  ;;  %v1636_v38 = vadd.f32 %v1635_v57, %v1475_v62  ;;  %v12851_v24 = vpop.f32.mrb[70].mxu1  ;;  %3745 = vmatprep.subr.bf16.mxu1 %v14721_v2  ;;  %v16288_v62 = vsub.s32 1, %v16135_v9 }
 0x221   : > { %12859 = vmatpush3.bf16.msra.mxu0 %v14675_v18  ;;  %v1742_v15 = vmax.f32 %v1644_v22, 0.0  ;;  %v1647_v59 = vadd.f32 %v12851_v24, %v16159_v26  ;;  %v1638_v60 = vpop.f32.mrb[71].mxu1  ;;  %v14719_v26 = vld [vmem:[#allocation8 + $0x378] ss:$12 sps:$4 sm:$0xff]   ;;  %18719 = vst [vmem:[#allocation87_spill] sm:$0xff] %v16285_v33  ;;  %v16293_v57 = vrot.slane %v16142_v47, %v16285_v33 }
 0x222   : > { %12860 = vmatprep.subr.bf16.mxu0 %v14676_v41  ;;  %v1639_v54 = vadd.f32 %v1638_v60, %v1478_v35  ;;  %v1736_v30 = vmax.f32 %v1636_v38, 0.0  ;;  %18720 = vst [vmem:[#allocation88_spill] sm:$0xff] %v16288_v62  ;;  %v14728_v22 = vld [vmem:[#allocation8 + $0x308] ss:$12 sps:$4 sm:$0xff]   ;;  %v16299_v53 = vrot.slane %v16142_v47, %v16288_v62 }
 0x223   : > { %2822 = vmatmul.mubr.bf16.gmra.mrb[96].mxu0 %v15872_v7  ;;  %v1745_v39 = vmax.f32 %v1647_v59, 0.0  ;;  %3746 = vmatpush1.bf16.msra.mxu1 %v14719_v26 }
 0x224   : > { %2713 = vmatmul.mubr.bf16.gmra.mrb[112].mxu1 %v15995_v45  ;;  %2829 = vmatprep.mubr.bf16.mxu0 %v15876_v10  ;;  %v1739_v18 = vmax.f32 %v1639_v54, 0.0 }
 0x225   : > { %2722 = vmatprep.mubr.bf16.mxu1 %v18696_v55  ;;  %12861 = vmatpush3.bf16.msra.mxu0 %v14676_v41  ;;  %v16276_v21 = vpack.c.bf16 %v1745_v39, %v1742_v15  ;;  %v14725_v41 = vld [vmem:[#allocation8 + $0x3a8] ss:$12 sps:$4 sm:$0xff]  }
 0x226   : > { %12862 = vmatprep.subr.bf16.mxu0 %v14677_v5  ;;  %v16278_v8 = vpack.c.bf16 %v1739_v18, %v1736_v30  ;;  %3747 = vmatprep.subr.bf16.mxu1 %v14724_v51 }
 0x227   : > { %18717 = vst [vmem:[#allocation85_spill] sm:$0xff] %v16276_v21  ;;  %3748 = vmatpush1.bf16.msra.mxu1 %v14722_v17 }
 0x228   : > { %18718 = vst [vmem:[#allocation86_spill] sm:$0xff] %v16278_v8  ;;  %3749 = vmatprep.subr.bf16.mxu1 %v14727_v44 }
 0x229   : > { %12863 = vmatpush3.bf16.msra.mxu0 %v14677_v5 }
 0x22a   : > { %12864 = vmatprep.subr.bf16.mxu0 %v14681_v20 }
 0x22b   : > { %2830 = vmatmul.mubr.bf16.gmra.mrb[100].mxu0 %v15892_v25  ;;  %3750 = vmatpush1.bf16.msra.mxu1 %v14725_v41 }
 0x22c   : > { %2723 = vmatmul.mubr.bf16.gmra.mrb[116].mxu1 %v16005_v13  ;;  %2837 = vmatprep.mubr.bf16.mxu0 %v15896_v28 }
 0x22d   : > { %2732 = vmatprep.mubr.bf16.mxu1 %v18696_v55  ;;  %12865 = vmatpush3.bf16.msra.mxu0 %v14681_v20 }
 0x22e   : > { %12866 = vmatprep.subr.bf16.mxu0 %v14694_v14 }
 0x231   : > { %12867 = vmatpush3.bf16.msra.mxu0 %v14694_v14 }
 0x232   : > { %11988 = vmatprep.subr.bf16.mxu0 %v14728_v22 }
 0x233   : > { %2838 = vmatmul.mubr.bf16.gmra.mrb[104].mxu0 %v15912_v46 }
 0x234   : > { %2733 = vmatmul.mubr.bf16.gmra.mrb[120].mxu1 %v16007_v16  ;;  %2845 = vmatprep.mubr.bf16.mxu0 %v15916_v49 }
 0x235   : > { %2742 = vmatprep.mubr.bf16.mxu1 %v18696_v55 }
 0x236   : > { %v1169_v9 = vpop.f32.mrb[0].mxu0 }
 0x237   : > { %v13204_v38 = vadd.f32 %v1169_v9, %v16293_v57  ;;  %v1171_v24 = vpop.f32.mrb[1].mxu0 }
 0x238   : > { %v1173_v35 = vpop.f32.mrb[2].mxu0  ;;  %v13205_v56 = vadd.f32 %v1171_v24, %v16299_v53 }
 0x239   : > { %v13206_v15 = vadd.f32 %v1173_v35, %v16293_v57  ;;  %v1175_v59 = vpop.f32.mrb[3].mxu0  ;;  %v1650_v5 = vmax.f32 %v13204_v38, 0.0 }
 0x23a   : > { %v13207_v60 = vadd.f32 %v1175_v59, %v16299_v53  ;;  %v1651_v47 = vmax.f32 %v13205_v56, 0.0 }
 0x23b   : > { %v1653_v54 = vmax.f32 %v13206_v15, 0.0  ;;  %2846 = vmatmul.mubr.bf16.gmra.mrb[108].mxu0 %v15930_v4 }
 0x23c   : > { %2743 = vmatmul.mubr.bf16.gmra.mrb[124].mxu1 %v16017_v37  ;;  %2853 = vmatprep.mubr.bf16.mxu0 %v15776_v34  ;;  %v1654_v39 = vmax.f32 %v13207_v60, 0.0 }
 0x23d   : > { %v16309_v2 = vpack.c.bf16 %v1653_v54, %v1650_v5  ;;  %2752 = vmatprep.mubr.bf16.mxu1 %v18696_v55 }
 0x23e   : > { %v1179_v30 = vpop.f32.mrb[4].mxu0  ;;  %v16312_v18 = vpack.c.bf16 %v1654_v39, %v1651_v47 }
 0x23f   : > { %v13208_v26 = vadd.f32 %v1179_v30, %v16293_v57  ;;  %v1181_v20 = vpop.f32.mrb[5].mxu0 }
 0x240   : > { %v1183_v51 = vpop.f32.mrb[6].mxu0  ;;  %v13209_v17 = vadd.f32 %v1181_v20, %v16299_v53 }
 0x241   : > { %v13210_v14 = vadd.f32 %v1183_v51, %v16293_v57  ;;  %v1185_v44 = vpop.f32.mrb[7].mxu0  ;;  %v1656_v22 = vmax.f32 %v13208_v26, 0.0  ;;  %v18721_v51 = vld [vmem:[#allocation63_spill] sm:$0xff] }
 0x242   : > { %v13211_v41 = vadd.f32 %v1185_v44, %v16299_v53  ;;  %v1657_v38 = vmax.f32 %v13209_v17, 0.0  ;;  %v18722_v17 = vld [vmem:[#allocation20_spill] sm:$0xff] }
 0x243   : > { %v1659_v9 = vmax.f32 %v13210_v14, 0.0  ;;  %2854 = vmatmul.mubr.bf16.gmra.mrb[112].mxu0 %v15783_v40 }
 0x244   : > { %2753 = vmatmul.mubr.bf16.gmra.mrb[128].mxu1 %v16019_v1  ;;  %2861 = vmatprep.mubr.bf16.mxu0 %v15785_v43  ;;  %v1660_v24 = vmax.f32 %v13211_v41, 0.0 }
 0x245   : > { %v16321_v35 = vpack.c.bf16 %v1659_v9, %v1656_v22  ;;  %2762 = vmatprep.mubr.bf16.mxu1 %v18696_v55 }
 0x246   : > { %v1189_v56 = vpop.f32.mrb[8].mxu0  ;;  %v16324_v15 = vpack.c.bf16 %v1660_v24, %v1657_v38 }
 0x247   : > { %v13212_v59 = vadd.f32 %v1189_v56, %v16293_v57  ;;  %v1191_v60 = vpop.f32.mrb[9].mxu0 }
 0x248   : > { %v1193_v5 = vpop.f32.mrb[10].mxu0  ;;  %v13213_v54 = vadd.f32 %v1191_v60, %v16299_v53 }
 0x249   : > { %v13214_v47 = vadd.f32 %v1193_v5, %v16293_v57  ;;  %v1195_v39 = vpop.f32.mrb[11].mxu0  ;;  %v1662_v26 = vmax.f32 %v13212_v59, 0.0 }
 0x24a   : > { %v13215_v30 = vadd.f32 %v1195_v39, %v16299_v53  ;;  %v1663_v14 = vmax.f32 %v13213_v54, 0.0  ;;  %v18723_v54 = vld [vmem:[#allocation22_spill] sm:$0xff] }
 0x24b   : > { %v1665_v20 = vmax.f32 %v13214_v47, 0.0  ;;  %2862 = vmatmul.mubr.bf16.gmra.mrb[116].mxu0 %v15793_v50 }
 0x24c   : > { %2763 = vmatmul.mubr.bf16.gmra.mrb[132].mxu1 %v18721_v51  ;;  %2869 = vmatprep.mubr.bf16.mxu0 %v18722_v17  ;;  %v1666_v44 = vmax.f32 %v13215_v30, 0.0  ;;  %v18724_v30 = vld [vmem:[#allocation23_spill] sm:$0xff] }
 0x24d   : > { %v16333_v41 = vpack.c.bf16 %v1665_v20, %v1662_v26 }
 0x24e   : > { %v1199_v22 = vpop.f32.mrb[12].mxu0  ;;  %v16335_v9 = vpack.c.bf16 %v1666_v44, %v1663_v14 }
 0x24f   : > { %v13216_v38 = vadd.f32 %v1199_v22, %v16293_v57  ;;  %v1201_v24 = vpop.f32.mrb[13].mxu0 }
 0x250   : > { %v1203_v56 = vpop.f32.mrb[14].mxu0  ;;  %v13217_v59 = vadd.f32 %v1201_v24, %v16299_v53 }
 0x251   : > { %v13218_v60 = vadd.f32 %v1203_v56, %v16293_v57  ;;  %v1205_v5 = vpop.f32.mrb[15].mxu0  ;;  %v1668_v39 = vmax.f32 %v13216_v38, 0.0 }
 0x252   : > { %v13219_v47 = vadd.f32 %v1205_v5, %v16299_v53  ;;  %v1669_v26 = vmax.f32 %v13217_v59, 0.0  ;;  %v18725_v59 = vld [vmem:[#allocation24_spill] sm:$0xff] }
 0x253   : > { %v1671_v17 = vmax.f32 %v13218_v60, 0.0  ;;  %2870 = vmatmul.mubr.bf16.gmra.mrb[120].mxu0 %v18723_v54 }
 0x254   : > { %2877 = vmatprep.mubr.bf16.mxu0 %v18724_v30  ;;  %v1672_v20 = vmax.f32 %v13219_v47, 0.0 }
 0x255   : > { %v16343_v14 = vpack.c.bf16 %v1671_v17, %v1668_v39  ;;  %v18726_v17 = vld [vmem:[#allocation25_spill] sm:$0xff] }
 0x256   : > { %v1209_v44 = vpop.f32.mrb[16].mxu0  ;;  %v16345_v22 = vpack.c.bf16 %v1672_v20, %v1669_v26 }
 0x257   : > { %v13220_v24 = vadd.f32 %v1209_v44, %v16293_v57  ;;  %v1211_v50 = vpop.f32.mrb[17].mxu0 }
 0x258   : > { %v1213_v56 = vpop.f32.mrb[18].mxu0  ;;  %v13221_v43 = vadd.f32 %v1211_v50, %v16299_v53 }
 0x259   : > { %v13222_v38 = vadd.f32 %v1213_v56, %v16293_v57  ;;  %v1215_v60 = vpop.f32.mrb[19].mxu0  ;;  %v1674_v54 = vmax.f32 %v13220_v24, 0.0 }
 0x25a   : > { %v13223_v5 = vadd.f32 %v1215_v60, %v16299_v53  ;;  %v1675_v47 = vmax.f32 %v13221_v43, 0.0  ;;  %v18727_v43 = vld [vmem:[#allocation27_spill] sm:$0xff] }
 0x25b   : > { %v1677_v30 = vmax.f32 %v13222_v38, 0.0  ;;  %2878 = vmatmul.mubr.bf16.gmra.mrb[124].mxu0 %v18725_v59 }
 0x25c   : > { %2885 = vmatprep.mubr.bf16.mxu0 %v18726_v17  ;;  %v1678_v39 = vmax.f32 %v13223_v5, 0.0 }
 0x25d   : > { %v16353_v26 = vpack.c.bf16 %v1677_v30, %v1674_v54  ;;  %v18728_v54 = vld [vmem:[#allocation29_spill] sm:$0xff] }
 0x25e   : > { %v1219_v20 = vpop.f32.mrb[20].mxu0  ;;  %v16355_v44 = vpack.c.bf16 %v1678_v39, %v1675_v47 }
 0x25f   : > { %v13224_v50 = vadd.f32 %v1219_v20, %v16293_v57  ;;  %v1221_v40 = vpop.f32.mrb[21].mxu0 }
 0x260   : > { %v1223_v56 = vpop.f32.mrb[22].mxu0  ;;  %v13225_v34 = vadd.f32 %v1221_v40, %v16299_v53 }
 0x261   : > { %v13226_v24 = vadd.f32 %v1223_v56, %v16293_v57  ;;  %v1225_v38 = vpop.f32.mrb[23].mxu0  ;;  %v1680_v59 = vmax.f32 %v13224_v50, 0.0 }
 0x262   : > { %v13227_v60 = vadd.f32 %v1225_v38, %v16299_v53  ;;  %v1681_v30 = vmax.f32 %v13225_v34, 0.0  ;;  %v18729_v34 = vld [vmem:[#allocation31_spill] sm:$0xff] }
 0x263   : > { %v1683_v17 = vmax.f32 %v13226_v24, 0.0  ;;  %2886 = vmatmul.mubr.bf16.gmra.mrb[128].mxu0 %v18727_v43 }
 0x264   : > { %2893 = vmatprep.mubr.bf16.mxu0 %v18728_v54  ;;  %v1684_v5 = vmax.f32 %v13227_v60, 0.0  ;;  %v18730_v60 = vld [vmem:[#allocation33_spill] sm:$0xff] }
 0x265   : > { %v16363_v47 = vpack.c.bf16 %v1683_v17, %v1680_v59 }
 0x266   : > { %v1229_v39 = vpop.f32.mrb[24].mxu0  ;;  %v16365_v20 = vpack.c.bf16 %v1684_v5, %v1681_v30 }
 0x267   : > { %v13228_v40 = vadd.f32 %v1229_v39, %v16293_v57  ;;  %v1231_v4 = vpop.f32.mrb[25].mxu0 }
 0x268   : > { %v13229_v56 = vadd.f32 %v1231_v4, %v16299_v53  ;;  %v1233_v49 = vpop.f32.mrb[26].mxu0 }
 0x269   : > { %v13230_v50 = vadd.f32 %v1233_v49, %v16293_v57  ;;  %v1235_v24 = vpop.f32.mrb[27].mxu0  ;;  %v1686_v43 = vmax.f32 %v13228_v40, 0.0 }
 0x26a   : > { %v13231_v38 = vadd.f32 %v1235_v24, %v16299_v53  ;;  %v1687_v59 = vmax.f32 %v13229_v56, 0.0 }
 0x26b   : > { %v1689_v54 = vmax.f32 %v13230_v50, 0.0  ;;  %2894 = vmatmul.mubr.bf16.gmra.mrb[132].mxu0 %v18729_v34  ;;  %v18732_v34 = vld [vmem:[#allocation35_spill] sm:$0xff] }
 0x26c   : > { %v1690_v17 = vmax.f32 %v13231_v38, 0.0  ;;  %2901 = vmatprep.mubr.bf16.mxu0 %v18730_v60  ;;  %v18733_v60 = vld [vmem:[#allocation37_spill] sm:$0xff] }
 0x26d   : > { %v16373_v30 = vpack.c.bf16 %v1689_v54, %v1686_v43 }
 0x26e   : > { %v1239_v5 = vpop.f32.mrb[28].mxu0  ;;  %v16375_v39 = vpack.c.bf16 %v1690_v17, %v1687_v59  ;;  %v14746_v17 = vld [vmem:[#allocation8 + $0x3c4] ss:$12 sps:$4 sm:$0xff]  }
 0x26f   : > { %18731 = vst [vmem:[#allocation89_spill] sm:$0xff] %v16373_v30  ;;  %v13232_v4 = vadd.f32 %v1239_v5, %v16293_v57  ;;  %v1241_v46 = vpop.f32.mrb[29].mxu0  ;;  %3912 = vmatprep.subr.bf16.mxu1 %v14746_v17 }
 0x270   : > { %v13233_v49 = vadd.f32 %v1241_v46, %v16299_v53  ;;  %v1243_v28 = vpop.f32.mrb[30].mxu0 }
 0x271   : > { %v13234_v40 = vadd.f32 %v1243_v28, %v16293_v57  ;;  %v1245_v50 = vpop.f32.mrb[31].mxu0  ;;  %v1692_v56 = vmax.f32 %v13232_v4, 0.0 }
 0x272   : > { %v13235_v24 = vadd.f32 %v1245_v50, %v16299_v53  ;;  %v1693_v43 = vmax.f32 %v13233_v49, 0.0 }
 0x273   : > { %v1695_v38 = vmax.f32 %v13234_v40, 0.0  ;;  %2902 = vmatmul.mubr.bf16.gmra.mrb[136].mxu0 %v18732_v34 }
 0x274   : > { %v1696_v54 = vmax.f32 %v13235_v24, 0.0  ;;  %2909 = vmatprep.mubr.bf16.mxu0 %v18733_v60 }
 0x275   : > { %v16383_v59 = vpack.c.bf16 %v1695_v38, %v1692_v56  ;;  %v18736_v56 = vld [vmem:[#allocation39_spill] sm:$0xff] }
 0x276   : > { %v1249_v5 = vpop.f32.mrb[32].mxu0  ;;  %v16385_v25 = vpack.c.bf16 %v1696_v54, %v1693_v43  ;;  %v18737_v43 = vld [vmem:[#allocation41_spill] sm:$0xff] }
 0x277   : > { %18734 = vst [vmem:[#allocation90_spill] sm:$0xff] %v16383_v59  ;;  %v13236_v46 = vadd.f32 %v1249_v5, %v16293_v57  ;;  %v1251_v28 = vpop.f32.mrb[33].mxu0 }
 0x278   : > { %18735 = vst [vmem:[#allocation91_spill] sm:$0xff] %v16385_v25  ;;  %v13237_v50 = vadd.f32 %v1251_v28, %v16299_v53  ;;  %v1253_v4 = vpop.f32.mrb[34].mxu0 }
 0x279   : > { %v13238_v40 = vadd.f32 %v1253_v4, %v16293_v57  ;;  %v1255_v34 = vpop.f32.mrb[35].mxu0  ;;  %v1698_v24 = vmax.f32 %v13236_v46, 0.0 }
 0x27a   : > { %v13239_v49 = vadd.f32 %v1255_v34, %v16299_v53  ;;  %v1699_v38 = vmax.f32 %v13237_v50, 0.0 }
 0x27b   : > { %v1701_v60 = vmax.f32 %v13238_v40, 0.0  ;;  %2910 = vmatmul.mubr.bf16.gmra.mrb[140].mxu0 %v18736_v56  ;;  %v18740_v56 = vld [vmem:[#allocation43_spill] sm:$0xff] }
 0x27c   : > { %v1702_v10 = vmax.f32 %v13239_v49, 0.0  ;;  %2917 = vmatprep.mubr.bf16.mxu0 %v18737_v43  ;;  %v18741_v43 = vld [vmem:[#allocation45_spill] sm:$0xff] }
 0x27d   : > { %v16393_v54 = vpack.c.bf16 %v1701_v60, %v1698_v24 }
 0x27e   : > { %v1259_v5 = vpop.f32.mrb[36].mxu0  ;;  %v16395_v17 = vpack.c.bf16 %v1702_v10, %v1699_v38 }
 0x27f   : > { %18738 = vst [vmem:[#allocation92_spill] sm:$0xff] %v16393_v54  ;;  %v13240_v28 = vadd.f32 %v1259_v5, %v16293_v57  ;;  %v1261_v7 = vpop.f32.mrb[37].mxu0 }
 0x280   : > { %18739 = vst [vmem:[#allocation93_spill] sm:$0xff] %v16395_v17  ;;  %v13241_v4 = vadd.f32 %v1261_v7, %v16299_v53  ;;  %v1263_v52 = vpop.f32.mrb[38].mxu0 }
 0x281   : > { %v13242_v34 = vadd.f32 %v1263_v52, %v16293_v57  ;;  %v1265_v46 = vpop.f32.mrb[39].mxu0  ;;  %v1704_v50 = vmax.f32 %v13240_v28, 0.0 }
 0x282   : > { %v13243_v40 = vadd.f32 %v1265_v46, %v16299_v53  ;;  %v1705_v60 = vmax.f32 %v13241_v4, 0.0 }
 0x283   : > { %v1707_v49 = vmax.f32 %v13242_v34, 0.0  ;;  %2918 = vmatmul.mubr.bf16.gmra.mrb[144].mxu0 %v18740_v56  ;;  %v18744_v56 = vld [vmem:[#allocation47_spill] sm:$0xff] }
 0x284   : > { %v1708_v24 = vmax.f32 %v13243_v40, 0.0  ;;  %2925 = vmatprep.mubr.bf16.mxu0 %v18741_v43  ;;  %v18745_v43 = vld [vmem:[#allocation48_spill] sm:$0xff] }
 0x285   : > { %v16403_v10 = vpack.c.bf16 %v1707_v49, %v1704_v50 }
 0x286   : > { %v1269_v38 = vpop.f32.mrb[40].mxu0  ;;  %v16405_v5 = vpack.c.bf16 %v1708_v24, %v1705_v60 }
 0x287   : > { %18742 = vst [vmem:[#allocation94_spill] sm:$0xff] %v16403_v10  ;;  %v13244_v7 = vadd.f32 %v1269_v38, %v16293_v57  ;;  %v1271_v48 = vpop.f32.mrb[41].mxu0 }
 0x288   : > { %18743 = vst [vmem:[#allocation95_spill] sm:$0xff] %v16405_v5  ;;  %v13245_v52 = vadd.f32 %v1271_v48, %v16299_v53  ;;  %v1273_v31 = vpop.f32.mrb[42].mxu0 }
 0x289   : > { %v13246_v28 = vadd.f32 %v1273_v31, %v16293_v57  ;;  %v1275_v34 = vpop.f32.mrb[43].mxu0  ;;  %v1710_v4 = vmax.f32 %v13244_v7, 0.0 }
 0x28a   : > { %v13247_v46 = vadd.f32 %v1275_v34, %v16299_v53  ;;  %v1711_v50 = vmax.f32 %v13245_v52, 0.0  ;;  %v14729_v34 = vld [vmem:[#allocation8 + $0x248] ss:$12 sps:$4 sm:$0xff]  }
 0x28b   : > { %v1713_v40 = vmax.f32 %v13246_v28, 0.0  ;;  %2926 = vmatmul.mubr.bf16.gmra.mrb[148].mxu0 %v18744_v56  ;;  %v14730_v56 = vld [vmem:[#allocation8 + $0x320] ss:$12 sps:$4 sm:$0xff]  }
 0x28c   : > { %v1714_v49 = vmax.f32 %v13247_v46, 0.0  ;;  %12868 = vmatprep.mubr.bf16.mxu0 %v18745_v43 }
 0x28d   : > { %v16413_v60 = vpack.c.bf16 %v1713_v40, %v1710_v4  ;;  %v18748_v4 = vld [vmem:[#allocation49_spill] sm:$0xff] }
 0x28e   : > { %v1279_v24 = vpop.f32.mrb[44].mxu0  ;;  %v16415_v38 = vpack.c.bf16 %v1714_v49, %v1711_v50  ;;  %v18749_v49 = vld [vmem:[#allocation50_spill] sm:$0xff] }
 0x28f   : > { %18746 = vst [vmem:[#allocation96_spill] sm:$0xff] %v16413_v60  ;;  %v13248_v48 = vadd.f32 %v1279_v24, %v16293_v57  ;;  %v1281_v27 = vpop.f32.mrb[45].mxu0  ;;  %v14731_v24 = vld [vmem:[#allocation8 + $0x260] ss:$12 sps:$4 sm:$0xff]  }
 0x290   : > { %18747 = vst [vmem:[#allocation97_spill] sm:$0xff] %v16415_v38  ;;  %v13249_v31 = vadd.f32 %v1281_v27, %v16299_v53  ;;  %v1283_v58 = vpop.f32.mrb[46].mxu0  ;;  %v14732_v27 = vld [vmem:[#allocation8 + $0x338] ss:$12 sps:$4 sm:$0xff]  }
 0x291   : > { %v13250_v7 = vadd.f32 %v1283_v58, %v16293_v57  ;;  %v1285_v28 = vpop.f32.mrb[47].mxu0  ;;  %v1716_v46 = vmax.f32 %v13248_v48, 0.0 }
 0x292   : > { %v13251_v52 = vadd.f32 %v1285_v28, %v16299_v53  ;;  %v1717_v40 = vmax.f32 %v13249_v31, 0.0  ;;  %v14733_v31 = vld [vmem:[#allocation8 + $0x278] ss:$12 sps:$4 sm:$0xff]  }
 0x293   : > { %v1719_v43 = vmax.f32 %v13250_v7, 0.0  ;;  %12869 = vmatmul.mubr.bf16.vlgmr.msra.gmra.mrb[152].mxu0 %v18748_v4  ;;  %v18752_v4 = vld [vmem:[#allocation51_spill] sm:$0xff] }
 0x294   : > { %v1720_v50 = vmax.f32 %v13251_v52, 0.0  ;;  %12872 = vmatprep.mubr.bf16.mxu0 %v18749_v49  ;;  %11989 = vmatpush3.bf16.msra.mxu0 %v14729_v34  ;;  %v14734_v34 = vld [vmem:[#allocation8 + $0x350] ss:$12 sps:$4 sm:$0xff]  }
 0x295   : > { %v16423_v21 = vpack.c.bf16 %v1719_v43, %v1716_v46  ;;  %11990 = vmatprep.subr.bf16.mxu0 %v14730_v56 }
 0x296   : > { %v1289_v8 = vpop.f32.mrb[48].mxu0  ;;  %v16425_v58 = vpack.c.bf16 %v1720_v50, %v1717_v40 }
 0x297   : > { %18750 = vst [vmem:[#allocation98_spill] sm:$0xff] %v16423_v21  ;;  %v13252_v36 = vadd.f32 %v1289_v8, %v16293_v57  ;;  %v1291_v28 = vpop.f32.mrb[49].mxu0  ;;  %v18753_v8 = vld [vmem:[#allocation52_spill] sm:$0xff] }
 0x298   : > { %18751 = vst [vmem:[#allocation99_spill] sm:$0xff] %v16425_v58  ;;  %v13253_v48 = vadd.f32 %v1291_v28, %v16299_v53  ;;  %v1293_v7 = vpop.f32.mrb[50].mxu0  ;;  %11991 = vmatpush3.bf16.msra.mxu0 %v14731_v24  ;;  %v14735_v28 = vld [vmem:[#allocation8 + $0x290] ss:$12 sps:$4 sm:$0xff]   ;;  %v14736_v24 = vld [vmem:[#allocation8 + $0x368] ss:$12 sps:$4 sm:$0xff]  }
 0x299   : > { %v13254_v52 = vadd.f32 %v1293_v7, %v16293_v57  ;;  %v1295_v49 = vpop.f32.mrb[51].mxu0  ;;  %11992 = vmatprep.subr.bf16.mxu0 %v14732_v27  ;;  %v1722_v56 = vmax.f32 %v13252_v36, 0.0 }
 0x29a   : > { %v13255_v43 = vadd.f32 %v1295_v49, %v16299_v53  ;;  %v1723_v40 = vmax.f32 %v13253_v48, 0.0  ;;  %v14737_v48 = vld [vmem:[#allocation8 + $0x2a8] ss:$12 sps:$4 sm:$0xff]  }
 0x29b   : > { %v1725_v46 = vmax.f32 %v13254_v52, 0.0  ;;  %12873 = vmatmul.mubr.bf16.gmra.mrb[156].mxu0 %v18752_v4 }
 0x29c   : > { %v1726_v50 = vmax.f32 %v13255_v43, 0.0  ;;  %12876 = vmatprep.mubr.bf16.mxu0 %v18753_v8  ;;  %11993 = vmatpush3.bf16.msra.mxu0 %v14733_v31  ;;  %v1986_v31 = vld [vmem:[#allocation7 + $0x3] sm:$0x7] }
 0x29d   : > { %v16433_v11 = vpack.c.bf16 %v1725_v46, %v1722_v56  ;;  %11994 = vmatprep.subr.bf16.mxu0 %v14734_v34  ;;  %v14738_v56 = vld [vmem:[#allocation8 + $0x380] ss:$12 sps:$4 sm:$0xff]   ;;  %v16443_v6 = vrot.slane %v1986_v31, %v16285_v33 }
 0x29e   : > { %v1299_v7 = vpop.f32.mrb[52].mxu0  ;;  %v16435_v3 = vpack.c.bf16 %v1726_v50, %v1723_v40  ;;  %v18756_v40 = vld [vmem:[#allocation53_spill] sm:$0xff] }
 0x29f   : > { %18754 = vst [vmem:[#allocation100_spill] sm:$0xff] %v16433_v11  ;;  %v13256_v27 = vadd.f32 %v1299_v7, %v16293_v57  ;;  %v1301_v49 = vpop.f32.mrb[53].mxu0 }
 0x2a0   : > { %18755 = vst [vmem:[#allocation101_spill] sm:$0xff] %v16435_v3  ;;  %v13257_v36 = vadd.f32 %v1301_v49, %v16299_v53  ;;  %v1303_v52 = vpop.f32.mrb[54].mxu0  ;;  %11995 = vmatpush3.bf16.msra.mxu0 %v14735_v28  ;;  %v14739_v28 = vld [vmem:[#allocation8 + $0x2c0] ss:$12 sps:$4 sm:$0xff]  }
 0x2a1   : > { %v13258_v43 = vadd.f32 %v1303_v52, %v16293_v57  ;;  %v1305_v8 = vpop.f32.mrb[55].mxu0  ;;  %11996 = vmatprep.subr.bf16.mxu0 %v14736_v24  ;;  %v1728_v46 = vmax.f32 %v13256_v27, 0.0  ;;  %v16449_v24 = vrot.slane %v1986_v31, %v16288_v62 }
 0x2a2   : > { %v13259_v34 = vadd.f32 %v1305_v8, %v16299_v53  ;;  %v1729_v50 = vmax.f32 %v13257_v36, 0.0  ;;  %v14740_v8 = vld [vmem:[#allocation8 + $0x398] ss:$12 sps:$4 sm:$0xff]  }
 0x2a3   : > { %v1731_v4 = vmax.f32 %v13258_v43, 0.0  ;;  %12877 = vmatmul.mubr.bf16.gmra.mrb[160].mxu0 %v18756_v40 }
 0x2a4   : > { %v1732_v7 = vmax.f32 %v13259_v34, 0.0  ;;  %12880 = vmatprep.mubr.bf16.mxu0 %v15971_v0  ;;  %11997 = vmatpush3.bf16.msra.mxu0 %v14737_v48 }
 0x2a5   : > { %v16446_v49 = vpack.c.bf16 %v1731_v4, %v1728_v46  ;;  %11998 = vmatprep.subr.bf16.mxu0 %v14738_v56  ;;  %v14741_v4 = vld [vmem:[#allocation8 + $0x2d8] ss:$12 sps:$4 sm:$0xff]  }
 0x2a6   : > { %v1309_v27 = vpop.f32.mrb[56].mxu0  ;;  %v16451_v52 = vpack.c.bf16 %v1732_v7, %v1729_v50  ;;  %v14742_v50 = vld [vmem:[#allocation8 + $0x3b0] ss:$12 sps:$4 sm:$0xff]  }
 0x2a7   : > { %18757 = vst [vmem:[#allocation102_spill] sm:$0xff] %v16446_v49  ;;  %v13260_v36 = vadd.f32 %v1309_v27, %v16293_v57  ;;  %v2614_v43 = vpop.f32.mrb[72].mxu1  ;;  %v1311_v34 = vpop.f32.mrb[57].mxu0 }
 0x2a8   : > { %18758 = vst [vmem:[#allocation103_spill] sm:$0xff] %v16451_v52  ;;  %v13268_v33 = vadd.f32 %v2614_v43, %v16443_v6  ;;  %v13261_v0 = vadd.f32 %v1311_v34, %v16299_v53  ;;  %v2616_v48 = vpop.f32.mrb[73].mxu1  ;;  %v1313_v40 = vpop.f32.mrb[58].mxu0  ;;  %11999 = vmatpush3.bf16.msra.mxu0 %v14739_v28 }
 0x2a9   : > { %v13269_v31 = vadd.f32 %v2616_v48, %v16449_v24  ;;  %v13262_v56 = vadd.f32 %v1313_v40, %v16293_v57  ;;  %v2618_v46 = vpop.f32.mrb[74].mxu1  ;;  %v1315_v62 = vpop.f32.mrb[59].mxu0  ;;  %12000 = vmatprep.subr.bf16.mxu0 %v14740_v8  ;;  %v1734_v43 = vmax.f32 %v13260_v36, 0.0  ;;  %v14743_v40 = vld [vmem:[#allocation8 + $0x2f0] ss:$12 sps:$4 sm:$0xff]  }
 0x2aa   : > { %v13270_v7 = vadd.f32 %v2618_v46, %v16443_v6  ;;  %v13263_v27 = vadd.f32 %v1315_v62, %v16299_v53  ;;  %v2620_v63 = vpop.f32.mrb[75].mxu1  ;;  %v3095_v28 = vmax.f32 %v13268_v33, 0.0  ;;  %v1735_v61 = vmax.f32 %v13261_v0, 0.0  ;;  %v16465_v62 = vld [vmem:[#allocation8 + $0x3c8] ss:$12 sps:$4 sm:$0xff]  }
 0x2ab   : > { %v1737_v12 = vmax.f32 %v13262_v56, 0.0  ;;  %v13271_v34 = vadd.f32 %v2620_v63, %v16449_v24  ;;  %12881 = vmatmul.mubr.bf16.gmra.mrb[164].mxu0 %v15981_v19  ;;  %v3096_v8 = vmax.f32 %v13269_v31, 0.0 }
 0x2ac   : > { %v3098_v48 = vmax.f32 %v13270_v7, 0.0  ;;  %v1738_v29 = vmax.f32 %v13263_v27, 0.0  ;;  %12884 = vmatprep.mubr.bf16.mxu0 %v15983_v23  ;;  %12001 = vmatpush3.bf16.msra.mxu0 %v14741_v4  ;;  %v14744_v4 = vld [vmem:[#allocation8 + $0x3c0] ss:$12 sps:$4 sm:$0xff]  }
 0x2ad   : > { %v16463_v49 = vpack.c.bf16 %v1737_v12, %v1734_v43  ;;  %v3099_v46 = vmax.f32 %v13271_v34, 0.0  ;;  %12002 = vmatprep.subr.bf16.mxu0 %v14742_v50  ;;  %v14750_v34 = vld [vmem:[#allocation8 + $0x3dc] ss:$12 sps:$4 sm:$0xff]  }
 0x2ae   : > { %v16467_v36 = vpack.c.bf16 %v3098_v48, %v3095_v28  ;;  %v1319_v63 = vpop.f32.mrb[60].mxu0  ;;  %v16469_v56 = vpack.c.bf16 %v1738_v29, %v1735_v61 }
 0x2af   : > { %18759 = vst [vmem:[#allocation104_spill] sm:$0xff] %v16463_v49  ;;  %v13264_v0 = vadd.f32 %v1319_v63, %v16293_v57  ;;  %v2624_v33 = vpop.f32.mrb[76].mxu1  ;;  %v1321_v7 = vpop.f32.mrb[61].mxu0  ;;  %v16472_v27 = vpack.c.bf16 %v3099_v46, %v3096_v8 }
 0x2b0   : > { %18760 = vst [vmem:[#allocation105_spill] sm:$0xff] %v16469_v56  ;;  %v13272_v31 = vadd.f32 %v2624_v33, %v16443_v6  ;;  %v13265_v12 = vadd.f32 %v1321_v7, %v16299_v53  ;;  %v2626_v43 = vpop.f32.mrb[77].mxu1  ;;  %v1323_v50 = vpop.f32.mrb[62].mxu0  ;;  %12003 = vmatpush3.bf16.msra.mxu0 %v14743_v40 }
 0x2b1   : > { %v13273_v28 = vadd.f32 %v2626_v43, %v16449_v24  ;;  %v13266_v61 = vadd.f32 %v1323_v50, %v16293_v57  ;;  %v2628_v29 = vpop.f32.mrb[78].mxu1  ;;  %3751 = vmatprep.mubr.bf16.mxu1 %v16472_v27  ;;  %v1325_v48 = vpop.f32.mrb[63].mxu0  ;;  %12900 = vmatprep.subr.bf16.mxu0 %v16465_v62  ;;  %v1740_v33 = vmax.f32 %v13264_v0, 0.0  ;;  %v14748_v57 = vld [vmem:[#allocation8 + $0x3d8] ss:$12 sps:$4 sm:$0xff]  }
 0x2b2   : > { %v13274_v8 = vadd.f32 %v2628_v29, %v16443_v6  ;;  %v13267_v46 = vadd.f32 %v1325_v48, %v16299_v53  ;;  %v2630_v63 = vpop.f32.mrb[79].mxu1  ;;  %3752 = vmatmul.mubr.bf16.vlgmr.msra.gmra.mrb[136].mxu1 %v16467_v36  ;;  %v3101_v43 = vmax.f32 %v13272_v31, 0.0  ;;  %v1741_v50 = vmax.f32 %v13265_v12, 0.0  ;;  %v14754_v29 = vld [vmem:[#allocation8 + $0x3f4] ss:$12 sps:$4 sm:$0xff]  }
 0x2b3   : > { %v1743_v40 = vmax.f32 %v13266_v61, 0.0  ;;  %v13275_v7 = vadd.f32 %v2630_v63, %v16449_v24  ;;  %12885 = vmatmul.mubr.bf16.gmra.mrb[168].mxu0 %v15993_v42  ;;  %3913 = vmatpush1.bf16.msra.mxu1 %v14744_v4  ;;  %v3102_v53 = vmax.f32 %v13273_v28, 0.0  ;;  %v14752_v31 = vld [vmem:[#allocation8 + $0x3f0] ss:$12 sps:$4 sm:$0xff]   ;;  %v14758_v28 = vld [vmem:[#allocation8 + $0x40c] ss:$12 sps:$4 sm:$0xff]  }
 0x2b4   : > { %v3104_v23 = vmax.f32 %v13274_v8, 0.0  ;;  %v1744_v19 = vmax.f32 %v13267_v46, 0.0  ;;  %12888 = vmatprep.mubr.bf16.mxu0 %v15995_v45  ;;  %3914 = vmatprep.subr.bf16.mxu1 %v14750_v34 }
 0x2b5   : > { %v16486_v48 = vpack.c.bf16 %v1743_v40, %v1740_v33  ;;  %v3105_v49 = vmax.f32 %v13275_v7, 0.0 }
 0x2b6   : > { %v11732_v0 = vpop.f32.mrb[64].mxu0  ;;  %v16488_v61 = vpack.c.bf16 %v3104_v23, %v3101_v43  ;;  %v16490_v63 = vpack.c.bf16 %v1744_v19, %v1741_v50  ;;  %v14756_v43 = vld [vmem:[#allocation8 + $0x408] ss:$12 sps:$4 sm:$0xff]  }
 0x2b7   : > { %18761 = vst [vmem:[#allocation106_spill] sm:$0xff] %v16486_v48  ;;  %v2634_v42 = vpop.f32.mrb[80].mxu1  ;;  %v11733_v4 = vpop.f32.mrb[65].mxu0  ;;  %v16492_v56 = vpack.c.bf16 %v3105_v49, %v3102_v53  ;;  %3915 = vmatpush1.bf16.msra.mxu1 %v14748_v57 }
 0x2b8   : > { %18762 = vst [vmem:[#allocation107_spill] sm:$0xff] %v16490_v63  ;;  %v13276_v12 = vadd.f32 %v2634_v42, %v16443_v6  ;;  %v11734_v8 = vadd.f32 %v11733_v4, %v11732_v0  ;;  %v2636_v34 = vpop.f32.mrb[81].mxu1  ;;  %v11735_v46 = vpop.f32.mrb[66].mxu0  ;;  %3916 = vmatprep.subr.bf16.mxu1 %v14754_v29  ;;  %v14762_v0 = vld [vmem:[#allocation8 + $0x424] ss:$12 sps:$4 sm:$0xff]   ;;  %v18763_v4 = vld [vmem:[#allocation66_spill] sm:$0xff] }
 0x2b9   : > { %v13277_v33 = vadd.f32 %v2636_v34, %v16449_v24  ;;  %v2638_v40 = vpop.f32.mrb[82].mxu1  ;;  %3761 = vmatprep.mubr.bf16.mxu1 %v16492_v56  ;;  %v11736_v19 = vpop.f32.mrb[67].mxu0 }
 0x2ba   : > { %v1363_v23 = vadd.f32 %v11734_v8, %v16150_v32  ;;  %v13278_v49 = vadd.f32 %v2638_v40, %v16443_v6  ;;  %v11737_v7 = vadd.f32 %v11736_v19, %v11735_v46  ;;  %v2640_v57 = vpop.f32.mrb[83].mxu1  ;;  %3762 = vmatmul.mubr.bf16.gmra.mrb[140].mxu1 %v16488_v61  ;;  %v3107_v50 = vmax.f32 %v13276_v12, 0.0  ;;  %v14760_v12 = vld [vmem:[#allocation8 + $0x420] ss:$12 sps:$4 sm:$0xff]  }
 0x2bb   : > { %v13279_v42 = vadd.f32 %v2640_v57, %v16449_v24  ;;  %12889 = vmatmul.mubr.bf16.gmra.mrb[172].mxu0 %v16005_v13  ;;  %3917 = vmatpush1.bf16.msra.mxu1 %v14752_v31  ;;  %v3108_v34 = vmax.f32 %v13277_v33, 0.0  ;;  %v18764_v57 = vld [vmem:[#allocation68_spill] sm:$0xff] }
 0x2bc   : > { %v3110_v29 = vmax.f32 %v13278_v49, 0.0  ;;  %v1366_v53 = vadd.f32 %v11737_v7, %v16150_v32  ;;  %12892 = vmatprep.mubr.bf16.mxu0 %v16007_v16  ;;  %3918 = vmatprep.subr.bf16.mxu1 %v14758_v28  ;;  %v1524_v8 = vadd.f32 %v18763_v4, %v1363_v23 }
 0x2bd   : > { %v3111_v46 = vmax.f32 %v13279_v42, 0.0 }
 0x2be   : > { %v11738_v40 = vpop.f32.mrb[68].mxu0  ;;  %v16505_v19 = vpack.c.bf16 %v3110_v29, %v3107_v50  ;;  %v1527_v45 = vadd.f32 %v18764_v57, %v1366_v53  ;;  %v1652_v29 = vmax.f32 %v1524_v8, 0.0  ;;  %v18766_v57 = vld [vmem:[#allocation65_spill] sm:$0xff] }
 0x2bf   : > { %v2644_v13 = vpop.f32.mrb[84].mxu1  ;;  %v11739_v31 = vpop.f32.mrb[69].mxu0  ;;  %v16508_v48 = vpack.c.bf16 %v3111_v46, %v3108_v34  ;;  %3919 = vmatpush1.bf16.msra.mxu1 %v14756_v43 }
 0x2c0   : > { %v13280_v49 = vadd.f32 %v2644_v13, %v16443_v6  ;;  %v11740_v7 = vadd.f32 %v11739_v31, %v11738_v40  ;;  %v2646_v28 = vpop.f32.mrb[85].mxu1  ;;  %v11741_v16 = vpop.f32.mrb[70].mxu0  ;;  %3920 = vmatprep.subr.bf16.mxu1 %v14762_v0  ;;  %v1655_v23 = vmax.f32 %v1527_v45, 0.0  ;;  %v14766_v13 = vld [vmem:[#allocation8 + $0x43c] ss:$12 sps:$4 sm:$0xff]  }
 0x2c1   : > { %v13281_v33 = vadd.f32 %v2646_v28, %v16449_v24  ;;  %v2648_v42 = vpop.f32.mrb[86].mxu1  ;;  %3771 = vmatprep.mubr.bf16.mxu1 %v16508_v48  ;;  %v11742_v50 = vpop.f32.mrb[71].mxu0  ;;  %v14764_v45 = vld [vmem:[#allocation8 + $0x438] ss:$12 sps:$4 sm:$0xff]  }
 0x2c2   : > { %v1371_v53 = vadd.f32 %v11740_v7, %v16150_v32  ;;  %v13282_v4 = vadd.f32 %v2648_v42, %v16443_v6  ;;  %v11743_v43 = vadd.f32 %v11742_v50, %v11741_v16  ;;  %v2650_v34 = vpop.f32.mrb[87].mxu1  ;;  %3772 = vmatmul.mubr.bf16.gmra.mrb[144].mxu1 %v16505_v19  ;;  %v16518_v0 = vpack.c.bf16 %v1655_v23, %v1652_v29  ;;  %v18767_v42 = vld [vmem:[#allocation67_spill] sm:$0xff] }
 0x2c3   : > { %v13283_v46 = vadd.f32 %v2650_v34, %v16449_v24  ;;  %12893 = vmatmul.mubr.bf16.gmra.mrb[176].mxu0 %v16017_v37  ;;  %3921 = vmatpush1.bf16.msra.mxu1 %v14760_v12  ;;  %v3113_v40 = vmax.f32 %v13280_v49, 0.0  ;;  %v3114_v16 = vmax.f32 %v13281_v33, 0.0 }
 0x2c4   : > { %18765 = vst [vmem:[#allocation66_spill] sm:$0xff] %v16518_v0  ;;  %v1532_v8 = vadd.f32 %v18766_v57, %v1371_v53  ;;  %v3116_v31 = vmax.f32 %v13282_v4, 0.0  ;;  %v1374_v7 = vadd.f32 %v11743_v43, %v16150_v32  ;;  %12896 = vmatprep.mubr.bf16.mxu0 %v16019_v1  ;;  %3922 = vmatprep.subr.bf16.mxu1 %v14766_v13 }
 0x2c5   : > { %v3117_v28 = vmax.f32 %v13283_v46, 0.0 }
 0x2c6   : > { %v1535_v50 = vadd.f32 %v18767_v42, %v1374_v7  ;;  %v11744_v34 = vpop.f32.mrb[72].mxu0  ;;  %v16524_v63 = vpack.c.bf16 %v3116_v31, %v3113_v40  ;;  %v1658_v49 = vmax.f32 %v1532_v8, 0.0  ;;  %v18769_v42 = vld [vmem:[#allocation70_spill] sm:$0xff] }
 0x2c7   : > { %v2654_v12 = vpop.f32.mrb[88].mxu1  ;;  %v11745_v37 = vpop.f32.mrb[73].mxu0  ;;  %v16526_v23 = vpack.c.bf16 %v3117_v28, %v3114_v16  ;;  %3923 = vmatpush1.bf16.msra.mxu1 %v14764_v45 }
 0x2c8   : > { %v1661_v29 = vmax.f32 %v1535_v50, 0.0  ;;  %v13284_v53 = vadd.f32 %v2654_v12, %v16443_v6  ;;  %v11746_v4 = vadd.f32 %v11745_v37, %v11744_v34  ;;  %v2656_v43 = vpop.f32.mrb[89].mxu1  ;;  %v11747_v57 = vpop.f32.mrb[74].mxu0 }
 0x2c9   : > { %v13285_v33 = vadd.f32 %v2656_v43, %v16449_v24  ;;  %v2658_v13 = vpop.f32.mrb[90].mxu1  ;;  %3781 = vmatprep.mubr.bf16.mxu1 %v16526_v23  ;;  %v11748_v46 = vpop.f32.mrb[75].mxu0 }
 0x2ca   : > { %v16531_v40 = vpack.c.bf16 %v1661_v29, %v1658_v49  ;;  %v1379_v31 = vadd.f32 %v11746_v4, %v16150_v32  ;;  %v13286_v7 = vadd.f32 %v2658_v13, %v16443_v6  ;;  %v2660_v45 = vpop.f32.mrb[91].mxu1  ;;  %3782 = vmatmul.mubr.bf16.gmra.mrb[148].mxu1 %v16524_v63  ;;  %v11749_v8 = vadd.f32 %v11748_v46, %v11747_v57  ;;  %v18770_v46 = vld [vmem:[#allocation72_spill] sm:$0xff] }
 0x2cb   : > { %v13287_v37 = vadd.f32 %v2660_v45, %v16449_v24  ;;  %12897 = vmatmul.mubr.bf16.gmra.mrb[180].mxu0 %v18721_v51  ;;  %v3119_v16 = vmax.f32 %v13284_v53, 0.0  ;;  %v3120_v34 = vmax.f32 %v13285_v33, 0.0 }
 0x2cc   : > { %18768 = vst [vmem:[#allocation68_spill] sm:$0xff] %v16531_v40  ;;  %v3122_v28 = vmax.f32 %v13286_v7, 0.0  ;;  %4137 = vmatprep.mubr.bf16.mxu0 %v16472_v27  ;;  %v1540_v50 = vadd.f32 %v18769_v42, %v1379_v31  ;;  %v1382_v12 = vadd.f32 %v11749_v8, %v16150_v32 }
 0x2cd   : > { %v3123_v49 = vmax.f32 %v13287_v37, 0.0  ;;  %v14751_v37 = vld [vmem:[#allocation8 + $0x3e0] ss:$12 sps:$4 sm:$0xff]  }
 0x2ce   : > { %v11750_v29 = vpop.f32.mrb[76].mxu0  ;;  %v16541_v4 = vpack.c.bf16 %v3122_v28, %v3119_v16  ;;  %v1543_v45 = vadd.f32 %v18770_v46, %v1382_v12  ;;  %v1664_v16 = vmax.f32 %v1540_v50, 0.0 }
 0x2cf   : > { %v2664_v43 = vpop.f32.mrb[92].mxu1  ;;  %v11751_v13 = vpop.f32.mrb[77].mxu0  ;;  %v16543_v57 = vpack.c.bf16 %v3123_v49, %v3120_v34 }
 0x2d0   : > { %v13288_v53 = vadd.f32 %v2664_v43, %v16443_v6  ;;  %v11752_v7 = vadd.f32 %v11751_v13, %v11750_v29  ;;  %v2666_v51 = vpop.f32.mrb[93].mxu1  ;;  %v11753_v27 = vpop.f32.mrb[78].mxu0  ;;  %v1667_v28 = vmax.f32 %v1543_v45, 0.0  ;;  %v14768_v29 = vld [vmem:[#allocation8 + $0x450] ss:$12 sps:$4 sm:$0xff]  }
 0x2d1   : > { %v13289_v31 = vadd.f32 %v2666_v51, %v16449_v24  ;;  %v2668_v33 = vpop.f32.mrb[94].mxu1  ;;  %3791 = vmatprep.mubr.bf16.mxu1 %v16543_v57  ;;  %v11754_v8 = vpop.f32.mrb[79].mxu0  ;;  %v14770_v43 = vld [vmem:[#allocation8 + $0x454] ss:$12 sps:$4 sm:$0xff]   ;;  %v18772_v45 = vld [vmem:[#allocation69_spill] sm:$0xff] }
 0x2d2   : > { %v1387_v42 = vadd.f32 %v11752_v7, %v16150_v32  ;;  %v13290_v34 = vadd.f32 %v2668_v33, %v16443_v6  ;;  %v11755_v49 = vadd.f32 %v11754_v8, %v11753_v27  ;;  %v2670_v12 = vpop.f32.mrb[95].mxu1  ;;  %3792 = vmatmul.mubr.bf16.gmra.mrb[152].mxu1 %v16541_v4  ;;  %v16554_v51 = vpack.c.bf16 %v1667_v28, %v1664_v16  ;;  %v14755_v8 = vld [vmem:[#allocation8 + $0x3f8] ss:$12 sps:$4 sm:$0xff]  }
 0x2d3   : > { %v13291_v13 = vadd.f32 %v2670_v12, %v16449_v24  ;;  %4138 = vmatmul.mubr.bf16.vlgmr.msra.gmra.mrb[184].mxu0 %v16467_v36  ;;  %v3125_v46 = vmax.f32 %v13288_v53, 0.0  ;;  %v3126_v27 = vmax.f32 %v13289_v31, 0.0  ;;  %3924 = vmatprep.subr.bf16.mxu1 %v14770_v43  ;;  %v18773_v36 = vld [vmem:[#allocation71_spill] sm:$0xff] }
 0x2d4   : > { %18771 = vst [vmem:[#allocation65_spill] sm:$0xff] %v16554_v51  ;;  %v3128_v1 = vmax.f32 %v13290_v34, 0.0  ;;  %v1390_v50 = vadd.f32 %v11755_v49, %v16150_v32  ;;  %4145 = vmatprep.mubr.bf16.mxu0 %v16492_v56  ;;  %12901 = vmatpush3.bf16.msra.mxu0 %v16465_v62  ;;  %v1548_v7 = vadd.f32 %v18772_v45, %v1387_v42  ;;  %v18779_v51 = vld [vmem:[#allocation75_spill] sm:$0xff] }
 0x2d5   : > { %v3129_v33 = vmax.f32 %v13291_v13, 0.0  ;;  %12902 = vmatprep.subr.bf16.mxu0 %v14751_v37  ;;  %3925 = vmatpush1.bf16.msra.mxu1 %v14768_v29  ;;  %v14759_v29 = vld [vmem:[#allocation8 + $0x410] ss:$12 sps:$4 sm:$0xff]  }
 0x2d6   : > { %v11756_v12 = vpop.f32.mrb[80].mxu0  ;;  %v16560_v40 = vpack.c.bf16 %v3128_v1, %v3125_v46  ;;  %v1551_v53 = vadd.f32 %v18773_v36, %v1390_v50  ;;  %v1670_v46 = vmax.f32 %v1548_v7, 0.0  ;;  %v18775_v7 = vld [vmem:[#allocation74_spill] sm:$0xff] }
 0x2d7   : > { %v2674_v16 = vpop.f32.mrb[96].mxu1  ;;  %v11757_v28 = vpop.f32.mrb[81].mxu0  ;;  %v16563_v34 = vpack.c.bf16 %v3129_v33, %v3126_v27 }
 0x2d8   : > { %v13292_v56 = vadd.f32 %v2674_v16, %v16443_v6  ;;  %v11758_v62 = vadd.f32 %v11757_v28, %v11756_v12  ;;  %v2676_v49 = vpop.f32.mrb[97].mxu1  ;;  %v11759_v42 = vpop.f32.mrb[82].mxu0  ;;  %12903 = vmatpush3.bf16.msra.mxu0 %v14751_v37  ;;  %v1673_v31 = vmax.f32 %v1551_v53, 0.0 }
 0x2d9   : > { %v13293_v13 = vadd.f32 %v2676_v49, %v16449_v24  ;;  %v2678_v43 = vpop.f32.mrb[98].mxu1  ;;  %3801 = vmatprep.mubr.bf16.mxu1 %v16563_v34  ;;  %v11760_v1 = vpop.f32.mrb[83].mxu0  ;;  %12904 = vmatprep.subr.bf16.mxu0 %v14755_v8 }
 0x2da   : > { %v1395_v50 = vadd.f32 %v11758_v62, %v16150_v32  ;;  %v13294_v45 = vadd.f32 %v2678_v43, %v16443_v6  ;;  %v11761_v27 = vadd.f32 %v11760_v1, %v11759_v42  ;;  %v2680_v33 = vpop.f32.mrb[99].mxu1  ;;  %3802 = vmatmul.mubr.bf16.gmra.mrb[156].mxu1 %v16560_v40  ;;  %v16573_v12 = vpack.c.bf16 %v1673_v31, %v1670_v46  ;;  %v14763_v42 = vld [vmem:[#allocation8 + $0x428] ss:$12 sps:$4 sm:$0xff]  }
 0x2db   : > { %v13295_v37 = vadd.f32 %v2680_v33, %v16449_v24  ;;  %4146 = vmatmul.mubr.bf16.gmra.mrb[188].mxu0 %v16488_v61  ;;  %v3131_v36 = vmax.f32 %v13292_v56, 0.0  ;;  %v3132_v62 = vmax.f32 %v13293_v13, 0.0  ;;  %v18776_v33 = vld [vmem:[#allocation76_spill] sm:$0xff] }
 0x2dc   : > { %18774 = vst [vmem:[#allocation67_spill] sm:$0xff] %v16573_v12  ;;  %v3134_v53 = vmax.f32 %v13294_v45, 0.0  ;;  %v1398_v16 = vadd.f32 %v11761_v27, %v16150_v32  ;;  %4153 = vmatprep.mubr.bf16.mxu0 %v16508_v48  ;;  %12905 = vmatpush3.bf16.msra.mxu0 %v14755_v8  ;;  %v1556_v28 = vadd.f32 %v18775_v7, %v1395_v50 }
 0x2dd   : > { %v3135_v49 = vmax.f32 %v13295_v37, 0.0  ;;  %12906 = vmatprep.subr.bf16.mxu0 %v14759_v29 }
 0x2de   : > { %v11762_v43 = vpop.f32.mrb[84].mxu0  ;;  %v16578_v1 = vpack.c.bf16 %v3134_v53, %v3131_v36  ;;  %v1559_v61 = vadd.f32 %v18776_v33, %v1398_v16  ;;  %v14767_v53 = vld [vmem:[#allocation8 + $0x440] ss:$12 sps:$4 sm:$0xff]   ;;  %v1676_v16 = vmax.f32 %v1556_v28, 0.0 }
 0x2df   : > { %v2684_v31 = vpop.f32.mrb[100].mxu1  ;;  %v11763_v46 = vpop.f32.mrb[85].mxu0  ;;  %v16581_v56 = vpack.c.bf16 %v3135_v49, %v3132_v62 }
 0x2e0   : > { %v13296_v45 = vadd.f32 %v2684_v31, %v16443_v6  ;;  %v11764_v27 = vadd.f32 %v11763_v46, %v11762_v43  ;;  %v2686_v48 = vpop.f32.mrb[101].mxu1  ;;  %v11765_v8 = vpop.f32.mrb[86].mxu0  ;;  %12907 = vmatpush3.bf16.msra.mxu0 %v14759_v29  ;;  %v1679_v50 = vmax.f32 %v1559_v61, 0.0  ;;  %v14772_v43 = vld [vmem:[#allocation8 + $0x468] ss:$12 sps:$4 sm:$0xff]  }
 0x2e1   : > { %v13297_v13 = vadd.f32 %v2686_v48, %v16449_v24  ;;  %v2688_v37 = vpop.f32.mrb[102].mxu1  ;;  %3811 = vmatprep.mubr.bf16.mxu1 %v16581_v56  ;;  %v11766_v36 = vpop.f32.mrb[87].mxu0  ;;  %12908 = vmatprep.subr.bf16.mxu0 %v14763_v42  ;;  %v14774_v29 = vld [vmem:[#allocation8 + $0x46c] ss:$12 sps:$4 sm:$0xff]  }
 0x2e2   : > { %v1403_v7 = vadd.f32 %v11764_v27, %v16150_v32  ;;  %v13298_v62 = vadd.f32 %v2688_v37, %v16443_v6  ;;  %v11767_v49 = vadd.f32 %v11766_v36, %v11765_v8  ;;  %v2690_v33 = vpop.f32.mrb[103].mxu1  ;;  %3812 = vmatmul.mubr.bf16.gmra.mrb[160].mxu1 %v16578_v1  ;;  %v16591_v31 = vpack.c.bf16 %v1679_v50, %v1676_v16  ;;  %v18778_v48 = vld [vmem:[#allocation73_spill] sm:$0xff]  ;;  %v14771_v36 = vld [vmem:[#allocation8 + $0x458] ss:$12 sps:$4 sm:$0xff]  }
 0x2e3   : > { %v13299_v61 = vadd.f32 %v2690_v33, %v16449_v24  ;;  %4154 = vmatmul.mubr.bf16.gmra.mrb[192].mxu0 %v16505_v19  ;;  %v3137_v46 = vmax.f32 %v13296_v45, 0.0  ;;  %v3138_v8 = vmax.f32 %v13297_v13, 0.0  ;;  %3926 = vmatprep.subr.bf16.mxu1 %v14774_v29 }
 0x2e4   : > { %18777 = vst [vmem:[#allocation70_spill] sm:$0xff] %v16591_v31  ;;  %v1564_v12 = vadd.f32 %v18778_v48, %v1403_v7  ;;  %v3140_v28 = vmax.f32 %v13298_v62, 0.0  ;;  %v1406_v27 = vadd.f32 %v11767_v49, %v16150_v32  ;;  %4161 = vmatprep.mubr.bf16.mxu0 %v16526_v23  ;;  %12909 = vmatpush3.bf16.msra.mxu0 %v14763_v42 }
 0x2e5   : > { %v3141_v37 = vmax.f32 %v13299_v61, 0.0  ;;  %12910 = vmatprep.subr.bf16.mxu0 %v14767_v53  ;;  %3927 = vmatpush1.bf16.msra.mxu1 %v14772_v43  ;;  %v14775_v43 = vld [vmem:[#allocation8 + $0x470] ss:$12 sps:$4 sm:$0xff]  }
 0x2e6   : > { %v1567_v33 = vadd.f32 %v18779_v51, %v1406_v27  ;;  %v11868_v0 = vpop.f32.mrb[88].mxu0  ;;  %v16597_v19 = vpack.c.bf16 %v3140_v28, %v3137_v46  ;;  %v1682_v7 = vmax.f32 %v1564_v12, 0.0 }
 0x2e7   : > { %v2694_v45 = vpop.f32.mrb[104].mxu1  ;;  %v11869_v50 = vpop.f32.mrb[89].mxu0  ;;  %v16599_v16 = vpack.c.bf16 %v3141_v37, %v3138_v8 }
 0x2e8   : > { %v1685_v32 = vmax.f32 %v1567_v33, 0.0  ;;  %v13300_v23 = vadd.f32 %v2694_v45, %v16443_v6  ;;  %v2696_v42 = vpop.f32.mrb[105].mxu1  ;;  %v16602_v13 = vadd.f32 %v11869_v50, %v11868_v0  ;;  %v11871_v62 = vpop.f32.mrb[90].mxu0  ;;  %12911 = vmatpush3.bf16.msra.mxu0 %v14767_v53 }
 0x2e9   : > { %v13301_v49 = vadd.f32 %v2696_v42, %v16449_v24  ;;  %v2698_v51 = vpop.f32.mrb[106].mxu1  ;;  %3821 = vmatprep.mubr.bf16.mxu1 %v16599_v16  ;;  %v11872_v29 = vpop.f32.mrb[91].mxu0  ;;  %12912 = vmatprep.subr.bf16.mxu0 %v14771_v36 }
 0x2ea   : > { %v16606_v61 = vpack.c.bf16 %v1685_v32, %v1682_v7  ;;  %v13302_v12 = vadd.f32 %v2698_v51, %v16443_v6  ;;  %v2700_v46 = vpop.f32.mrb[107].mxu1  ;;  %v16609_v48 = vadd.f32 %v11872_v29, %v11871_v62  ;;  %3822 = vmatmul.mubr.bf16.gmra.mrb[164].mxu1 %v16597_v19  ;;  %v3143_v53 = vmax.f32 %v13300_v23, 0.0 }
 0x2eb   : > { %v13303_v0 = vadd.f32 %v2700_v46, %v16449_v24  ;;  %4162 = vmatmul.mubr.bf16.gmra.mrb[196].mxu0 %v16524_v63  ;;  %v3144_v27 = vmax.f32 %v13301_v49, 0.0 }
 0x2ec   : > { %18780 = vst [vmem:[#allocation72_spill] sm:$0xff] %v16606_v61  ;;  %v3146_v28 = vmax.f32 %v13302_v12, 0.0  ;;  %4169 = vmatprep.mubr.bf16.mxu0 %v16543_v57  ;;  %12913 = vmatpush3.bf16.msra.mxu0 %v14771_v36 }
 0x2ed   : > { %v3147_v8 = vmax.f32 %v13303_v0, 0.0  ;;  %12914 = vmatprep.subr.bf16.mxu0 %v14775_v43 }
 0x2ee   : > { %v11874_v37 = vpop.f32.mrb[92].mxu0  ;;  %v16615_v33 = vpack.c.bf16 %v3146_v28, %v3143_v53 }
 0x2ef   : > { %v2704_v45 = vpop.f32.mrb[108].mxu1  ;;  %v11875_v50 = vpop.f32.mrb[93].mxu0  ;;  %v16617_v7 = vpack.c.bf16 %v3147_v8, %v3144_v27  ;;  %v14779_v27 = vld [vmem:[#allocation8 + $0xc8] ss:$12 sps:$4 sm:$0xff]  }
 0x2f0   : > { %v13304_v32 = vadd.f32 %v2704_v45, %v16443_v6  ;;  %v2706_v42 = vpop.f32.mrb[109].mxu1  ;;  %v16620_v62 = vadd.f32 %v11875_v50, %v11874_v37  ;;  %v11877_v63 = vpop.f32.mrb[94].mxu0  ;;  %12915 = vmatpush3.bf16.msra.mxu0 %v14775_v43  ;;  %v14778_v43 = vld [vmem:[#allocation8 + $0x4] ss:$12 sps:$4 sm:$0xff]  }
 0x2f1   : > { %v13305_v57 = vadd.f32 %v2706_v42, %v16449_v24  ;;  %v2708_v36 = vpop.f32.mrb[110].mxu1  ;;  %3831 = vmatprep.mubr.bf16.mxu1 %v16617_v7  ;;  %v11878_v23 = vpop.f32.mrb[95].mxu0  ;;  %4811 = vmatprep.subr.bf16.mxu1 %v14778_v43 }
 0x2f2   : > { %v13306_v49 = vadd.f32 %v2708_v36, %v16443_v6  ;;  %v2710_v51 = vpop.f32.mrb[111].mxu1  ;;  %v16625_v29 = vadd.f32 %v11878_v23, %v11877_v63  ;;  %3832 = vmatmul.mubr.bf16.gmra.mrb[168].mxu1 %v16615_v33  ;;  %v3149_v46 = vmax.f32 %v13304_v32, 0.0  ;;  %12124 = vmatprep.subr.bf16.mxu0 %v14779_v27 }
 0x2f3   : > { %v13307_v12 = vadd.f32 %v2710_v51, %v16449_v24  ;;  %4170 = vmatmul.mubr.bf16.gmra.mrb[200].mxu0 %v16541_v4  ;;  %v3150_v53 = vmax.f32 %v13305_v57, 0.0 }
 0x2f4   : > { %v3152_v0 = vmax.f32 %v13306_v49, 0.0  ;;  %4177 = vmatprep.mubr.bf16.mxu0 %v16563_v34 }
 0x2f5   : > { %v3153_v28 = vmax.f32 %v13307_v12, 0.0 }
 0x2f6   : > { %v11880_v8 = vpop.f32.mrb[96].mxu0  ;;  %v16631_v37 = vpack.c.bf16 %v3152_v0, %v3149_v46 }
 0x2f7   : > { %v2714_v45 = vpop.f32.mrb[112].mxu1  ;;  %v11881_v50 = vpop.f32.mrb[97].mxu0  ;;  %v16633_v42 = vpack.c.bf16 %v3153_v28, %v3150_v53 }
 0x2f8   : > { %v13308_v63 = vadd.f32 %v2714_v45, %v16443_v6  ;;  %v2716_v4 = vpop.f32.mrb[113].mxu1  ;;  %v16636_v32 = vadd.f32 %v11881_v50, %v11880_v8  ;;  %v11883_v36 = vpop.f32.mrb[98].mxu0 }
 0x2f9   : > { %v13309_v34 = vadd.f32 %v2716_v4, %v16449_v24  ;;  %v2718_v57 = vpop.f32.mrb[114].mxu1  ;;  %3841 = vmatprep.mubr.bf16.mxu1 %v16633_v42  ;;  %v11884_v23 = vpop.f32.mrb[99].mxu0 }
 0x2fa   : > { %v13310_v49 = vadd.f32 %v2718_v57, %v16443_v6  ;;  %v2720_v51 = vpop.f32.mrb[115].mxu1  ;;  %v16641_v12 = vadd.f32 %v11884_v23, %v11883_v36  ;;  %3842 = vmatmul.mubr.bf16.gmra.mrb[172].mxu1 %v16631_v37  ;;  %v3155_v0 = vmax.f32 %v13308_v63, 0.0 }
 0x2fb   : > { %v13311_v46 = vadd.f32 %v2720_v51, %v16449_v24  ;;  %4178 = vmatmul.mubr.bf16.gmra.mrb[204].mxu0 %v16560_v40  ;;  %v3156_v53 = vmax.f32 %v13309_v34, 0.0 }
 0x2fc   : > { %v3158_v43 = vmax.f32 %v13310_v49, 0.0  ;;  %4185 = vmatprep.mubr.bf16.mxu0 %v16581_v56 }
 0x2fd   : > { %v3159_v28 = vmax.f32 %v13311_v46, 0.0 }
 0x2fe   : > { %v11886_v27 = vpop.f32.mrb[100].mxu0  ;;  %v16647_v8 = vpack.c.bf16 %v3158_v43, %v3155_v0 }
 0x2ff   : > { %v2724_v45 = vpop.f32.mrb[116].mxu1  ;;  %v11887_v50 = vpop.f32.mrb[101].mxu0  ;;  %v16649_v4 = vpack.c.bf16 %v3159_v28, %v3156_v53 }
 0x300   : > { %v13312_v36 = vadd.f32 %v2724_v45, %v16443_v6  ;;  %v2726_v57 = vpop.f32.mrb[117].mxu1  ;;  %v16652_v23 = vadd.f32 %v11887_v50, %v11886_v27  ;;  %v11889_v51 = vpop.f32.mrb[102].mxu0 }
 0x301   : > { %v13313_v40 = vadd.f32 %v2726_v57, %v16449_v24  ;;  %v2728_v63 = vpop.f32.mrb[118].mxu1  ;;  %3851 = vmatprep.mubr.bf16.mxu1 %v16649_v4  ;;  %v11890_v56 = vpop.f32.mrb[103].mxu0 }
 0x302   : > { %v13314_v34 = vadd.f32 %v2728_v63, %v16443_v6  ;;  %v2730_v49 = vpop.f32.mrb[119].mxu1  ;;  %v16657_v46 = vadd.f32 %v11890_v56, %v11889_v51  ;;  %3852 = vmatmul.mubr.bf16.gmra.mrb[176].mxu1 %v16647_v8  ;;  %v3161_v43 = vmax.f32 %v13312_v36, 0.0 }
 0x303   : > { %v13315_v0 = vadd.f32 %v2730_v49, %v16449_v24  ;;  %4186 = vmatmul.mubr.bf16.gmra.mrb[208].mxu0 %v16578_v1  ;;  %v3162_v28 = vmax.f32 %v13313_v40, 0.0 }
 0x304   : > { %v3164_v53 = vmax.f32 %v13314_v34, 0.0  ;;  %4193 = vmatprep.mubr.bf16.mxu0 %v16599_v16 }
 0x305   : > { %v3165_v27 = vmax.f32 %v13315_v0, 0.0 }
 0x306   : > { %v11892_v45 = vpop.f32.mrb[104].mxu0  ;;  %v16663_v50 = vpack.c.bf16 %v3164_v53, %v3161_v43 }
 0x307   : > { %v2734_v57 = vpop.f32.mrb[120].mxu1  ;;  %v11893_v63 = vpop.f32.mrb[105].mxu0  ;;  %v16665_v61 = vpack.c.bf16 %v3165_v27, %v3162_v28 }
 0x308   : > { %v13316_v51 = vadd.f32 %v2734_v57, %v16443_v6  ;;  %v2736_v56 = vpop.f32.mrb[121].mxu1  ;;  %v16668_v31 = vadd.f32 %v11893_v63, %v11892_v45  ;;  %v11895_v49 = vpop.f32.mrb[106].mxu0 }
 0x309   : > { %v13317_v1 = vadd.f32 %v2736_v56, %v16449_v24  ;;  %v2738_v36 = vpop.f32.mrb[122].mxu1  ;;  %3861 = vmatprep.mubr.bf16.mxu1 %v16665_v61  ;;  %v11896_v16 = vpop.f32.mrb[107].mxu0 }
 0x30a   : > { %v13318_v40 = vadd.f32 %v2738_v36, %v16443_v6  ;;  %v2740_v34 = vpop.f32.mrb[123].mxu1  ;;  %v16673_v0 = vadd.f32 %v11896_v16, %v11895_v49  ;;  %3862 = vmatmul.mubr.bf16.gmra.mrb[180].mxu1 %v16663_v50  ;;  %v3167_v53 = vmax.f32 %v13316_v51, 0.0 }
 0x30b   : > { %v13319_v43 = vadd.f32 %v2740_v34, %v16449_v24  ;;  %4194 = vmatmul.mubr.bf16.gmra.mrb[212].mxu0 %v16597_v19  ;;  %v3168_v27 = vmax.f32 %v13317_v1, 0.0 }
 0x30c   : > { %v3170_v28 = vmax.f32 %v13318_v40, 0.0  ;;  %4201 = vmatprep.mubr.bf16.mxu0 %v16617_v7 }
 0x30d   : > { %v3171_v45 = vmax.f32 %v13319_v43, 0.0 }
 0x30e   : > { %v11898_v57 = vpop.f32.mrb[108].mxu0  ;;  %v16679_v63 = vpack.c.bf16 %v3170_v28, %v3167_v53 }
 0x30f   : > { %v2744_v56 = vpop.f32.mrb[124].mxu1  ;;  %v11899_v36 = vpop.f32.mrb[109].mxu0  ;;  %v16681_v52 = vpack.c.bf16 %v3171_v45, %v3168_v27 }
 0x310   : > { %v13320_v49 = vadd.f32 %v2744_v56, %v16443_v6  ;;  %v2746_v16 = vpop.f32.mrb[125].mxu1  ;;  %v16684_v11 = vadd.f32 %v11899_v36, %v11898_v57  ;;  %v11901_v34 = vpop.f32.mrb[110].mxu0 }
 0x311   : > { %v13321_v19 = vadd.f32 %v2746_v16, %v16449_v24  ;;  %v2748_v51 = vpop.f32.mrb[126].mxu1  ;;  %3871 = vmatprep.mubr.bf16.mxu1 %v16681_v52  ;;  %v11902_v7 = vpop.f32.mrb[111].mxu0 }
 0x312   : > { %v13322_v1 = vadd.f32 %v2748_v51, %v16443_v6  ;;  %v2750_v40 = vpop.f32.mrb[127].mxu1  ;;  %v16689_v43 = vadd.f32 %v11902_v7, %v11901_v34  ;;  %3872 = vmatmul.mubr.bf16.gmra.mrb[184].mxu1 %v16679_v63  ;;  %v3173_v28 = vmax.f32 %v13320_v49, 0.0 }
 0x313   : > { %v13323_v53 = vadd.f32 %v2750_v40, %v16449_v24  ;;  %4202 = vmatmul.mubr.bf16.gmra.mrb[216].mxu0 %v16615_v33  ;;  %v3174_v45 = vmax.f32 %v13321_v19, 0.0 }
 0x314   : > { %v3176_v27 = vmax.f32 %v13322_v1, 0.0  ;;  %4209 = vmatprep.mubr.bf16.mxu0 %v16633_v42 }
 0x315   : > { %v3177_v57 = vmax.f32 %v13323_v53, 0.0 }
 0x316   : > { %v11904_v56 = vpop.f32.mrb[112].mxu0  ;;  %v16695_v36 = vpack.c.bf16 %v3176_v27, %v3173_v28 }
 0x317   : > { %v2754_v16 = vpop.f32.mrb[128].mxu1  ;;  %v11905_v51 = vpop.f32.mrb[113].mxu0  ;;  %v16697_v3 = vpack.c.bf16 %v3177_v57, %v3174_v45 }
 0x318   : > { %v13324_v34 = vadd.f32 %v2754_v16, %v16443_v6  ;;  %v2756_v7 = vpop.f32.mrb[129].mxu1  ;;  %v16700_v21 = vadd.f32 %v11905_v51, %v11904_v56  ;;  %v11907_v40 = vpop.f32.mrb[114].mxu0 }
 0x319   : > { %v13325_v33 = vadd.f32 %v2756_v7, %v16449_v24  ;;  %v2758_v49 = vpop.f32.mrb[130].mxu1  ;;  %3881 = vmatprep.mubr.bf16.mxu1 %v16697_v3  ;;  %v11908_v42 = vpop.f32.mrb[115].mxu0 }
 0x31a   : > { %v13326_v19 = vadd.f32 %v2758_v49, %v16443_v6  ;;  %v2760_v1 = vpop.f32.mrb[131].mxu1  ;;  %v16705_v53 = vadd.f32 %v11908_v42, %v11907_v40  ;;  %3882 = vmatmul.mubr.bf16.gmra.mrb[188].mxu1 %v16695_v36  ;;  %v3179_v27 = vmax.f32 %v13324_v34, 0.0 }
 0x31b   : > { %v13327_v28 = vadd.f32 %v2760_v1, %v16449_v24  ;;  %4210 = vmatmul.mubr.bf16.gmra.mrb[220].mxu0 %v16631_v37  ;;  %v3180_v57 = vmax.f32 %v13325_v33, 0.0 }
 0x31c   : > { %v3182_v45 = vmax.f32 %v13326_v19, 0.0  ;;  %4217 = vmatprep.mubr.bf16.mxu0 %v16649_v4 }
 0x31d   : > { %v3183_v56 = vmax.f32 %v13327_v28, 0.0 }
 0x31e   : > { %v11910_v16 = vpop.f32.mrb[116].mxu0  ;;  %v3233_v51 = vpack.c.bf16 %v3182_v45, %v3179_v27 }
 0x31f   : > { %v2764_v7 = vpop.f32.mrb[132].mxu1  ;;  %v11911_v58 = vpop.f32.mrb[117].mxu0  ;;  %v3234_v49 = vpack.c.bf16 %v3183_v56, %v3180_v57 }
 0x320   : > { %v13328_v40 = vadd.f32 %v2764_v7, %v16443_v6  ;;  %v2766_v42 = vpop.f32.mrb[133].mxu1  ;;  %v16712_v60 = vadd.f32 %v11911_v58, %v11910_v16  ;;  %v11913_v38 = vpop.f32.mrb[118].mxu0 }
 0x321   : > { %v13329_v1 = vadd.f32 %v2766_v42, %v16449_v24  ;;  %v2768_v37 = vpop.f32.mrb[134].mxu1  ;;  %3891 = vmatprep.mubr.bf16.mxu1 %v3234_v49  ;;  %v11914_v34 = vpop.f32.mrb[119].mxu0 }
 0x322   : > { %v13330_v4 = vadd.f32 %v2768_v37, %v16443_v6  ;;  %v2770_v33 = vpop.f32.mrb[135].mxu1  ;;  %v16716_v19 = vadd.f32 %v11914_v34, %v11913_v38  ;;  %3892 = vmatmul.mubr.bf16.gmra.mrb[192].mxu1 %v3233_v51  ;;  %v3185_v27 = vmax.f32 %v13328_v40, 0.0 }
 0x323   : > { %v13331_v28 = vadd.f32 %v2770_v33, %v16449_v24  ;;  %4218 = vmatmul.mubr.bf16.gmra.mrb[224].mxu0 %v16647_v8  ;;  %v3186_v58 = vmax.f32 %v13329_v1, 0.0 }
 0x324   : > { %v3188_v45 = vmax.f32 %v13330_v4, 0.0  ;;  %4225 = vmatprep.mubr.bf16.mxu0 %v16665_v61 }
 0x325   : > { %v3189_v57 = vmax.f32 %v13331_v28, 0.0 }
 0x326   : > { %v11916_v56 = vpop.f32.mrb[120].mxu0  ;;  %v3236_v16 = vpack.c.bf16 %v3188_v45, %v3185_v27 }
 0x327   : > { %v11917_v7 = vpop.f32.mrb[121].mxu0  ;;  %v3237_v42 = vpack.c.bf16 %v3189_v57, %v3186_v58 }
 0x328   : > { %v16721_v10 = vadd.f32 %v11917_v7, %v11916_v56  ;;  %v11919_v6 = vpop.f32.mrb[122].mxu0 }
 0x329   : > { %3901 = vmatprep.mubr.bf16.mxu1 %v3237_v42  ;;  %v11920_v38 = vpop.f32.mrb[123].mxu0 }
 0x32a   : > { %v16723_v37 = vadd.f32 %v11920_v38, %v11919_v6  ;;  %3902 = vmatmul.mubr.bf16.gmra.mrb[196].mxu1 %v3236_v16 }
 0x32b   : > { %4226 = vmatmul.mubr.bf16.gmra.mrb[228].mxu0 %v16663_v50  ;;  %3944 = vmatprep.mubr.bf16.mxu1 %v18696_v55 }
 0x32c   : > { %4233 = vmatprep.mubr.bf16.mxu0 %v16681_v52 }
 0x32e   : > { %v11922_v24 = vpop.f32.mrb[124].mxu0 }
 0x32f   : > { %v11923_v61 = vpop.f32.mrb[125].mxu0 }
 0x330   : > { %v16728_v8 = vadd.f32 %v11923_v61, %v11922_v24  ;;  %v11925_v40 = vpop.f32.mrb[126].mxu0 }
 0x331   : > { %v11926_v1 = vpop.f32.mrb[127].mxu0 }
 0x332   : > { %v16730_v34 = vadd.f32 %v11926_v1, %v11925_v40 }
 0x333   : > { %4234 = vmatmul.mubr.bf16.gmra.mrb[232].mxu0 %v16679_v63 }
 0x334   : > { %4241 = vmatprep.mubr.bf16.mxu0 %v16697_v3 }
 0x336   : > { %v11928_v4 = vpop.f32.mrb[128].mxu0 }
 0x337   : > { %v11929_v33 = vpop.f32.mrb[129].mxu0 }
 0x338   : > { %v16734_v28 = vadd.f32 %v11929_v33, %v11928_v4  ;;  %v11931_v50 = vpop.f32.mrb[130].mxu0 }
 0x339   : > { %v11932_v27 = vpop.f32.mrb[131].mxu0 }
 0x33a   : > { %v16736_v45 = vadd.f32 %v11932_v27, %v11931_v50 }
 0x33b   : > { %4242 = vmatmul.mubr.bf16.gmra.mrb[236].mxu0 %v16695_v36 }
 0x33c   : > { %4249 = vmatprep.mubr.bf16.mxu0 %v3234_v49 }
 0x33e   : > { %v11934_v52 = vpop.f32.mrb[132].mxu0 }
 0x33f   : > { %v11935_v58 = vpop.f32.mrb[133].mxu0 }
 0x340   : > { %v16739_v57 = vadd.f32 %v11935_v58, %v11934_v52  ;;  %v11937_v56 = vpop.f32.mrb[134].mxu0 }
 0x341   : > { %v11938_v7 = vpop.f32.mrb[135].mxu0 }
 0x342   : > { %v16741_v63 = vadd.f32 %v11938_v7, %v11937_v56 }
 0x343   : > { %4250 = vmatmul.mubr.bf16.gmra.mrb[240].mxu0 %v3233_v51 }
 0x344   : > { %4257 = vmatprep.mubr.bf16.mxu0 %v3237_v42 }
 0x346   : > { %v11940_v3 = vpop.f32.mrb[136].mxu0 }
 0x347   : > { %v11941_v6 = vpop.f32.mrb[137].mxu0 }
 0x348   : > { %v16743_v38 = vadd.f32 %v11941_v6, %v11940_v3  ;;  %v11943_v24 = vpop.f32.mrb[138].mxu0 }
 0x349   : > { %v11944_v61 = vpop.f32.mrb[139].mxu0 }
 0x34a   : > { %v16745_v40 = vadd.f32 %v11944_v61, %v11943_v24 }
 0x34b   : > { %4258 = vmatmul.mubr.bf16.gmra.mrb[244].mxu0 %v3236_v16 }
 0x34e   : > { %v11946_v36 = vpop.f32.mrb[140].mxu0 }
 0x34f   : > { %v11947_v49 = vpop.f32.mrb[141].mxu0 }
 0x350   : > { %v16747_v1 = vadd.f32 %v11947_v49, %v11946_v36  ;;  %v11949_v4 = vpop.f32.mrb[142].mxu0  ;;  %v15271_v36 = vld [vmem:[#allocation7 + $0x3] sm:$0x7]  ;;  %v18781_v49 = vld [vmem:[#allocation64_spill] sm:$0xff] }
 0x351   : > { %v11950_v33 = vpop.f32.mrb[143].mxu0 }
 0x352   : > { %v16749_v50 = vadd.f32 %v11950_v33, %v11949_v4  ;;  %v16760_v4 = vrot.slane %v15271_v36, %v18781_v49 }
 0x354   : > { %v2816_v33 = vadd.f32 %v16620_v62, %v16760_v4 }
 0x356   : > { %v11952_v27 = vpop.f32.mrb[144].mxu0 }
 0x357   : > { %v11953_v51 = vpop.f32.mrb[145].mxu0 }
 0x358   : > { %v16751_v42 = vadd.f32 %v11953_v51, %v11952_v27  ;;  %v11955_v52 = vpop.f32.mrb[146].mxu0  ;;  %v2808_v51 = vadd.f32 %v16602_v13, %v16760_v4  ;;  %v2832_v13 = vadd.f32 %v16652_v23, %v16760_v4 }
 0x359   : > { %v11956_v58 = vpop.f32.mrb[147].mxu0 }
 0x35a   : > { %v16753_v56 = vadd.f32 %v11956_v58, %v11955_v52 }
 0x35e   : > { %v11958_v7 = vpop.f32.mrb[148].mxu0 }
 0x35f   : > { %v11959_v3 = vpop.f32.mrb[149].mxu0 }
 0x360   : > { %v16755_v6 = vadd.f32 %v11959_v3, %v11958_v7  ;;  %v11961_v16 = vpop.f32.mrb[150].mxu0  ;;  %v2819_v7 = vadd.f32 %v16625_v29, %v16760_v4  ;;  %v2824_v29 = vadd.f32 %v16636_v32, %v16760_v4  ;;  %v14781_v32 = vld [vmem:[#allocation8 + $0x18] ss:$12 sps:$4 sm:$0xff]  }
 0x361   : > { %v11962_v24 = vpop.f32.mrb[151].mxu0 }
 0x362   : > { %v16757_v61 = vadd.f32 %v11962_v24, %v11961_v16  ;;  %v2811_v16 = vadd.f32 %v16609_v48, %v16760_v4 }
 0x366   : > { %v12870_v27 = vpop.f32.mrb[152].mxu0 }
 0x367   : > { %v2977_v52 = vadd.f32 %v12870_v27, %v2816_v33  ;;  %v2968_v58 = vpop.f32.mrb[153].mxu0  ;;  %v14776_v33 = vld [vmem:[#allocation8] ss:$12 sps:$4 sm:$0xff]  }
 0x368   : > { %v2969_v3 = vadd.f32 %v2968_v58, %v2808_v51  ;;  %v12871_v5 = vpop.f32.mrb[154].mxu0  ;;  %v14780_v51 = vld [vmem:[#allocation8 + $0x8] ss:$12 sps:$4 sm:$0xff]  }
 0x369   : > { %v2980_v24 = vadd.f32 %v12871_v5, %v2819_v7  ;;  %v2971_v36 = vpop.f32.mrb[155].mxu0  ;;  %v3103_v54 = vmax.f32 %v2977_v52, 0.0  ;;  %v2835_v5 = vadd.f32 %v16657_v46, %v16760_v4  ;;  %v14783_v52 = vld [vmem:[#allocation8 + $0x1c] ss:$12 sps:$4 sm:$0xff]   ;;  %v14784_v7 = vld [vmem:[#allocation8 + $0xe0] ss:$12 sps:$4 sm:$0xff]  }
 0x36a   : > { %v2972_v49 = vadd.f32 %v2971_v36, %v2811_v16  ;;  %v3097_v62 = vmax.f32 %v2969_v3, 0.0  ;;  %v14788_v46 = vld [vmem:[#allocation8 + $0x34] ss:$12 sps:$4 sm:$0xff]   ;;  %v14789_v36 = vld [vmem:[#allocation8 + $0xf8] ss:$12 sps:$4 sm:$0xff]  }
 0x36b   : > { %v3106_v17 = vmax.f32 %v2980_v24, 0.0 }
 0x36c   : > { %v3100_v59 = vmax.f32 %v2972_v49, 0.0 }
 0x36d   : > { %v3196_v25 = vpack.c.bf16 %v3106_v17, %v3103_v54  ;;  %v2827_v54 = vadd.f32 %v16641_v12, %v16760_v4  ;;  %v2848_v12 = vadd.f32 %v16684_v11, %v16760_v4  ;;  %v14794_v11 = vld [vmem:[#allocation8 + $0x110] ss:$12 sps:$4 sm:$0xff]  }
 0x36e   : > { %v3193_v27 = vpack.c.bf16 %v3100_v59, %v3097_v62  ;;  %v12874_v30 = vpop.f32.mrb[156].mxu0 }
 0x36f   : > { %v2993_v58 = vadd.f32 %v12874_v30, %v2832_v13  ;;  %v2984_v48 = vpop.f32.mrb[157].mxu0  ;;  %v14785_v30 = vld [vmem:[#allocation8 + $0x20] ss:$12 sps:$4 sm:$0xff]  }
 0x370   : > { %v2985_v3 = vadd.f32 %v2984_v48, %v2824_v29  ;;  %v12875_v49 = vpop.f32.mrb[158].mxu0  ;;  %3945 = vmatmul.mubr.bf16.vlgmr.msra.gmra.mrb[136].mxu1 %v3193_v27  ;;  %12916 = vmatprep.mubr.bf16.mxu0 %v3193_v27  ;;  %v2840_v29 = vadd.f32 %v16668_v31, %v16760_v4  ;;  %v14786_v48 = vld [vmem:[#allocation8 + $0x30] ss:$12 sps:$4 sm:$0xff]   ;;  %v2843_v31 = vadd.f32 %v16673_v0, %v16760_v4 }
 0x371   : > { %v2996_v59 = vadd.f32 %v12875_v49, %v2835_v5  ;;  %v2987_v17 = vpop.f32.mrb[159].mxu0  ;;  %12917 = vmatmul.mubr.bf16.vlgmr.msra.gmra.mrb[248].mxu0 %v3196_v25  ;;  %4812 = vmatpush1.bf16.msra.mxu1 %v14776_v33  ;;  %v3115_v16 = vmax.f32 %v2993_v58, 0.0  ;;  %v14790_v58 = vld [vmem:[#allocation8 + $0x38] ss:$12 sps:$4 sm:$0xff]  }
 0x372   : > { %v2988_v23 = vadd.f32 %v2987_v17, %v2827_v54  ;;  %12125 = vmatpush3.bf16.msra.mxu0 %v14780_v51  ;;  %3954 = vmatprep.mubr.bf16.mxu1 %v18696_v55  ;;  %v3109_v62 = vmax.f32 %v2985_v3, 0.0  ;;  %v14793_v3 = vld [vmem:[#allocation8 + $0x4c] ss:$12 sps:$4 sm:$0xff]  }
 0x373   : > { %v3118_v24 = vmax.f32 %v2996_v59, 0.0  ;;  %4813 = vmatprep.subr.bf16.mxu1 %v14783_v52  ;;  %12126 = vmatprep.subr.bf16.mxu0 %v14784_v7  ;;  %v2851_v7 = vadd.f32 %v16689_v43, %v16760_v4  ;;  %v14791_v43 = vld [vmem:[#allocation8 + $0x48] ss:$12 sps:$4 sm:$0xff]  }
 0x374   : > { %v3112_v13 = vmax.f32 %v2988_v23, 0.0  ;;  %v14795_v23 = vld [vmem:[#allocation8 + $0x50] ss:$12 sps:$4 sm:$0xff]  }
 0x375   : > { %v16781_v27 = vpack.c.bf16 %v3118_v24, %v3115_v16  ;;  %4814 = vmatpush1.bf16.msra.mxu1 %v14781_v32  ;;  %v14799_v16 = vld [vmem:[#allocation8 + $0x128] ss:$12 sps:$4 sm:$0xff]  }
 0x376   : > { %v12878_v33 = vpop.f32.mrb[160].mxu0  ;;  %v3199_v51 = vpack.c.bf16 %v3112_v13, %v3109_v62  ;;  %12127 = vmatpush3.bf16.msra.mxu0 %v14785_v30  ;;  %4815 = vmatprep.subr.bf16.mxu1 %v14788_v46  ;;  %v2864_v62 = vadd.f32 %v16712_v60, %v16760_v4 }
 0x377   : > { %v3009_v5 = vadd.f32 %v12878_v33, %v2848_v12  ;;  %v3000_v52 = vpop.f32.mrb[161].mxu0  ;;  %12128 = vmatprep.subr.bf16.mxu0 %v14789_v36  ;;  %v2856_v12 = vadd.f32 %v16700_v21, %v16760_v4  ;;  %v2859_v21 = vadd.f32 %v16705_v53, %v16760_v4 }
 0x378   : > { %v3001_v49 = vadd.f32 %v3000_v52, %v2840_v29  ;;  %v12879_v54 = vpop.f32.mrb[162].mxu0  ;;  %3955 = vmatmul.mubr.bf16.gmra.mrb[140].mxu1 %v3196_v25  ;;  %12920 = vmatprep.mubr.bf16.mxu0 %v3199_v51  ;;  %v14798_v25 = vld [vmem:[#allocation8 + $0x64] ss:$12 sps:$4 sm:$0xff]   ;;  %v14796_v29 = vld [vmem:[#allocation8 + $0x60] ss:$12 sps:$4 sm:$0xff]   ;;  %v2867_v52 = vadd.f32 %v16716_v19, %v16760_v4 }
 0x379   : > { %v3012_v59 = vadd.f32 %v12879_v54, %v2851_v7  ;;  %v3003_v17 = vpop.f32.mrb[163].mxu0  ;;  %12921 = vmatmul.mubr.bf16.gmra.mrb[252].mxu0 %v16781_v27  ;;  %3964 = vmatprep.mubr.bf16.mxu1 %v18696_v55  ;;  %v3127_v30 = vmax.f32 %v3009_v5, 0.0  ;;  %v14803_v7 = vld [vmem:[#allocation8 + $0x7c] ss:$12 sps:$4 sm:$0xff]   ;;  %v14801_v19 = vld [vmem:[#allocation8 + $0x78] ss:$12 sps:$4 sm:$0xff]  }
 0x37a   : > { %v3004_v32 = vadd.f32 %v3003_v17, %v2843_v31  ;;  %4816 = vmatpush1.bf16.msra.mxu1 %v14786_v48  ;;  %12129 = vmatpush3.bf16.msra.mxu0 %v14790_v58  ;;  %v3121_v24 = vmax.f32 %v3001_v49, 0.0  ;;  %v14800_v48 = vld [vmem:[#allocation8 + $0x68] ss:$12 sps:$4 sm:$0xff]  }
 0x37b   : > { %v3130_v46 = vmax.f32 %v3012_v59, 0.0  ;;  %4817 = vmatprep.subr.bf16.mxu1 %v14793_v3  ;;  %12130 = vmatprep.subr.bf16.mxu0 %v14794_v11  ;;  %v14804_v3 = vld [vmem:[#allocation8 + $0x140] ss:$12 sps:$4 sm:$0xff]  }
 0x37c   : > { %v3124_v36 = vmax.f32 %v3004_v32, 0.0  ;;  %v14805_v59 = vld [vmem:[#allocation8 + $0x80] ss:$12 sps:$4 sm:$0xff]  }
 0x37d   : > { %v16791_v0 = vpack.c.bf16 %v3130_v46, %v3127_v30  ;;  %v2880_v46 = vadd.f32 %v16728_v8, %v16760_v4 }
 0x37e   : > { %v12882_v13 = vpop.f32.mrb[164].mxu0  ;;  %v16797_v33 = vpack.c.bf16 %v3124_v36, %v3121_v24  ;;  %4818 = vmatpush1.bf16.msra.mxu1 %v14791_v43  ;;  %12131 = vmatpush3.bf16.msra.mxu0 %v14795_v23  ;;  %v14809_v43 = vld [vmem:[#allocation8 + $0x158] ss:$12 sps:$4 sm:$0xff]   ;;  %v14806_v36 = vld [vmem:[#allocation8 + $0x90] ss:$12 sps:$4 sm:$0xff]  }
 0x37f   : > { %v3025_v58 = vadd.f32 %v12882_v13, %v2864_v62  ;;  %v3016_v5 = vpop.f32.mrb[165].mxu0  ;;  %4819 = vmatprep.subr.bf16.mxu1 %v14798_v25  ;;  %12132 = vmatprep.subr.bf16.mxu0 %v14799_v16  ;;  %v2872_v16 = vadd.f32 %v16721_v10, %v16760_v4  ;;  %v14810_v62 = vld [vmem:[#allocation8 + $0x98] ss:$12 sps:$4 sm:$0xff]   ;;  %v2875_v10 = vadd.f32 %v16723_v37, %v16760_v4 }
 0x380   : > { %v3017_v60 = vadd.f32 %v3016_v5, %v2856_v12  ;;  %v12883_v11 = vpop.f32.mrb[166].mxu0  ;;  %3965 = vmatmul.mubr.bf16.gmra.mrb[144].mxu1 %v3199_v51  ;;  %12924 = vmatprep.mubr.bf16.mxu0 %v16797_v33  ;;  %v14808_v51 = vld [vmem:[#allocation8 + $0x94] ss:$12 sps:$4 sm:$0xff]  }
 0x381   : > { %v3028_v49 = vadd.f32 %v12883_v11, %v2867_v52  ;;  %v3019_v54 = vpop.f32.mrb[167].mxu0  ;;  %12925 = vmatmul.mubr.bf16.gmra.mrb[0].mxu0 %v16791_v0  ;;  %3974 = vmatprep.mubr.bf16.mxu1 %v18696_v55  ;;  %v3139_v17 = vmax.f32 %v3025_v58, 0.0  ;;  %v14814_v58 = vld [vmem:[#allocation8 + $0x170] ss:$12 sps:$4 sm:$0xff]  }
 0x382   : > { %v3020_v31 = vadd.f32 %v3019_v54, %v2859_v21  ;;  %4820 = vmatpush1.bf16.msra.mxu1 %v14796_v29  ;;  %12133 = vmatpush3.bf16.msra.mxu0 %v14800_v48  ;;  %v3133_v23 = vmax.f32 %v3017_v60, 0.0  ;;  %v2883_v29 = vadd.f32 %v16730_v34, %v16760_v4  ;;  %v14813_v48 = vld [vmem:[#allocation8 + $0xac] ss:$12 sps:$4 sm:$0xff]   ;;  %v14815_v60 = vld [vmem:[#allocation8 + $0xb0] ss:$12 sps:$4 sm:$0xff]  }
 0x383   : > { %v3142_v32 = vmax.f32 %v3028_v49, 0.0  ;;  %4821 = vmatprep.subr.bf16.mxu1 %v14803_v7  ;;  %12134 = vmatprep.subr.bf16.mxu0 %v14804_v3  ;;  %v14811_v3 = vld [vmem:[#allocation8 + $0xa8] ss:$12 sps:$4 sm:$0xff]  }
 0x384   : > { %v3136_v30 = vmax.f32 %v3020_v31, 0.0  ;;  %v16822_v49 = vld [vmem:[#allocation8 + $0x188] ss:$12 sps:$4 sm:$0xff]  }
 0x385   : > { %v16806_v53 = vpack.c.bf16 %v3142_v32, %v3139_v17  ;;  %v2888_v17 = vadd.f32 %v16734_v28, %v16760_v4  ;;  %v2891_v28 = vadd.f32 %v16736_v45, %v16760_v4  ;;  %v2912_v45 = vadd.f32 %v16747_v1, %v16760_v4 }
 0x386   : > { %v12886_v25 = vpop.f32.mrb[168].mxu0  ;;  %v16812_v24 = vpack.c.bf16 %v3136_v30, %v3133_v23  ;;  %4822 = vmatpush1.bf16.msra.mxu1 %v14801_v19  ;;  %12135 = vmatpush3.bf16.msra.mxu0 %v14805_v59  ;;  %v2896_v19 = vadd.f32 %v16739_v57, %v16760_v4  ;;  %v2899_v30 = vadd.f32 %v16741_v63, %v16760_v4 }
 0x387   : > { %v3041_v13 = vadd.f32 %v12886_v25, %v2880_v46  ;;  %v3032_v12 = vpop.f32.mrb[169].mxu0  ;;  %4823 = vmatprep.subr.bf16.mxu1 %v14808_v51  ;;  %12136 = vmatprep.subr.bf16.mxu0 %v14809_v43  ;;  %v14816_v51 = vld [vmem:[#allocation8 + $0xc0] ss:$12 sps:$4 sm:$0xff]   ;;  %v14822_v46 = vld [vmem:[#allocation8 + $0xdc] ss:$12 sps:$4 sm:$0xff]  }
 0x388   : > { %v3033_v8 = vadd.f32 %v3032_v12, %v2872_v16  ;;  %v12887_v5 = vpop.f32.mrb[170].mxu0  ;;  %3975 = vmatmul.mubr.bf16.gmra.mrb[148].mxu1 %v16781_v27  ;;  %12928 = vmatprep.mubr.bf16.mxu0 %v16812_v24  ;;  %v14818_v27 = vld [vmem:[#allocation8 + $0xc4] ss:$12 sps:$4 sm:$0xff]  }
 0x389   : > { %v3044_v52 = vadd.f32 %v12887_v5, %v2883_v29  ;;  %v3035_v7 = vpop.f32.mrb[171].mxu0  ;;  %12929 = vmatmul.mubr.bf16.gmra.mrb[4].mxu0 %v16806_v53  ;;  %3984 = vmatprep.mubr.bf16.mxu1 %v18696_v55  ;;  %v3151_v11 = vmax.f32 %v3041_v13, 0.0  ;;  %v14825_v29 = vld [vmem:[#allocation8 + $0xf4] ss:$12 sps:$4 sm:$0xff]   ;;  %v2904_v5 = vadd.f32 %v16743_v38, %v16760_v4  ;;  %v2907_v38 = vadd.f32 %v16745_v40, %v16760_v4 }
 0x38a   : > { %v3036_v34 = vadd.f32 %v3035_v7, %v2875_v10  ;;  %4824 = vmatpush1.bf16.msra.mxu1 %v14806_v36  ;;  %12137 = vmatpush3.bf16.msra.mxu0 %v14810_v62  ;;  %v3145_v54 = vmax.f32 %v3033_v8, 0.0  ;;  %v14820_v62 = vld [vmem:[#allocation8 + $0xd8] ss:$12 sps:$4 sm:$0xff]   ;;  %v2928_v40 = vadd.f32 %v16755_v6, %v16760_v4 }
 0x38b   : > { %v3154_v21 = vmax.f32 %v3044_v52, 0.0  ;;  %4825 = vmatprep.subr.bf16.mxu1 %v14813_v48  ;;  %12138 = vmatprep.subr.bf16.mxu0 %v14814_v58  ;;  %v14823_v52 = vld [vmem:[#allocation8 + $0xf0] ss:$12 sps:$4 sm:$0xff]  }
 0x38c   : > { %v3148_v37 = vmax.f32 %v3036_v34, 0.0 }
 0x38d   : > { %v16824_v31 = vpack.c.bf16 %v3154_v21, %v3151_v11 }
 0x38e   : > { %v12890_v59 = vpop.f32.mrb[172].mxu0  ;;  %v16830_v32 = vpack.c.bf16 %v3148_v37, %v3145_v54  ;;  %4826 = vmatpush1.bf16.msra.mxu1 %v14811_v3  ;;  %12139 = vmatpush3.bf16.msra.mxu0 %v14815_v60  ;;  %v2915_v3 = vadd.f32 %v16749_v50, %v16760_v4  ;;  %v14829_v60 = vld [vmem:[#allocation8 + $0x10c] ss:$12 sps:$4 sm:$0xff]   ;;  %v14827_v50 = vld [vmem:[#allocation8 + $0x108] ss:$12 sps:$4 sm:$0xff]  }
 0x38f   : > { %v3057_v43 = vadd.f32 %v12890_v59, %v2896_v19  ;;  %v3048_v23 = vpop.f32.mrb[173].mxu0  ;;  %4827 = vmatprep.subr.bf16.mxu1 %v14818_v27  ;;  %12948 = vmatprep.subr.bf16.mxu0 %v16822_v49  ;;  %v14832_v59 = vld [vmem:[#allocation8 + $0x124] ss:$12 sps:$4 sm:$0xff]  }
 0x390   : > { %v3049_v25 = vadd.f32 %v3048_v23, %v2888_v17  ;;  %v12891_v57 = vpop.f32.mrb[174].mxu0  ;;  %3985 = vmatmul.mubr.bf16.gmra.mrb[152].mxu1 %v16797_v33  ;;  %12932 = vmatprep.mubr.bf16.mxu0 %v16830_v32  ;;  %v2920_v23 = vadd.f32 %v16751_v42, %v16760_v4  ;;  %v2923_v42 = vadd.f32 %v16753_v56, %v16760_v4  ;;  %v14837_v56 = vld [vmem:[#allocation8 + $0x150] ss:$12 sps:$4 sm:$0xff]  }
 0x391   : > { %v3060_v16 = vadd.f32 %v12891_v57, %v2899_v30  ;;  %v3051_v36 = vpop.f32.mrb[175].mxu0  ;;  %12933 = vmatmul.mubr.bf16.gmra.mrb[8].mxu0 %v16824_v31  ;;  %3994 = vmatprep.mubr.bf16.mxu1 %v18696_v55  ;;  %v3163_v13 = vmax.f32 %v3057_v43, 0.0 }
 0x392   : > { %v3052_v63 = vadd.f32 %v3051_v36, %v2891_v28  ;;  %4828 = vmatpush1.bf16.msra.mxu1 %v14816_v51  ;;  %v3157_v48 = vmax.f32 %v3049_v25, 0.0  ;;  %v2931_v28 = vadd.f32 %v16757_v61, %v16760_v4  ;;  %v14834_v61 = vld [vmem:[#allocation8 + $0x138] ss:$12 sps:$4 sm:$0xff]  }
 0x393   : > { %v3166_v12 = vmax.f32 %v3060_v16, 0.0  ;;  %4829 = vmatprep.subr.bf16.mxu1 %v14822_v46  ;;  %v14830_v46 = vld [vmem:[#allocation8 + $0x120] ss:$12 sps:$4 sm:$0xff]   ;;  %v14836_v16 = vld [vmem:[#allocation8 + $0x13c] ss:$12 sps:$4 sm:$0xff]  }
 0x394   : > { %v3160_v33 = vmax.f32 %v3052_v63, 0.0 }
 0x395   : > { %v16841_v58 = vpack.c.bf16 %v3166_v12, %v3163_v13 }
 0x396   : > { %v12894_v8 = vpop.f32.mrb[176].mxu0  ;;  %v16847_v10 = vpack.c.bf16 %v3160_v33, %v3157_v48  ;;  %4830 = vmatpush1.bf16.msra.mxu1 %v14820_v62  ;;  %v14839_v48 = vld [vmem:[#allocation8 + $0x154] ss:$12 sps:$4 sm:$0xff]  }
 0x397   : > { %v3073_v7 = vadd.f32 %v12894_v8, %v2912_v45  ;;  %v3064_v34 = vpop.f32.mrb[177].mxu0  ;;  %4831 = vmatprep.subr.bf16.mxu1 %v14825_v29 }
 0x398   : > { %v3065_v11 = vadd.f32 %v3064_v34, %v2904_v5  ;;  %v12895_v21 = vpop.f32.mrb[178].mxu0  ;;  %3995 = vmatmul.mubr.bf16.gmra.mrb[156].mxu1 %v16791_v0  ;;  %12936 = vmatprep.mubr.bf16.mxu0 %v16847_v10 }
 0x399   : > { %v3076_v1 = vadd.f32 %v12895_v21, %v2915_v3  ;;  %v3067_v27 = vpop.f32.mrb[179].mxu0  ;;  %12937 = vmatmul.mubr.bf16.gmra.mrb[12].mxu0 %v16841_v58  ;;  %4004 = vmatprep.mubr.bf16.mxu1 %v18696_v55  ;;  %v3175_v37 = vmax.f32 %v3073_v7, 0.0  ;;  %v14846_v21 = vld [vmem:[#allocation8 + $0x184] ss:$12 sps:$4 sm:$0xff]  }
 0x39a   : > { %v3068_v54 = vadd.f32 %v3067_v27, %v2907_v38  ;;  %4832 = vmatpush1.bf16.msra.mxu1 %v14823_v52  ;;  %v3169_v17 = vmax.f32 %v3065_v11, 0.0  ;;  %v14843_v52 = vld [vmem:[#allocation8 + $0x16c] ss:$12 sps:$4 sm:$0xff]   ;;  %v14841_v11 = vld [vmem:[#allocation8 + $0x168] ss:$12 sps:$4 sm:$0xff]  }
 0x39b   : > { %v3178_v19 = vmax.f32 %v3076_v1, 0.0  ;;  %4833 = vmatprep.subr.bf16.mxu1 %v14829_v60 }
 0x39c   : > { %v3172_v0 = vmax.f32 %v3068_v54, 0.0 }
 0x39d   : > { %v16857_v51 = vpack.c.bf16 %v3178_v19, %v3175_v37  ;;  %v14833_v19 = vld [vmem:[#allocation8 + $0x1b8] ss:$12 sps:$4 sm:$0xff]  }
 0x39e   : > { %v12898_v43 = vpop.f32.mrb[180].mxu0  ;;  %v16863_v30 = vpack.c.bf16 %v3172_v0, %v3169_v17  ;;  %4834 = vmatpush1.bf16.msra.mxu1 %v14827_v50  ;;  %v14840_v0 = vld [vmem:[#allocation8 + $0x1d0] ss:$12 sps:$4 sm:$0xff]  }
 0x39f   : > { %v3089_v25 = vadd.f32 %v12898_v43, %v2928_v40  ;;  %v3080_v57 = vpop.f32.mrb[181].mxu0  ;;  %4835 = vmatprep.subr.bf16.mxu1 %v14832_v59 }
 0x3a0   : > { %v3081_v36 = vadd.f32 %v3080_v57, %v2920_v23  ;;  %v12899_v63 = vpop.f32.mrb[182].mxu0  ;;  %4005 = vmatmul.mubr.bf16.gmra.mrb[160].mxu1 %v16812_v24  ;;  %12940 = vmatprep.mubr.bf16.mxu0 %v16863_v30  ;;  %v14851_v57 = vld [vmem:[#allocation8 + $0x200] ss:$12 sps:$4 sm:$0xff]  }
 0x3a1   : > { %v3092_v6 = vadd.f32 %v12899_v63, %v2931_v28  ;;  %v3083_v62 = vpop.f32.mrb[183].mxu0  ;;  %12941 = vmatmul.mubr.bf16.gmra.mrb[16].mxu0 %v16857_v51  ;;  %4014 = vmatprep.mubr.bf16.mxu1 %v18696_v55  ;;  %v3187_v12 = vmax.f32 %v3089_v25, 0.0  ;;  %v14855_v63 = vld [vmem:[#allocation8 + $0x218] ss:$12 sps:$4 sm:$0xff]  }
 0x3a2   : > { %v3084_v13 = vadd.f32 %v3083_v62, %v2923_v42  ;;  %4836 = vmatpush1.bf16.msra.mxu1 %v14830_v46  ;;  %v3181_v33 = vmax.f32 %v3081_v36, 0.0  ;;  %v14859_v62 = vld [vmem:[#allocation8 + $0x230] ss:$12 sps:$4 sm:$0xff]  }
 0x3a3   : > { %v3190_v29 = vmax.f32 %v3092_v6, 0.0  ;;  %4837 = vmatprep.subr.bf16.mxu1 %v14836_v16 }
 0x3a4   : > { %v3184_v24 = vmax.f32 %v3084_v13, 0.0 }
 0x3a5   : > { %v16873_v45 = vpack.c.bf16 %v3190_v29, %v3187_v12  ;;  %v14865_v29 = vld [vmem:[#allocation5 + $0x1c] ss:$48 sps:$4 sm:$0xff]  }
 0x3a6   : > { %v12004_v8 = vpop.f32.mrb[184].mxu0  ;;  %v16875_v5 = vpack.c.bf16 %v3184_v24, %v3181_v33  ;;  %4838 = vmatpush1.bf16.msra.mxu1 %v14834_v61 }
 0x3a7   : > { %v12005_v4 = vpop.f32.mrb[185].mxu0  ;;  %4839 = vmatprep.subr.bf16.mxu1 %v14839_v48 }
 0x3a8   : > { %v16877_v7 = vadd.f32 %v12005_v4, %v12004_v8  ;;  %4015 = vmatmul.mubr.bf16.gmra.mrb[164].mxu1 %v16806_v53  ;;  %v12007_v34 = vpop.f32.mrb[186].mxu0  ;;  %12944 = vmatprep.mubr.bf16.mxu0 %v16875_v5  ;;  %v14826_v53 = vld [vmem:[#allocation8 + $0x1a0] ss:$12 sps:$4 sm:$0xff]  }
 0x3a9   : > { %v12008_v3 = vpop.f32.mrb[187].mxu0  ;;  %12945 = vmatmul.mubr.bf16.gmra.mrb[20].mxu0 %v16873_v45  ;;  %4024 = vmatprep.mubr.bf16.mxu1 %v18696_v55 }
 0x3aa   : > { %v16883_v60 = vadd.f32 %v12008_v3, %v12007_v34  ;;  %5229 = vmatprep.mubr.bf16.mxu0 %v16312_v18  ;;  %4840 = vmatpush1.bf16.msra.mxu1 %v14837_v56 }
 0x3ab   : > { %4841 = vmatprep.subr.bf16.mxu1 %v14843_v52 }
 0x3ae   : > { %v12010_v38 = vpop.f32.mrb[188].mxu0  ;;  %4842 = vmatpush1.bf16.msra.mxu1 %v14841_v11 }
 0x3af   : > { %v12011_v1 = vpop.f32.mrb[189].mxu0  ;;  %5004 = vmatprep.subr.bf16.mxu1 %v14846_v21 }
 0x3b0   : > { %v16886_v27 = vadd.f32 %v12011_v1, %v12010_v38  ;;  %4025 = vmatmul.mubr.bf16.gmra.mrb[168].mxu1 %v16830_v32  ;;  %v12013_v54 = vpop.f32.mrb[190].mxu0 }
 0x3b1   : > { %v12014_v50 = vpop.f32.mrb[191].mxu0  ;;  %5230 = vmatmul.mubr.bf16.vlgmr.msra.gmra.mrb[24].mxu0 %v16309_v2  ;;  %4034 = vmatprep.mubr.bf16.mxu1 %v18696_v55 }
 0x3b2   : > { %v16891_v37 = vadd.f32 %v12014_v50, %v12013_v54  ;;  %5237 = vmatprep.mubr.bf16.mxu0 %v16324_v15  ;;  %12949 = vmatpush3.bf16.msra.mxu0 %v16822_v49  ;;  %v14847_v49 = vld [vmem:[#allocation8 + $0x1e8] ss:$12 sps:$4 sm:$0xff]   ;;  %v18782_v50 = vld [vmem:[#allocation89_spill] sm:$0xff] }
 0x3b3   : > { %12950 = vmatprep.subr.bf16.mxu0 %v14826_v53 }
 0x3b6   : > { %v12016_v59 = vpop.f32.mrb[192].mxu0  ;;  %12951 = vmatpush3.bf16.msra.mxu0 %v14826_v53 }
 0x3b7   : > { %v12017_v17 = vpop.f32.mrb[193].mxu0  ;;  %12952 = vmatprep.subr.bf16.mxu0 %v14833_v19 }
 0x3b8   : > { %v16895_v32 = vadd.f32 %v12017_v17, %v12016_v59  ;;  %4035 = vmatmul.mubr.bf16.gmra.mrb[172].mxu1 %v16824_v31  ;;  %v12019_v40 = vpop.f32.mrb[194].mxu0 }
 0x3b9   : > { %v12020_v43 = vpop.f32.mrb[195].mxu0  ;;  %5238 = vmatmul.mubr.bf16.gmra.mrb[28].mxu0 %v16321_v35  ;;  %4044 = vmatprep.mubr.bf16.mxu1 %v18696_v55 }
 0x3ba   : > { %v16900_v23 = vadd.f32 %v12020_v43, %v12019_v40  ;;  %5245 = vmatprep.mubr.bf16.mxu0 %v16335_v9  ;;  %12953 = vmatpush3.bf16.msra.mxu0 %v14833_v19  ;;  %v18783_v19 = vld [vmem:[#allocation91_spill] sm:$0xff] }
 0x3bb   : > { %12954 = vmatprep.subr.bf16.mxu0 %v14840_v0 }
 0x3be   : > { %v12022_v46 = vpop.f32.mrb[196].mxu0  ;;  %12955 = vmatpush3.bf16.msra.mxu0 %v14840_v0 }
 0x3bf   : > { %v12023_v25 = vpop.f32.mrb[197].mxu0  ;;  %12956 = vmatprep.subr.bf16.mxu0 %v14847_v49 }
 0x3c0   : > { %v16903_v28 = vadd.f32 %v12023_v25, %v12022_v46  ;;  %4045 = vmatmul.mubr.bf16.gmra.mrb[176].mxu1 %v16847_v10  ;;  %v12025_v31 = vpop.f32.mrb[198].mxu0  ;;  %v18785_v46 = vld [vmem:[#allocation93_spill] sm:$0xff] }
 0x3c1   : > { %v12026_v16 = vpop.f32.mrb[199].mxu0  ;;  %5246 = vmatmul.mubr.bf16.gmra.mrb[32].mxu0 %v16333_v41  ;;  %4054 = vmatprep.mubr.bf16.mxu1 %v18696_v55 }
 0x3c2   : > { %v16908_v36 = vadd.f32 %v12026_v16, %v12025_v31  ;;  %5253 = vmatprep.mubr.bf16.mxu0 %v16345_v22  ;;  %12957 = vmatpush3.bf16.msra.mxu0 %v14847_v49  ;;  %v14850_v16 = vld [vmem:[#allocation8 + $0x19c] ss:$12 sps:$4 sm:$0xff]  }
 0x3c3   : > { %12958 = vmatprep.subr.bf16.mxu0 %v14851_v57 }
 0x3c6   : > { %v12028_v42 = vpop.f32.mrb[200].mxu0  ;;  %12959 = vmatpush3.bf16.msra.mxu0 %v14851_v57  ;;  %v14844_v57 = vld [vmem:[#allocation8 + $0x180] ss:$12 sps:$4 sm:$0xff]  }
 0x3c7   : > { %v12029_v6 = vpop.f32.mrb[201].mxu0  ;;  %12960 = vmatprep.subr.bf16.mxu0 %v14855_v63 }
 0x3c8   : > { %v16911_v13 = vadd.f32 %v12029_v6, %v12028_v42  ;;  %4055 = vmatmul.mubr.bf16.gmra.mrb[180].mxu1 %v16841_v58  ;;  %v12031_v10 = vpop.f32.mrb[202].mxu0  ;;  %v18786_v6 = vld [vmem:[#allocation92_spill] sm:$0xff] }
 0x3c9   : > { %v12032_v61 = vpop.f32.mrb[203].mxu0  ;;  %5254 = vmatmul.mubr.bf16.gmra.mrb[36].mxu0 %v16343_v14  ;;  %4064 = vmatprep.mubr.bf16.mxu1 %v18696_v55 }
 0x3ca   : > { %v16916_v12 = vadd.f32 %v12032_v61, %v12031_v10  ;;  %5261 = vmatprep.mubr.bf16.mxu0 %v16355_v44  ;;  %12961 = vmatpush3.bf16.msra.mxu0 %v14855_v63  ;;  %v14848_v10 = vld [vmem:[#allocation8 + $0x198] ss:$12 sps:$4 sm:$0xff]   ;;  %v14854_v61 = vld [vmem:[#allocation8 + $0x1b4] ss:$12 sps:$4 sm:$0xff]  }
 0x3cb   : > { %12962 = vmatprep.subr.bf16.mxu0 %v14859_v62 }
 0x3ce   : > { %v12034_v48 = vpop.f32.mrb[204].mxu0  ;;  %12963 = vmatpush3.bf16.msra.mxu0 %v14859_v62  ;;  %v18787_v62 = vld [vmem:[#allocation95_spill] sm:$0xff] }
 0x3cf   : > { %v12035_v33 = vpop.f32.mrb[205].mxu0  ;;  %6016 = vmatprep.subr.bf16.mxu0 %v14865_v29 }
 0x3d0   : > { %v16919_v24 = vadd.f32 %v12035_v33, %v12034_v48  ;;  %4065 = vmatmul.mubr.bf16.gmra.mrb[184].mxu1 %v16863_v30  ;;  %v12037_v58 = vpop.f32.mrb[206].mxu0  ;;  %v14852_v48 = vld [vmem:[#allocation8 + $0x1b0] ss:$12 sps:$4 sm:$0xff]  }
 0x3d1   : > { %v12038_v8 = vpop.f32.mrb[207].mxu0  ;;  %5262 = vmatmul.mubr.bf16.gmra.mrb[40].mxu0 %v16353_v26  ;;  %4074 = vmatprep.mubr.bf16.mxu1 %v18696_v55 }
 0x3d2   : > { %v16924_v56 = vadd.f32 %v12038_v8, %v12037_v58  ;;  %5269 = vmatprep.mubr.bf16.mxu0 %v16365_v20  ;;  %v14858_v58 = vld [vmem:[#allocation8 + $0x1cc] ss:$12 sps:$4 sm:$0xff]  }
 0x3d6   : > { %v12040_v4 = vpop.f32.mrb[208].mxu0 }
 0x3d7   : > { %v12041_v52 = vpop.f32.mrb[209].mxu0 }
 0x3d8   : > { %v16927_v34 = vadd.f32 %v12041_v52, %v12040_v4  ;;  %4075 = vmatmul.mubr.bf16.gmra.mrb[188].mxu1 %v16857_v51  ;;  %v12043_v3 = vpop.f32.mrb[210].mxu0  ;;  %v18788_v4 = vld [vmem:[#allocation94_spill] sm:$0xff] }
 0x3d9   : > { %v12044_v11 = vpop.f32.mrb[211].mxu0  ;;  %5270 = vmatmul.mubr.bf16.gmra.mrb[44].mxu0 %v16363_v47  ;;  %4084 = vmatprep.mubr.bf16.mxu1 %v18696_v55 }
 0x3da   : > { %v16932_v30 = vadd.f32 %v12044_v11, %v12043_v3  ;;  %5277 = vmatprep.mubr.bf16.mxu0 %v16375_v39  ;;  %v18789_v3 = vld [vmem:[#allocation97_spill] sm:$0xff]  ;;  %v14856_v11 = vld [vmem:[#allocation8 + $0x1c8] ss:$12 sps:$4 sm:$0xff]  }
 0x3de   : > { %v12046_v21 = vpop.f32.mrb[212].mxu0 }
 0x3df   : > { %v12047_v38 = vpop.f32.mrb[213].mxu0 }
 0x3e0   : > { %v16935_v1 = vadd.f32 %v12047_v38, %v12046_v21  ;;  %4085 = vmatmul.mubr.bf16.gmra.mrb[192].mxu1 %v16875_v5  ;;  %v12049_v53 = vpop.f32.mrb[214].mxu0  ;;  %v18784_v5 = vld [vmem:[#allocation90_spill] sm:$0xff]  ;;  %v14862_v21 = vld [vmem:[#allocation8 + $0x1e4] ss:$12 sps:$4 sm:$0xff]  }
 0x3e1   : > { %v12050_v54 = vpop.f32.mrb[215].mxu0  ;;  %5278 = vmatmul.mubr.bf16.gmra.mrb[48].mxu0 %v18782_v50  ;;  %4094 = vmatprep.mubr.bf16.mxu1 %v18696_v55 }
 0x3e2   : > { %v16940_v51 = vadd.f32 %v12050_v54, %v12049_v53  ;;  %5285 = vmatprep.mubr.bf16.mxu0 %v18783_v19  ;;  %v14860_v53 = vld [vmem:[#allocation8 + $0x1e0] ss:$12 sps:$4 sm:$0xff]  }
 0x3e6   : > { %v12052_v59 = vpop.f32.mrb[216].mxu0 }
 0x3e7   : > { %v12053_v17 = vpop.f32.mrb[217].mxu0 }
 0x3e8   : > { %v16943_v0 = vadd.f32 %v12053_v17, %v12052_v59  ;;  %4095 = vmatmul.mubr.bf16.gmra.mrb[196].mxu1 %v16873_v45  ;;  %v12055_v40 = vpop.f32.mrb[218].mxu0  ;;  %v14877_v59 = vld [vmem:[#allocation8 + $0x1fc] ss:$12 sps:$4 sm:$0xff]  }
 0x3e9   : > { %v12056_v43 = vpop.f32.mrb[219].mxu0  ;;  %4843 = vmatprep.mubr.bf16.mxu1 %v16312_v18  ;;  %5286 = vmatmul.mubr.bf16.gmra.mrb[52].mxu0 %v18784_v5 }
 0x3ea   : > { %v16948_v49 = vadd.f32 %v12056_v43, %v12055_v40  ;;  %5293 = vmatprep.mubr.bf16.mxu0 %v18785_v46  ;;  %v18790_v40 = vld [vmem:[#allocation96_spill] sm:$0xff] }
 0x3ee   : > { %v12058_v25 = vpop.f32.mrb[220].mxu0 }
 0x3ef   : > { %v12059_v31 = vpop.f32.mrb[221].mxu0 }
 0x3f0   : > { %v16951_v63 = vadd.f32 %v12059_v31, %v12058_v25  ;;  %v12061_v42 = vpop.f32.mrb[222].mxu0  ;;  %4844 = vmatmul.mubr.bf16.vlgmr.msra.gmra.mrb[136].mxu1 %v16309_v2  ;;  %v18791_v25 = vld [vmem:[#allocation99_spill] sm:$0xff] }
 0x3f1   : > { %v12062_v45 = vpop.f32.mrb[223].mxu0  ;;  %4853 = vmatprep.mubr.bf16.mxu1 %v16324_v15  ;;  %5294 = vmatmul.mubr.bf16.gmra.mrb[56].mxu0 %v18786_v6  ;;  %v14892_v31 = vld [vmem:[#allocation8 + $0x214] ss:$12 sps:$4 sm:$0xff]  }
 0x3f2   : > { %v16956_v18 = vadd.f32 %v12062_v45, %v12061_v42  ;;  %5005 = vmatpush1.bf16.msra.mxu1 %v14844_v57  ;;  %5301 = vmatprep.mubr.bf16.mxu0 %v18787_v62  ;;  %v14875_v57 = vld [vmem:[#allocation8 + $0x1f8] ss:$12 sps:$4 sm:$0xff]   ;;  %v14890_v42 = vld [vmem:[#allocation8 + $0x210] ss:$12 sps:$4 sm:$0xff]  }
 0x3f3   : > { %5006 = vmatprep.subr.bf16.mxu1 %v14850_v16 }
 0x3f6   : > { %v12064_v29 = vpop.f32.mrb[224].mxu0  ;;  %5007 = vmatpush1.bf16.msra.mxu1 %v14848_v10  ;;  %v14907_v10 = vld [vmem:[#allocation8 + $0x22c] ss:$12 sps:$4 sm:$0xff]  }
 0x3f7   : > { %v12065_v33 = vpop.f32.mrb[225].mxu0  ;;  %5008 = vmatprep.subr.bf16.mxu1 %v14854_v61 }
 0x3f8   : > { %v16959_v2 = vadd.f32 %v12065_v33, %v12064_v29  ;;  %v12067_v8 = vpop.f32.mrb[226].mxu0  ;;  %4854 = vmatmul.mubr.bf16.gmra.mrb[140].mxu1 %v16321_v35  ;;  %v18792_v29 = vld [vmem:[#allocation98_spill] sm:$0xff]  ;;  %v18793_v33 = vld [vmem:[#allocation101_spill] sm:$0xff] }
 0x3f9   : > { %v12068_v15 = vpop.f32.mrb[227].mxu0  ;;  %4863 = vmatprep.mubr.bf16.mxu1 %v16335_v9  ;;  %5302 = vmatmul.mubr.bf16.gmra.mrb[60].mxu0 %v18788_v4 }
 0x3fa   : > { %v16964_v52 = vadd.f32 %v12068_v15, %v12067_v8  ;;  %5309 = vmatprep.mubr.bf16.mxu0 %v18789_v3  ;;  %5009 = vmatpush1.bf16.msra.mxu1 %v14852_v48  ;;  %v14923_v8 = vld [vmem:[#allocation5 + $0x320] ss:$48 sps:$4 sm:$0xff]  }
 0x3fb   : > { %5010 = vmatprep.subr.bf16.mxu1 %v14858_v58  ;;  %v14905_v58 = vld [vmem:[#allocation8 + $0x228] ss:$12 sps:$4 sm:$0xff]  }
 0x3fe   : > { %v12070_v38 = vpop.f32.mrb[228].mxu0  ;;  %5011 = vmatpush1.bf16.msra.mxu1 %v14856_v11 }
 0x3ff   : > { %v12071_v54 = vpop.f32.mrb[229].mxu0  ;;  %5012 = vmatprep.subr.bf16.mxu1 %v14862_v21 }
 0x400   : > { %v16967_v35 = vadd.f32 %v12071_v54, %v12070_v38  ;;  %v12073_v17 = vpop.f32.mrb[230].mxu0  ;;  %4864 = vmatmul.mubr.bf16.gmra.mrb[144].mxu1 %v16333_v41  ;;  %v18794_v38 = vld [vmem:[#allocation100_spill] sm:$0xff]  ;;  %v18795_v54 = vld [vmem:[#allocation103_spill] sm:$0xff] }
 0x401   : > { %v12074_v9 = vpop.f32.mrb[231].mxu0  ;;  %4873 = vmatprep.mubr.bf16.mxu1 %v16345_v22  ;;  %5310 = vmatmul.mubr.bf16.gmra.mrb[64].mxu0 %v18790_v40 }
 0x402   : > { %v16972_v43 = vadd.f32 %v12074_v9, %v12073_v17  ;;  %5317 = vmatprep.mubr.bf16.mxu0 %v18791_v25  ;;  %5013 = vmatpush1.bf16.msra.mxu1 %v14860_v53 }
 0x403   : > { %5014 = vmatprep.subr.bf16.mxu1 %v14877_v59 }
 0x406   : > { %v12076_v16 = vpop.f32.mrb[232].mxu0  ;;  %5015 = vmatpush1.bf16.msra.mxu1 %v14875_v57 }
 0x407   : > { %v12077_v45 = vpop.f32.mrb[233].mxu0  ;;  %5016 = vmatprep.subr.bf16.mxu1 %v14892_v31 }
 0x408   : > { %v16975_v41 = vadd.f32 %v12077_v45, %v12076_v16  ;;  %v12079_v61 = vpop.f32.mrb[234].mxu0  ;;  %4874 = vmatmul.mubr.bf16.gmra.mrb[148].mxu1 %v16343_v14 }
 0x409   : > { %v12080_v22 = vpop.f32.mrb[235].mxu0  ;;  %4883 = vmatprep.mubr.bf16.mxu1 %v16355_v44  ;;  %5318 = vmatmul.mubr.bf16.gmra.mrb[68].mxu0 %v18792_v29 }
 0x40a   : > { %v16980_v48 = vadd.f32 %v12080_v22, %v12079_v61  ;;  %5325 = vmatprep.mubr.bf16.mxu0 %v18793_v33  ;;  %5017 = vmatpush1.bf16.msra.mxu1 %v14890_v42 }
 0x40b   : > { %5018 = vmatprep.subr.bf16.mxu1 %v14907_v10 }
 0x40e   : > { %v12082_v15 = vpop.f32.mrb[236].mxu0  ;;  %5019 = vmatpush1.bf16.msra.mxu1 %v14905_v58 }
 0x40f   : > { %v12083_v11 = vpop.f32.mrb[237].mxu0  ;;  %12260 = vmatprep.subr.bf16.mxu1 %v14923_v8  ;;  %v18803_v8 = vld [vmem:[#allocation106_spill] sm:$0xff] }
 0x410   : > { %v16983_v21 = vadd.f32 %v12083_v11, %v12082_v15  ;;  %v12085_v14 = vpop.f32.mrb[238].mxu0  ;;  %4884 = vmatmul.mubr.bf16.gmra.mrb[152].mxu1 %v16353_v26  ;;  %v18796_v26 = vld [vmem:[#allocation102_spill] sm:$0xff]  ;;  %v14863_v11 = vld [vmem:[#allocation5 + $0x18] ss:$48 sps:$4 sm:$0xff]  }
 0x411   : > { %v12086_v44 = vpop.f32.mrb[239].mxu0  ;;  %4893 = vmatprep.mubr.bf16.mxu1 %v16365_v20  ;;  %5326 = vmatmul.mubr.bf16.gmra.mrb[72].mxu0 %v18794_v38  ;;  %v18798_v20 = vld [vmem:[#allocation105_spill] sm:$0xff]  ;;  %v18804_v15 = vld [vmem:[#allocation66_spill] sm:$0xff] }
 0x412   : > { %v16988_v53 = vadd.f32 %v12086_v44, %v12085_v14  ;;  %5333 = vmatprep.mubr.bf16.mxu0 %v18795_v54  ;;  %v14868_v14 = vld [vmem:[#allocation5 + $0x7c] ss:$48 sps:$4 sm:$0xff]   ;;  %v14866_v44 = vld [vmem:[#allocation5 + $0x78] ss:$48 sps:$4 sm:$0xff]  }
 0x416   : > { %v12088_v59 = vpop.f32.mrb[240].mxu0 }
 0x417   : > { %v12089_v17 = vpop.f32.mrb[241].mxu0 }
 0x418   : > { %v16991_v9 = vadd.f32 %v12089_v17, %v12088_v59  ;;  %v12091_v57 = vpop.f32.mrb[242].mxu0  ;;  %4894 = vmatmul.mubr.bf16.gmra.mrb[156].mxu1 %v16363_v47  ;;  %v18800_v47 = vld [vmem:[#allocation104_spill] sm:$0xff]  ;;  %v14874_v59 = vld [vmem:[#allocation5 + $0x13c] ss:$48 sps:$4 sm:$0xff]  }
 0x419   : > { %v12092_v31 = vpop.f32.mrb[243].mxu0  ;;  %4903 = vmatprep.mubr.bf16.mxu1 %v16375_v39  ;;  %5334 = vmatmul.mubr.bf16.gmra.mrb[76].mxu0 %v18796_v26  ;;  %v18802_v39 = vld [vmem:[#allocation107_spill] sm:$0xff] }
 0x41a   : > { %v16996_v16 = vadd.f32 %v12092_v31, %v12091_v57  ;;  %5341 = vmatprep.mubr.bf16.mxu0 %v18798_v20  ;;  %v18807_v17 = vld [vmem:[#allocation67_spill] sm:$0xff] }
 0x41b   : > { %v14880_v57 = vld [vmem:[#allocation5 + $0x19c] ss:$48 sps:$4 sm:$0xff]   ;;  %v14878_v31 = vld [vmem:[#allocation5 + $0x198] ss:$48 sps:$4 sm:$0xff]  }
 0x41c   : > { %18797 = vst [vmem:[#allocation69_spill] sm:$0xff] %v16996_v16 }
 0x41e   : > { %v12094_v42 = vpop.f32.mrb[244].mxu0 }
 0x41f   : > { %v12095_v45 = vpop.f32.mrb[245].mxu0 }
 0x420   : > { %v16999_v10 = vadd.f32 %v12095_v45, %v12094_v42  ;;  %v12097_v61 = vpop.f32.mrb[246].mxu0  ;;  %4904 = vmatmul.mubr.bf16.gmra.mrb[160].mxu1 %v18782_v50  ;;  %v18805_v50 = vld [vmem:[#allocation68_spill] sm:$0xff]  ;;  %v14883_v42 = vld [vmem:[#allocation5 + $0x1fc] ss:$48 sps:$4 sm:$0xff]  }
 0x421   : > { %v12098_v22 = vpop.f32.mrb[247].mxu0  ;;  %4913 = vmatprep.mubr.bf16.mxu1 %v18783_v19  ;;  %5342 = vmatmul.mubr.bf16.gmra.mrb[80].mxu0 %v18800_v47  ;;  %v18806_v19 = vld [vmem:[#allocation65_spill] sm:$0xff]  ;;  %v18809_v45 = vld [vmem:[#allocation72_spill] sm:$0xff] }
 0x422   : > { %18799 = vst [vmem:[#allocation71_spill] sm:$0xff] %v16999_v10  ;;  %v17004_v58 = vadd.f32 %v12098_v22, %v12097_v61  ;;  %5349 = vmatprep.mubr.bf16.mxu0 %v18802_v39  ;;  %v14886_v61 = vld [vmem:[#allocation5 + $0x25c] ss:$48 sps:$4 sm:$0xff]   ;;  %v14884_v22 = vld [vmem:[#allocation5 + $0x258] ss:$48 sps:$4 sm:$0xff]  }
 0x424   : > { %18801 = vst [vmem:[#allocation74_spill] sm:$0xff] %v17004_v58  ;;  %v18825_v58 = vld [vmem:[#allocation34_spill] sm:$0xff] }
 0x428   : > { %4914 = vmatmul.mubr.bf16.gmra.mrb[164].mxu1 %v18784_v5  ;;  %v14871_v5 = vld [vmem:[#allocation5 + $0xdc] ss:$48 sps:$4 sm:$0xff]  }
 0x429   : > { %4923 = vmatprep.mubr.bf16.mxu1 %v18785_v46  ;;  %5350 = vmatmul.mubr.bf16.gmra.mrb[84].mxu0 %v18803_v8  ;;  %v14869_v46 = vld [vmem:[#allocation5 + $0xd8] ss:$48 sps:$4 sm:$0xff]  }
 0x42a   : > { %12964 = vmatprep.mubr.bf16.mxu0 %v18804_v15 }
 0x430   : > { %4924 = vmatmul.mubr.bf16.gmra.mrb[168].mxu1 %v18786_v6  ;;  %v18808_v6 = vld [vmem:[#allocation70_spill] sm:$0xff] }
 0x431   : > { %4933 = vmatprep.mubr.bf16.mxu1 %v18787_v62  ;;  %12965 = vmatmul.mubr.bf16.vlgmr.msra.gmra.mrb[248].mxu0 %v18805_v50  ;;  %v14872_v62 = vld [vmem:[#allocation5 + $0x138] ss:$48 sps:$4 sm:$0xff]  }
 0x432   : > { %12968 = vmatprep.mubr.bf16.mxu0 %v18806_v19  ;;  %6017 = vmatpush1.bf16.msra.mxu0 %v14863_v11  ;;  %v14889_v11 = vld [vmem:[#allocation5 + $0x2bc] ss:$48 sps:$4 sm:$0xff]  }
 0x433   : > { %6018 = vmatprep.subr.bf16.mxu0 %v14868_v14  ;;  %v18811_v14 = vld [vmem:[#allocation77_spill] sm:$0xff] }
 0x436   : > { %6019 = vmatpush1.bf16.msra.mxu0 %v14866_v44  ;;  %v14895_v44 = vld [vmem:[#allocation5 + $0x31c] ss:$48 sps:$4 sm:$0xff]  }
 0x437   : > { %6020 = vmatprep.subr.bf16.mxu0 %v14871_v5  ;;  %v14893_v5 = vld [vmem:[#allocation5 + $0x318] ss:$48 sps:$4 sm:$0xff]  }
 0x438   : > { %4934 = vmatmul.mubr.bf16.gmra.mrb[172].mxu1 %v18788_v4  ;;  %v18810_v4 = vld [vmem:[#allocation78_spill] sm:$0xff] }
 0x439   : > { %4943 = vmatprep.mubr.bf16.mxu1 %v18789_v3  ;;  %12969 = vmatmul.mubr.bf16.gmra.mrb[252].mxu0 %v18807_v17  ;;  %v14881_v3 = vld [vmem:[#allocation5 + $0x1f8] ss:$48 sps:$4 sm:$0xff]  }
 0x43a   : > { %12972 = vmatprep.mubr.bf16.mxu0 %v18808_v6  ;;  %6021 = vmatpush1.bf16.msra.mxu0 %v14869_v46  ;;  %v14898_v46 = vld [vmem:[#allocation5 + $0x37c] ss:$48 sps:$4 sm:$0xff]  }
 0x43b   : > { %6022 = vmatprep.subr.bf16.mxu0 %v14874_v59  ;;  %v18813_v59 = vld [vmem:[#allocation79_spill] sm:$0xff] }
 0x43e   : > { %6023 = vmatpush1.bf16.msra.mxu0 %v14872_v62  ;;  %v14901_v62 = vld [vmem:[#allocation5 + $0x3dc] ss:$48 sps:$4 sm:$0xff]  }
 0x43f   : > { %6024 = vmatprep.subr.bf16.mxu0 %v14880_v57  ;;  %v14899_v57 = vld [vmem:[#allocation5 + $0x3d8] ss:$48 sps:$4 sm:$0xff]  }
 0x440   : > { %4944 = vmatmul.mubr.bf16.gmra.mrb[176].mxu1 %v18790_v40  ;;  %v18812_v40 = vld [vmem:[#allocation80_spill] sm:$0xff] }
 0x441   : > { %4953 = vmatprep.mubr.bf16.mxu1 %v18791_v25  ;;  %12973 = vmatmul.mubr.bf16.gmra.mrb[0].mxu0 %v18809_v45  ;;  %v14887_v25 = vld [vmem:[#allocation5 + $0x2b8] ss:$48 sps:$4 sm:$0xff]  }
 0x442   : > { %12976 = vmatprep.mubr.bf16.mxu0 %v18810_v4  ;;  %6025 = vmatpush1.bf16.msra.mxu0 %v14878_v31  ;;  %v14904_v31 = vld [vmem:[#allocation5 + $0x43c] ss:$48 sps:$4 sm:$0xff]  }
 0x443   : > { %6026 = vmatprep.subr.bf16.mxu0 %v14883_v42  ;;  %v18815_v42 = vld [vmem:[#allocation81_spill] sm:$0xff] }
 0x446   : > { %6027 = vmatpush1.bf16.msra.mxu0 %v14881_v3  ;;  %v14910_v3 = vld [vmem:[#allocation5 + $0x49c] ss:$48 sps:$4 sm:$0xff]  }
 0x447   : > { %6028 = vmatprep.subr.bf16.mxu0 %v14886_v61  ;;  %v14908_v61 = vld [vmem:[#allocation5 + $0x498] ss:$48 sps:$4 sm:$0xff]  }
 0x448   : > { %4954 = vmatmul.mubr.bf16.gmra.mrb[180].mxu1 %v18792_v29  ;;  %v18814_v29 = vld [vmem:[#allocation82_spill] sm:$0xff] }
 0x449   : > { %4963 = vmatprep.mubr.bf16.mxu1 %v18793_v33  ;;  %12977 = vmatmul.mubr.bf16.gmra.mrb[4].mxu0 %v18811_v14  ;;  %v14896_v33 = vld [vmem:[#allocation5 + $0x378] ss:$48 sps:$4 sm:$0xff]  }
 0x44a   : > { %12980 = vmatprep.mubr.bf16.mxu0 %v18812_v40  ;;  %6029 = vmatpush1.bf16.msra.mxu0 %v14884_v22  ;;  %v14913_v22 = vld [vmem:[#allocation5 + $0x4fc] ss:$48 sps:$4 sm:$0xff]  }
 0x44b   : > { %6030 = vmatprep.subr.bf16.mxu0 %v14889_v11  ;;  %v18817_v11 = vld [vmem:[#allocation83_spill] sm:$0xff] }
 0x44e   : > { %6031 = vmatpush1.bf16.msra.mxu0 %v14887_v25  ;;  %v14916_v25 = vld [vmem:[#allocation5 + $0x55c] ss:$48 sps:$4 sm:$0xff]  }
 0x44f   : > { %6032 = vmatprep.subr.bf16.mxu0 %v14895_v44  ;;  %v14914_v44 = vld [vmem:[#allocation5 + $0x558] ss:$48 sps:$4 sm:$0xff]  }
 0x450   : > { %4964 = vmatmul.mubr.bf16.gmra.mrb[184].mxu1 %v18794_v38  ;;  %v18816_v38 = vld [vmem:[#allocation84_spill] sm:$0xff] }
 0x451   : > { %4973 = vmatprep.mubr.bf16.mxu1 %v18795_v54  ;;  %12981 = vmatmul.mubr.bf16.gmra.mrb[8].mxu0 %v18813_v59  ;;  %v14902_v54 = vld [vmem:[#allocation5 + $0x438] ss:$48 sps:$4 sm:$0xff]  }
 0x452   : > { %12984 = vmatprep.mubr.bf16.mxu0 %v18814_v29  ;;  %6033 = vmatpush1.bf16.msra.mxu0 %v14893_v5  ;;  %v14919_v5 = vld [vmem:[#allocation5 + $0x5bc] ss:$48 sps:$4 sm:$0xff]  }
 0x453   : > { %6034 = vmatprep.subr.bf16.mxu0 %v14898_v46  ;;  %v18819_v46 = vld [vmem:[#allocation85_spill] sm:$0xff] }
 0x456   : > { %6035 = vmatpush1.bf16.msra.mxu0 %v14896_v33  ;;  %v14922_v33 = vld [vmem:[#allocation5 + $0x61c] ss:$48 sps:$4 sm:$0xff]  }
 0x457   : > { %6036 = vmatprep.subr.bf16.mxu0 %v14901_v62  ;;  %v14924_v62 = vld [vmem:[#allocation5 + $0x20] ss:$48 sps:$4 sm:$0xff]  }
 0x458   : > { %4974 = vmatmul.mubr.bf16.gmra.mrb[188].mxu1 %v18796_v26  ;;  %v18818_v26 = vld [vmem:[#allocation86_spill] sm:$0xff] }
 0x459   : > { %4983 = vmatprep.mubr.bf16.mxu1 %v18798_v20  ;;  %12985 = vmatmul.mubr.bf16.gmra.mrb[12].mxu0 %v18815_v42  ;;  %v14911_v20 = vld [vmem:[#allocation5 + $0x4f8] ss:$48 sps:$4 sm:$0xff]  }
 0x45a   : > { %12988 = vmatprep.mubr.bf16.mxu0 %v18816_v38  ;;  %6037 = vmatpush1.bf16.msra.mxu0 %v14899_v57  ;;  %v14920_v57 = vld [vmem:[#allocation5 + $0x618] ss:$48 sps:$4 sm:$0xff]  }
 0x45b   : > { %6038 = vmatprep.subr.bf16.mxu0 %v14904_v31  ;;  %v14927_v31 = vld [vmem:[#allocation5 + $0x67c] ss:$48 sps:$4 sm:$0xff]  }
 0x45e   : > { %6039 = vmatpush1.bf16.msra.mxu0 %v14902_v54  ;;  %v14928_v54 = vld [vmem:[#allocation5 + $0x380] ss:$48 sps:$4 sm:$0xff]  }
 0x45f   : > { %6040 = vmatprep.subr.bf16.mxu0 %v14910_v3  ;;  %v18821_v3 = vld [vmem:[#allocation26_spill] sm:$0xff] }
 0x460   : > { %4984 = vmatmul.mubr.bf16.gmra.mrb[192].mxu1 %v18800_v47  ;;  %v14917_v47 = vld [vmem:[#allocation5 + $0x5b8] ss:$48 sps:$4 sm:$0xff]  }
 0x461   : > { %4993 = vmatprep.mubr.bf16.mxu1 %v18802_v39  ;;  %12989 = vmatmul.mubr.bf16.gmra.mrb[16].mxu0 %v18817_v11  ;;  %v18820_v39 = vld [vmem:[#allocation21_spill] sm:$0xff] }
 0x462   : > { %12992 = vmatprep.mubr.bf16.mxu0 %v18818_v26  ;;  %6041 = vmatpush1.bf16.msra.mxu0 %v14908_v61  ;;  %v14925_v61 = vld [vmem:[#allocation5 + $0x678] ss:$48 sps:$4 sm:$0xff]  }
 0x463   : > { %6042 = vmatprep.subr.bf16.mxu0 %v14913_v22  ;;  %v14933_v22 = vld [vmem:[#allocation5 + $0x3e0] ss:$48 sps:$4 sm:$0xff]  }
 0x466   : > { %6043 = vmatpush1.bf16.msra.mxu0 %v14911_v20  ;;  %v18822_v20 = vld [vmem:[#allocation28_spill] sm:$0xff] }
 0x467   : > { %6044 = vmatprep.subr.bf16.mxu0 %v14916_v25  ;;  %v14932_v25 = vld [vmem:[#allocation5 + $0x6dc] ss:$48 sps:$4 sm:$0xff]  }
 0x468   : > { %4994 = vmatmul.mubr.bf16.gmra.mrb[196].mxu1 %v18803_v8  ;;  %v14929_v8 = vld [vmem:[#allocation5 + $0x80] ss:$48 sps:$4 sm:$0xff]  }
 0x469   : > { %12993 = vmatmul.mubr.bf16.gmra.mrb[20].mxu0 %v18819_v46  ;;  %5036 = vmatprep.mubr.bf16.mxu1 %v18696_v55 }
 0x46a   : > { %6045 = vmatpush1.bf16.msra.mxu0 %v14914_v44  ;;  %6048 = vmatprep.mubr.bf16.mxu0 %v18820_v39  ;;  %v14930_v44 = vld [vmem:[#allocation5 + $0x6d8] ss:$48 sps:$4 sm:$0xff]  }
 0x46b   : > { %6046 = vmatprep.subr.bf16.mxu0 %v14919_v5  ;;  %v14937_v5 = vld [vmem:[#allocation5 + $0x73c] ss:$48 sps:$4 sm:$0xff]  }
 0x46e   : > { %6047 = vmatpush1.bf16.msra.mxu0 %v14917_v47  ;;  %v14938_v47 = vld [vmem:[#allocation5 + $0x440] ss:$48 sps:$4 sm:$0xff]  }
 0x46f   : > { %6209 = vmatprep.subr.bf16.mxu0 %v14922_v33  ;;  %v18823_v33 = vld [vmem:[#allocation30_spill] sm:$0xff] }
 0x470   : > { %5037 = vmatmul.mubr.bf16.vlgmr.msra.gmra.mrb[136].mxu1 %v18804_v15  ;;  %v14934_v15 = vld [vmem:[#allocation5 + $0xe0] ss:$48 sps:$4 sm:$0xff]  }
 0x471   : > { %6049 = vmatmul.mubr.bf16.vlgmr.msra.gmra.mrb[88].mxu0 %v18821_v3  ;;  %12261 = vmatpush3.bf16.msra.mxu1 %v14924_v62  ;;  %v18824_v62 = vld [vmem:[#allocation32_spill] sm:$0xff] }
 0x472   : > { %6210 = vmatpush1.bf16.msra.mxu0 %v14920_v57  ;;  %5046 = vmatprep.mubr.bf16.mxu1 %v18696_v55  ;;  %v14935_v57 = vld [vmem:[#allocation5 + $0x738] ss:$48 sps:$4 sm:$0xff]  }
 0x473   : > { %6058 = vmatprep.mubr.bf16.mxu0 %v18822_v20  ;;  %6211 = vmatprep.subr.bf16.mxu0 %v14927_v31  ;;  %v14939_v31 = vld [vmem:[#allocation5 + $0x140] ss:$48 sps:$4 sm:$0xff]  }
 0x474   : > { %12262 = vmatprep.subr.bf16.mxu1 %v14928_v54  ;;  %v14942_v54 = vld [vmem:[#allocation5 + $0x79c] ss:$48 sps:$4 sm:$0xff]  }
 0x475   : > { %12263 = vmatpush3.bf16.msra.mxu1 %v14929_v8  ;;  %v14943_v8 = vld [vmem:[#allocation5 + $0x4a0] ss:$48 sps:$4 sm:$0xff]  }
 0x476   : > { %6212 = vmatpush1.bf16.msra.mxu0 %v14925_v61  ;;  %12264 = vmatprep.subr.bf16.mxu1 %v14933_v22  ;;  %v14940_v61 = vld [vmem:[#allocation5 + $0x798] ss:$48 sps:$4 sm:$0xff]   ;;  %v14947_v22 = vld [vmem:[#allocation5 + $0x7fc] ss:$48 sps:$4 sm:$0xff]  }
 0x477   : > { %6213 = vmatprep.subr.bf16.mxu0 %v14932_v25  ;;  %v14948_v25 = vld [vmem:[#allocation5 + $0x500] ss:$48 sps:$4 sm:$0xff]  }
 0x478   : > { %5047 = vmatmul.mubr.bf16.gmra.mrb[140].mxu1 %v18805_v50  ;;  %v14944_v50 = vld [vmem:[#allocation5 + $0x1a0] ss:$48 sps:$4 sm:$0xff]  }
 0x479   : > { %6059 = vmatmul.mubr.bf16.gmra.mrb[92].mxu0 %v18823_v33  ;;  %5056 = vmatprep.mubr.bf16.mxu1 %v18696_v55 }
 0x47a   : > { %6068 = vmatprep.mubr.bf16.mxu0 %v18824_v62  ;;  %6214 = vmatpush1.bf16.msra.mxu0 %v14930_v44  ;;  %v18826_v44 = vld [vmem:[#allocation36_spill] sm:$0xff]  ;;  %v14957_v62 = vld [vmem:[#allocation5 + $0x8bc] ss:$48 sps:$4 sm:$0xff]  }
 0x47b   : > { %12265 = vmatpush3.bf16.msra.mxu1 %v14934_v15  ;;  %6215 = vmatprep.subr.bf16.mxu0 %v14937_v5  ;;  %v14945_v15 = vld [vmem:[#allocation5 + $0x7f8] ss:$48 sps:$4 sm:$0xff]   ;;  %v14949_v5 = vld [vmem:[#allocation5 + $0x200] ss:$48 sps:$4 sm:$0xff]  }
 0x47c   : > { %12266 = vmatprep.subr.bf16.mxu1 %v14938_v47  ;;  %v14952_v47 = vld [vmem:[#allocation5 + $0x85c] ss:$48 sps:$4 sm:$0xff]  }
 0x47e   : > { %6216 = vmatpush1.bf16.msra.mxu0 %v14935_v57 }
 0x47f   : > { %12267 = vmatpush3.bf16.msra.mxu1 %v14939_v31  ;;  %6217 = vmatprep.subr.bf16.mxu0 %v14942_v54  ;;  %v14953_v31 = vld [vmem:[#allocation5 + $0x560] ss:$48 sps:$4 sm:$0xff]  }
 0x480   : > { %5057 = vmatmul.mubr.bf16.gmra.mrb[144].mxu1 %v18806_v19  ;;  %12268 = vmatprep.subr.bf16.mxu1 %v14943_v8  ;;  %v14950_v8 = vld [vmem:[#allocation5 + $0x858] ss:$48 sps:$4 sm:$0xff]  }
 0x481   : > { %6069 = vmatmul.mubr.bf16.gmra.mrb[96].mxu0 %v18825_v58  ;;  %5066 = vmatprep.mubr.bf16.mxu1 %v18696_v55  ;;  %v14954_v58 = vld [vmem:[#allocation5 + $0x260] ss:$48 sps:$4 sm:$0xff]  }
 0x482   : > { %6078 = vmatprep.mubr.bf16.mxu0 %v18826_v44  ;;  %6218 = vmatpush1.bf16.msra.mxu0 %v14940_v61  ;;  %v14958_v61 = vld [vmem:[#allocation5 + $0x5c0] ss:$48 sps:$4 sm:$0xff]  }
 0x483   : > { %12269 = vmatpush3.bf16.msra.mxu1 %v14944_v50  ;;  %6219 = vmatprep.subr.bf16.mxu0 %v14947_v22  ;;  %v18827_v22 = vld [vmem:[#allocation38_spill] sm:$0xff] }
 0x484   : > { %v12140_v57 = vpop.f32.mrb[24].mxu0  ;;  %12270 = vmatprep.subr.bf16.mxu1 %v14948_v25  ;;  %v18828_v25 = vld [vmem:[#allocation40_spill] sm:$0xff] }
 0x485   : > { %v12141_v54 = vpop.f32.mrb[25].mxu0 }
 0x486   : > { %v12142_v10 = vadd.f32 %v12141_v54, %v12140_v57  ;;  %v12143_v19 = vpop.f32.mrb[26].mxu0  ;;  %6220 = vmatpush1.bf16.msra.mxu0 %v14945_v15  ;;  %v14955_v15 = vld [vmem:[#allocation5 + $0x8b8] ss:$48 sps:$4 sm:$0xff]  }
 0x487   : > { %v12144_v16 = vpop.f32.mrb[27].mxu0  ;;  %12271 = vmatpush3.bf16.msra.mxu1 %v14949_v5  ;;  %6221 = vmatprep.subr.bf16.mxu0 %v14952_v47  ;;  %v17065_v47 = vld [vmem:[#allocation5 + $0x620] ss:$48 sps:$4 sm:$0xff]  }
 0x488   : > { %v12145_v44 = vadd.f32 %v12144_v16, %v12143_v19  ;;  %5067 = vmatmul.mubr.bf16.gmra.mrb[148].mxu1 %v18807_v17  ;;  %12272 = vmatprep.subr.bf16.mxu1 %v14953_v31  ;;  %v17057_v50 = vadd.f32 %v12142_v10, %v16877_v7  ;;  %v14959_v16 = vld [vmem:[#allocation5 + $0x2c0] ss:$48 sps:$4 sm:$0xff]  }
 0x489   : > { %6079 = vmatmul.mubr.bf16.gmra.mrb[100].mxu0 %v18827_v22  ;;  %5076 = vmatprep.mubr.bf16.mxu1 %v18696_v55 }
 0x48a   : > { %6088 = vmatprep.mubr.bf16.mxu0 %v18828_v25  ;;  %6222 = vmatpush1.bf16.msra.mxu0 %v14950_v8  ;;  %v17063_v5 = vadd.f32 %v12145_v44, %v16883_v60 }
 0x48b   : > { %12273 = vmatpush3.bf16.msra.mxu1 %v14954_v58  ;;  %6223 = vmatprep.subr.bf16.mxu0 %v14957_v62  ;;  %v18830_v58 = vld [vmem:[#allocation42_spill] sm:$0xff]  ;;  %v18831_v62 = vld [vmem:[#allocation44_spill] sm:$0xff] }
 0x48c   : > { %v12146_v17 = vpop.f32.mrb[28].mxu0  ;;  %12274 = vmatprep.subr.bf16.mxu1 %v14958_v61 }
 0x48d   : > { %v12147_v7 = vpop.f32.mrb[29].mxu0 }
 0x48e   : > { %v12148_v10 = vadd.f32 %v12147_v7, %v12146_v17  ;;  %v12149_v57 = vpop.f32.mrb[30].mxu0  ;;  %6224 = vmatpush1.bf16.msra.mxu0 %v14955_v15  ;;  %v18834_v17 = vld [vmem:[#allocation46_spill] sm:$0xff]  ;;  %v18835_v7 = vld [vmem:[#allocation16_spill] sm:$0xff] }
 0x48f   : > { %v12150_v31 = vpop.f32.mrb[31].mxu0  ;;  %12275 = vmatpush3.bf16.msra.mxu1 %v14959_v16 }
 0x490   : > { %v12151_v54 = vadd.f32 %v12150_v31, %v12149_v57  ;;  %5077 = vmatmul.mubr.bf16.gmra.mrb[152].mxu1 %v18808_v6  ;;  %12996 = vmatprep.subr.bf16.mxu1 %v17065_v47  ;;  %v17070_v60 = vadd.f32 %v12148_v10, %v16886_v27 }
 0x491   : > { %6089 = vmatmul.mubr.bf16.gmra.mrb[104].mxu0 %v18830_v58  ;;  %5086 = vmatprep.mubr.bf16.mxu1 %v18696_v55 }
 0x492   : > { %18829 = vst [vmem:[#allocation76_spill] sm:$0xff] %v17070_v60  ;;  %6098 = vmatprep.mubr.bf16.mxu0 %v18831_v62  ;;  %v17076_v44 = vadd.f32 %v12151_v54, %v16891_v37 }
 0x494   : > { %18832 = vst [vmem:[#allocation73_spill] sm:$0xff] %v17076_v44  ;;  %v12152_v19 = vpop.f32.mrb[32].mxu0 }
 0x495   : > { %v12153_v8 = vpop.f32.mrb[33].mxu0 }
 0x496   : > { %v12154_v61 = vadd.f32 %v12153_v8, %v12152_v19  ;;  %v12155_v15 = vpop.f32.mrb[34].mxu0 }
 0x497   : > { %v12156_v16 = vpop.f32.mrb[35].mxu0 }
 0x498   : > { %v12157_v6 = vadd.f32 %v12156_v16, %v12155_v15  ;;  %5087 = vmatmul.mubr.bf16.gmra.mrb[156].mxu1 %v18809_v45  ;;  %v17080_v27 = vadd.f32 %v12154_v61, %v16895_v32  ;;  %v18838_v45 = vld [vmem:[#allocation17_spill] sm:$0xff]  ;;  %v18839_v61 = vld [vmem:[#allocation18_spill] sm:$0xff] }
 0x499   : > { %6099 = vmatmul.mubr.bf16.gmra.mrb[108].mxu0 %v18834_v17  ;;  %5096 = vmatprep.mubr.bf16.mxu1 %v18696_v55 }
 0x49a   : > { %18833 = vst [vmem:[#allocation75_spill] sm:$0xff] %v17080_v27  ;;  %6108 = vmatprep.mubr.bf16.mxu0 %v18835_v7  ;;  %v17086_v37 = vadd.f32 %v12157_v6, %v16900_v23 }
 0x49c   : > { %18836 = vst [vmem:[#allocation89_spill] sm:$0xff] %v17086_v37  ;;  %v12158_v10 = vpop.f32.mrb[36].mxu0 }
 0x49d   : > { %v12159_v57 = vpop.f32.mrb[37].mxu0 }
 0x49e   : > { %v12160_v31 = vadd.f32 %v12159_v57, %v12158_v10  ;;  %v12161_v54 = vpop.f32.mrb[38].mxu0 }
 0x49f   : > { %v12162_v19 = vpop.f32.mrb[39].mxu0 }
 0x4a0   : > { %v12163_v8 = vadd.f32 %v12162_v19, %v12161_v54  ;;  %5097 = vmatmul.mubr.bf16.gmra.mrb[160].mxu1 %v18810_v4  ;;  %v17090_v32 = vadd.f32 %v12160_v31, %v16903_v28  ;;  %v18842_v4 = vld [vmem:[#allocation19_spill] sm:$0xff]  ;;  %v18843_v31 = vld [vmem:[#allocation20_spill] sm:$0xff] }
 0x4a1   : > { %6109 = vmatmul.mubr.bf16.gmra.mrb[112].mxu0 %v18838_v45  ;;  %5106 = vmatprep.mubr.bf16.mxu1 %v18696_v55 }
 0x4a2   : > { %18837 = vst [vmem:[#allocation91_spill] sm:$0xff] %v17090_v32  ;;  %6118 = vmatprep.mubr.bf16.mxu0 %v18839_v61  ;;  %v17096_v23 = vadd.f32 %v12163_v8, %v16908_v36 }
 0x4a4   : > { %18840 = vst [vmem:[#allocation90_spill] sm:$0xff] %v17096_v23  ;;  %v12164_v15 = vpop.f32.mrb[40].mxu0 }
 0x4a5   : > { %v12165_v16 = vpop.f32.mrb[41].mxu0 }
 0x4a6   : > { %v12166_v6 = vadd.f32 %v12165_v16, %v12164_v15  ;;  %v12167_v10 = vpop.f32.mrb[42].mxu0 }
 0x4a7   : > { %v12168_v57 = vpop.f32.mrb[43].mxu0 }
 0x4a8   : > { %v12169_v54 = vadd.f32 %v12168_v57, %v12167_v10  ;;  %5107 = vmatmul.mubr.bf16.gmra.mrb[164].mxu1 %v18811_v14  ;;  %v17100_v28 = vadd.f32 %v12166_v6, %v16911_v13  ;;  %v18846_v14 = vld [vmem:[#allocation22_spill] sm:$0xff]  ;;  %v18847_v6 = vld [vmem:[#allocation23_spill] sm:$0xff] }
 0x4a9   : > { %6119 = vmatmul.mubr.bf16.gmra.mrb[116].mxu0 %v18842_v4  ;;  %5116 = vmatprep.mubr.bf16.mxu1 %v18696_v55 }
 0x4aa   : > { %18841 = vst [vmem:[#allocation93_spill] sm:$0xff] %v17100_v28  ;;  %6128 = vmatprep.mubr.bf16.mxu0 %v18843_v31  ;;  %v17106_v36 = vadd.f32 %v12169_v54, %v16916_v12 }
 0x4ac   : > { %18844 = vst [vmem:[#allocation92_spill] sm:$0xff] %v17106_v36  ;;  %v12170_v19 = vpop.f32.mrb[44].mxu0 }
 0x4ad   : > { %v12171_v8 = vpop.f32.mrb[45].mxu0 }
 0x4ae   : > { %v12172_v15 = vadd.f32 %v12171_v8, %v12170_v19  ;;  %v12173_v16 = vpop.f32.mrb[46].mxu0 }
 0x4af   : > { %v12174_v23 = vpop.f32.mrb[47].mxu0 }
 0x4b0   : > { %v12175_v10 = vadd.f32 %v12174_v23, %v12173_v16  ;;  %5117 = vmatmul.mubr.bf16.gmra.mrb[168].mxu1 %v18812_v40  ;;  %v17110_v13 = vadd.f32 %v12172_v15, %v16919_v24  ;;  %v18850_v40 = vld [vmem:[#allocation24_spill] sm:$0xff]  ;;  %v18851_v15 = vld [vmem:[#allocation25_spill] sm:$0xff] }
 0x4b1   : > { %6129 = vmatmul.mubr.bf16.gmra.mrb[120].mxu0 %v18846_v14  ;;  %5126 = vmatprep.mubr.bf16.mxu1 %v18696_v55 }
 0x4b2   : > { %18845 = vst [vmem:[#allocation95_spill] sm:$0xff] %v17110_v13  ;;  %6138 = vmatprep.mubr.bf16.mxu0 %v18847_v6  ;;  %v17116_v12 = vadd.f32 %v12175_v10, %v16924_v56 }
 0x4b4   : > { %18848 = vst [vmem:[#allocation94_spill] sm:$0xff] %v17116_v12  ;;  %v12176_v57 = vpop.f32.mrb[48].mxu0 }
 0x4b5   : > { %v12177_v54 = vpop.f32.mrb[49].mxu0 }
 0x4b6   : > { %v12178_v19 = vadd.f32 %v12177_v54, %v12176_v57  ;;  %v12179_v8 = vpop.f32.mrb[50].mxu0 }
 0x4b7   : > { %v12180_v36 = vpop.f32.mrb[51].mxu0 }
 0x4b8   : > { %v12181_v23 = vadd.f32 %v12180_v36, %v12179_v8  ;;  %5127 = vmatmul.mubr.bf16.gmra.mrb[172].mxu1 %v18813_v59  ;;  %v17120_v24 = vadd.f32 %v12178_v19, %v16927_v34  ;;  %v18854_v59 = vld [vmem:[#allocation27_spill] sm:$0xff]  ;;  %v18855_v19 = vld [vmem:[#allocation29_spill] sm:$0xff] }
 0x4b9   : > { %6139 = vmatmul.mubr.bf16.gmra.mrb[124].mxu0 %v18850_v40  ;;  %5136 = vmatprep.mubr.bf16.mxu1 %v18696_v55 }
 0x4ba   : > { %18849 = vst [vmem:[#allocation97_spill] sm:$0xff] %v17120_v24  ;;  %6148 = vmatprep.mubr.bf16.mxu0 %v18851_v15  ;;  %v17126_v56 = vadd.f32 %v12181_v23, %v16932_v30 }
 0x4bc   : > { %18852 = vst [vmem:[#allocation96_spill] sm:$0xff] %v17126_v56  ;;  %v12182_v16 = vpop.f32.mrb[52].mxu0 }
 0x4bd   : > { %v12183_v10 = vpop.f32.mrb[53].mxu0 }
 0x4be   : > { %v12184_v57 = vadd.f32 %v12183_v10, %v12182_v16  ;;  %v12185_v54 = vpop.f32.mrb[54].mxu0 }
 0x4bf   : > { %v12186_v12 = vpop.f32.mrb[55].mxu0 }
 0x4c0   : > { %v12187_v36 = vadd.f32 %v12186_v12, %v12185_v54  ;;  %5137 = vmatmul.mubr.bf16.gmra.mrb[176].mxu1 %v18814_v29  ;;  %v17130_v34 = vadd.f32 %v12184_v57, %v16935_v1  ;;  %v18858_v29 = vld [vmem:[#allocation31_spill] sm:$0xff]  ;;  %v14966_v57 = vld [vmem:[#allocation8 + $0x548] ss:$12 sps:$4 sm:$0xff]   ;;  %v18859_v54 = vld [vmem:[#allocation33_spill] sm:$0xff] }
 0x4c1   : > { %6149 = vmatmul.mubr.bf16.gmra.mrb[128].mxu0 %v18854_v59  ;;  %5146 = vmatprep.mubr.bf16.mxu1 %v18696_v55 }
 0x4c2   : > { %18853 = vst [vmem:[#allocation99_spill] sm:$0xff] %v17130_v34  ;;  %6158 = vmatprep.mubr.bf16.mxu0 %v18855_v19  ;;  %v17136_v30 = vadd.f32 %v12187_v36, %v16940_v51  ;;  %12396 = vmatprep.subr.bf16.mxu0 %v14966_v57 }
 0x4c4   : > { %18856 = vst [vmem:[#allocation98_spill] sm:$0xff] %v17136_v30  ;;  %v12188_v8 = vpop.f32.mrb[56].mxu0 }
 0x4c5   : > { %v12189_v23 = vpop.f32.mrb[57].mxu0 }
 0x4c6   : > { %v12190_v16 = vadd.f32 %v12189_v23, %v12188_v8  ;;  %v12191_v10 = vpop.f32.mrb[58].mxu0 }
 0x4c7   : > { %v12192_v56 = vpop.f32.mrb[59].mxu0 }
 0x4c8   : > { %v12193_v12 = vadd.f32 %v12192_v56, %v12191_v10  ;;  %5147 = vmatmul.mubr.bf16.gmra.mrb[180].mxu1 %v18815_v42  ;;  %v17140_v1 = vadd.f32 %v12190_v16, %v16943_v0  ;;  %v18862_v16 = vld [vmem:[#allocation35_spill] sm:$0xff] }
 0x4c9   : > { %6159 = vmatmul.mubr.bf16.gmra.mrb[132].mxu0 %v18858_v29  ;;  %5156 = vmatprep.mubr.bf16.mxu1 %v18696_v55 }
 0x4ca   : > { %18857 = vst [vmem:[#allocation101_spill] sm:$0xff] %v17140_v1  ;;  %6168 = vmatprep.mubr.bf16.mxu0 %v18859_v54  ;;  %v17146_v51 = vadd.f32 %v12193_v12, %v16948_v49  ;;  %v18863_v1 = vld [vmem:[#allocation37_spill] sm:$0xff] }
 0x4cc   : > { %18860 = vst [vmem:[#allocation100_spill] sm:$0xff] %v17146_v51  ;;  %v12194_v36 = vpop.f32.mrb[60].mxu0 }
 0x4cd   : > { %v12195_v8 = vpop.f32.mrb[61].mxu0 }
 0x4ce   : > { %v12196_v23 = vadd.f32 %v12195_v8, %v12194_v36  ;;  %v12197_v56 = vpop.f32.mrb[62].mxu0 }
 0x4cf   : > { %v12198_v10 = vpop.f32.mrb[63].mxu0 }
 0x4d0   : > { %v12199_v42 = vadd.f32 %v12198_v10, %v12197_v56  ;;  %5157 = vmatmul.mubr.bf16.gmra.mrb[184].mxu1 %v18816_v38  ;;  %v17150_v0 = vadd.f32 %v12196_v23, %v16951_v63  ;;  %v18866_v38 = vld [vmem:[#allocation39_spill] sm:$0xff]  ;;  %v18867_v23 = vld [vmem:[#allocation41_spill] sm:$0xff] }
 0x4d1   : > { %6169 = vmatmul.mubr.bf16.gmra.mrb[136].mxu0 %v18862_v16  ;;  %5166 = vmatprep.mubr.bf16.mxu1 %v18696_v55 }
 0x4d2   : > { %18861 = vst [vmem:[#allocation103_spill] sm:$0xff] %v17150_v0  ;;  %6178 = vmatprep.mubr.bf16.mxu0 %v18863_v1  ;;  %v17156_v49 = vadd.f32 %v12199_v42, %v16956_v18 }
 0x4d4   : > { %18864 = vst [vmem:[#allocation102_spill] sm:$0xff] %v17156_v49  ;;  %v12200_v12 = vpop.f32.mrb[64].mxu0 }
 0x4d5   : > { %v12201_v57 = vpop.f32.mrb[65].mxu0 }
 0x4d6   : > { %v12202_v36 = vadd.f32 %v12201_v57, %v12200_v12  ;;  %v12203_v8 = vpop.f32.mrb[66].mxu0 }
 0x4d7   : > { %v12204_v51 = vpop.f32.mrb[67].mxu0 }
 0x4d8   : > { %v12205_v56 = vadd.f32 %v12204_v51, %v12203_v8  ;;  %5167 = vmatmul.mubr.bf16.gmra.mrb[188].mxu1 %v18817_v11  ;;  %v17160_v63 = vadd.f32 %v12202_v36, %v16959_v2  ;;  %v18870_v11 = vld [vmem:[#allocation43_spill] sm:$0xff]  ;;  %v18871_v36 = vld [vmem:[#allocation45_spill] sm:$0xff] }
 0x4d9   : > { %6179 = vmatmul.mubr.bf16.gmra.mrb[140].mxu0 %v18866_v38  ;;  %5176 = vmatprep.mubr.bf16.mxu1 %v18696_v55 }
 0x4da   : > { %18865 = vst [vmem:[#allocation105_spill] sm:$0xff] %v17160_v63  ;;  %6188 = vmatprep.mubr.bf16.mxu0 %v18867_v23  ;;  %v17166_v18 = vadd.f32 %v12205_v56, %v16964_v52 }
 0x4dc   : > { %18868 = vst [vmem:[#allocation104_spill] sm:$0xff] %v17166_v18  ;;  %v12206_v10 = vpop.f32.mrb[68].mxu0 }
 0x4dd   : > { %v12207_v42 = vpop.f32.mrb[69].mxu0 }
 0x4de   : > { %v12208_v12 = vadd.f32 %v12207_v42, %v12206_v10  ;;  %v12209_v57 = vpop.f32.mrb[70].mxu0 }
 0x4df   : > { %v12210_v49 = vpop.f32.mrb[71].mxu0 }
 0x4e0   : > { %v12211_v51 = vadd.f32 %v12210_v49, %v12209_v57  ;;  %5177 = vmatmul.mubr.bf16.gmra.mrb[192].mxu1 %v18818_v26  ;;  %v17170_v2 = vadd.f32 %v12208_v12, %v16967_v35  ;;  %v18874_v26 = vld [vmem:[#allocation47_spill] sm:$0xff] }
 0x4e1   : > { %6189 = vmatmul.mubr.bf16.gmra.mrb[144].mxu0 %v18870_v11  ;;  %5186 = vmatprep.mubr.bf16.mxu1 %v18696_v55 }
 0x4e2   : > { %18869 = vst [vmem:[#allocation107_spill] sm:$0xff] %v17170_v2  ;;  %6198 = vmatprep.mubr.bf16.mxu0 %v18871_v36  ;;  %v17176_v52 = vadd.f32 %v12211_v51, %v16972_v43  ;;  %v14975_v2 = vld [vmem:[#allocation8 + $0x4d0] ss:$12 sps:$4 sm:$0xff]  }
 0x4e4   : > { %18872 = vst [vmem:[#allocation106_spill] sm:$0xff] %v17176_v52  ;;  %v12212_v8 = vpop.f32.mrb[72].mxu0 }
 0x4e5   : > { %v12213_v56 = vpop.f32.mrb[73].mxu0 }
 0x4e6   : > { %v12214_v10 = vadd.f32 %v12213_v56, %v12212_v8  ;;  %v12215_v42 = vpop.f32.mrb[74].mxu0 }
 0x4e7   : > { %v12216_v18 = vpop.f32.mrb[75].mxu0 }
 0x4e8   : > { %v12217_v49 = vadd.f32 %v12216_v18, %v12215_v42  ;;  %5187 = vmatmul.mubr.bf16.gmra.mrb[196].mxu1 %v18819_v46  ;;  %v17180_v35 = vadd.f32 %v12214_v10, %v16975_v41  ;;  %v14961_v18 = vld [vmem:[#allocation5 + $0x680] ss:$48 sps:$4 sm:$0xff]   ;;  %v14969_v41 = vld [vmem:[#allocation8 + $0x560] ss:$12 sps:$4 sm:$0xff]  }
 0x4e9   : > { %6199 = vmatmul.mubr.bf16.gmra.mrb[148].mxu0 %v18874_v26  ;;  %6434 = vmatprep.mubr.bf16.mxu1 %v18820_v39  ;;  %v14967_v42 = vld [vmem:[#allocation8 + $0x488] ss:$12 sps:$4 sm:$0xff]  }
 0x4ea   : > { %18873 = vst [vmem:[#allocation66_spill] sm:$0xff] %v17180_v35  ;;  %6241 = vmatprep.mubr.bf16.mxu0 %v18696_v55  ;;  %v17186_v43 = vadd.f32 %v12217_v49, %v16980_v48  ;;  %v18877_v35 = vld [vmem:[#allocation48_spill] sm:$0xff] }
 0x4eb   : > { %v14962_v48 = vld [vmem:[#allocation5 + $0x6e0] ss:$48 sps:$4 sm:$0xff]  }
 0x4ec   : > { %18875 = vst [vmem:[#allocation68_spill] sm:$0xff] %v17186_v43  ;;  %v12218_v12 = vpop.f32.mrb[76].mxu0  ;;  %v14973_v43 = vld [vmem:[#allocation8 + $0x4b8] ss:$12 sps:$4 sm:$0xff]  }
 0x4ed   : > { %v12219_v57 = vpop.f32.mrb[77].mxu0 }
 0x4ee   : > { %v12220_v51 = vadd.f32 %v12219_v57, %v12218_v12  ;;  %v12221_v8 = vpop.f32.mrb[78].mxu0  ;;  %v14970_v12 = vld [vmem:[#allocation8 + $0x4a0] ss:$12 sps:$4 sm:$0xff]  }
 0x4ef   : > { %v12222_v56 = vpop.f32.mrb[79].mxu0 }
 0x4f0   : > { %v12223_v46 = vadd.f32 %v12222_v56, %v12221_v8  ;;  %6435 = vmatmul.mubr.bf16.vlgmr.msra.gmra.mrb[200].mxu1 %v18821_v3  ;;  %v17190_v10 = vadd.f32 %v12220_v51, %v16983_v21  ;;  %v14972_v8 = vld [vmem:[#allocation8 + $0x578] ss:$12 sps:$4 sm:$0xff]  }
 0x4f1   : > { %6242 = vmatmul.mubr.bf16.vlgmr.msra.gmra.mrb[88].mxu0 %v18877_v35  ;;  %12997 = vmatpush3.bf16.msra.mxu1 %v17065_v47 }
 0x4f2   : > { %18876 = vst [vmem:[#allocation65_spill] sm:$0xff] %v17190_v10  ;;  %6442 = vmatprep.mubr.bf16.mxu1 %v18822_v20  ;;  %6251 = vmatprep.mubr.bf16.mxu0 %v18696_v55  ;;  %v17197_v49 = vadd.f32 %v12223_v46, %v16988_v53  ;;  %v14963_v10 = vld [vmem:[#allocation5 + $0x740] ss:$48 sps:$4 sm:$0xff]  }
 0x4f3   : > { %12998 = vmatprep.subr.bf16.mxu1 %v14961_v18  ;;  %12397 = vmatpush3.bf16.msra.mxu0 %v14967_v42  ;;  %v18880_v42 = vld [vmem:[#allocation49_spill] sm:$0xff]  ;;  %v18881_v46 = vld [vmem:[#allocation32_spill] sm:$0xff] }
 0x4f4   : > { %18878 = vst [vmem:[#allocation67_spill] sm:$0xff] %v17197_v49  ;;  %v12224_v57 = vpop.f32.mrb[80].mxu0  ;;  %12398 = vmatprep.subr.bf16.mxu0 %v14969_v41  ;;  %v14974_v41 = vld [vmem:[#allocation8 + $0x590] ss:$12 sps:$4 sm:$0xff]   ;;  %v18884_v49 = vld [vmem:[#allocation34_spill] sm:$0xff] }
 0x4f5   : > { %v12225_v21 = vpop.f32.mrb[81].mxu0  ;;  %12999 = vmatpush3.bf16.msra.mxu1 %v14961_v18  ;;  %v18882_v18 = vld [vmem:[#allocation69_spill] sm:$0xff] }
 0x4f6   : > { %v12226_v51 = vadd.f32 %v12225_v21, %v12224_v57  ;;  %v12227_v56 = vpop.f32.mrb[82].mxu0  ;;  %13000 = vmatprep.subr.bf16.mxu1 %v14962_v48 }
 0x4f7   : > { %v12228_v47 = vpop.f32.mrb[83].mxu0  ;;  %12399 = vmatpush3.bf16.msra.mxu0 %v14970_v12  ;;  %v14964_v12 = vld [vmem:[#allocation5 + $0x7a0] ss:$48 sps:$4 sm:$0xff]  }
 0x4f8   : > { %v12229_v52 = vadd.f32 %v12228_v47, %v12227_v56  ;;  %6443 = vmatmul.mubr.bf16.gmra.mrb[204].mxu1 %v18823_v33  ;;  %12400 = vmatprep.subr.bf16.mxu0 %v14972_v8  ;;  %v17201_v53 = vadd.f32 %v12226_v51, %v16991_v9  ;;  %v14965_v47 = vld [vmem:[#allocation5 + $0x800] ss:$48 sps:$4 sm:$0xff]  }
 0x4f9   : > { %6252 = vmatmul.mubr.bf16.gmra.mrb[92].mxu0 %v18880_v42  ;;  %6450 = vmatprep.mubr.bf16.mxu1 %v18881_v46 }
 0x4fa   : > { %18879 = vst [vmem:[#allocation70_spill] sm:$0xff] %v17201_v53  ;;  %6261 = vmatprep.mubr.bf16.mxu0 %v18696_v55  ;;  %13001 = vmatpush3.bf16.msra.mxu1 %v14962_v48  ;;  %v17207_v57 = vadd.f32 %v12229_v52, %v18882_v18  ;;  %v18885_v48 = vld [vmem:[#allocation71_spill] sm:$0xff]  ;;  %v18887_v52 = vld [vmem:[#allocation50_spill] sm:$0xff]  ;;  %v18888_v18 = vld [vmem:[#allocation36_spill] sm:$0xff] }
 0x4fb   : > { %13002 = vmatprep.subr.bf16.mxu1 %v14963_v10  ;;  %12401 = vmatpush3.bf16.msra.mxu0 %v14973_v43  ;;  %v18889_v43 = vld [vmem:[#allocation74_spill] sm:$0xff] }
 0x4fc   : > { %18883 = vst [vmem:[#allocation72_spill] sm:$0xff] %v17207_v57  ;;  %v12230_v21 = vpop.f32.mrb[84].mxu0  ;;  %12402 = vmatprep.subr.bf16.mxu0 %v14974_v41  ;;  %v14976_v57 = vld [vmem:[#allocation8 + $0x480] ss:$12 sps:$4 sm:$0xff]  }
 0x4fd   : > { %v12231_v8 = vpop.f32.mrb[85].mxu0 }
 0x4fe   : > { %v12232_v56 = vadd.f32 %v12231_v8, %v12230_v21  ;;  %v12233_v9 = vpop.f32.mrb[86].mxu0  ;;  %13003 = vmatpush3.bf16.msra.mxu1 %v14963_v10  ;;  %v14968_v10 = vld [vmem:[#allocation5 + $0x860] ss:$48 sps:$4 sm:$0xff]   ;;  %v18891_v8 = vld [vmem:[#allocation51_spill] sm:$0xff] }
 0x4ff   : > { %v12234_v51 = vpop.f32.mrb[87].mxu0  ;;  %13004 = vmatprep.subr.bf16.mxu1 %v14964_v12  ;;  %12403 = vmatpush3.bf16.msra.mxu0 %v14975_v2  ;;  %v14971_v21 = vld [vmem:[#allocation5 + $0x8c0] ss:$48 sps:$4 sm:$0xff]  }
 0x500   : > { %v12235_v53 = vadd.f32 %v12234_v51, %v12233_v9  ;;  %6451 = vmatmul.mubr.bf16.gmra.mrb[208].mxu1 %v18884_v49  ;;  %v17211_v63 = vadd.f32 %v12232_v56, %v18885_v48  ;;  %v14979_v56 = vld [vmem:[#allocation8 + $0x5a8] ss:$12 sps:$4 sm:$0xff]   ;;  %v18893_v9 = vld [vmem:[#allocation53_spill] sm:$0xff] }
 0x501   : > { %6262 = vmatmul.mubr.bf16.gmra.mrb[96].mxu0 %v18887_v52  ;;  %6458 = vmatprep.mubr.bf16.mxu1 %v18888_v18  ;;  %v14980_v2 = vld [vmem:[#allocation8 + $0x4e8] ss:$12 sps:$4 sm:$0xff]   ;;  %v14993_v51 = vld [vmem:[#allocation8 + $0x5c0] ss:$12 sps:$4 sm:$0xff]  }
 0x502   : > { %18886 = vst [vmem:[#allocation78_spill] sm:$0xff] %v17211_v63  ;;  %6271 = vmatprep.mubr.bf16.mxu0 %v18696_v55  ;;  %13005 = vmatpush3.bf16.msra.mxu1 %v14964_v12  ;;  %v17217_v41 = vadd.f32 %v12235_v53, %v18889_v43  ;;  %v14978_v12 = vld [vmem:[#allocation8 + $0x484] ss:$12 sps:$4 sm:$0xff]   ;;  %v18894_v48 = vld [vmem:[#allocation54_spill] sm:$0xff]  ;;  %v18895_v43 = vld [vmem:[#allocation55_spill] sm:$0xff] }
 0x503   : > { %13006 = vmatprep.subr.bf16.mxu1 %v14965_v47  ;;  %12404 = vmatprep.subr.bf16.mxu0 %v14979_v56  ;;  %v18892_v53 = vld [vmem:[#allocation52_spill] sm:$0xff]  ;;  %v15021_v56 = vld [vmem:[#allocation8 + $0x5f0] ss:$12 sps:$4 sm:$0xff]  }
 0x504   : > { %18890 = vst [vmem:[#allocation77_spill] sm:$0xff] %v17217_v41  ;;  %12405 = vmatpush3.bf16.msra.mxu0 %v14980_v2  ;;  %v18896_v2 = vld [vmem:[#allocation56_spill] sm:$0xff]  ;;  %v18902_v41 = vld [vmem:[#allocation62_spill] sm:$0xff]  ;;  %v18903_v63 = vld [vmem:[#allocation63_spill] sm:$0xff] }
 0x505   : > { %12406 = vmatprep.subr.bf16.mxu0 %v14993_v51  ;;  %v18897_v51 = vld [vmem:[#allocation57_spill] sm:$0xff] }
 0x506   : > { %13007 = vmatpush3.bf16.msra.mxu1 %v14965_v47  ;;  %v14994_v47 = vld [vmem:[#allocation8 + $0x500] ss:$12 sps:$4 sm:$0xff]  }
 0x507   : > { %13008 = vmatprep.subr.bf16.mxu1 %v14968_v10 }
 0x508   : > { %6459 = vmatmul.mubr.bf16.gmra.mrb[212].mxu1 %v18827_v22  ;;  %12407 = vmatpush3.bf16.msra.mxu0 %v14994_v47  ;;  %v18898_v47 = vld [vmem:[#allocation58_spill] sm:$0xff] }
 0x509   : > { %6272 = vmatmul.mubr.bf16.gmra.mrb[100].mxu0 %v18891_v8  ;;  %6466 = vmatprep.mubr.bf16.mxu1 %v18828_v25 }
 0x50a   : > { %6281 = vmatprep.mubr.bf16.mxu0 %v18696_v55  ;;  %13009 = vmatpush3.bf16.msra.mxu1 %v14968_v10  ;;  %v15007_v10 = vld [vmem:[#allocation8 + $0x5d8] ss:$12 sps:$4 sm:$0xff]  }
 0x50b   : > { %13010 = vmatprep.subr.bf16.mxu1 %v14971_v21  ;;  %12408 = vmatprep.subr.bf16.mxu0 %v15007_v10  ;;  %v18899_v10 = vld [vmem:[#allocation59_spill] sm:$0xff] }
 0x50e   : > { %13011 = vmatpush3.bf16.msra.mxu1 %v14971_v21  ;;  %v15008_v21 = vld [vmem:[#allocation8 + $0x518] ss:$12 sps:$4 sm:$0xff]  }
 0x50f   : > { %7348 = vmatprep.subr.bf16.mxu1 %v14978_v12  ;;  %12409 = vmatpush3.bf16.msra.mxu0 %v15008_v21  ;;  %v15022_v12 = vld [vmem:[#allocation8 + $0x530] ss:$12 sps:$4 sm:$0xff]   ;;  %v18900_v21 = vld [vmem:[#allocation60_spill] sm:$0xff] }
 0x510   : > { %6467 = vmatmul.mubr.bf16.gmra.mrb[216].mxu1 %v18830_v58  ;;  %12410 = vmatprep.subr.bf16.mxu0 %v15021_v56  ;;  %v17259_v56 = vld [vmem:[#allocation8 + $0x608] ss:$12 sps:$4 sm:$0xff]  }
 0x511   : > { %6282 = vmatmul.mubr.bf16.gmra.mrb[104].mxu0 %v18892_v53  ;;  %6474 = vmatprep.mubr.bf16.mxu1 %v18831_v62 }
 0x512   : > { %6291 = vmatprep.mubr.bf16.mxu0 %v18696_v55 }
 0x513   : > { %12411 = vmatpush3.bf16.msra.mxu0 %v15022_v12  ;;  %v18901_v12 = vld [vmem:[#allocation61_spill] sm:$0xff] }
 0x514   : > { %13044 = vmatprep.subr.bf16.mxu0 %v17259_v56 }
 0x518   : > { %6475 = vmatmul.mubr.bf16.gmra.mrb[220].mxu1 %v18834_v17 }
 0x519   : > { %6292 = vmatmul.mubr.bf16.gmra.mrb[108].mxu0 %v18893_v9  ;;  %6482 = vmatprep.mubr.bf16.mxu1 %v18835_v7 }
 0x51a   : > { %6301 = vmatprep.mubr.bf16.mxu0 %v18696_v55 }
 0x520   : > { %6483 = vmatmul.mubr.bf16.gmra.mrb[224].mxu1 %v18838_v45 }
 0x521   : > { %6302 = vmatmul.mubr.bf16.gmra.mrb[112].mxu0 %v18894_v48  ;;  %6490 = vmatprep.mubr.bf16.mxu1 %v18839_v61 }
 0x522   : > { %6311 = vmatprep.mubr.bf16.mxu0 %v18696_v55 }
 0x528   : > { %6491 = vmatmul.mubr.bf16.gmra.mrb[228].mxu1 %v18842_v4 }
 0x529   : > { %6312 = vmatmul.mubr.bf16.gmra.mrb[116].mxu0 %v18895_v43  ;;  %6498 = vmatprep.mubr.bf16.mxu1 %v18843_v31 }
 0x52a   : > { %6321 = vmatprep.mubr.bf16.mxu0 %v18696_v55 }
 0x530   : > { %6499 = vmatmul.mubr.bf16.gmra.mrb[232].mxu1 %v18846_v14 }
 0x531   : > { %6322 = vmatmul.mubr.bf16.gmra.mrb[120].mxu0 %v18896_v2  ;;  %6506 = vmatprep.mubr.bf16.mxu1 %v18847_v6 }
 0x532   : > { %6331 = vmatprep.mubr.bf16.mxu0 %v18696_v55 }
 0x538   : > { %6507 = vmatmul.mubr.bf16.gmra.mrb[236].mxu1 %v18850_v40 }
 0x539   : > { %6332 = vmatmul.mubr.bf16.gmra.mrb[124].mxu0 %v18897_v51  ;;  %6514 = vmatprep.mubr.bf16.mxu1 %v18851_v15 }
 0x53a   : > { %6341 = vmatprep.mubr.bf16.mxu0 %v18696_v55 }
 0x540   : > { %6515 = vmatmul.mubr.bf16.gmra.mrb[240].mxu1 %v18854_v59 }
 0x541   : > { %6342 = vmatmul.mubr.bf16.gmra.mrb[128].mxu0 %v18898_v47  ;;  %6522 = vmatprep.mubr.bf16.mxu1 %v18855_v19 }
 0x542   : > { %6351 = vmatprep.mubr.bf16.mxu0 %v18696_v55 }
 0x548   : > { %6523 = vmatmul.mubr.bf16.gmra.mrb[244].mxu1 %v18858_v29 }
 0x549   : > { %6352 = vmatmul.mubr.bf16.gmra.mrb[132].mxu0 %v18899_v10  ;;  %6530 = vmatprep.mubr.bf16.mxu1 %v18859_v54  ;;  %v15033_v54 = vld [vmem:[#allocation8 + $0x620] ss:$12 sps:$4 sm:$0xff]  }
 0x54a   : > { %6361 = vmatprep.mubr.bf16.mxu0 %v18696_v55 }
 0x550   : > { %6531 = vmatmul.mubr.bf16.gmra.mrb[248].mxu1 %v18862_v16 }
 0x551   : > { %6362 = vmatmul.mubr.bf16.gmra.mrb[136].mxu0 %v18900_v21  ;;  %6538 = vmatprep.mubr.bf16.mxu1 %v18863_v1  ;;  %v14989_v1 = vld [vmem:[#allocation8 + $0x4cc] ss:$12 sps:$4 sm:$0xff]  }
 0x552   : > { %6371 = vmatprep.mubr.bf16.mxu0 %v18696_v55 }
 0x558   : > { %6539 = vmatmul.mubr.bf16.gmra.mrb[252].mxu1 %v18866_v38  ;;  %v14983_v38 = vld [vmem:[#allocation8 + $0x49c] ss:$12 sps:$4 sm:$0xff]  }
 0x559   : > { %6372 = vmatmul.mubr.bf16.gmra.mrb[140].mxu0 %v18901_v12  ;;  %6546 = vmatprep.mubr.bf16.mxu1 %v18867_v23  ;;  %v14986_v23 = vld [vmem:[#allocation8 + $0x4b4] ss:$12 sps:$4 sm:$0xff]  }
 0x55a   : > { %6381 = vmatprep.mubr.bf16.mxu0 %v18696_v55 }
 0x560   : > { %6547 = vmatmul.mubr.bf16.gmra.mrb[0].mxu1 %v18870_v11  ;;  %v14981_v11 = vld [vmem:[#allocation8 + $0x498] ss:$12 sps:$4 sm:$0xff]  }
 0x561   : > { %6382 = vmatmul.mubr.bf16.gmra.mrb[144].mxu0 %v18902_v41  ;;  %6554 = vmatprep.mubr.bf16.mxu1 %v18871_v36  ;;  %v14984_v36 = vld [vmem:[#allocation8 + $0x4b0] ss:$12 sps:$4 sm:$0xff]  }
 0x562   : > { %6391 = vmatprep.mubr.bf16.mxu0 %v18696_v55 }
 0x568   : > { %6555 = vmatmul.mubr.bf16.gmra.mrb[4].mxu1 %v18874_v26  ;;  %v14992_v26 = vld [vmem:[#allocation8 + $0x4e4] ss:$12 sps:$4 sm:$0xff]  }
 0x569   : > { %6392 = vmatmul.mubr.bf16.gmra.mrb[148].mxu0 %v18903_v63  ;;  %13012 = vmatprep.mubr.bf16.mxu1 %v18877_v35  ;;  %v14987_v35 = vld [vmem:[#allocation8 + $0x4c8] ss:$12 sps:$4 sm:$0xff]  }
 0x570   : > { %13013 = vmatmul.mubr.bf16.vlgmr.msra.gmra.mrb[8].mxu1 %v18880_v42  ;;  %v14990_v42 = vld [vmem:[#allocation8 + $0x4e0] ss:$12 sps:$4 sm:$0xff]  }
 0x571   : > { %13016 = vmatprep.mubr.bf16.mxu1 %v18887_v52  ;;  %7349 = vmatpush1.bf16.msra.mxu1 %v14976_v57  ;;  %v14997_v52 = vld [vmem:[#allocation8 + $0x4fc] ss:$12 sps:$4 sm:$0xff]   ;;  %v15003_v57 = vld [vmem:[#allocation8 + $0x52c] ss:$12 sps:$4 sm:$0xff]  }
 0x572   : > { %7350 = vmatprep.subr.bf16.mxu1 %v14983_v38  ;;  %v14995_v38 = vld [vmem:[#allocation8 + $0x4f8] ss:$12 sps:$4 sm:$0xff]  }
 0x575   : > { %7351 = vmatpush1.bf16.msra.mxu1 %v14981_v11  ;;  %v14998_v11 = vld [vmem:[#allocation8 + $0x510] ss:$12 sps:$4 sm:$0xff]  }
 0x576   : > { %7352 = vmatprep.subr.bf16.mxu1 %v14986_v23  ;;  %v15000_v23 = vld [vmem:[#allocation8 + $0x514] ss:$12 sps:$4 sm:$0xff]  }
 0x578   : > { %13017 = vmatmul.mubr.bf16.gmra.mrb[12].mxu1 %v18891_v8 }
 0x579   : > { %13020 = vmatprep.mubr.bf16.mxu1 %v18892_v53  ;;  %7353 = vmatpush1.bf16.msra.mxu1 %v14984_v36  ;;  %v15006_v36 = vld [vmem:[#allocation8 + $0x544] ss:$12 sps:$4 sm:$0xff]  }
 0x57a   : > { %7354 = vmatprep.subr.bf16.mxu1 %v14989_v1  ;;  %v15001_v1 = vld [vmem:[#allocation8 + $0x528] ss:$12 sps:$4 sm:$0xff]  }
 0x57d   : > { %7355 = vmatpush1.bf16.msra.mxu1 %v14987_v35  ;;  %v15004_v35 = vld [vmem:[#allocation8 + $0x540] ss:$12 sps:$4 sm:$0xff]  }
 0x57e   : > { %7356 = vmatprep.subr.bf16.mxu1 %v14992_v26  ;;  %v15011_v26 = vld [vmem:[#allocation8 + $0x55c] ss:$12 sps:$4 sm:$0xff]  }
 0x580   : > { %13021 = vmatmul.mubr.bf16.gmra.mrb[16].mxu1 %v18893_v9 }
 0x581   : > { %13024 = vmatprep.mubr.bf16.mxu1 %v18894_v48  ;;  %7357 = vmatpush1.bf16.msra.mxu1 %v14990_v42  ;;  %v15009_v42 = vld [vmem:[#allocation8 + $0x558] ss:$12 sps:$4 sm:$0xff]  }
 0x582   : > { %7358 = vmatprep.subr.bf16.mxu1 %v14997_v52  ;;  %v15014_v52 = vld [vmem:[#allocation8 + $0x574] ss:$12 sps:$4 sm:$0xff]  }
 0x585   : > { %7359 = vmatpush1.bf16.msra.mxu1 %v14995_v38  ;;  %v15012_v38 = vld [vmem:[#allocation8 + $0x570] ss:$12 sps:$4 sm:$0xff]  }
 0x586   : > { %7360 = vmatprep.subr.bf16.mxu1 %v15000_v23  ;;  %v15017_v23 = vld [vmem:[#allocation8 + $0x58c] ss:$12 sps:$4 sm:$0xff]  }
 0x588   : > { %13025 = vmatmul.mubr.bf16.gmra.mrb[20].mxu1 %v18895_v43 }
 0x589   : > { %13028 = vmatprep.mubr.bf16.mxu1 %v18896_v2  ;;  %7361 = vmatpush1.bf16.msra.mxu1 %v14998_v11  ;;  %v15015_v11 = vld [vmem:[#allocation8 + $0x588] ss:$12 sps:$4 sm:$0xff]  }
 0x58a   : > { %7362 = vmatprep.subr.bf16.mxu1 %v15003_v57  ;;  %v15020_v57 = vld [vmem:[#allocation8 + $0x5a4] ss:$12 sps:$4 sm:$0xff]  }
 0x58d   : > { %7363 = vmatpush1.bf16.msra.mxu1 %v15001_v1  ;;  %v15018_v1 = vld [vmem:[#allocation8 + $0x5a0] ss:$12 sps:$4 sm:$0xff]  }
 0x58e   : > { %7364 = vmatprep.subr.bf16.mxu1 %v15006_v36  ;;  %v15025_v36 = vld [vmem:[#allocation8 + $0x5bc] ss:$12 sps:$4 sm:$0xff]  }
 0x590   : > { %13029 = vmatmul.mubr.bf16.gmra.mrb[24].mxu1 %v18897_v51 }
 0x591   : > { %13032 = vmatprep.mubr.bf16.mxu1 %v18898_v47  ;;  %7365 = vmatpush1.bf16.msra.mxu1 %v15004_v35  ;;  %v15023_v35 = vld [vmem:[#allocation8 + $0x5b8] ss:$12 sps:$4 sm:$0xff]  }
 0x592   : > { %7366 = vmatprep.subr.bf16.mxu1 %v15011_v26  ;;  %v15028_v26 = vld [vmem:[#allocation8 + $0x5d4] ss:$12 sps:$4 sm:$0xff]  }
 0x595   : > { %7367 = vmatpush1.bf16.msra.mxu1 %v15009_v42  ;;  %v15026_v42 = vld [vmem:[#allocation8 + $0x5d0] ss:$12 sps:$4 sm:$0xff]  }
 0x596   : > { %7368 = vmatprep.subr.bf16.mxu1 %v15014_v52  ;;  %v15031_v52 = vld [vmem:[#allocation8 + $0x5ec] ss:$12 sps:$4 sm:$0xff]  }
 0x598   : > { %13033 = vmatmul.mubr.bf16.gmra.mrb[28].mxu1 %v18899_v10 }
 0x599   : > { %13036 = vmatprep.mubr.bf16.mxu1 %v18900_v21  ;;  %7369 = vmatpush1.bf16.msra.mxu1 %v15012_v38  ;;  %v15029_v38 = vld [vmem:[#allocation8 + $0x5e8] ss:$12 sps:$4 sm:$0xff]  }
 0x59a   : > { %7370 = vmatprep.subr.bf16.mxu1 %v15017_v23  ;;  %v15039_v23 = vld [vmem:[#allocation8 + $0x604] ss:$12 sps:$4 sm:$0xff]  }
 0x59d   : > { %7371 = vmatpush1.bf16.msra.mxu1 %v15015_v11  ;;  %v5615_v11 = vld [vmem:[#allocation7 + $0x6] sm:$0x7] }
 0x59e   : > { %7372 = vmatprep.subr.bf16.mxu1 %v15020_v57  ;;  %v18904_v57 = vld [vmem:[#allocation87_spill] sm:$0xff] }
 0x5a0   : > { %13037 = vmatmul.mubr.bf16.gmra.mrb[32].mxu1 %v18901_v12  ;;  %v17289_v12 = vrot.slane %v5615_v11, %v18904_v57 }
 0x5a1   : > { %13040 = vmatprep.mubr.bf16.mxu1 %v18902_v41  ;;  %7373 = vmatpush1.bf16.msra.mxu1 %v15018_v1  ;;  %v18905_v1 = vld [vmem:[#allocation88_spill] sm:$0xff] }
 0x5a2   : > { %7374 = vmatprep.subr.bf16.mxu1 %v15025_v36  ;;  %v17292_v41 = vrot.slane %v5615_v11, %v18905_v1 }
 0x5a5   : > { %7375 = vmatpush1.bf16.msra.mxu1 %v15023_v35  ;;  %v18906_v35 = vld [vmem:[#allocation64_spill] sm:$0xff] }
 0x5a6   : > { %7376 = vmatprep.subr.bf16.mxu1 %v15028_v26  ;;  %v17295_v21 = vrot.slane %v5615_v11, %v18906_v35 }
 0x5a8   : > { %13041 = vmatmul.mubr.bf16.gmra.mrb[36].mxu1 %v18903_v63 }
 0x5a9   : > { %7377 = vmatpush1.bf16.msra.mxu1 %v15026_v42 }
 0x5aa   : > { %7378 = vmatprep.subr.bf16.mxu1 %v15031_v52 }
 0x5ad   : > { %7379 = vmatpush1.bf16.msra.mxu1 %v15029_v38 }
 0x5ae   : > { %7541 = vmatprep.subr.bf16.mxu1 %v15039_v23 }
 0x5c3   : > { %v12276_v36 = vpop.f32.mrb[200].mxu1 }
 0x5c4   : > { %v6243_v26 = vpop.f32.mrb[88].mxu0  ;;  %v12277_v10 = vpop.f32.mrb[201].mxu1 }
 0x5c5   : > { %v13460_v42 = vadd.f32 %v6243_v26, %v17289_v12  ;;  %v12278_v63 = vadd.f32 %v12277_v10, %v12276_v36  ;;  %v6245_v52 = vpop.f32.mrb[89].mxu0  ;;  %v12279_v47 = vpop.f32.mrb[202].mxu1 }
 0x5c6   : > { %v13461_v38 = vadd.f32 %v6245_v52, %v17292_v41  ;;  %v6247_v23 = vpop.f32.mrb[90].mxu0  ;;  %v12280_v51 = vpop.f32.mrb[203].mxu1 }
 0x5c7   : > { %v13462_v57 = vadd.f32 %v6247_v23, %v17289_v12  ;;  %v12281_v2 = vadd.f32 %v12280_v51, %v12279_v47  ;;  %v6249_v1 = vpop.f32.mrb[91].mxu0  ;;  %v17301_v43 = vadd.f32 %v12278_v63, %v17295_v21  ;;  %v6724_v35 = vmax.f32 %v13460_v42, 0.0  ;;  %v15037_v23 = vld [vmem:[#allocation8 + $0x600] ss:$12 sps:$4 sm:$0xff]  }
 0x5c8   : > { %v13463_v11 = vadd.f32 %v6249_v1, %v17292_v41  ;;  %v6725_v10 = vmax.f32 %v13461_v38, 0.0  ;;  %v15043_v1 = vld [vmem:[#allocation8 + $0x61c] ss:$12 sps:$4 sm:$0xff]  }
 0x5c9   : > { %v6727_v48 = vmax.f32 %v13462_v57, 0.0  ;;  %v17305_v26 = vadd.f32 %v12281_v2, %v17295_v21 }
 0x5ca   : > { %v6728_v36 = vmax.f32 %v13463_v11, 0.0 }
 0x5cb   : > { %v6820_v9 = vpack.c.bf16 %v6727_v48, %v6724_v35  ;;  %v12282_v52 = vpop.f32.mrb[204].mxu1 }
 0x5cc   : > { %v6253_v53 = vpop.f32.mrb[92].mxu0  ;;  %v12283_v8 = vpop.f32.mrb[205].mxu1  ;;  %v6821_v16 = vpack.c.bf16 %v6728_v36, %v6725_v10 }
 0x5cd   : > { %v13464_v51 = vadd.f32 %v6253_v53, %v17289_v12  ;;  %v12284_v47 = vadd.f32 %v12283_v8, %v12282_v52  ;;  %v6255_v63 = vpop.f32.mrb[93].mxu0  ;;  %v12285_v0 = vpop.f32.mrb[206].mxu1  ;;  %v15041_v53 = vld [vmem:[#allocation8 + $0x618] ss:$12 sps:$4 sm:$0xff]  }
 0x5ce   : > { %v13465_v57 = vadd.f32 %v6255_v63, %v17292_v41  ;;  %v6257_v42 = vpop.f32.mrb[94].mxu0  ;;  %v12286_v2 = vpop.f32.mrb[207].mxu1  ;;  %7380 = vmatprep.mubr.bf16.mxu1 %v6821_v16  ;;  %7766 = vmatprep.mubr.bf16.mxu0 %v6821_v16  ;;  %v15034_v52 = vld [vmem:[#allocation8 + $0x638] ss:$12 sps:$4 sm:$0xff]   ;;  %v15047_v16 = vld [vmem:[#allocation8 + $0x634] ss:$12 sps:$4 sm:$0xff]  }
 0x5cf   : > { %v13466_v48 = vadd.f32 %v6257_v42, %v17289_v12  ;;  %v12287_v35 = vadd.f32 %v12286_v2, %v12285_v0  ;;  %v6259_v38 = vpop.f32.mrb[95].mxu0  ;;  %7381 = vmatmul.mubr.bf16.vlgmr.msra.gmra.mrb[136].mxu1 %v6820_v9  ;;  %7767 = vmatmul.mubr.bf16.vlgmr.msra.gmra.mrb[152].mxu0 %v6820_v9  ;;  %v17311_v11 = vadd.f32 %v12284_v47, %v17295_v21  ;;  %v6730_v10 = vmax.f32 %v13464_v51, 0.0 }
 0x5d0   : > { %v13467_v8 = vadd.f32 %v6259_v38, %v17292_v41  ;;  %13045 = vmatpush3.bf16.msra.mxu0 %v17259_v56  ;;  %7542 = vmatpush1.bf16.msra.mxu1 %v15037_v23  ;;  %v6731_v63 = vmax.f32 %v13465_v57, 0.0  ;;  %v15045_v56 = vld [vmem:[#allocation8 + $0x630] ss:$12 sps:$4 sm:$0xff]  }
 0x5d1   : > { %v6733_v36 = vmax.f32 %v13466_v48, 0.0  ;;  %13046 = vmatprep.subr.bf16.mxu0 %v15033_v54  ;;  %7543 = vmatprep.subr.bf16.mxu1 %v15043_v1  ;;  %v17316_v0 = vadd.f32 %v12287_v35, %v17295_v21  ;;  %v15035_v1 = vld [vmem:[#allocation8 + $0x650] ss:$12 sps:$4 sm:$0xff]   ;;  %v15050_v35 = vld [vmem:[#allocation8 + $0x64c] ss:$12 sps:$4 sm:$0xff]  }
 0x5d2   : > { %v6734_v9 = vmax.f32 %v13467_v8, 0.0 }
 0x5d3   : > { %v12288_v42 = vpop.f32.mrb[208].mxu1  ;;  %v6823_v47 = vpack.c.bf16 %v6733_v36, %v6730_v10 }
 0x5d4   : > { %v6263_v2 = vpop.f32.mrb[96].mxu0  ;;  %v12289_v29 = vpop.f32.mrb[209].mxu1  ;;  %v6824_v38 = vpack.c.bf16 %v6734_v9, %v6731_v63  ;;  %13047 = vmatpush3.bf16.msra.mxu0 %v15033_v54  ;;  %7544 = vmatpush1.bf16.msra.mxu1 %v15041_v53 }
 0x5d5   : > { %v13468_v23 = vadd.f32 %v6263_v2, %v17289_v12  ;;  %v12290_v51 = vadd.f32 %v12289_v29, %v12288_v42  ;;  %v6265_v48 = vpop.f32.mrb[97].mxu0  ;;  %v12291_v19 = vpop.f32.mrb[210].mxu1  ;;  %13048 = vmatprep.subr.bf16.mxu0 %v15034_v52  ;;  %7545 = vmatprep.subr.bf16.mxu1 %v15047_v16  ;;  %v15048_v16 = vld [vmem:[#allocation8 + $0x648] ss:$12 sps:$4 sm:$0xff]   ;;  %v15053_v2 = vld [vmem:[#allocation8 + $0x664] ss:$12 sps:$4 sm:$0xff]  }
 0x5d6   : > { %v13469_v57 = vadd.f32 %v6265_v48, %v17292_v41  ;;  %v6267_v8 = vpop.f32.mrb[98].mxu0  ;;  %v12292_v30 = vpop.f32.mrb[211].mxu1  ;;  %7390 = vmatprep.mubr.bf16.mxu1 %v6824_v38  ;;  %7774 = vmatprep.mubr.bf16.mxu0 %v6824_v38  ;;  %v15036_v42 = vld [vmem:[#allocation8 + $0x668] ss:$12 sps:$4 sm:$0xff]  }
 0x5d7   : > { %v13470_v10 = vadd.f32 %v6267_v8, %v17289_v12  ;;  %v12293_v54 = vadd.f32 %v12292_v30, %v12291_v19  ;;  %v6269_v53 = vpop.f32.mrb[99].mxu0  ;;  %7391 = vmatmul.mubr.bf16.gmra.mrb[140].mxu1 %v6823_v47  ;;  %7775 = vmatmul.mubr.bf16.gmra.mrb[156].mxu0 %v6823_v47  ;;  %v17322_v29 = vadd.f32 %v12290_v51, %v17295_v21  ;;  %v6736_v63 = vmax.f32 %v13468_v23, 0.0 }
 0x5d8   : > { %v13471_v36 = vadd.f32 %v6269_v53, %v17292_v41  ;;  %13049 = vmatpush3.bf16.msra.mxu0 %v15034_v52  ;;  %7546 = vmatpush1.bf16.msra.mxu1 %v15045_v56  ;;  %v6737_v19 = vmax.f32 %v13469_v57, 0.0  ;;  %v15051_v52 = vld [vmem:[#allocation8 + $0x660] ss:$12 sps:$4 sm:$0xff]  }
 0x5d9   : > { %v6739_v9 = vmax.f32 %v13470_v10, 0.0  ;;  %13050 = vmatprep.subr.bf16.mxu0 %v15035_v1  ;;  %7547 = vmatprep.subr.bf16.mxu1 %v15050_v35  ;;  %v17326_v38 = vadd.f32 %v12293_v54, %v17295_v21  ;;  %v15040_v35 = vld [vmem:[#allocation8 + $0x680] ss:$12 sps:$4 sm:$0xff]   ;;  %v15057_v54 = vld [vmem:[#allocation8 + $0x67c] ss:$12 sps:$4 sm:$0xff]  }
 0x5da   : > { %v6740_v30 = vmax.f32 %v13471_v36, 0.0 }
 0x5db   : > { %v12294_v47 = vpop.f32.mrb[212].mxu1  ;;  %v6826_v48 = vpack.c.bf16 %v6739_v9, %v6736_v63 }
 0x5dc   : > { %v6273_v51 = vpop.f32.mrb[100].mxu0  ;;  %v12295_v8 = vpop.f32.mrb[213].mxu1  ;;  %v6827_v59 = vpack.c.bf16 %v6740_v30, %v6737_v19  ;;  %13051 = vmatpush3.bf16.msra.mxu0 %v15035_v1  ;;  %7548 = vmatpush1.bf16.msra.mxu1 %v15048_v16 }
 0x5dd   : > { %v13472_v56 = vadd.f32 %v6273_v51, %v17289_v12  ;;  %v12296_v23 = vadd.f32 %v12295_v8, %v12294_v47  ;;  %v6275_v10 = vpop.f32.mrb[101].mxu0  ;;  %v12297_v53 = vpop.f32.mrb[214].mxu1  ;;  %13052 = vmatprep.subr.bf16.mxu0 %v15036_v42  ;;  %7549 = vmatprep.subr.bf16.mxu1 %v15053_v2  ;;  %v15055_v2 = vld [vmem:[#allocation8 + $0x678] ss:$12 sps:$4 sm:$0xff]  }
 0x5de   : > { %v13473_v57 = vadd.f32 %v6275_v10, %v17292_v41  ;;  %v6277_v36 = vpop.f32.mrb[102].mxu0  ;;  %v12298_v34 = vpop.f32.mrb[215].mxu1  ;;  %7400 = vmatprep.mubr.bf16.mxu1 %v6827_v59  ;;  %7782 = vmatprep.mubr.bf16.mxu0 %v6827_v59  ;;  %v15044_v51 = vld [vmem:[#allocation8 + $0x698] ss:$12 sps:$4 sm:$0xff]   ;;  %v15060_v59 = vld [vmem:[#allocation8 + $0x694] ss:$12 sps:$4 sm:$0xff]  }
 0x5df   : > { %v13474_v63 = vadd.f32 %v6277_v36, %v17289_v12  ;;  %v12299_v1 = vadd.f32 %v12298_v34, %v12297_v53  ;;  %v6279_v16 = vpop.f32.mrb[103].mxu0  ;;  %7401 = vmatmul.mubr.bf16.gmra.mrb[144].mxu1 %v6826_v48  ;;  %7783 = vmatmul.mubr.bf16.gmra.mrb[160].mxu0 %v6826_v48  ;;  %v17332_v9 = vadd.f32 %v12296_v23, %v17295_v21  ;;  %v6742_v30 = vmax.f32 %v13472_v56, 0.0 }
 0x5e0   : > { %v13475_v19 = vadd.f32 %v6279_v16, %v17292_v41  ;;  %13053 = vmatpush3.bf16.msra.mxu0 %v15036_v42  ;;  %7550 = vmatpush1.bf16.msra.mxu1 %v15051_v52  ;;  %v6743_v34 = vmax.f32 %v13473_v57, 0.0  ;;  %v15058_v42 = vld [vmem:[#allocation8 + $0x690] ss:$12 sps:$4 sm:$0xff]  }
 0x5e1   : > { %v6745_v47 = vmax.f32 %v13474_v63, 0.0  ;;  %13054 = vmatprep.subr.bf16.mxu0 %v15040_v35  ;;  %7551 = vmatprep.subr.bf16.mxu1 %v15057_v54  ;;  %v17336_v8 = vadd.f32 %v12299_v1, %v17295_v21  ;;  %v15054_v54 = vld [vmem:[#allocation8 + $0x6b0] ss:$12 sps:$4 sm:$0xff]   ;;  %v15063_v1 = vld [vmem:[#allocation8 + $0x6ac] ss:$12 sps:$4 sm:$0xff]  }
 0x5e2   : > { %v6746_v10 = vmax.f32 %v13475_v19, 0.0 }
 0x5e3   : > { %v12300_v48 = vpop.f32.mrb[216].mxu1  ;;  %v6829_v53 = vpack.c.bf16 %v6745_v47, %v6742_v30 }
 0x5e4   : > { %v6283_v23 = vpop.f32.mrb[104].mxu0  ;;  %v12301_v36 = vpop.f32.mrb[217].mxu1  ;;  %v6830_v15 = vpack.c.bf16 %v6746_v10, %v6743_v34  ;;  %13055 = vmatpush3.bf16.msra.mxu0 %v15040_v35  ;;  %7552 = vmatpush1.bf16.msra.mxu1 %v15055_v2 }
 0x5e5   : > { %v13476_v52 = vadd.f32 %v6283_v23, %v17289_v12  ;;  %v12302_v56 = vadd.f32 %v12301_v36, %v12300_v48  ;;  %v6285_v63 = vpop.f32.mrb[105].mxu0  ;;  %v12303_v16 = vpop.f32.mrb[218].mxu1  ;;  %13056 = vmatprep.subr.bf16.mxu0 %v15044_v51  ;;  %7553 = vmatprep.subr.bf16.mxu1 %v15060_v59  ;;  %v15061_v59 = vld [vmem:[#allocation8 + $0x6a8] ss:$12 sps:$4 sm:$0xff]   ;;  %v15066_v23 = vld [vmem:[#allocation5 + $0x28] ss:$48 sps:$4 sm:$0xff]  }
 0x5e6   : > { %v13477_v57 = vadd.f32 %v6285_v63, %v17292_v41  ;;  %v6287_v19 = vpop.f32.mrb[106].mxu0  ;;  %v12304_v40 = vpop.f32.mrb[219].mxu1  ;;  %7410 = vmatprep.mubr.bf16.mxu1 %v6830_v15  ;;  %7790 = vmatprep.mubr.bf16.mxu0 %v6830_v15 }
 0x5e7   : > { %v13478_v30 = vadd.f32 %v6287_v19, %v17289_v12  ;;  %v12305_v35 = vadd.f32 %v12304_v40, %v12303_v16  ;;  %v6289_v2 = vpop.f32.mrb[107].mxu0  ;;  %7411 = vmatmul.mubr.bf16.gmra.mrb[148].mxu1 %v6829_v53  ;;  %7791 = vmatmul.mubr.bf16.gmra.mrb[164].mxu0 %v6829_v53  ;;  %v17342_v47 = vadd.f32 %v12302_v56, %v17295_v21  ;;  %v6748_v10 = vmax.f32 %v13476_v52, 0.0 }
 0x5e8   : > { %v13479_v34 = vadd.f32 %v6289_v2, %v17292_v41  ;;  %13057 = vmatpush3.bf16.msra.mxu0 %v15044_v51  ;;  %7554 = vmatpush1.bf16.msra.mxu1 %v15058_v42  ;;  %v6749_v40 = vmax.f32 %v13477_v57, 0.0 }
 0x5e9   : > { %v6751_v48 = vmax.f32 %v13478_v30, 0.0  ;;  %13058 = vmatprep.subr.bf16.mxu0 %v15054_v54  ;;  %7555 = vmatprep.subr.bf16.mxu1 %v15063_v1  ;;  %v17346_v15 = vadd.f32 %v12305_v35, %v17295_v21 }
 0x5ea   : > { %v6752_v36 = vmax.f32 %v13479_v34, 0.0 }
 0x5eb   : > { %v12306_v63 = vpop.f32.mrb[220].mxu1  ;;  %v6832_v53 = vpack.c.bf16 %v6751_v48, %v6748_v10 }
 0x5ec   : > { %v6293_v16 = vpop.f32.mrb[108].mxu0  ;;  %v12307_v56 = vpop.f32.mrb[221].mxu1  ;;  %v6833_v19 = vpack.c.bf16 %v6752_v36, %v6749_v40  ;;  %13059 = vmatpush3.bf16.msra.mxu0 %v15054_v54  ;;  %7556 = vmatpush1.bf16.msra.mxu1 %v15061_v59 }
 0x5ed   : > { %v13480_v51 = vadd.f32 %v6293_v16, %v17289_v12  ;;  %v12308_v42 = vadd.f32 %v12307_v56, %v12306_v63  ;;  %v6295_v52 = vpop.f32.mrb[109].mxu0  ;;  %v12309_v30 = vpop.f32.mrb[222].mxu1  ;;  %8649 = vmatprep.subr.bf16.mxu0 %v15066_v23 }
 0x5ee   : > { %v13481_v1 = vadd.f32 %v6295_v52, %v17292_v41  ;;  %v6297_v2 = vpop.f32.mrb[110].mxu0  ;;  %v12310_v35 = vpop.f32.mrb[223].mxu1  ;;  %7420 = vmatprep.mubr.bf16.mxu1 %v6833_v19  ;;  %7798 = vmatprep.mubr.bf16.mxu0 %v6833_v19 }
 0x5ef   : > { %v13482_v57 = vadd.f32 %v6297_v2, %v17289_v12  ;;  %v12311_v34 = vadd.f32 %v12310_v35, %v12309_v30  ;;  %v6299_v10 = vpop.f32.mrb[111].mxu0  ;;  %7421 = vmatmul.mubr.bf16.gmra.mrb[152].mxu1 %v6832_v53  ;;  %7799 = vmatmul.mubr.bf16.gmra.mrb[168].mxu0 %v6832_v53  ;;  %v17352_v54 = vadd.f32 %v12308_v42, %v17295_v21  ;;  %v6754_v48 = vmax.f32 %v13480_v51, 0.0 }
 0x5f0   : > { %v13483_v59 = vadd.f32 %v6299_v10, %v17292_v41  ;;  %v6755_v36 = vmax.f32 %v13481_v1, 0.0 }
 0x5f1   : > { %v6757_v40 = vmax.f32 %v13482_v57, 0.0  ;;  %v17356_v23 = vadd.f32 %v12311_v34, %v17295_v21 }
 0x5f2   : > { %v6758_v63 = vmax.f32 %v13483_v59, 0.0 }
 0x5f3   : > { %v12312_v16 = vpop.f32.mrb[224].mxu1  ;;  %v6835_v56 = vpack.c.bf16 %v6757_v40, %v6754_v48 }
 0x5f4   : > { %v6303_v19 = vpop.f32.mrb[112].mxu0  ;;  %v12313_v52 = vpop.f32.mrb[225].mxu1  ;;  %v6836_v30 = vpack.c.bf16 %v6758_v63, %v6755_v36 }
 0x5f5   : > { %v13484_v2 = vadd.f32 %v6303_v19, %v17289_v12  ;;  %v12314_v53 = vadd.f32 %v12313_v52, %v12312_v16  ;;  %v6305_v35 = vpop.f32.mrb[113].mxu0  ;;  %v12315_v42 = vpop.f32.mrb[226].mxu1 }
 0x5f6   : > { %v13485_v24 = vadd.f32 %v6305_v35, %v17292_v41  ;;  %v6307_v10 = vpop.f32.mrb[114].mxu0  ;;  %v12316_v51 = vpop.f32.mrb[227].mxu1  ;;  %7430 = vmatprep.mubr.bf16.mxu1 %v6836_v30  ;;  %7806 = vmatprep.mubr.bf16.mxu0 %v6836_v30 }
 0x5f7   : > { %v13486_v57 = vadd.f32 %v6307_v10, %v17289_v12  ;;  %v12317_v1 = vadd.f32 %v12316_v51, %v12315_v42  ;;  %v6309_v34 = vpop.f32.mrb[115].mxu0  ;;  %7431 = vmatmul.mubr.bf16.gmra.mrb[156].mxu1 %v6835_v56  ;;  %7807 = vmatmul.mubr.bf16.gmra.mrb[172].mxu0 %v6835_v56  ;;  %v17362_v59 = vadd.f32 %v12314_v53, %v17295_v21  ;;  %v6760_v40 = vmax.f32 %v13484_v2, 0.0 }
 0x5f8   : > { %v13487_v48 = vadd.f32 %v6309_v34, %v17292_v41  ;;  %v6761_v16 = vmax.f32 %v13485_v24, 0.0 }
 0x5f9   : > { %v6763_v36 = vmax.f32 %v13486_v57, 0.0  ;;  %v17366_v63 = vadd.f32 %v12317_v1, %v17295_v21 }
 0x5fa   : > { %v6764_v19 = vmax.f32 %v13487_v48, 0.0 }
 0x5fb   : > { %v12318_v52 = vpop.f32.mrb[228].mxu1  ;;  %v6838_v30 = vpack.c.bf16 %v6763_v36, %v6760_v40 }
 0x5fc   : > { %v6313_v35 = vpop.f32.mrb[116].mxu0  ;;  %v12319_v10 = vpop.f32.mrb[229].mxu1  ;;  %v6839_v42 = vpack.c.bf16 %v6764_v19, %v6761_v16 }
 0x5fd   : > { %v13488_v51 = vadd.f32 %v6313_v35, %v17289_v12  ;;  %v12320_v56 = vadd.f32 %v12319_v10, %v12318_v52  ;;  %v6315_v6 = vpop.f32.mrb[117].mxu0  ;;  %v12321_v53 = vpop.f32.mrb[230].mxu1 }
 0x5fe   : > { %v13489_v14 = vadd.f32 %v6315_v6, %v17292_v41  ;;  %v6317_v34 = vpop.f32.mrb[118].mxu0  ;;  %v12322_v2 = vpop.f32.mrb[231].mxu1  ;;  %7440 = vmatprep.mubr.bf16.mxu1 %v6839_v42  ;;  %7814 = vmatprep.mubr.bf16.mxu0 %v6839_v42 }
 0x5ff   : > { %v13490_v57 = vadd.f32 %v6317_v34, %v17289_v12  ;;  %v12323_v24 = vadd.f32 %v12322_v2, %v12321_v53  ;;  %v6319_v1 = vpop.f32.mrb[119].mxu0  ;;  %7441 = vmatmul.mubr.bf16.gmra.mrb[160].mxu1 %v6838_v30  ;;  %7815 = vmatmul.mubr.bf16.gmra.mrb[176].mxu0 %v6838_v30  ;;  %v17372_v48 = vadd.f32 %v12320_v56, %v17295_v21  ;;  %v6766_v36 = vmax.f32 %v13488_v51, 0.0 }
 0x600   : > { %v13491_v40 = vadd.f32 %v6319_v1, %v17292_v41  ;;  %v6767_v6 = vmax.f32 %v13489_v14, 0.0 }
 0x601   : > { %v6769_v16 = vmax.f32 %v13490_v57, 0.0  ;;  %v17376_v19 = vadd.f32 %v12323_v24, %v17295_v21 }
 0x602   : > { %v6770_v52 = vmax.f32 %v13491_v40, 0.0 }
 0x603   : > { %v12324_v35 = vpop.f32.mrb[232].mxu1  ;;  %v6841_v10 = vpack.c.bf16 %v6769_v16, %v6766_v36 }
 0x604   : > { %v6323_v42 = vpop.f32.mrb[120].mxu0  ;;  %v12325_v34 = vpop.f32.mrb[233].mxu1  ;;  %v6842_v53 = vpack.c.bf16 %v6770_v52, %v6767_v6 }
 0x605   : > { %v13492_v2 = vadd.f32 %v6323_v42, %v17289_v12  ;;  %v12326_v30 = vadd.f32 %v12325_v34, %v12324_v35  ;;  %v6325_v13 = vpop.f32.mrb[121].mxu0  ;;  %v12327_v56 = vpop.f32.mrb[234].mxu1 }
 0x606   : > { %v13493_v31 = vadd.f32 %v6325_v13, %v17292_v41  ;;  %v6327_v1 = vpop.f32.mrb[122].mxu0  ;;  %v12328_v51 = vpop.f32.mrb[235].mxu1  ;;  %7450 = vmatprep.mubr.bf16.mxu1 %v6842_v53  ;;  %7822 = vmatprep.mubr.bf16.mxu0 %v6842_v53 }
 0x607   : > { %v13494_v57 = vadd.f32 %v6327_v1, %v17289_v12  ;;  %v12329_v14 = vadd.f32 %v12328_v51, %v12327_v56  ;;  %v6329_v24 = vpop.f32.mrb[123].mxu0  ;;  %7451 = vmatmul.mubr.bf16.gmra.mrb[164].mxu1 %v6841_v10  ;;  %7823 = vmatmul.mubr.bf16.gmra.mrb[180].mxu0 %v6841_v10  ;;  %v17382_v40 = vadd.f32 %v12326_v30, %v17295_v21  ;;  %v6772_v16 = vmax.f32 %v13492_v2, 0.0 }
 0x608   : > { %v13495_v36 = vadd.f32 %v6329_v24, %v17292_v41  ;;  %v6773_v13 = vmax.f32 %v13493_v31, 0.0 }
 0x609   : > { %v6775_v6 = vmax.f32 %v13494_v57, 0.0  ;;  %v17386_v52 = vadd.f32 %v12329_v14, %v17295_v21 }
 0x60a   : > { %v6776_v35 = vmax.f32 %v13495_v36, 0.0 }
 0x60b   : > { %v6844_v42 = vpack.c.bf16 %v6775_v6, %v6772_v16  ;;  %v12330_v34 = vpop.f32.mrb[236].mxu1  ;;  %v15115_v6 = vld [vmem:[#allocation5 + $0x32c] ss:$48 sps:$4 sm:$0xff]  }
 0x60c   : > { %v6845_v53 = vpack.c.bf16 %v6776_v35, %v6773_v13  ;;  %v6333_v1 = vpop.f32.mrb[124].mxu0  ;;  %v12331_v56 = vpop.f32.mrb[237].mxu1  ;;  %12532 = vmatprep.subr.bf16.mxu1 %v15115_v6 }
 0x60d   : > { %v13496_v51 = vadd.f32 %v6333_v1, %v17289_v12  ;;  %v12332_v10 = vadd.f32 %v12331_v56, %v12330_v34  ;;  %v6335_v4 = vpop.f32.mrb[125].mxu0  ;;  %v12333_v30 = vpop.f32.mrb[238].mxu1 }
 0x60e   : > { %v13497_v28 = vadd.f32 %v6335_v4, %v17292_v41  ;;  %v6337_v24 = vpop.f32.mrb[126].mxu0  ;;  %v12334_v2 = vpop.f32.mrb[239].mxu1  ;;  %7460 = vmatprep.mubr.bf16.mxu1 %v6845_v53  ;;  %7830 = vmatprep.mubr.bf16.mxu0 %v6845_v53 }
 0x60f   : > { %v13498_v57 = vadd.f32 %v6337_v24, %v17289_v12  ;;  %v12335_v31 = vadd.f32 %v12334_v2, %v12333_v30  ;;  %v6339_v14 = vpop.f32.mrb[127].mxu0  ;;  %7461 = vmatmul.mubr.bf16.gmra.mrb[168].mxu1 %v6844_v42  ;;  %7831 = vmatmul.mubr.bf16.gmra.mrb[184].mxu0 %v6844_v42  ;;  %v17392_v36 = vadd.f32 %v12332_v10, %v17295_v21  ;;  %v6778_v13 = vmax.f32 %v13496_v51, 0.0 }
 0x610   : > { %v13499_v16 = vadd.f32 %v6339_v14, %v17292_v41  ;;  %v6779_v34 = vmax.f32 %v13497_v28, 0.0 }
 0x611   : > { %v6781_v35 = vmax.f32 %v13498_v57, 0.0  ;;  %v17396_v4 = vadd.f32 %v12335_v31, %v17295_v21 }
 0x612   : > { %v6782_v1 = vmax.f32 %v13499_v16, 0.0 }
 0x613   : > { %v6847_v53 = vpack.c.bf16 %v6781_v35, %v6778_v13  ;;  %v12336_v56 = vpop.f32.mrb[240].mxu1 }
 0x614   : > { %v6848_v30 = vpack.c.bf16 %v6782_v1, %v6779_v34  ;;  %v6343_v24 = vpop.f32.mrb[128].mxu0  ;;  %v12337_v2 = vpop.f32.mrb[241].mxu1 }
 0x615   : > { %v13500_v42 = vadd.f32 %v6343_v24, %v17289_v12  ;;  %v12338_v10 = vadd.f32 %v12337_v2, %v12336_v56  ;;  %v6345_v61 = vpop.f32.mrb[129].mxu0  ;;  %v12339_v45 = vpop.f32.mrb[242].mxu1 }
 0x616   : > { %v13501_v14 = vadd.f32 %v6345_v61, %v17292_v41  ;;  %v6347_v51 = vpop.f32.mrb[130].mxu0  ;;  %v12340_v57 = vpop.f32.mrb[243].mxu1  ;;  %7470 = vmatprep.mubr.bf16.mxu1 %v6848_v30  ;;  %7838 = vmatprep.mubr.bf16.mxu0 %v6848_v30 }
 0x617   : > { %v13502_v28 = vadd.f32 %v6347_v51, %v17289_v12  ;;  %v12341_v31 = vadd.f32 %v12340_v57, %v12339_v45  ;;  %v6349_v16 = vpop.f32.mrb[131].mxu0  ;;  %7471 = vmatmul.mubr.bf16.gmra.mrb[172].mxu1 %v6847_v53  ;;  %7839 = vmatmul.mubr.bf16.gmra.mrb[188].mxu0 %v6847_v53  ;;  %v17402_v6 = vadd.f32 %v12338_v10, %v17295_v21  ;;  %v6784_v35 = vmax.f32 %v13500_v42, 0.0 }
 0x618   : > { %v13503_v13 = vadd.f32 %v6349_v16, %v17292_v41  ;;  %v6785_v61 = vmax.f32 %v13501_v14, 0.0 }
 0x619   : > { %v6787_v34 = vmax.f32 %v13502_v28, 0.0  ;;  %v17406_v1 = vadd.f32 %v12341_v31, %v17295_v21 }
 0x61a   : > { %v6788_v56 = vmax.f32 %v13503_v13, 0.0 }
 0x61b   : > { %v6850_v24 = vpack.c.bf16 %v6787_v34, %v6784_v35  ;;  %v12342_v30 = vpop.f32.mrb[244].mxu1 }
 0x61c   : > { %v6851_v2 = vpack.c.bf16 %v6788_v56, %v6785_v61  ;;  %v6353_v51 = vpop.f32.mrb[132].mxu0  ;;  %v12343_v45 = vpop.f32.mrb[245].mxu1 }
 0x61d   : > { %v13504_v57 = vadd.f32 %v6353_v51, %v17289_v12  ;;  %v12344_v53 = vadd.f32 %v12343_v45, %v12342_v30  ;;  %v6355_v32 = vpop.f32.mrb[133].mxu0  ;;  %v12345_v10 = vpop.f32.mrb[246].mxu1 }
 0x61e   : > { %v13505_v7 = vadd.f32 %v6355_v32, %v17292_v41  ;;  %v6357_v16 = vpop.f32.mrb[134].mxu0  ;;  %v12346_v42 = vpop.f32.mrb[247].mxu1  ;;  %7480 = vmatprep.mubr.bf16.mxu1 %v6851_v2  ;;  %7846 = vmatprep.mubr.bf16.mxu0 %v6851_v2 }
 0x61f   : > { %v13506_v28 = vadd.f32 %v6357_v16, %v17289_v12  ;;  %v12347_v14 = vadd.f32 %v12346_v42, %v12345_v10  ;;  %v6359_v31 = vpop.f32.mrb[135].mxu0  ;;  %7481 = vmatmul.mubr.bf16.gmra.mrb[176].mxu1 %v6850_v24  ;;  %7847 = vmatmul.mubr.bf16.gmra.mrb[192].mxu0 %v6850_v24  ;;  %v17412_v13 = vadd.f32 %v12344_v53, %v17295_v21  ;;  %v6790_v34 = vmax.f32 %v13504_v57, 0.0 }
 0x620   : > { %v13507_v35 = vadd.f32 %v6359_v31, %v17292_v41  ;;  %v6791_v32 = vmax.f32 %v13505_v7, 0.0 }
 0x621   : > { %v6793_v61 = vmax.f32 %v13506_v28, 0.0  ;;  %v17416_v56 = vadd.f32 %v12347_v14, %v17295_v21 }
 0x622   : > { %v6794_v30 = vmax.f32 %v13507_v35, 0.0 }
 0x623   : > { %v6853_v51 = vpack.c.bf16 %v6793_v61, %v6790_v34  ;;  %v12348_v2 = vpop.f32.mrb[248].mxu1 }
 0x624   : > { %v6854_v45 = vpack.c.bf16 %v6794_v30, %v6791_v32  ;;  %v6363_v16 = vpop.f32.mrb[136].mxu0  ;;  %v12349_v10 = vpop.f32.mrb[249].mxu1 }
 0x625   : > { %v13508_v42 = vadd.f32 %v6363_v16, %v17289_v12  ;;  %v12350_v24 = vadd.f32 %v12349_v10, %v12348_v2  ;;  %v6365_v37 = vpop.f32.mrb[137].mxu0  ;;  %v12351_v53 = vpop.f32.mrb[250].mxu1 }
 0x626   : > { %v13509_v17 = vadd.f32 %v6365_v37, %v17292_v41  ;;  %v6367_v31 = vpop.f32.mrb[138].mxu0  ;;  %v12352_v57 = vpop.f32.mrb[251].mxu1  ;;  %7490 = vmatprep.mubr.bf16.mxu1 %v6854_v45  ;;  %7854 = vmatprep.mubr.bf16.mxu0 %v6854_v45 }
 0x627   : > { %v13510_v28 = vadd.f32 %v6367_v31, %v17289_v12  ;;  %v12353_v7 = vadd.f32 %v12352_v57, %v12351_v53  ;;  %v6369_v14 = vpop.f32.mrb[139].mxu0  ;;  %7491 = vmatmul.mubr.bf16.gmra.mrb[180].mxu1 %v6853_v51  ;;  %7855 = vmatmul.mubr.bf16.gmra.mrb[196].mxu0 %v6853_v51  ;;  %v17422_v35 = vadd.f32 %v12350_v24, %v17295_v21  ;;  %v6796_v61 = vmax.f32 %v13508_v42, 0.0 }
 0x628   : > { %v13511_v34 = vadd.f32 %v6369_v14, %v17292_v41  ;;  %v6797_v37 = vmax.f32 %v13509_v17, 0.0 }
 0x629   : > { %v6799_v32 = vmax.f32 %v13510_v28, 0.0  ;;  %v17426_v30 = vadd.f32 %v12353_v7, %v17295_v21 }
 0x62a   : > { %v6800_v2 = vmax.f32 %v13511_v34, 0.0 }
 0x62b   : > { %v6856_v16 = vpack.c.bf16 %v6799_v32, %v6796_v61  ;;  %v12354_v45 = vpop.f32.mrb[252].mxu1 }
 0x62c   : > { %v6857_v10 = vpack.c.bf16 %v6800_v2, %v6797_v37  ;;  %v6373_v31 = vpop.f32.mrb[140].mxu0  ;;  %v12355_v53 = vpop.f32.mrb[253].mxu1 }
 0x62d   : > { %v13512_v57 = vadd.f32 %v6373_v31, %v17289_v12  ;;  %v12356_v51 = vadd.f32 %v12355_v53, %v12354_v45  ;;  %v6375_v27 = vpop.f32.mrb[141].mxu0  ;;  %v12357_v24 = vpop.f32.mrb[254].mxu1 }
 0x62e   : > { %v13513_v62 = vadd.f32 %v6375_v27, %v17292_v41  ;;  %v6377_v14 = vpop.f32.mrb[142].mxu0  ;;  %v12358_v42 = vpop.f32.mrb[255].mxu1  ;;  %7500 = vmatprep.mubr.bf16.mxu1 %v6857_v10  ;;  %7862 = vmatprep.mubr.bf16.mxu0 %v6857_v10 }
 0x62f   : > { %v13514_v28 = vadd.f32 %v6377_v14, %v17289_v12  ;;  %v12359_v17 = vadd.f32 %v12358_v42, %v12357_v24  ;;  %v6379_v7 = vpop.f32.mrb[143].mxu0  ;;  %7501 = vmatmul.mubr.bf16.gmra.mrb[184].mxu1 %v6856_v16  ;;  %7863 = vmatmul.mubr.bf16.gmra.mrb[200].mxu0 %v6856_v16  ;;  %v17432_v34 = vadd.f32 %v12356_v51, %v17295_v21  ;;  %v6802_v32 = vmax.f32 %v13512_v57, 0.0 }
 0x630   : > { %v13515_v61 = vadd.f32 %v6379_v7, %v17292_v41  ;;  %v6803_v27 = vmax.f32 %v13513_v62, 0.0 }
 0x631   : > { %v6805_v37 = vmax.f32 %v13514_v28, 0.0  ;;  %v17436_v2 = vadd.f32 %v12359_v17, %v17295_v21 }
 0x632   : > { %v6806_v45 = vmax.f32 %v13515_v61, 0.0 }
 0x633   : > { %v6859_v31 = vpack.c.bf16 %v6805_v37, %v6802_v32  ;;  %v12360_v10 = vpop.f32.mrb[0].mxu1 }
 0x634   : > { %v6860_v53 = vpack.c.bf16 %v6806_v45, %v6803_v27  ;;  %v6383_v14 = vpop.f32.mrb[144].mxu0  ;;  %v12361_v24 = vpop.f32.mrb[1].mxu1 }
 0x635   : > { %v13516_v42 = vadd.f32 %v6383_v14, %v17289_v12  ;;  %v12362_v16 = vadd.f32 %v12361_v24, %v12360_v10  ;;  %v6385_v44 = vpop.f32.mrb[145].mxu0  ;;  %v12363_v51 = vpop.f32.mrb[2].mxu1 }
 0x636   : > { %v13517_v58 = vadd.f32 %v6385_v44, %v17292_v41  ;;  %v6387_v7 = vpop.f32.mrb[146].mxu0  ;;  %v12364_v57 = vpop.f32.mrb[3].mxu1  ;;  %7510 = vmatprep.mubr.bf16.mxu1 %v6860_v53  ;;  %7870 = vmatprep.mubr.bf16.mxu0 %v6860_v53 }
 0x637   : > { %v13518_v28 = vadd.f32 %v6387_v7, %v17289_v12  ;;  %v12365_v62 = vadd.f32 %v12364_v57, %v12363_v51  ;;  %v6389_v17 = vpop.f32.mrb[147].mxu0  ;;  %7511 = vmatmul.mubr.bf16.gmra.mrb[188].mxu1 %v6859_v31  ;;  %7871 = vmatmul.mubr.bf16.gmra.mrb[204].mxu0 %v6859_v31  ;;  %v17442_v61 = vadd.f32 %v12362_v16, %v17295_v21  ;;  %v6808_v37 = vmax.f32 %v13516_v42, 0.0 }
 0x638   : > { %v13519_v32 = vadd.f32 %v6389_v17, %v17292_v41  ;;  %v6809_v44 = vmax.f32 %v13517_v58, 0.0 }
 0x639   : > { %v6811_v27 = vmax.f32 %v13518_v28, 0.0  ;;  %v17446_v45 = vadd.f32 %v12365_v62, %v17295_v21 }
 0x63a   : > { %v6812_v10 = vmax.f32 %v13519_v32, 0.0 }
 0x63b   : > { %v6862_v14 = vpack.c.bf16 %v6811_v27, %v6808_v37  ;;  %v12366_v53 = vpop.f32.mrb[4].mxu1 }
 0x63c   : > { %v6863_v24 = vpack.c.bf16 %v6812_v10, %v6809_v44  ;;  %v6393_v7 = vpop.f32.mrb[148].mxu0  ;;  %v12367_v51 = vpop.f32.mrb[5].mxu1 }
 0x63d   : > { %v13520_v57 = vadd.f32 %v6393_v7, %v17289_v12  ;;  %v12368_v31 = vadd.f32 %v12367_v51, %v12366_v53  ;;  %v6395_v60 = vpop.f32.mrb[149].mxu0  ;;  %v12369_v16 = vpop.f32.mrb[6].mxu1 }
 0x63e   : > { %v13521_v25 = vadd.f32 %v6395_v60, %v17292_v41  ;;  %v6397_v17 = vpop.f32.mrb[150].mxu0  ;;  %v12370_v42 = vpop.f32.mrb[7].mxu1  ;;  %7520 = vmatprep.mubr.bf16.mxu1 %v6863_v24  ;;  %7878 = vmatprep.mubr.bf16.mxu0 %v6863_v24 }
 0x63f   : > { %v13522_v28 = vadd.f32 %v6397_v17, %v17289_v12  ;;  %v12371_v58 = vadd.f32 %v12370_v42, %v12369_v16  ;;  %v6399_v62 = vpop.f32.mrb[151].mxu0  ;;  %7521 = vmatmul.mubr.bf16.gmra.mrb[192].mxu1 %v6862_v14  ;;  %7879 = vmatmul.mubr.bf16.gmra.mrb[208].mxu0 %v6862_v14  ;;  %v17452_v32 = vadd.f32 %v12368_v31, %v17295_v21  ;;  %v6814_v27 = vmax.f32 %v13520_v57, 0.0 }
 0x640   : > { %v13523_v37 = vadd.f32 %v6399_v62, %v17292_v41  ;;  %v6815_v60 = vmax.f32 %v13521_v25, 0.0 }
 0x641   : > { %v6817_v44 = vmax.f32 %v13522_v28, 0.0  ;;  %v17456_v10 = vadd.f32 %v12371_v58, %v17295_v21 }
 0x642   : > { %v6818_v53 = vmax.f32 %v13523_v37, 0.0 }
 0x643   : > { %v6865_v7 = vpack.c.bf16 %v6817_v44, %v6814_v27  ;;  %v13014_v24 = vpop.f32.mrb[8].mxu1 }
 0x644   : > { %v6866_v51 = vpack.c.bf16 %v6818_v53, %v6815_v60  ;;  %v6606_v12 = vadd.f32 %v13014_v24, %v17311_v11  ;;  %v6597_v16 = vpop.f32.mrb[9].mxu1  ;;  %v15116_v60 = vld [vmem:[#allocation5 + $0x2c] ss:$48 sps:$4 sm:$0xff]  }
 0x645   : > { %v6598_v14 = vadd.f32 %v6597_v16, %v17301_v43  ;;  %v13015_v17 = vpop.f32.mrb[10].mxu1  ;;  %v15120_v24 = vld [vmem:[#allocation5 + $0x38c] ss:$48 sps:$4 sm:$0xff]  }
 0x646   : > { %v6609_v31 = vadd.f32 %v13015_v17, %v17316_v0  ;;  %v6600_v42 = vpop.f32.mrb[11].mxu1  ;;  %7530 = vmatprep.mubr.bf16.mxu1 %v6866_v51  ;;  %7886 = vmatprep.mubr.bf16.mxu0 %v6866_v51  ;;  %v6732_v25 = vmax.f32 %v6606_v12, 0.0  ;;  %v15064_v0 = vld [vmem:[#allocation5 + $0x24] ss:$48 sps:$4 sm:$0xff]   ;;  %v15072_v17 = vld [vmem:[#allocation5 + $0xe8] ss:$48 sps:$4 sm:$0xff]  }
 0x647   : > { %v6601_v41 = vadd.f32 %v6600_v42, %v17305_v26  ;;  %7531 = vmatmul.mubr.bf16.gmra.mrb[196].mxu1 %v6865_v7  ;;  %7887 = vmatmul.mubr.bf16.gmra.mrb[212].mxu0 %v6865_v7  ;;  %v6726_v57 = vmax.f32 %v6598_v14, 0.0  ;;  %v15069_v26 = vld [vmem:[#allocation5 + $0x88] ss:$48 sps:$4 sm:$0xff]  }
 0x648   : > { %v6735_v21 = vmax.f32 %v6609_v31, 0.0  ;;  %7573 = vmatprep.mubr.bf16.mxu1 %v18696_v55 }
 0x649   : > { %v6729_v28 = vmax.f32 %v6601_v41, 0.0 }
 0x64a   : > { %v6825_v11 = vpack.c.bf16 %v6735_v21, %v6732_v25  ;;  %v15070_v21 = vld [vmem:[#allocation5 + $0xe4] ss:$48 sps:$4 sm:$0xff]  }
 0x64b   : > { %v6822_v58 = vpack.c.bf16 %v6729_v28, %v6726_v57  ;;  %v13018_v62 = vpop.f32.mrb[12].mxu1 }
 0x64c   : > { %v6622_v43 = vadd.f32 %v13018_v62, %v17332_v9  ;;  %v6613_v37 = vpop.f32.mrb[13].mxu1  ;;  %v15067_v9 = vld [vmem:[#allocation5 + $0x84] ss:$48 sps:$4 sm:$0xff]   ;;  %v15125_v62 = vld [vmem:[#allocation5 + $0x3ec] ss:$48 sps:$4 sm:$0xff]  }
 0x64d   : > { %v6614_v27 = vadd.f32 %v6613_v37, %v17322_v29  ;;  %v13019_v44 = vpop.f32.mrb[14].mxu1  ;;  %13060 = vmatprep.mubr.bf16.mxu0 %v6822_v58 }
 0x64e   : > { %v6625_v53 = vadd.f32 %v13019_v44, %v17336_v8  ;;  %v6616_v7 = vpop.f32.mrb[15].mxu1  ;;  %v6744_v12 = vmax.f32 %v6622_v43, 0.0  ;;  %v15121_v8 = vld [vmem:[#allocation5 + $0x8c] ss:$48 sps:$4 sm:$0xff]  }
 0x64f   : > { %v6617_v51 = vadd.f32 %v6616_v7, %v17326_v38  ;;  %7574 = vmatmul.mubr.bf16.vlgmr.msra.gmra.mrb[136].mxu1 %v6822_v58  ;;  %13061 = vmatmul.mubr.bf16.vlgmr.msra.gmra.mrb[248].mxu0 %v6825_v11  ;;  %v6738_v14 = vmax.f32 %v6614_v27, 0.0  ;;  %v15075_v58 = vld [vmem:[#allocation5 + $0x148] ss:$48 sps:$4 sm:$0xff]  }
 0x650   : > { %v6747_v16 = vmax.f32 %v6625_v53, 0.0  ;;  %8650 = vmatpush1.bf16.msra.mxu0 %v15064_v0  ;;  %7583 = vmatprep.mubr.bf16.mxu1 %v18696_v55  ;;  %v15126_v0 = vld [vmem:[#allocation5 + $0xec] ss:$48 sps:$4 sm:$0xff]   ;;  %v15078_v7 = vld [vmem:[#allocation5 + $0x1a8] ss:$48 sps:$4 sm:$0xff]  }
 0x651   : > { %v6741_v29 = vmax.f32 %v6617_v51, 0.0  ;;  %8651 = vmatprep.subr.bf16.mxu0 %v15069_v26  ;;  %12533 = vmatpush3.bf16.msra.mxu1 %v15116_v60 }
 0x652   : > { %v17468_v31 = vpack.c.bf16 %v6747_v16, %v6744_v12  ;;  %12534 = vmatprep.subr.bf16.mxu1 %v15120_v24  ;;  %v15128_v24 = vld [vmem:[#allocation5 + $0x14c] ss:$48 sps:$4 sm:$0xff]   ;;  %v15076_v16 = vld [vmem:[#allocation5 + $0x1a4] ss:$48 sps:$4 sm:$0xff]  }
 0x653   : > { %v6828_v42 = vpack.c.bf16 %v6741_v29, %v6738_v14  ;;  %v13022_v41 = vpop.f32.mrb[16].mxu1  ;;  %v15081_v29 = vld [vmem:[#allocation5 + $0x208] ss:$48 sps:$4 sm:$0xff]  }
 0x654   : > { %v6638_v38 = vadd.f32 %v13022_v41, %v17352_v54  ;;  %v6629_v25 = vpop.f32.mrb[17].mxu1  ;;  %8652 = vmatpush1.bf16.msra.mxu0 %v15067_v9  ;;  %v15127_v54 = vld [vmem:[#allocation5 + $0x44c] ss:$48 sps:$4 sm:$0xff]  }
 0x655   : > { %v6630_v57 = vadd.f32 %v6629_v25, %v17342_v47  ;;  %v13023_v28 = vpop.f32.mrb[18].mxu1  ;;  %13064 = vmatprep.mubr.bf16.mxu0 %v6828_v42  ;;  %8653 = vmatprep.subr.bf16.mxu0 %v15072_v17  ;;  %v15073_v47 = vld [vmem:[#allocation5 + $0x144] ss:$48 sps:$4 sm:$0xff]   ;;  %v15132_v17 = vld [vmem:[#allocation5 + $0x4ac] ss:$48 sps:$4 sm:$0xff]  }
 0x656   : > { %v6641_v43 = vadd.f32 %v13023_v28, %v17356_v23  ;;  %v6632_v37 = vpop.f32.mrb[19].mxu1  ;;  %12535 = vmatpush3.bf16.msra.mxu1 %v15121_v8  ;;  %v6756_v44 = vmax.f32 %v6638_v38, 0.0  ;;  %v15133_v38 = vld [vmem:[#allocation5 + $0x1ac] ss:$48 sps:$4 sm:$0xff]  }
 0x657   : > { %v6633_v27 = vadd.f32 %v6632_v37, %v17346_v15  ;;  %7584 = vmatmul.mubr.bf16.gmra.mrb[140].mxu1 %v6825_v11  ;;  %13065 = vmatmul.mubr.bf16.gmra.mrb[252].mxu0 %v17468_v31  ;;  %v6750_v60 = vmax.f32 %v6630_v57, 0.0 }
 0x658   : > { %v6759_v26 = vmax.f32 %v6641_v43, 0.0  ;;  %8654 = vmatpush1.bf16.msra.mxu0 %v15070_v21  ;;  %7593 = vmatprep.mubr.bf16.mxu1 %v18696_v55  ;;  %v15135_v43 = vld [vmem:[#allocation5 + $0x20c] ss:$48 sps:$4 sm:$0xff]  }
 0x659   : > { %v6753_v53 = vmax.f32 %v6633_v27, 0.0  ;;  %8655 = vmatprep.subr.bf16.mxu0 %v15075_v58  ;;  %12536 = vmatprep.subr.bf16.mxu1 %v15125_v62  ;;  %v15084_v62 = vld [vmem:[#allocation5 + $0x268] ss:$48 sps:$4 sm:$0xff]   ;;  %v15082_v27 = vld [vmem:[#allocation5 + $0x264] ss:$48 sps:$4 sm:$0xff]  }
 0x65a   : > { %v17476_v23 = vpack.c.bf16 %v6759_v26, %v6756_v44  ;;  %12537 = vmatpush3.bf16.msra.mxu1 %v15126_v0  ;;  %v15087_v26 = vld [vmem:[#allocation5 + $0x2c8] ss:$48 sps:$4 sm:$0xff]  }
 0x65b   : > { %v17478_v15 = vpack.c.bf16 %v6753_v53, %v6750_v60  ;;  %v13026_v11 = vpop.f32.mrb[20].mxu1  ;;  %12538 = vmatprep.subr.bf16.mxu1 %v15127_v54 }
 0x65c   : > { %v6654_v51 = vadd.f32 %v13026_v11, %v17372_v48  ;;  %v6645_v12 = vpop.f32.mrb[21].mxu1  ;;  %8656 = vmatpush1.bf16.msra.mxu0 %v15073_v47  ;;  %v15134_v48 = vld [vmem:[#allocation5 + $0x50c] ss:$48 sps:$4 sm:$0xff]  }
 0x65d   : > { %v6646_v9 = vadd.f32 %v6645_v12, %v17362_v59  ;;  %v13027_v14 = vpop.f32.mrb[22].mxu1  ;;  %13068 = vmatprep.mubr.bf16.mxu0 %v17478_v15  ;;  %8657 = vmatprep.subr.bf16.mxu0 %v15078_v7  ;;  %v15079_v59 = vld [vmem:[#allocation5 + $0x204] ss:$48 sps:$4 sm:$0xff]   ;;  %v15136_v47 = vld [vmem:[#allocation5 + $0x56c] ss:$48 sps:$4 sm:$0xff]  }
 0x65e   : > { %v6657_v8 = vadd.f32 %v13027_v14, %v17376_v19  ;;  %v6648_v41 = vpop.f32.mrb[23].mxu1  ;;  %12539 = vmatpush3.bf16.msra.mxu1 %v15128_v24  ;;  %v6768_v21 = vmax.f32 %v6654_v51, 0.0  ;;  %v15137_v7 = vld [vmem:[#allocation5 + $0x26c] ss:$48 sps:$4 sm:$0xff]   ;;  %v15085_v51 = vld [vmem:[#allocation5 + $0x2c4] ss:$48 sps:$4 sm:$0xff]  }
 0x65f   : > { %v6649_v25 = vadd.f32 %v6648_v41, %v17366_v63  ;;  %7594 = vmatmul.mubr.bf16.gmra.mrb[144].mxu1 %v6828_v42  ;;  %13069 = vmatmul.mubr.bf16.gmra.mrb[0].mxu0 %v17476_v23  ;;  %v6762_v28 = vmax.f32 %v6646_v9, 0.0 }
 0x660   : > { %v6771_v57 = vmax.f32 %v6657_v8, 0.0  ;;  %8658 = vmatpush1.bf16.msra.mxu0 %v15076_v16  ;;  %7603 = vmatprep.mubr.bf16.mxu1 %v18696_v55  ;;  %v15088_v8 = vld [vmem:[#allocation5 + $0x324] ss:$48 sps:$4 sm:$0xff]  }
 0x661   : > { %v6765_v58 = vmax.f32 %v6649_v25, 0.0  ;;  %8659 = vmatprep.subr.bf16.mxu0 %v15081_v29  ;;  %12540 = vmatprep.subr.bf16.mxu1 %v15132_v17  ;;  %v15093_v25 = vld [vmem:[#allocation5 + $0x388] ss:$48 sps:$4 sm:$0xff]  }
 0x662   : > { %v17487_v19 = vpack.c.bf16 %v6771_v57, %v6768_v21  ;;  %12541 = vmatpush3.bf16.msra.mxu1 %v15133_v38 }
 0x663   : > { %v17489_v63 = vpack.c.bf16 %v6765_v58, %v6762_v28  ;;  %v13030_v42 = vpop.f32.mrb[24].mxu1  ;;  %12542 = vmatprep.subr.bf16.mxu1 %v15134_v48  ;;  %v15091_v28 = vld [vmem:[#allocation5 + $0x384] ss:$48 sps:$4 sm:$0xff]  }
 0x664   : > { %v6670_v37 = vadd.f32 %v13030_v42, %v17392_v36  ;;  %v6661_v0 = vpop.f32.mrb[25].mxu1  ;;  %8660 = vmatpush1.bf16.msra.mxu0 %v15079_v59  ;;  %v15138_v36 = vld [vmem:[#allocation5 + $0x5cc] ss:$48 sps:$4 sm:$0xff]  }
 0x665   : > { %v6662_v54 = vadd.f32 %v6661_v0, %v17382_v40  ;;  %v13031_v44 = vpop.f32.mrb[26].mxu1  ;;  %13072 = vmatprep.mubr.bf16.mxu0 %v17489_v63  ;;  %8661 = vmatprep.subr.bf16.mxu0 %v15084_v62  ;;  %v15096_v62 = vld [vmem:[#allocation5 + $0x3e8] ss:$48 sps:$4 sm:$0xff]  }
 0x666   : > { %v6673_v60 = vadd.f32 %v13031_v44, %v17396_v4  ;;  %v6664_v53 = vpop.f32.mrb[27].mxu1  ;;  %12543 = vmatpush3.bf16.msra.mxu1 %v15135_v43  ;;  %v6780_v11 = vmax.f32 %v6670_v37, 0.0  ;;  %v15090_v4 = vld [vmem:[#allocation5 + $0x328] ss:$48 sps:$4 sm:$0xff]   ;;  %v15094_v37 = vld [vmem:[#allocation5 + $0x3e4] ss:$48 sps:$4 sm:$0xff]  }
 0x667   : > { %v6665_v24 = vadd.f32 %v6664_v53, %v17386_v52  ;;  %7604 = vmatmul.mubr.bf16.gmra.mrb[148].mxu1 %v17468_v31  ;;  %13073 = vmatmul.mubr.bf16.gmra.mrb[4].mxu0 %v17487_v19  ;;  %v6774_v12 = vmax.f32 %v6662_v54, 0.0  ;;  %v15139_v52 = vld [vmem:[#allocation5 + $0x2cc] ss:$48 sps:$4 sm:$0xff]   ;;  %v15099_v54 = vld [vmem:[#allocation5 + $0x448] ss:$48 sps:$4 sm:$0xff]  }
 0x668   : > { %v6783_v40 = vmax.f32 %v6673_v60, 0.0  ;;  %8662 = vmatpush1.bf16.msra.mxu0 %v15082_v27  ;;  %7613 = vmatprep.mubr.bf16.mxu1 %v18696_v55  ;;  %v15097_v53 = vld [vmem:[#allocation5 + $0x444] ss:$48 sps:$4 sm:$0xff]  }
 0x669   : > { %v6777_v16 = vmax.f32 %v6665_v24, 0.0  ;;  %8663 = vmatprep.subr.bf16.mxu0 %v15087_v26  ;;  %12544 = vmatprep.subr.bf16.mxu1 %v15136_v47  ;;  %v15102_v24 = vld [vmem:[#allocation5 + $0x4a8] ss:$48 sps:$4 sm:$0xff]  }
 0x66a   : > { %v17499_v9 = vpack.c.bf16 %v6783_v40, %v6780_v11  ;;  %12545 = vmatpush3.bf16.msra.mxu1 %v15137_v7  ;;  %v15100_v40 = vld [vmem:[#allocation5 + $0x4a4] ss:$48 sps:$4 sm:$0xff]  }
 0x66b   : > { %v17501_v14 = vpack.c.bf16 %v6777_v16, %v6774_v12  ;;  %v13034_v31 = vpop.f32.mrb[28].mxu1  ;;  %12546 = vmatprep.subr.bf16.mxu1 %v15138_v36  ;;  %v15105_v16 = vld [vmem:[#allocation5 + $0x508] ss:$48 sps:$4 sm:$0xff]  }
 0x66c   : > { %v6686_v29 = vadd.f32 %v13034_v31, %v17412_v13  ;;  %v6677_v17 = vpop.f32.mrb[29].mxu1  ;;  %8664 = vmatpush1.bf16.msra.mxu0 %v15085_v51 }
 0x66d   : > { %v6678_v41 = vadd.f32 %v6677_v17, %v17402_v6  ;;  %v13035_v38 = vpop.f32.mrb[30].mxu1  ;;  %13076 = vmatprep.mubr.bf16.mxu0 %v17501_v14  ;;  %8665 = vmatprep.subr.bf16.mxu0 %v15090_v4  ;;  %v15103_v17 = vld [vmem:[#allocation5 + $0x504] ss:$48 sps:$4 sm:$0xff]  }
 0x66e   : > { %v6689_v48 = vadd.f32 %v13035_v38, %v17416_v56  ;;  %v6680_v21 = vpop.f32.mrb[31].mxu1  ;;  %12547 = vmatpush3.bf16.msra.mxu1 %v15139_v52  ;;  %v6792_v13 = vmax.f32 %v6686_v29, 0.0 }
 0x66f   : > { %v6681_v57 = vadd.f32 %v6680_v21, %v17406_v1  ;;  %7614 = vmatmul.mubr.bf16.gmra.mrb[152].mxu1 %v17478_v15  ;;  %13077 = vmatmul.mubr.bf16.gmra.mrb[8].mxu0 %v17499_v9  ;;  %v6786_v6 = vmax.f32 %v6678_v41, 0.0  ;;  %v15108_v41 = vld [vmem:[#allocation5 + $0x568] ss:$48 sps:$4 sm:$0xff]   ;;  %v15112_v21 = vld [vmem:[#allocation5 + $0x624] ss:$48 sps:$4 sm:$0xff]  }
 0x670   : > { %v6795_v59 = vmax.f32 %v6689_v48, 0.0  ;;  %8666 = vmatpush1.bf16.msra.mxu0 %v15088_v8  ;;  %7623 = vmatprep.mubr.bf16.mxu1 %v18696_v55  ;;  %v15114_v48 = vld [vmem:[#allocation5 + $0x628] ss:$48 sps:$4 sm:$0xff]  }
 0x671   : > { %v6789_v58 = vmax.f32 %v6681_v57, 0.0  ;;  %8667 = vmatprep.subr.bf16.mxu0 %v15093_v25  ;;  %v15109_v25 = vld [vmem:[#allocation5 + $0x5c4] ss:$48 sps:$4 sm:$0xff]   ;;  %v15119_v57 = vld [vmem:[#allocation5 + $0x688] ss:$48 sps:$4 sm:$0xff]  }
 0x672   : > { %v17511_v43 = vpack.c.bf16 %v6795_v59, %v6792_v13  ;;  %v17547_v13 = vld [vmem:[#allocation5 + $0x62c] ss:$48 sps:$4 sm:$0xff]   ;;  %v15124_v59 = vld [vmem:[#allocation5 + $0x6e8] ss:$48 sps:$4 sm:$0xff]  }
 0x673   : > { %v17513_v56 = vpack.c.bf16 %v6789_v58, %v6786_v6  ;;  %v13038_v42 = vpop.f32.mrb[32].mxu1  ;;  %13092 = vmatprep.subr.bf16.mxu1 %v17547_v13  ;;  %v15131_v6 = vld [vmem:[#allocation5 + $0x748] ss:$48 sps:$4 sm:$0xff]  }
 0x674   : > { %v6702_v1 = vadd.f32 %v13038_v42, %v17432_v34  ;;  %v6693_v15 = vpop.f32.mrb[33].mxu1  ;;  %8668 = vmatpush1.bf16.msra.mxu0 %v15091_v28  ;;  %v15122_v28 = vld [vmem:[#allocation5 + $0x6e4] ss:$48 sps:$4 sm:$0xff]   ;;  %v15142_v58 = vld [vmem:[#allocation5 + $0x7a8] ss:$48 sps:$4 sm:$0xff]  }
 0x675   : > { %v6694_v0 = vadd.f32 %v6693_v15, %v17422_v35  ;;  %v13039_v27 = vpop.f32.mrb[34].mxu1  ;;  %13080 = vmatprep.mubr.bf16.mxu0 %v17513_v56  ;;  %8669 = vmatprep.subr.bf16.mxu0 %v15096_v62  ;;  %v15140_v62 = vld [vmem:[#allocation5 + $0x7a4] ss:$48 sps:$4 sm:$0xff]   ;;  %v15145_v42 = vld [vmem:[#allocation5 + $0x808] ss:$48 sps:$4 sm:$0xff]  }
 0x676   : > { %v6705_v44 = vadd.f32 %v13039_v27, %v17436_v2  ;;  %v6696_v26 = vpop.f32.mrb[35].mxu1  ;;  %v6804_v34 = vmax.f32 %v6702_v1, 0.0  ;;  %v15148_v15 = vld [vmem:[#allocation5 + $0x868] ss:$48 sps:$4 sm:$0xff]  }
 0x677   : > { %v6697_v47 = vadd.f32 %v6696_v26, %v17426_v30  ;;  %7624 = vmatmul.mubr.bf16.gmra.mrb[156].mxu1 %v17476_v23  ;;  %13081 = vmatmul.mubr.bf16.gmra.mrb[12].mxu0 %v17511_v43  ;;  %v6798_v35 = vmax.f32 %v6694_v0, 0.0 }
 0x678   : > { %v6807_v60 = vmax.f32 %v6705_v44, 0.0  ;;  %8670 = vmatpush1.bf16.msra.mxu0 %v15094_v37  ;;  %7633 = vmatprep.mubr.bf16.mxu1 %v18696_v55  ;;  %v15146_v44 = vld [vmem:[#allocation5 + $0x864] ss:$48 sps:$4 sm:$0xff]  }
 0x679   : > { %v6801_v7 = vmax.f32 %v6697_v47, 0.0  ;;  %8671 = vmatprep.subr.bf16.mxu0 %v15099_v54  ;;  %v15151_v47 = vld [vmem:[#allocation5 + $0x8c8] ss:$48 sps:$4 sm:$0xff]  }
 0x67a   : > { %v17523_v36 = vpack.c.bf16 %v6807_v60, %v6804_v34  ;;  %v18907_v60 = vld [vmem:[#allocation40_spill] sm:$0xff] }
 0x67b   : > { %v17525_v2 = vpack.c.bf16 %v6801_v7, %v6798_v35  ;;  %v13042_v11 = vpop.f32.mrb[36].mxu1 }
 0x67c   : > { %v6718_v30 = vadd.f32 %v13042_v11, %v17452_v32  ;;  %v6709_v23 = vpop.f32.mrb[37].mxu1  ;;  %8672 = vmatpush1.bf16.msra.mxu0 %v15097_v53  ;;  %v15149_v53 = vld [vmem:[#allocation5 + $0x8c4] ss:$48 sps:$4 sm:$0xff]  }
 0x67d   : > { %v6710_v51 = vadd.f32 %v6709_v23, %v17442_v61  ;;  %v13043_v12 = vpop.f32.mrb[38].mxu1  ;;  %13084 = vmatprep.mubr.bf16.mxu0 %v17525_v2  ;;  %8673 = vmatprep.subr.bf16.mxu0 %v15102_v24 }
 0x67e   : > { %v6721_v4 = vadd.f32 %v13043_v12, %v17456_v10  ;;  %v6712_v52 = vpop.f32.mrb[39].mxu1  ;;  %v6816_v32 = vmax.f32 %v6718_v30, 0.0  ;;  %v18908_v30 = vld [vmem:[#allocation76_spill] sm:$0xff] }
 0x67f   : > { %v6713_v31 = vadd.f32 %v6712_v52, %v17446_v45  ;;  %7634 = vmatmul.mubr.bf16.gmra.mrb[160].mxu1 %v17489_v63  ;;  %13085 = vmatmul.mubr.bf16.gmra.mrb[16].mxu0 %v17523_v36  ;;  %v6810_v61 = vmax.f32 %v6710_v51, 0.0  ;;  %v15106_v45 = vld [vmem:[#allocation5 + $0x564] ss:$48 sps:$4 sm:$0xff]   ;;  %v15111_v63 = vld [vmem:[#allocation5 + $0x5c8] ss:$48 sps:$4 sm:$0xff]  }
 0x680   : > { %v6819_v29 = vmax.f32 %v6721_v4, 0.0  ;;  %8674 = vmatpush1.bf16.msra.mxu0 %v15100_v40  ;;  %7643 = vmatprep.mubr.bf16.mxu1 %v18696_v55  ;;  %v18910_v40 = vld [vmem:[#allocation73_spill] sm:$0xff]  ;;  %v18911_v12 = vld [vmem:[#allocation44_spill] sm:$0xff] }
 0x681   : > { %v6813_v8 = vmax.f32 %v6713_v31, 0.0  ;;  %8675 = vmatprep.subr.bf16.mxu0 %v15105_v16 }
 0x682   : > { %v17535_v38 = vpack.c.bf16 %v6819_v29, %v6816_v32  ;;  %v18912_v29 = vld [vmem:[#allocation75_spill] sm:$0xff] }
 0x683   : > { %v17537_v10 = vpack.c.bf16 %v6813_v8, %v6810_v61  ;;  %v18914_v8 = vld [vmem:[#allocation89_spill] sm:$0xff] }
 0x684   : > { %8676 = vmatpush1.bf16.msra.mxu0 %v15103_v17 }
 0x685   : > { %13088 = vmatprep.mubr.bf16.mxu0 %v17537_v10  ;;  %8677 = vmatprep.subr.bf16.mxu0 %v15108_v41 }
 0x687   : > { %7644 = vmatmul.mubr.bf16.gmra.mrb[164].mxu1 %v17487_v19  ;;  %13089 = vmatmul.mubr.bf16.gmra.mrb[20].mxu0 %v17535_v38  ;;  %v15117_v19 = vld [vmem:[#allocation5 + $0x684] ss:$48 sps:$4 sm:$0xff]  }
 0x688   : > { %8678 = vmatpush1.bf16.msra.mxu0 %v15106_v45  ;;  %7653 = vmatprep.mubr.bf16.mxu1 %v18696_v55  ;;  %v18915_v45 = vld [vmem:[#allocation16_spill] sm:$0xff] }
 0x689   : > { %8679 = vmatprep.subr.bf16.mxu0 %v15111_v63  ;;  %8681 = vmatprep.mubr.bf16.mxu0 %v18820_v39 }
 0x68c   : > { %8680 = vmatpush1.bf16.msra.mxu0 %v15109_v25 }
 0x68d   : > { %8842 = vmatprep.subr.bf16.mxu0 %v15114_v48 }
 0x68f   : > { %7654 = vmatmul.mubr.bf16.gmra.mrb[168].mxu1 %v17501_v14  ;;  %8682 = vmatmul.mubr.bf16.vlgmr.msra.gmra.mrb[216].mxu0 %v18821_v3  ;;  %v15129_v14 = vld [vmem:[#allocation5 + $0x744] ss:$48 sps:$4 sm:$0xff]  }
 0x690   : > { %8843 = vmatpush1.bf16.msra.mxu0 %v15112_v21  ;;  %7663 = vmatprep.mubr.bf16.mxu1 %v18696_v55 }
 0x691   : > { %8691 = vmatprep.mubr.bf16.mxu0 %v18822_v20  ;;  %8844 = vmatprep.subr.bf16.mxu0 %v15119_v57 }
 0x694   : > { %8845 = vmatpush1.bf16.msra.mxu0 %v15117_v19  ;;  %v18916_v19 = vld [vmem:[#allocation91_spill] sm:$0xff] }
 0x695   : > { %8846 = vmatprep.subr.bf16.mxu0 %v15124_v59 }
 0x697   : > { %7664 = vmatmul.mubr.bf16.gmra.mrb[172].mxu1 %v17499_v9  ;;  %8692 = vmatmul.mubr.bf16.gmra.mrb[220].mxu0 %v18823_v33  ;;  %v15143_v9 = vld [vmem:[#allocation5 + $0x804] ss:$48 sps:$4 sm:$0xff]  }
 0x698   : > { %7673 = vmatprep.mubr.bf16.mxu1 %v18696_v55  ;;  %8701 = vmatprep.mubr.bf16.mxu0 %v18881_v46 }
 0x699   : > { %8847 = vmatpush1.bf16.msra.mxu0 %v15122_v28 }
 0x69a   : > { %8848 = vmatprep.subr.bf16.mxu0 %v15131_v6  ;;  %v18918_v6 = vld [vmem:[#allocation90_spill] sm:$0xff] }
 0x69d   : > { %8849 = vmatpush1.bf16.msra.mxu0 %v15129_v14 }
 0x69e   : > { %8850 = vmatprep.subr.bf16.mxu0 %v15142_v58  ;;  %v18920_v58 = vld [vmem:[#allocation18_spill] sm:$0xff] }
 0x69f   : > { %7674 = vmatmul.mubr.bf16.gmra.mrb[176].mxu1 %v17513_v56  ;;  %8702 = vmatmul.mubr.bf16.gmra.mrb[224].mxu0 %v18884_v49 }
 0x6a0   : > { %7683 = vmatprep.mubr.bf16.mxu1 %v18696_v55  ;;  %8711 = vmatprep.mubr.bf16.mxu0 %v18888_v18 }
 0x6a1   : > { %8851 = vmatpush1.bf16.msra.mxu0 %v15140_v62 }
 0x6a2   : > { %v12412_v1 = vpop.f32.mrb[152].mxu0  ;;  %8852 = vmatprep.subr.bf16.mxu0 %v15145_v42 }
 0x6a3   : > { %v12413_v37 = vpop.f32.mrb[153].mxu0 }
 0x6a4   : > { %v12414_v0 = vadd.f32 %v12413_v37, %v12412_v1  ;;  %v12415_v27 = vpop.f32.mrb[154].mxu0  ;;  %v18921_v37 = vld [vmem:[#allocation93_spill] sm:$0xff] }
 0x6a5   : > { %v12416_v54 = vpop.f32.mrb[155].mxu0  ;;  %8853 = vmatpush1.bf16.msra.mxu0 %v15143_v9 }
 0x6a6   : > { %v17560_v26 = vadd.f32 %v17057_v50, %v12414_v0  ;;  %v12417_v56 = vadd.f32 %v12416_v54, %v12415_v27  ;;  %8854 = vmatprep.subr.bf16.mxu0 %v15148_v15  ;;  %v18924_v54 = vld [vmem:[#allocation92_spill] sm:$0xff] }
 0x6a7   : > { %7684 = vmatmul.mubr.bf16.gmra.mrb[180].mxu1 %v17511_v43  ;;  %8712 = vmatmul.mubr.bf16.gmra.mrb[228].mxu0 %v18827_v22 }
 0x6a8   : > { %v17565_v34 = vadd.f32 %v17063_v5, %v12417_v56  ;;  %7693 = vmatprep.mubr.bf16.mxu1 %v18696_v55  ;;  %8721 = vmatprep.mubr.bf16.mxu0 %v18907_v60  ;;  %v18909_v5 = vld [vmem:[#allocation42_spill] sm:$0xff]  ;;  %v18926_v56 = vld [vmem:[#allocation20_spill] sm:$0xff] }
 0x6a9   : > { %8855 = vmatpush1.bf16.msra.mxu0 %v15146_v44 }
 0x6aa   : > { %v12418_v35 = vpop.f32.mrb[156].mxu0  ;;  %8856 = vmatprep.subr.bf16.mxu0 %v15151_v47 }
 0x6ab   : > { %v12419_v50 = vpop.f32.mrb[157].mxu0 }
 0x6ac   : > { %v12420_v7 = vadd.f32 %v12419_v50, %v12418_v35  ;;  %v12421_v24 = vpop.f32.mrb[158].mxu0 }
 0x6ad   : > { %v12422_v11 = vpop.f32.mrb[159].mxu0  ;;  %8857 = vmatpush1.bf16.msra.mxu0 %v15149_v53 }
 0x6ae   : > { %v17570_v43 = vadd.f32 %v18908_v30, %v12420_v7  ;;  %v12423_v23 = vadd.f32 %v12422_v11, %v12421_v24  ;;  %v18927_v24 = vld [vmem:[#allocation95_spill] sm:$0xff] }
 0x6af   : > { %7694 = vmatmul.mubr.bf16.gmra.mrb[184].mxu1 %v17525_v2  ;;  %8722 = vmatmul.mubr.bf16.gmra.mrb[232].mxu0 %v18909_v5  ;;  %v18913_v2 = vld [vmem:[#allocation46_spill] sm:$0xff] }
 0x6b0   : > { %v17575_v51 = vadd.f32 %v18910_v40, %v12423_v23  ;;  %7703 = vmatprep.mubr.bf16.mxu1 %v18696_v55  ;;  %8731 = vmatprep.mubr.bf16.mxu0 %v18911_v12  ;;  %v15153_v23 = vld [vmem:[#allocation5 + $0x68c] ss:$48 sps:$4 sm:$0xff]   ;;  %v18930_v40 = vld [vmem:[#allocation94_spill] sm:$0xff] }
 0x6b2   : > { %v12424_v16 = vpop.f32.mrb[160].mxu0 }
 0x6b3   : > { %v12425_v4 = vpop.f32.mrb[161].mxu0 }
 0x6b4   : > { %v12426_v52 = vadd.f32 %v12425_v4, %v12424_v16  ;;  %v12427_v31 = vpop.f32.mrb[162].mxu0  ;;  %v18932_v4 = vld [vmem:[#allocation23_spill] sm:$0xff] }
 0x6b5   : > { %v12428_v32 = vpop.f32.mrb[163].mxu0 }
 0x6b6   : > { %v17580_v17 = vadd.f32 %v18912_v29, %v12426_v52  ;;  %v12429_v61 = vadd.f32 %v12428_v32, %v12427_v31  ;;  %v15154_v52 = vld [vmem:[#allocation5 + $0x6ec] ss:$48 sps:$4 sm:$0xff]  }
 0x6b7   : > { %7704 = vmatmul.mubr.bf16.gmra.mrb[188].mxu1 %v17523_v36  ;;  %8732 = vmatmul.mubr.bf16.gmra.mrb[236].mxu0 %v18913_v2  ;;  %v18917_v36 = vld [vmem:[#allocation17_spill] sm:$0xff] }
 0x6b8   : > { %v17585_v41 = vadd.f32 %v18914_v8, %v12429_v61  ;;  %7713 = vmatprep.mubr.bf16.mxu1 %v18696_v55  ;;  %8741 = vmatprep.mubr.bf16.mxu0 %v18915_v45  ;;  %v18933_v8 = vld [vmem:[#allocation97_spill] sm:$0xff] }
 0x6ba   : > { %v12430_v63 = vpop.f32.mrb[164].mxu0 }
 0x6bb   : > { %v12431_v25 = vpop.f32.mrb[165].mxu0 }
 0x6bc   : > { %v12432_v48 = vadd.f32 %v12431_v25, %v12430_v63  ;;  %v12433_v21 = vpop.f32.mrb[166].mxu0  ;;  %v15155_v25 = vld [vmem:[#allocation5 + $0x74c] ss:$48 sps:$4 sm:$0xff]  }
 0x6bd   : > { %v12434_v57 = vpop.f32.mrb[167].mxu0 }
 0x6be   : > { %v17590_v59 = vadd.f32 %v18916_v19, %v12432_v48  ;;  %v12435_v28 = vadd.f32 %v12434_v57, %v12433_v21  ;;  %v18935_v48 = vld [vmem:[#allocation24_spill] sm:$0xff]  ;;  %v18938_v21 = vld [vmem:[#allocation25_spill] sm:$0xff] }
 0x6bf   : > { %7714 = vmatmul.mubr.bf16.gmra.mrb[192].mxu1 %v17537_v10  ;;  %8742 = vmatmul.mubr.bf16.gmra.mrb[240].mxu0 %v18917_v36  ;;  %v18923_v10 = vld [vmem:[#allocation19_spill] sm:$0xff] }
 0x6c0   : > { %v17595_v14 = vadd.f32 %v18918_v6, %v12435_v28  ;;  %7723 = vmatprep.mubr.bf16.mxu1 %v18696_v55  ;;  %8751 = vmatprep.mubr.bf16.mxu0 %v18920_v58  ;;  %v15156_v19 = vld [vmem:[#allocation5 + $0x7ac] ss:$48 sps:$4 sm:$0xff]  }
 0x6c2   : > { %18919 = vst [vmem:[#allocation80_spill] sm:$0xff] %v17595_v14  ;;  %v12436_v62 = vpop.f32.mrb[168].mxu0 }
 0x6c3   : > { %v12437_v42 = vpop.f32.mrb[169].mxu0 }
 0x6c4   : > { %v12438_v9 = vadd.f32 %v12437_v42, %v12436_v62  ;;  %v12439_v1 = vpop.f32.mrb[170].mxu0 }
 0x6c5   : > { %v12440_v15 = vpop.f32.mrb[171].mxu0 }
 0x6c6   : > { %v17600_v0 = vadd.f32 %v18921_v37, %v12438_v9  ;;  %v12441_v27 = vadd.f32 %v12440_v15, %v12439_v1  ;;  %v18939_v9 = vld [vmem:[#allocation99_spill] sm:$0xff] }
 0x6c7   : > { %7724 = vmatmul.mubr.bf16.gmra.mrb[196].mxu1 %v17535_v38  ;;  %8752 = vmatmul.mubr.bf16.gmra.mrb[244].mxu0 %v18923_v10  ;;  %v18929_v38 = vld [vmem:[#allocation22_spill] sm:$0xff]  ;;  %v15157_v15 = vld [vmem:[#allocation5 + $0x80c] ss:$48 sps:$4 sm:$0xff]  }
 0x6c8   : > { %18922 = vst [vmem:[#allocation79_spill] sm:$0xff] %v17600_v0  ;;  %v17605_v44 = vadd.f32 %v18924_v54, %v12441_v27  ;;  %8761 = vmatprep.mubr.bf16.mxu0 %v18926_v56  ;;  %9067 = vmatprep.mubr.bf16.mxu1 %v18820_v39  ;;  %v18941_v37 = vld [vmem:[#allocation27_spill] sm:$0xff]  ;;  %v18944_v54 = vld [vmem:[#allocation29_spill] sm:$0xff] }
 0x6ca   : > { %18925 = vst [vmem:[#allocation82_spill] sm:$0xff] %v17605_v44  ;;  %v12442_v47 = vpop.f32.mrb[172].mxu0 }
 0x6cb   : > { %v12443_v53 = vpop.f32.mrb[173].mxu0 }
 0x6cc   : > { %v12444_v35 = vadd.f32 %v12443_v53, %v12442_v47  ;;  %v12445_v50 = vpop.f32.mrb[174].mxu0  ;;  %v15158_v53 = vld [vmem:[#allocation5 + $0x86c] ss:$48 sps:$4 sm:$0xff]  }
 0x6cd   : > { %v12446_v7 = vpop.f32.mrb[175].mxu0 }
 0x6ce   : > { %v17610_v11 = vadd.f32 %v18927_v24, %v12444_v35  ;;  %v12447_v30 = vadd.f32 %v12446_v7, %v12445_v50 }
 0x6cf   : > { %8762 = vmatmul.mubr.bf16.gmra.mrb[24].mxu0 %v18929_v38  ;;  %9068 = vmatmul.mubr.bf16.vlgmr.msra.gmra.mrb[40].mxu1 %v18821_v3 }
 0x6d0   : > { %18928 = vst [vmem:[#allocation81_spill] sm:$0xff] %v17610_v11  ;;  %v17615_v16 = vadd.f32 %v18930_v40, %v12447_v30  ;;  %8771 = vmatprep.mubr.bf16.mxu0 %v18932_v4  ;;  %9075 = vmatprep.mubr.bf16.mxu1 %v18822_v20  ;;  %v18936_v20 = vld [vmem:[#allocation96_spill] sm:$0xff]  ;;  %v18945_v30 = vld [vmem:[#allocation101_spill] sm:$0xff] }
 0x6d1   : > { %13093 = vmatpush3.bf16.msra.mxu1 %v17547_v13  ;;  %v15159_v40 = vld [vmem:[#allocation5 + $0x8cc] ss:$48 sps:$4 sm:$0xff]  }
 0x6d2   : > { %18931 = vst [vmem:[#allocation84_spill] sm:$0xff] %v17615_v16  ;;  %v12448_v39 = vpop.f32.mrb[176].mxu0  ;;  %13094 = vmatprep.subr.bf16.mxu1 %v15153_v23 }
 0x6d3   : > { %v12449_v31 = vpop.f32.mrb[177].mxu0 }
 0x6d4   : > { %v12450_v32 = vadd.f32 %v12449_v31, %v12448_v39  ;;  %v12451_v29 = vpop.f32.mrb[178].mxu0  ;;  %v18947_v39 = vld [vmem:[#allocation31_spill] sm:$0xff]  ;;  %v18950_v31 = vld [vmem:[#allocation33_spill] sm:$0xff] }
 0x6d5   : > { %v12452_v61 = vpop.f32.mrb[179].mxu0  ;;  %13095 = vmatpush3.bf16.msra.mxu1 %v15153_v23 }
 0x6d6   : > { %v17621_v63 = vadd.f32 %v18933_v8, %v12450_v32  ;;  %v12453_v3 = vadd.f32 %v12452_v61, %v12451_v29  ;;  %13096 = vmatprep.subr.bf16.mxu1 %v15154_v52 }
 0x6d7   : > { %8772 = vmatmul.mubr.bf16.gmra.mrb[28].mxu0 %v18935_v48  ;;  %9076 = vmatmul.mubr.bf16.gmra.mrb[44].mxu1 %v18823_v33 }
 0x6d8   : > { %18934 = vst [vmem:[#allocation83_spill] sm:$0xff] %v17621_v63  ;;  %v17626_v13 = vadd.f32 %v18936_v20, %v12453_v3  ;;  %8781 = vmatprep.mubr.bf16.mxu0 %v18938_v21  ;;  %9083 = vmatprep.mubr.bf16.mxu1 %v18881_v46  ;;  %v18942_v46 = vld [vmem:[#allocation98_spill] sm:$0xff] }
 0x6d9   : > { %13097 = vmatpush3.bf16.msra.mxu1 %v15154_v52 }
 0x6da   : > { %18937 = vst [vmem:[#allocation86_spill] sm:$0xff] %v17626_v13  ;;  %v12454_v57 = vpop.f32.mrb[180].mxu0  ;;  %13098 = vmatprep.subr.bf16.mxu1 %v15155_v25  ;;  %v15245_v13 = vld [vmem:[#allocation8 + $0x8d0] ss:$12 sps:$4 sm:$0xff]  }
 0x6db   : > { %v12455_v28 = vpop.f32.mrb[181].mxu0 }
 0x6dc   : > { %v12456_v6 = vadd.f32 %v12455_v28, %v12454_v57  ;;  %v12457_v62 = vpop.f32.mrb[182].mxu0 }
 0x6dd   : > { %v12458_v42 = vpop.f32.mrb[183].mxu0  ;;  %13099 = vmatpush3.bf16.msra.mxu1 %v15155_v25  ;;  %v18951_v25 = vld [vmem:[#allocation103_spill] sm:$0xff] }
 0x6de   : > { %v17631_v1 = vadd.f32 %v18939_v9, %v12456_v6  ;;  %v12459_v33 = vadd.f32 %v12458_v42, %v12457_v62  ;;  %13100 = vmatprep.subr.bf16.mxu1 %v15156_v19 }
 0x6df   : > { %8782 = vmatmul.mubr.bf16.gmra.mrb[32].mxu0 %v18941_v37  ;;  %9084 = vmatmul.mubr.bf16.gmra.mrb[48].mxu1 %v18884_v49 }
 0x6e0   : > { %18940 = vst [vmem:[#allocation85_spill] sm:$0xff] %v17631_v1  ;;  %v17636_v27 = vadd.f32 %v18942_v46, %v12459_v33  ;;  %8791 = vmatprep.mubr.bf16.mxu0 %v18944_v54  ;;  %9091 = vmatprep.mubr.bf16.mxu1 %v18888_v18  ;;  %v18948_v18 = vld [vmem:[#allocation100_spill] sm:$0xff] }
 0x6e1   : > { %13101 = vmatpush3.bf16.msra.mxu1 %v15156_v19  ;;  %v18954_v19 = vld [vmem:[#allocation102_spill] sm:$0xff] }
 0x6e2   : > { %18943 = vst [vmem:[#allocation21_spill] sm:$0xff] %v17636_v27  ;;  %v12460_v47 = vpop.f32.mrb[184].mxu0  ;;  %13102 = vmatprep.subr.bf16.mxu1 %v15157_v15  ;;  %v15237_v27 = vld [vmem:[#allocation8 + $0x8a0] ss:$12 sps:$4 sm:$0xff]  }
 0x6e3   : > { %v12461_v35 = vpop.f32.mrb[185].mxu0 }
 0x6e4   : > { %v12462_v50 = vadd.f32 %v12461_v35, %v12460_v47  ;;  %v12463_v7 = vpop.f32.mrb[186].mxu0 }
 0x6e5   : > { %v12464_v24 = vpop.f32.mrb[187].mxu0  ;;  %13103 = vmatpush3.bf16.msra.mxu1 %v15157_v15  ;;  %v18957_v15 = vld [vmem:[#allocation105_spill] sm:$0xff] }
 0x6e6   : > { %v17641_v23 = vadd.f32 %v18945_v30, %v12462_v50  ;;  %v12465_v49 = vadd.f32 %v12464_v24, %v12463_v7  ;;  %13104 = vmatprep.subr.bf16.mxu1 %v15158_v53  ;;  %v18962_v50 = vld [vmem:[#allocation41_spill] sm:$0xff] }
 0x6e7   : > { %8792 = vmatmul.mubr.bf16.gmra.mrb[36].mxu0 %v18947_v39  ;;  %9092 = vmatmul.mubr.bf16.gmra.mrb[52].mxu1 %v18827_v22  ;;  %v18953_v22 = vld [vmem:[#allocation35_spill] sm:$0xff] }
 0x6e8   : > { %18946 = vst [vmem:[#allocation26_spill] sm:$0xff] %v17641_v23  ;;  %v17646_v52 = vadd.f32 %v18948_v18, %v12465_v49  ;;  %8801 = vmatprep.mubr.bf16.mxu0 %v18950_v31  ;;  %9099 = vmatprep.mubr.bf16.mxu1 %v18907_v60  ;;  %v18956_v60 = vld [vmem:[#allocation37_spill] sm:$0xff] }
 0x6e9   : > { %13105 = vmatpush3.bf16.msra.mxu1 %v15158_v53  ;;  %v18959_v53 = vld [vmem:[#allocation39_spill] sm:$0xff] }
 0x6ea   : > { %18949 = vst [vmem:[#allocation28_spill] sm:$0xff] %v17646_v52  ;;  %v12466_v32 = vpop.f32.mrb[188].mxu0  ;;  %13106 = vmatprep.subr.bf16.mxu1 %v15159_v40 }
 0x6eb   : > { %v12467_v29 = vpop.f32.mrb[189].mxu0 }
 0x6ec   : > { %v12468_v61 = vadd.f32 %v12467_v29, %v12466_v32  ;;  %v12469_v8 = vpop.f32.mrb[190].mxu0  ;;  %v18965_v29 = vld [vmem:[#allocation43_spill] sm:$0xff] }
 0x6ed   : > { %v12470_v3 = vpop.f32.mrb[191].mxu0  ;;  %13107 = vmatpush3.bf16.msra.mxu1 %v15159_v40  ;;  %v18963_v40 = vld [vmem:[#allocation107_spill] sm:$0xff] }
 0x6ee   : > { %v17651_v20 = vadd.f32 %v18951_v25, %v12468_v61  ;;  %v12471_v57 = vadd.f32 %v12470_v3, %v12469_v8  ;;  %v18968_v8 = vld [vmem:[#allocation45_spill] sm:$0xff] }
 0x6ef   : > { %8802 = vmatmul.mubr.bf16.gmra.mrb[40].mxu0 %v18953_v22  ;;  %9100 = vmatmul.mubr.bf16.gmra.mrb[56].mxu1 %v18909_v5  ;;  %v18960_v5 = vld [vmem:[#allocation104_spill] sm:$0xff] }
 0x6f0   : > { %18952 = vst [vmem:[#allocation30_spill] sm:$0xff] %v17651_v20  ;;  %v17656_v28 = vadd.f32 %v18954_v19, %v12471_v57  ;;  %8811 = vmatprep.mubr.bf16.mxu0 %v18956_v60  ;;  %9107 = vmatprep.mubr.bf16.mxu1 %v18911_v12 }
 0x6f2   : > { %18955 = vst [vmem:[#allocation38_spill] sm:$0xff] %v17656_v28  ;;  %v12472_v6 = vpop.f32.mrb[192].mxu0 }
 0x6f3   : > { %v12473_v62 = vpop.f32.mrb[193].mxu0 }
 0x6f4   : > { %v12474_v42 = vadd.f32 %v12473_v62, %v12472_v6  ;;  %v12475_v9 = vpop.f32.mrb[194].mxu0  ;;  %v18969_v6 = vld [vmem:[#allocation66_spill] sm:$0xff] }
 0x6f5   : > { %v12476_v33 = vpop.f32.mrb[195].mxu0 }
 0x6f6   : > { %v17661_v46 = vadd.f32 %v18957_v15, %v12474_v42  ;;  %v12477_v47 = vadd.f32 %v12476_v33, %v12475_v9  ;;  %v18971_v9 = vld [vmem:[#allocation47_spill] sm:$0xff]  ;;  %v18972_v33 = vld [vmem:[#allocation68_spill] sm:$0xff] }
 0x6f7   : > { %8812 = vmatmul.mubr.bf16.gmra.mrb[44].mxu0 %v18959_v53  ;;  %9108 = vmatmul.mubr.bf16.gmra.mrb[60].mxu1 %v18913_v2  ;;  %v18966_v2 = vld [vmem:[#allocation106_spill] sm:$0xff] }
 0x6f8   : > { %18958 = vst [vmem:[#allocation32_spill] sm:$0xff] %v17661_v46  ;;  %v17666_v35 = vadd.f32 %v18960_v5, %v12477_v47  ;;  %8821 = vmatprep.mubr.bf16.mxu0 %v18962_v50  ;;  %9115 = vmatprep.mubr.bf16.mxu1 %v18915_v45  ;;  %v15240_v46 = vld [vmem:[#allocation8 + $0x860] ss:$12 sps:$4 sm:$0xff]  }
 0x6fa   : > { %18961 = vst [vmem:[#allocation69_spill] sm:$0xff] %v17666_v35  ;;  %v12478_v12 = vpop.f32.mrb[196].mxu0  ;;  %v15229_v35 = vld [vmem:[#allocation8 + $0x85c] ss:$12 sps:$4 sm:$0xff]  }
 0x6fb   : > { %v12479_v7 = vpop.f32.mrb[197].mxu0 }
 0x6fc   : > { %v12480_v24 = vadd.f32 %v12479_v7, %v12478_v12  ;;  %v12481_v30 = vpop.f32.mrb[198].mxu0 }
 0x6fd   : > { %v12482_v49 = vpop.f32.mrb[199].mxu0 }
 0x6fe   : > { %v17671_v18 = vadd.f32 %v18963_v40, %v12480_v24  ;;  %v12483_v32 = vadd.f32 %v12482_v49, %v12481_v30  ;;  %v15161_v30 = vld [vmem:[#allocation8 + $0x6c8] ss:$12 sps:$4 sm:$0xff]   ;;  %v18974_v49 = vld [vmem:[#allocation65_spill] sm:$0xff] }
 0x6ff   : > { %8822 = vmatmul.mubr.bf16.gmra.mrb[48].mxu0 %v18965_v29  ;;  %9116 = vmatmul.mubr.bf16.gmra.mrb[64].mxu1 %v18917_v36  ;;  %v15160_v36 = vld [vmem:[#allocation8 + $0x788] ss:$12 sps:$4 sm:$0xff]  }
 0x700   : > { %18964 = vst [vmem:[#allocation34_spill] sm:$0xff] %v17671_v18  ;;  %v17676_v61 = vadd.f32 %v18966_v2, %v12483_v32  ;;  %8831 = vmatprep.mubr.bf16.mxu0 %v18968_v8  ;;  %9123 = vmatprep.mubr.bf16.mxu1 %v18920_v58  ;;  %v15164_v58 = vld [vmem:[#allocation8 + $0x6c4] ss:$12 sps:$4 sm:$0xff]   ;;  %v15174_v32 = vld [vmem:[#allocation8 + $0x7a0] ss:$12 sps:$4 sm:$0xff]  }
 0x701   : > { %12668 = vmatprep.subr.bf16.mxu0 %v15160_v36  ;;  %9981 = vmatprep.subr.bf16.mxu1 %v15164_v58  ;;  %v18976_v2 = vld [vmem:[#allocation48_spill] sm:$0xff]  ;;  %v18979_v58 = vld [vmem:[#allocation70_spill] sm:$0xff] }
 0x702   : > { %18967 = vst [vmem:[#allocation71_spill] sm:$0xff] %v17676_v61  ;;  %v12484_v45 = vpop.f32.mrb[200].mxu0 }
 0x703   : > { %v12485_v3 = vpop.f32.mrb[201].mxu0 }
 0x704   : > { %v12486_v25 = vadd.f32 %v12485_v3, %v12484_v45  ;;  %v12487_v57 = vpop.f32.mrb[202].mxu0  ;;  %v18977_v45 = vld [vmem:[#allocation67_spill] sm:$0xff] }
 0x705   : > { %v12488_v19 = vpop.f32.mrb[203].mxu0  ;;  %v15175_v3 = vld [vmem:[#allocation8 + $0x6e0] ss:$12 sps:$4 sm:$0xff]  }
 0x706   : > { %v17681_v62 = vadd.f32 %v18969_v6, %v12486_v25  ;;  %v12489_v42 = vadd.f32 %v12488_v19, %v12487_v57  ;;  %v15188_v57 = vld [vmem:[#allocation8 + $0x7b8] ss:$12 sps:$4 sm:$0xff]  }
 0x707   : > { %8832 = vmatmul.mubr.bf16.gmra.mrb[52].mxu0 %v18971_v9  ;;  %9124 = vmatmul.mubr.bf16.gmra.mrb[68].mxu1 %v18923_v10 }
 0x708   : > { %18970 = vst [vmem:[#allocation36_spill] sm:$0xff] %v17681_v62  ;;  %v17686_v15 = vadd.f32 %v18972_v33, %v12489_v42  ;;  %8874 = vmatprep.mubr.bf16.mxu0 %v18696_v55  ;;  %9131 = vmatprep.mubr.bf16.mxu1 %v18926_v56  ;;  %v15189_v33 = vld [vmem:[#allocation8 + $0x6f8] ss:$12 sps:$4 sm:$0xff]  }
 0x70a   : > { %18973 = vst [vmem:[#allocation74_spill] sm:$0xff] %v17686_v15  ;;  %v12490_v47 = vpop.f32.mrb[204].mxu0 }
 0x70b   : > { %v12491_v5 = vpop.f32.mrb[205].mxu0 }
 0x70c   : > { %v12492_v12 = vadd.f32 %v12491_v5, %v12490_v47  ;;  %v12493_v7 = vpop.f32.mrb[206].mxu0  ;;  %v15202_v5 = vld [vmem:[#allocation8 + $0x7d0] ss:$12 sps:$4 sm:$0xff]  }
 0x70d   : > { %v12494_v24 = vpop.f32.mrb[207].mxu0 }
 0x70e   : > { %v17691_v40 = vadd.f32 %v18974_v49, %v12492_v12  ;;  %v12495_v10 = vadd.f32 %v12494_v24, %v12493_v7  ;;  %v18981_v12 = vld [vmem:[#allocation49_spill] sm:$0xff]  ;;  %v15207_v49 = vld [vmem:[#allocation8 + $0x7e8] ss:$12 sps:$4 sm:$0xff]  }
 0x70f   : > { %8875 = vmatmul.mubr.bf16.vlgmr.msra.gmra.mrb[216].mxu0 %v18976_v2  ;;  %9132 = vmatmul.mubr.bf16.gmra.mrb[72].mxu1 %v18929_v38  ;;  %v15203_v24 = vld [vmem:[#allocation8 + $0x710] ss:$12 sps:$4 sm:$0xff]  }
 0x710   : > { %18975 = vst [vmem:[#allocation40_spill] sm:$0xff] %v17691_v40  ;;  %v17696_v56 = vadd.f32 %v18977_v45, %v12495_v10  ;;  %8884 = vmatprep.mubr.bf16.mxu0 %v18696_v55  ;;  %9139 = vmatprep.mubr.bf16.mxu1 %v18932_v4  ;;  %v18982_v4 = vld [vmem:[#allocation72_spill] sm:$0xff] }
 0x711   : > { %12669 = vmatpush3.bf16.msra.mxu0 %v15161_v30 }
 0x712   : > { %18978 = vst [vmem:[#allocation76_spill] sm:$0xff] %v17696_v56  ;;  %v12496_v25 = vpop.f32.mrb[208].mxu0  ;;  %12670 = vmatprep.subr.bf16.mxu0 %v15174_v32 }
 0x713   : > { %v12497_v19 = vpop.f32.mrb[209].mxu0 }
 0x714   : > { %v12498_v6 = vadd.f32 %v12497_v19, %v12496_v25  ;;  %v12499_v42 = vpop.f32.mrb[210].mxu0  ;;  %v15208_v25 = vld [vmem:[#allocation8 + $0x728] ss:$12 sps:$4 sm:$0xff]  }
 0x715   : > { %v12500_v36 = vpop.f32.mrb[211].mxu0  ;;  %12671 = vmatpush3.bf16.msra.mxu0 %v15175_v3 }
 0x716   : > { %v17701_v38 = vadd.f32 %v18979_v58, %v12498_v6  ;;  %v12501_v47 = vadd.f32 %v12500_v36, %v12499_v42  ;;  %12672 = vmatprep.subr.bf16.mxu0 %v15188_v57  ;;  %v18984_v57 = vld [vmem:[#allocation78_spill] sm:$0xff]  ;;  %v15212_v36 = vld [vmem:[#allocation8 + $0x800] ss:$12 sps:$4 sm:$0xff]   ;;  %v18990_v58 = vld [vmem:[#allocation52_spill] sm:$0xff] }
 0x717   : > { %8885 = vmatmul.mubr.bf16.gmra.mrb[220].mxu0 %v18981_v12  ;;  %9140 = vmatmul.mubr.bf16.gmra.mrb[76].mxu1 %v18935_v48  ;;  %v18986_v6 = vld [vmem:[#allocation50_spill] sm:$0xff] }
 0x718   : > { %18980 = vst [vmem:[#allocation42_spill] sm:$0xff] %v17701_v38  ;;  %v17706_v7 = vadd.f32 %v18982_v4, %v12501_v47  ;;  %8894 = vmatprep.mubr.bf16.mxu0 %v18696_v55  ;;  %9147 = vmatprep.mubr.bf16.mxu1 %v18938_v21  ;;  %v18987_v21 = vld [vmem:[#allocation77_spill] sm:$0xff]  ;;  %v18996_v4 = vld [vmem:[#allocation58_spill] sm:$0xff] }
 0x719   : > { %12673 = vmatpush3.bf16.msra.mxu0 %v15189_v33  ;;  %v18989_v33 = vld [vmem:[#allocation51_spill] sm:$0xff]  ;;  %v15178_v47 = vld [vmem:[#allocation8 + $0x724] ss:$12 sps:$4 sm:$0xff]  }
 0x71a   : > { %18983 = vst [vmem:[#allocation73_spill] sm:$0xff] %v17706_v7  ;;  %v12502_v30 = vpop.f32.mrb[212].mxu0  ;;  %12674 = vmatprep.subr.bf16.mxu0 %v15202_v5  ;;  %v15176_v5 = vld [vmem:[#allocation8 + $0x720] ss:$12 sps:$4 sm:$0xff]  }
 0x71b   : > { %v12503_v10 = vpop.f32.mrb[213].mxu0 }
 0x71c   : > { %v12504_v32 = vadd.f32 %v12503_v10, %v12502_v30  ;;  %v12505_v45 = vpop.f32.mrb[214].mxu0  ;;  %v15213_v30 = vld [vmem:[#allocation8 + $0x740] ss:$12 sps:$4 sm:$0xff]   ;;  %v15217_v10 = vld [vmem:[#allocation8 + $0x818] ss:$12 sps:$4 sm:$0xff]  }
 0x71d   : > { %v12506_v3 = vpop.f32.mrb[215].mxu0  ;;  %12675 = vmatpush3.bf16.msra.mxu0 %v15203_v24  ;;  %v15179_v24 = vld [vmem:[#allocation8 + $0x738] ss:$12 sps:$4 sm:$0xff]  }
 0x71e   : > { %v17711_v48 = vadd.f32 %v18984_v57, %v12504_v32  ;;  %v12507_v19 = vadd.f32 %v12506_v3, %v12505_v45  ;;  %12676 = vmatprep.subr.bf16.mxu0 %v15207_v49  ;;  %v15184_v49 = vld [vmem:[#allocation8 + $0x754] ss:$12 sps:$4 sm:$0xff]   ;;  %v15182_v32 = vld [vmem:[#allocation8 + $0x750] ss:$12 sps:$4 sm:$0xff]   ;;  %v15218_v45 = vld [vmem:[#allocation8 + $0x758] ss:$12 sps:$4 sm:$0xff]  }
 0x71f   : > { %8895 = vmatmul.mubr.bf16.gmra.mrb[224].mxu0 %v18986_v6  ;;  %9148 = vmatmul.mubr.bf16.gmra.mrb[80].mxu1 %v18941_v37  ;;  %v18991_v37 = vld [vmem:[#allocation53_spill] sm:$0xff] }
 0x720   : > { %18985 = vst [vmem:[#allocation44_spill] sm:$0xff] %v17711_v48  ;;  %v17716_v42 = vadd.f32 %v18987_v21, %v12507_v19  ;;  %8904 = vmatprep.mubr.bf16.mxu0 %v18696_v55  ;;  %9155 = vmatprep.mubr.bf16.mxu1 %v18944_v54  ;;  %v18992_v54 = vld [vmem:[#allocation54_spill] sm:$0xff]  ;;  %v15222_v57 = vld [vmem:[#allocation8 + $0x830] ss:$12 sps:$4 sm:$0xff]  }
 0x721   : > { %12677 = vmatpush3.bf16.msra.mxu0 %v15208_v25  ;;  %v15187_v3 = vld [vmem:[#allocation8 + $0x76c] ss:$12 sps:$4 sm:$0xff]   ;;  %v18997_v25 = vld [vmem:[#allocation59_spill] sm:$0xff]  ;;  %v15185_v19 = vld [vmem:[#allocation8 + $0x768] ss:$12 sps:$4 sm:$0xff]  }
 0x722   : > { %18988 = vst [vmem:[#allocation75_spill] sm:$0xff] %v17716_v42  ;;  %12678 = vmatprep.subr.bf16.mxu0 %v15212_v36  ;;  %v15192_v21 = vld [vmem:[#allocation8 + $0x784] ss:$12 sps:$4 sm:$0xff]   ;;  %v15190_v36 = vld [vmem:[#allocation8 + $0x780] ss:$12 sps:$4 sm:$0xff]  }
 0x725   : > { %12679 = vmatpush3.bf16.msra.mxu0 %v15213_v30 }
 0x726   : > { %12680 = vmatprep.subr.bf16.mxu0 %v15217_v10 }
 0x727   : > { %8905 = vmatmul.mubr.bf16.gmra.mrb[228].mxu0 %v18989_v33  ;;  %9156 = vmatmul.mubr.bf16.gmra.mrb[84].mxu1 %v18947_v39  ;;  %v18993_v39 = vld [vmem:[#allocation55_spill] sm:$0xff] }
 0x728   : > { %8914 = vmatprep.mubr.bf16.mxu0 %v18696_v55  ;;  %9163 = vmatprep.mubr.bf16.mxu1 %v18950_v31  ;;  %v15162_v31 = vld [vmem:[#allocation8 + $0x6c0] ss:$12 sps:$4 sm:$0xff]  }
 0x729   : > { %12681 = vmatpush3.bf16.msra.mxu0 %v15218_v45 }
 0x72a   : > { %12682 = vmatprep.subr.bf16.mxu0 %v15222_v57 }
 0x72f   : > { %8915 = vmatmul.mubr.bf16.gmra.mrb[232].mxu0 %v18990_v58  ;;  %9164 = vmatmul.mubr.bf16.gmra.mrb[88].mxu1 %v18953_v22  ;;  %v15167_v22 = vld [vmem:[#allocation8 + $0x6dc] ss:$12 sps:$4 sm:$0xff]  }
 0x730   : > { %8924 = vmatprep.mubr.bf16.mxu0 %v18696_v55  ;;  %9171 = vmatprep.mubr.bf16.mxu1 %v18956_v60  ;;  %v18994_v60 = vld [vmem:[#allocation56_spill] sm:$0xff] }
 0x737   : > { %8925 = vmatmul.mubr.bf16.gmra.mrb[236].mxu0 %v18991_v37  ;;  %9172 = vmatmul.mubr.bf16.gmra.mrb[92].mxu1 %v18959_v53  ;;  %v15165_v53 = vld [vmem:[#allocation8 + $0x6d8] ss:$12 sps:$4 sm:$0xff]  }
 0x738   : > { %8934 = vmatprep.mubr.bf16.mxu0 %v18696_v55  ;;  %9179 = vmatprep.mubr.bf16.mxu1 %v18962_v50  ;;  %v15170_v50 = vld [vmem:[#allocation8 + $0x6f4] ss:$12 sps:$4 sm:$0xff]  }
 0x73f   : > { %8935 = vmatmul.mubr.bf16.gmra.mrb[240].mxu0 %v18992_v54  ;;  %9180 = vmatmul.mubr.bf16.gmra.mrb[96].mxu1 %v18965_v29  ;;  %v15168_v29 = vld [vmem:[#allocation8 + $0x6f0] ss:$12 sps:$4 sm:$0xff]  }
 0x740   : > { %8944 = vmatprep.mubr.bf16.mxu0 %v18696_v55  ;;  %9187 = vmatprep.mubr.bf16.mxu1 %v18968_v8  ;;  %v15173_v8 = vld [vmem:[#allocation8 + $0x70c] ss:$12 sps:$4 sm:$0xff]  }
 0x747   : > { %8945 = vmatmul.mubr.bf16.gmra.mrb[244].mxu0 %v18993_v39  ;;  %9188 = vmatmul.mubr.bf16.gmra.mrb[100].mxu1 %v18971_v9  ;;  %v18995_v9 = vld [vmem:[#allocation57_spill] sm:$0xff] }
 0x748   : > { %8954 = vmatprep.mubr.bf16.mxu0 %v18696_v55  ;;  %13108 = vmatprep.mubr.bf16.mxu1 %v18976_v2  ;;  %v15171_v2 = vld [vmem:[#allocation8 + $0x708] ss:$12 sps:$4 sm:$0xff]  }
 0x74f   : > { %8955 = vmatmul.mubr.bf16.gmra.mrb[24].mxu0 %v18994_v60  ;;  %13109 = vmatmul.mubr.bf16.vlgmr.msra.gmra.mrb[104].mxu1 %v18981_v12  ;;  %v15181_v12 = vld [vmem:[#allocation8 + $0x73c] ss:$12 sps:$4 sm:$0xff]  }
 0x750   : > { %8964 = vmatprep.mubr.bf16.mxu0 %v18696_v55  ;;  %13112 = vmatprep.mubr.bf16.mxu1 %v18986_v6  ;;  %v15223_v6 = vld [vmem:[#allocation8 + $0x770] ss:$12 sps:$4 sm:$0xff]  }
 0x751   : > { %9982 = vmatpush1.bf16.msra.mxu1 %v15162_v31  ;;  %12683 = vmatpush3.bf16.msra.mxu0 %v15223_v6  ;;  %v15201_v31 = vld [vmem:[#allocation8 + $0x7cc] ss:$12 sps:$4 sm:$0xff]  }
 0x752   : > { %9983 = vmatprep.subr.bf16.mxu1 %v15167_v22  ;;  %v18999_v22 = vld [vmem:[#allocation61_spill] sm:$0xff] }
 0x755   : > { %9984 = vmatpush1.bf16.msra.mxu1 %v15165_v53  ;;  %v15206_v53 = vld [vmem:[#allocation8 + $0x7e4] ss:$12 sps:$4 sm:$0xff]  }
 0x756   : > { %9985 = vmatprep.subr.bf16.mxu1 %v15170_v50  ;;  %v15204_v50 = vld [vmem:[#allocation8 + $0x7e0] ss:$12 sps:$4 sm:$0xff]  }
 0x757   : > { %8965 = vmatmul.mubr.bf16.gmra.mrb[28].mxu0 %v18995_v9  ;;  %13113 = vmatmul.mubr.bf16.gmra.mrb[108].mxu1 %v18989_v33  ;;  %v15195_v33 = vld [vmem:[#allocation8 + $0x79c] ss:$12 sps:$4 sm:$0xff]  }
 0x758   : > { %8974 = vmatprep.mubr.bf16.mxu0 %v18696_v55  ;;  %13116 = vmatprep.mubr.bf16.mxu1 %v18990_v58  ;;  %v18998_v58 = vld [vmem:[#allocation60_spill] sm:$0xff] }
 0x759   : > { %9986 = vmatpush1.bf16.msra.mxu1 %v15168_v29  ;;  %v15211_v29 = vld [vmem:[#allocation8 + $0x7fc] ss:$12 sps:$4 sm:$0xff]  }
 0x75a   : > { %9987 = vmatprep.subr.bf16.mxu1 %v15173_v8  ;;  %v19000_v8 = vld [vmem:[#allocation62_spill] sm:$0xff] }
 0x75d   : > { %9988 = vmatpush1.bf16.msra.mxu1 %v15171_v2  ;;  %v15216_v2 = vld [vmem:[#allocation8 + $0x814] ss:$12 sps:$4 sm:$0xff]  }
 0x75e   : > { %9989 = vmatprep.subr.bf16.mxu1 %v15178_v47  ;;  %v15214_v47 = vld [vmem:[#allocation8 + $0x810] ss:$12 sps:$4 sm:$0xff]  }
 0x75f   : > { %8975 = vmatmul.mubr.bf16.gmra.mrb[32].mxu0 %v18996_v4  ;;  %13117 = vmatmul.mubr.bf16.gmra.mrb[112].mxu1 %v18991_v37  ;;  %v15193_v37 = vld [vmem:[#allocation8 + $0x798] ss:$12 sps:$4 sm:$0xff]  }
 0x760   : > { %8984 = vmatprep.mubr.bf16.mxu0 %v18696_v55  ;;  %13120 = vmatprep.mubr.bf16.mxu1 %v18992_v54  ;;  %v15198_v54 = vld [vmem:[#allocation8 + $0x7b4] ss:$12 sps:$4 sm:$0xff]  }
 0x761   : > { %9990 = vmatpush1.bf16.msra.mxu1 %v15176_v5  ;;  %v15221_v5 = vld [vmem:[#allocation8 + $0x82c] ss:$12 sps:$4 sm:$0xff]  }
 0x762   : > { %9991 = vmatprep.subr.bf16.mxu1 %v15181_v12  ;;  %v19001_v12 = vld [vmem:[#allocation63_spill] sm:$0xff] }
 0x765   : > { %9992 = vmatpush1.bf16.msra.mxu1 %v15179_v24  ;;  %v15226_v24 = vld [vmem:[#allocation8 + $0x844] ss:$12 sps:$4 sm:$0xff]  }
 0x766   : > { %9993 = vmatprep.subr.bf16.mxu1 %v15184_v49 }
 0x767   : > { %8985 = vmatmul.mubr.bf16.gmra.mrb[36].mxu0 %v18997_v25  ;;  %13121 = vmatmul.mubr.bf16.gmra.mrb[116].mxu1 %v18993_v39  ;;  %v15196_v39 = vld [vmem:[#allocation8 + $0x7b0] ss:$12 sps:$4 sm:$0xff]  }
 0x768   : > { %8994 = vmatprep.mubr.bf16.mxu0 %v18696_v55  ;;  %13124 = vmatprep.mubr.bf16.mxu1 %v18994_v60  ;;  %v15199_v60 = vld [vmem:[#allocation8 + $0x7c8] ss:$12 sps:$4 sm:$0xff]  }
 0x769   : > { %9994 = vmatpush1.bf16.msra.mxu1 %v15182_v32 }
 0x76a   : > { %9995 = vmatprep.subr.bf16.mxu1 %v15187_v3 }
 0x76d   : > { %9996 = vmatpush1.bf16.msra.mxu1 %v15185_v19 }
 0x76e   : > { %9997 = vmatprep.subr.bf16.mxu1 %v15192_v21 }
 0x76f   : > { %8995 = vmatmul.mubr.bf16.gmra.mrb[40].mxu0 %v18998_v58  ;;  %13125 = vmatmul.mubr.bf16.gmra.mrb[120].mxu1 %v18995_v9  ;;  %v15209_v9 = vld [vmem:[#allocation8 + $0x7f8] ss:$12 sps:$4 sm:$0xff]  }
 0x770   : > { %9004 = vmatprep.mubr.bf16.mxu0 %v18696_v55  ;;  %13128 = vmatprep.mubr.bf16.mxu1 %v18996_v4  ;;  %v15219_v4 = vld [vmem:[#allocation8 + $0x828] ss:$12 sps:$4 sm:$0xff]  }
 0x771   : > { %9998 = vmatpush1.bf16.msra.mxu1 %v15190_v36 }
 0x772   : > { %9999 = vmatprep.subr.bf16.mxu1 %v15195_v33  ;;  %v17778_v33 = vld [vmem:[#allocation8 + $0x848] ss:$12 sps:$4 sm:$0xff]  }
 0x773   : > { %13140 = vmatprep.subr.bf16.mxu0 %v17778_v33 }
 0x775   : > { %10000 = vmatpush1.bf16.msra.mxu1 %v15193_v37 }
 0x776   : > { %10001 = vmatprep.subr.bf16.mxu1 %v15198_v54 }
 0x777   : > { %9005 = vmatmul.mubr.bf16.gmra.mrb[44].mxu0 %v18999_v22  ;;  %13129 = vmatmul.mubr.bf16.gmra.mrb[124].mxu1 %v18997_v25 }
 0x778   : > { %9014 = vmatprep.mubr.bf16.mxu0 %v18696_v55  ;;  %13132 = vmatprep.mubr.bf16.mxu1 %v18998_v58 }
 0x779   : > { %10002 = vmatpush1.bf16.msra.mxu1 %v15196_v39 }
 0x77a   : > { %10003 = vmatprep.subr.bf16.mxu1 %v15201_v31 }
 0x77d   : > { %10004 = vmatpush1.bf16.msra.mxu1 %v15199_v60 }
 0x77e   : > { %10005 = vmatprep.subr.bf16.mxu1 %v15206_v53 }
 0x77f   : > { %9015 = vmatmul.mubr.bf16.gmra.mrb[48].mxu0 %v19000_v8  ;;  %13133 = vmatmul.mubr.bf16.gmra.mrb[128].mxu1 %v18999_v22 }
 0x780   : > { %9024 = vmatprep.mubr.bf16.mxu0 %v18696_v55  ;;  %13136 = vmatprep.mubr.bf16.mxu1 %v19000_v8 }
 0x781   : > { %10006 = vmatpush1.bf16.msra.mxu1 %v15204_v50 }
 0x782   : > { %10007 = vmatprep.subr.bf16.mxu1 %v15211_v29 }
 0x785   : > { %10008 = vmatpush1.bf16.msra.mxu1 %v15209_v9 }
 0x786   : > { %10009 = vmatprep.subr.bf16.mxu1 %v15216_v2 }
 0x787   : > { %9025 = vmatmul.mubr.bf16.gmra.mrb[52].mxu0 %v19001_v12  ;;  %13137 = vmatmul.mubr.bf16.gmra.mrb[132].mxu1 %v19001_v12 }
 0x789   : > { %10010 = vmatpush1.bf16.msra.mxu1 %v15214_v47 }
 0x78a   : > { %10011 = vmatprep.subr.bf16.mxu1 %v15221_v5 }
 0x78d   : > { %10012 = vmatpush1.bf16.msra.mxu1 %v15219_v4 }
 0x78e   : > { %10174 = vmatprep.subr.bf16.mxu1 %v15226_v24 }
 0x7a2   : > { %v12548_v30 = vpop.f32.mrb[40].mxu1 }
 0x7a3   : > { %v12549_v49 = vpop.f32.mrb[41].mxu1 }
 0x7a4   : > { %v17770_v10 = vadd.f32 %v12549_v49, %v12548_v30  ;;  %v12551_v32 = vpop.f32.mrb[42].mxu1 }
 0x7a5   : > { %v12552_v45 = vpop.f32.mrb[43].mxu1 }
 0x7a6   : > { %v17772_v3 = vadd.f32 %v12552_v45, %v12551_v32 }
 0x7aa   : > { %v12554_v25 = vpop.f32.mrb[44].mxu1 }
 0x7ab   : > { %v12555_v57 = vpop.f32.mrb[45].mxu1 }
 0x7ac   : > { %v17774_v19 = vadd.f32 %v12555_v57, %v12554_v25  ;;  %v12557_v6 = vpop.f32.mrb[46].mxu1 }
 0x7ad   : > { %v12558_v21 = vpop.f32.mrb[47].mxu1 }
 0x7ae   : > { %v17776_v36 = vadd.f32 %v12558_v21, %v12557_v6 }
 0x7b2   : > { %v12560_v58 = vpop.f32.mrb[48].mxu1 }
 0x7b3   : > { %v12561_v37 = vpop.f32.mrb[49].mxu1 }
 0x7b4   : > { %v17781_v54 = vadd.f32 %v12561_v37, %v12560_v58  ;;  %v12563_v39 = vpop.f32.mrb[50].mxu1 }
 0x7b5   : > { %v12564_v31 = vpop.f32.mrb[51].mxu1 }
 0x7b6   : > { %v17783_v22 = vadd.f32 %v12564_v31, %v12563_v39 }
 0x7ba   : > { %v12566_v60 = vpop.f32.mrb[52].mxu1 }
 0x7bb   : > { %v12567_v53 = vpop.f32.mrb[53].mxu1 }
 0x7bc   : > { %v17785_v50 = vadd.f32 %v12567_v53, %v12566_v60  ;;  %v12569_v29 = vpop.f32.mrb[54].mxu1 }
 0x7bd   : > { %v12570_v8 = vpop.f32.mrb[55].mxu1 }
 0x7be   : > { %v17787_v9 = vadd.f32 %v12570_v8, %v12569_v29  ;;  %v17801_v29 = vld [vmem:[#allocation7 + $0x9] sm:$0x7] }
 0x7c2   : > { %v12572_v2 = vpop.f32.mrb[56].mxu1 }
 0x7c3   : > { %v12573_v47 = vpop.f32.mrb[57].mxu1 }
 0x7c4   : > { %v17789_v5 = vadd.f32 %v12573_v47, %v12572_v2  ;;  %v12575_v12 = vpop.f32.mrb[58].mxu1 }
 0x7c5   : > { %v12576_v4 = vpop.f32.mrb[59].mxu1 }
 0x7c6   : > { %v17791_v24 = vadd.f32 %v12576_v4, %v12575_v12  ;;  %v19002_v4 = vld [vmem:[#allocation87_spill] sm:$0xff] }
 0x7ca   : > { %v12578_v30 = vpop.f32.mrb[60].mxu1 }
 0x7cb   : > { %v12579_v49 = vpop.f32.mrb[61].mxu1 }
 0x7cc   : > { %v17793_v32 = vadd.f32 %v12579_v49, %v12578_v30  ;;  %v12581_v45 = vpop.f32.mrb[62].mxu1  ;;  %v17809_v30 = vrot.slane %v17801_v29, %v19002_v4  ;;  %v19003_v49 = vld [vmem:[#allocation88_spill] sm:$0xff] }
 0x7cd   : > { %v12582_v25 = vpop.f32.mrb[63].mxu1 }
 0x7ce   : > { %v17795_v57 = vadd.f32 %v12582_v25, %v12581_v45  ;;  %v17813_v45 = vrot.slane %v17801_v29, %v19003_v49 }
 0x7d2   : > { %v12584_v6 = vpop.f32.mrb[64].mxu1 }
 0x7d3   : > { %v12585_v21 = vpop.f32.mrb[65].mxu1 }
 0x7d4   : > { %v17797_v58 = vadd.f32 %v12585_v21, %v12584_v6  ;;  %v12587_v37 = vpop.f32.mrb[66].mxu1 }
 0x7d5   : > { %v12588_v39 = vpop.f32.mrb[67].mxu1 }
 0x7d6   : > { %v17799_v31 = vadd.f32 %v12588_v39, %v12587_v37 }
 0x7da   : > { %v12590_v60 = vpop.f32.mrb[68].mxu1 }
 0x7db   : > { %v12591_v53 = vpop.f32.mrb[69].mxu1 }
 0x7dc   : > { %v17803_v8 = vadd.f32 %v12591_v53, %v12590_v60  ;;  %v12593_v2 = vpop.f32.mrb[70].mxu1 }
 0x7dd   : > { %v12594_v47 = vpop.f32.mrb[71].mxu1 }
 0x7de   : > { %v17805_v12 = vadd.f32 %v12594_v47, %v12593_v2 }
 0x7e2   : > { %v8876_v25 = vpop.f32.mrb[216].mxu0  ;;  %v12596_v6 = vpop.f32.mrb[72].mxu1 }
 0x7e3   : > { %v13524_v21 = vadd.f32 %v8876_v25, %v17809_v30  ;;  %v8878_v37 = vpop.f32.mrb[217].mxu0  ;;  %v12597_v39 = vpop.f32.mrb[73].mxu1 }
 0x7e4   : > { %v13525_v60 = vadd.f32 %v8878_v37, %v17813_v45  ;;  %v8880_v53 = vpop.f32.mrb[218].mxu0  ;;  %v17817_v42 = vadd.f32 %v12597_v39, %v12596_v6  ;;  %v12599_v2 = vpop.f32.mrb[74].mxu1  ;;  %v15224_v37 = vld [vmem:[#allocation8 + $0x840] ss:$12 sps:$4 sm:$0xff]  }
 0x7e5   : > { %v13526_v47 = vadd.f32 %v8880_v53, %v17809_v30  ;;  %v8882_v4 = vpop.f32.mrb[219].mxu0  ;;  %v12600_v48 = vpop.f32.mrb[75].mxu1  ;;  %v9357_v38 = vmax.f32 %v13524_v21, 0.0 }
 0x7e6   : > { %v13527_v7 = vadd.f32 %v8882_v4, %v17813_v45  ;;  %v17821_v49 = vadd.f32 %v12600_v48, %v12599_v2  ;;  %v9358_v40 = vmax.f32 %v13525_v60, 0.0 }
 0x7e7   : > { %v9360_v56 = vmax.f32 %v13526_v47, 0.0 }
 0x7e8   : > { %v9361_v25 = vmax.f32 %v13527_v7, 0.0  ;;  %v15227_v7 = vld [vmem:[#allocation8 + $0x858] ss:$12 sps:$4 sm:$0xff]  }
 0x7e9   : > { %v9453_v15 = vpack.c.bf16 %v9360_v56, %v9357_v38 }
 0x7ea   : > { %v9454_v62 = vpack.c.bf16 %v9361_v25, %v9358_v40  ;;  %v8886_v61 = vpop.f32.mrb[220].mxu0  ;;  %v12602_v18 = vpop.f32.mrb[76].mxu1 }
 0x7eb   : > { %v13528_v6 = vadd.f32 %v8886_v61, %v17809_v30  ;;  %v8888_v39 = vpop.f32.mrb[221].mxu0  ;;  %v12603_v53 = vpop.f32.mrb[77].mxu1 }
 0x7ec   : > { %v13529_v28 = vadd.f32 %v8888_v39, %v17813_v45  ;;  %v8890_v4 = vpop.f32.mrb[222].mxu0  ;;  %10013 = vmatprep.mubr.bf16.mxu1 %v9454_v62  ;;  %10399 = vmatprep.mubr.bf16.mxu0 %v9454_v62  ;;  %v17825_v48 = vadd.f32 %v12603_v53, %v12602_v18  ;;  %v12605_v21 = vpop.f32.mrb[78].mxu1  ;;  %v15232_v18 = vld [vmem:[#allocation8 + $0x874] ss:$12 sps:$4 sm:$0xff]   ;;  %v15244_v62 = vld [vmem:[#allocation8 + $0x878] ss:$12 sps:$4 sm:$0xff]  }
 0x7ed   : > { %v13530_v56 = vadd.f32 %v8890_v4, %v17809_v30  ;;  %v8892_v40 = vpop.f32.mrb[223].mxu0  ;;  %10014 = vmatmul.mubr.bf16.vlgmr.msra.gmra.mrb[136].mxu1 %v9453_v15  ;;  %10400 = vmatmul.mubr.bf16.vlgmr.msra.gmra.mrb[56].mxu0 %v9453_v15  ;;  %v12606_v38 = vpop.f32.mrb[79].mxu1  ;;  %v9363_v2 = vmax.f32 %v13528_v6, 0.0 }
 0x7ee   : > { %v13531_v61 = vadd.f32 %v8892_v40, %v17813_v45  ;;  %10175 = vmatpush1.bf16.msra.mxu1 %v15224_v37  ;;  %v17829_v60 = vadd.f32 %v12606_v38, %v12605_v21  ;;  %13141 = vmatpush3.bf16.msra.mxu0 %v17778_v33  ;;  %v9364_v25 = vmax.f32 %v13529_v28, 0.0  ;;  %v15230_v40 = vld [vmem:[#allocation8 + $0x870] ss:$12 sps:$4 sm:$0xff]   ;;  %v15235_v33 = vld [vmem:[#allocation8 + $0x88c] ss:$12 sps:$4 sm:$0xff]  }
 0x7ef   : > { %v9366_v47 = vmax.f32 %v13530_v56, 0.0  ;;  %10176 = vmatprep.subr.bf16.mxu1 %v15229_v35  ;;  %13142 = vmatprep.subr.bf16.mxu0 %v15240_v46  ;;  %v15248_v35 = vld [vmem:[#allocation8 + $0x890] ss:$12 sps:$4 sm:$0xff]  }
 0x7f0   : > { %v9367_v39 = vmax.f32 %v13531_v61, 0.0 }
 0x7f1   : > { %v9456_v53 = vpack.c.bf16 %v9366_v47, %v9363_v2 }
 0x7f2   : > { %v9457_v4 = vpack.c.bf16 %v9367_v39, %v9364_v25  ;;  %v8896_v15 = vpop.f32.mrb[224].mxu0  ;;  %10177 = vmatpush1.bf16.msra.mxu1 %v15227_v7  ;;  %v12608_v20 = vpop.f32.mrb[80].mxu1  ;;  %13143 = vmatpush3.bf16.msra.mxu0 %v15240_v46  ;;  %v15233_v25 = vld [vmem:[#allocation8 + $0x888] ss:$12 sps:$4 sm:$0xff]  }
 0x7f3   : > { %v13532_v37 = vadd.f32 %v8896_v15, %v17809_v30  ;;  %v8898_v21 = vpop.f32.mrb[225].mxu0  ;;  %v12609_v38 = vpop.f32.mrb[81].mxu1  ;;  %10178 = vmatprep.subr.bf16.mxu1 %v15232_v18  ;;  %13144 = vmatprep.subr.bf16.mxu0 %v15244_v62 }
 0x7f4   : > { %v13533_v6 = vadd.f32 %v8898_v21, %v17813_v45  ;;  %v8900_v56 = vpop.f32.mrb[226].mxu0  ;;  %10023 = vmatprep.mubr.bf16.mxu1 %v9457_v4  ;;  %10407 = vmatprep.mubr.bf16.mxu0 %v9457_v4  ;;  %v17834_v28 = vadd.f32 %v12609_v38, %v12608_v20  ;;  %v12611_v61 = vpop.f32.mrb[82].mxu1  ;;  %v15239_v4 = vld [vmem:[#allocation8 + $0x8a4] ss:$12 sps:$4 sm:$0xff]   ;;  %v15252_v20 = vld [vmem:[#allocation8 + $0x8a8] ss:$12 sps:$4 sm:$0xff]  }
 0x7f5   : > { %v13534_v7 = vadd.f32 %v8900_v56, %v17809_v30  ;;  %v8902_v2 = vpop.f32.mrb[227].mxu0  ;;  %10024 = vmatmul.mubr.bf16.gmra.mrb[140].mxu1 %v9456_v53  ;;  %10408 = vmatmul.mubr.bf16.gmra.mrb[60].mxu0 %v9456_v53  ;;  %v12612_v46 = vpop.f32.mrb[83].mxu1  ;;  %v9369_v39 = vmax.f32 %v13532_v37, 0.0  ;;  %v15253_v37 = vld [vmem:[#allocation8 + $0x8c0] ss:$12 sps:$4 sm:$0xff]  }
 0x7f6   : > { %v13535_v47 = vadd.f32 %v8902_v2, %v17813_v45  ;;  %v17838_v18 = vadd.f32 %v12612_v46, %v12611_v61  ;;  %10179 = vmatpush1.bf16.msra.mxu1 %v15230_v40  ;;  %13145 = vmatpush3.bf16.msra.mxu0 %v15244_v62  ;;  %v9370_v21 = vmax.f32 %v13533_v6, 0.0  ;;  %v15243_v62 = vld [vmem:[#allocation8 + $0x8bc] ss:$12 sps:$4 sm:$0xff]  }
 0x7f7   : > { %v9372_v15 = vmax.f32 %v13534_v7, 0.0  ;;  %10180 = vmatprep.subr.bf16.mxu1 %v15235_v33  ;;  %13146 = vmatprep.subr.bf16.mxu0 %v15248_v35 }
 0x7f8   : > { %v9373_v38 = vmax.f32 %v13535_v47, 0.0 }
 0x7f9   : > { %v9459_v56 = vpack.c.bf16 %v9372_v15, %v9369_v39  ;;  %v15241_v15 = vld [vmem:[#allocation8 + $0x8b8] ss:$12 sps:$4 sm:$0xff]  }
 0x7fa   : > { %v9460_v52 = vpack.c.bf16 %v9373_v38, %v9370_v21  ;;  %v8906_v23 = vpop.f32.mrb[228].mxu0  ;;  %v12614_v53 = vpop.f32.mrb[84].mxu1  ;;  %10181 = vmatpush1.bf16.msra.mxu1 %v15233_v25  ;;  %13147 = vmatpush3.bf16.msra.mxu0 %v15248_v35  ;;  %v15254_v38 = vld [vmem:[#allocation8 + $0x8d8] ss:$12 sps:$4 sm:$0xff]  }
 0x7fb   : > { %v13536_v61 = vadd.f32 %v8906_v23, %v17809_v30  ;;  %v8908_v40 = vpop.f32.mrb[229].mxu0  ;;  %v12615_v2 = vpop.f32.mrb[85].mxu1  ;;  %10182 = vmatprep.subr.bf16.mxu1 %v15239_v4  ;;  %13148 = vmatprep.subr.bf16.mxu0 %v15252_v20 }
 0x7fc   : > { %v13537_v33 = vadd.f32 %v8908_v40, %v17813_v45  ;;  %v8910_v7 = vpop.f32.mrb[230].mxu0  ;;  %10033 = vmatprep.mubr.bf16.mxu1 %v9460_v52  ;;  %10415 = vmatprep.mubr.bf16.mxu0 %v9460_v52  ;;  %v17842_v6 = vadd.f32 %v12615_v2, %v12614_v53  ;;  %v12617_v46 = vpop.f32.mrb[86].mxu1  ;;  %v15247_v52 = vld [vmem:[#allocation8 + $0x8d4] ss:$12 sps:$4 sm:$0xff]  }
 0x7fd   : > { %v13538_v47 = vadd.f32 %v8910_v7, %v17809_v30  ;;  %v8912_v25 = vpop.f32.mrb[231].mxu0  ;;  %10034 = vmatmul.mubr.bf16.gmra.mrb[144].mxu1 %v9459_v56  ;;  %10416 = vmatmul.mubr.bf16.gmra.mrb[64].mxu0 %v9459_v56  ;;  %v12618_v23 = vpop.f32.mrb[87].mxu1  ;;  %v9375_v4 = vmax.f32 %v13536_v61, 0.0  ;;  %v15255_v61 = vld [vmem:[#allocation8 + $0x8f0] ss:$12 sps:$4 sm:$0xff]  }
 0x7fe   : > { %v13539_v35 = vadd.f32 %v8912_v25, %v17813_v45  ;;  %v17846_v39 = vadd.f32 %v12618_v23, %v12617_v46  ;;  %10183 = vmatpush1.bf16.msra.mxu1 %v15237_v27  ;;  %13149 = vmatpush3.bf16.msra.mxu0 %v15252_v20  ;;  %v9376_v53 = vmax.f32 %v13537_v33, 0.0  ;;  %v15251_v20 = vld [vmem:[#allocation8 + $0x8ec] ss:$12 sps:$4 sm:$0xff]  }
 0x7ff   : > { %v9378_v21 = vmax.f32 %v13538_v47, 0.0  ;;  %10184 = vmatprep.subr.bf16.mxu1 %v15243_v62  ;;  %13150 = vmatprep.subr.bf16.mxu0 %v15253_v37 }
 0x800   : > { %v9379_v40 = vmax.f32 %v13539_v35, 0.0 }
 0x801   : > { %v9462_v2 = vpack.c.bf16 %v9378_v21, %v9375_v4  ;;  %v15249_v21 = vld [vmem:[#allocation8 + $0x8e8] ss:$12 sps:$4 sm:$0xff]  }
 0x802   : > { %v9463_v7 = vpack.c.bf16 %v9379_v40, %v9376_v53  ;;  %v8916_v1 = vpop.f32.mrb[232].mxu0  ;;  %v12620_v56 = vpop.f32.mrb[88].mxu1  ;;  %10185 = vmatpush1.bf16.msra.mxu1 %v15241_v15  ;;  %13151 = vmatpush3.bf16.msra.mxu0 %v15253_v37 }
 0x803   : > { %v13540_v46 = vadd.f32 %v8916_v1, %v17809_v30  ;;  %v8918_v27 = vpop.f32.mrb[233].mxu0  ;;  %v12621_v25 = vpop.f32.mrb[89].mxu1  ;;  %10186 = vmatprep.subr.bf16.mxu1 %v15247_v52  ;;  %13152 = vmatprep.subr.bf16.mxu0 %v15254_v38 }
 0x804   : > { %v13541_v62 = vadd.f32 %v8918_v27, %v17813_v45  ;;  %v8920_v47 = vpop.f32.mrb[234].mxu0  ;;  %10043 = vmatprep.mubr.bf16.mxu1 %v9463_v7  ;;  %10423 = vmatprep.mubr.bf16.mxu0 %v9463_v7  ;;  %v17850_v33 = vadd.f32 %v12621_v25, %v12620_v56  ;;  %v12623_v23 = vpop.f32.mrb[90].mxu1 }
 0x805   : > { %v13542_v35 = vadd.f32 %v8920_v47, %v17809_v30  ;;  %v8922_v15 = vpop.f32.mrb[235].mxu0  ;;  %10044 = vmatmul.mubr.bf16.gmra.mrb[148].mxu1 %v9462_v2  ;;  %10424 = vmatmul.mubr.bf16.gmra.mrb[68].mxu0 %v9462_v2  ;;  %v12624_v1 = vpop.f32.mrb[91].mxu1  ;;  %v9381_v52 = vmax.f32 %v13540_v46, 0.0 }
 0x806   : > { %v13543_v37 = vadd.f32 %v8922_v15, %v17813_v45  ;;  %v17854_v4 = vadd.f32 %v12624_v1, %v12623_v23  ;;  %10187 = vmatpush1.bf16.msra.mxu1 %v15245_v13  ;;  %13153 = vmatpush3.bf16.msra.mxu0 %v15254_v38  ;;  %v9382_v40 = vmax.f32 %v13541_v62, 0.0 }
 0x807   : > { %v9384_v53 = vmax.f32 %v13542_v35, 0.0  ;;  %10188 = vmatprep.subr.bf16.mxu1 %v15251_v20  ;;  %13154 = vmatprep.subr.bf16.mxu0 %v15255_v61 }
 0x808   : > { %v9385_v7 = vmax.f32 %v13543_v37, 0.0 }
 0x809   : > { %v9465_v56 = vpack.c.bf16 %v9384_v53, %v9381_v52 }
 0x80a   : > { %v9466_v27 = vpack.c.bf16 %v9385_v7, %v9382_v40  ;;  %v8926_v25 = vpop.f32.mrb[236].mxu0  ;;  %v12626_v47 = vpop.f32.mrb[92].mxu1  ;;  %10189 = vmatpush1.bf16.msra.mxu1 %v15249_v21  ;;  %13155 = vmatpush3.bf16.msra.mxu0 %v15255_v61 }
 0x80b   : > { %v13544_v2 = vadd.f32 %v8926_v25, %v17809_v30  ;;  %v8928_v15 = vpop.f32.mrb[237].mxu0  ;;  %v12627_v23 = vpop.f32.mrb[93].mxu1 }
 0x80c   : > { %v13545_v13 = vadd.f32 %v8928_v15, %v17813_v45  ;;  %v8930_v1 = vpop.f32.mrb[238].mxu0  ;;  %10053 = vmatprep.mubr.bf16.mxu1 %v9466_v27  ;;  %10431 = vmatprep.mubr.bf16.mxu0 %v9466_v27  ;;  %v17858_v38 = vadd.f32 %v12627_v23, %v12626_v47  ;;  %v12629_v46 = vpop.f32.mrb[94].mxu1 }
 0x80d   : > { %v13546_v20 = vadd.f32 %v8930_v1, %v17809_v30  ;;  %v8932_v62 = vpop.f32.mrb[239].mxu0  ;;  %10054 = vmatmul.mubr.bf16.gmra.mrb[152].mxu1 %v9465_v56  ;;  %10432 = vmatmul.mubr.bf16.gmra.mrb[72].mxu0 %v9465_v56  ;;  %v12630_v35 = vpop.f32.mrb[95].mxu1  ;;  %v9387_v21 = vmax.f32 %v13544_v2, 0.0 }
 0x80e   : > { %v13547_v61 = vadd.f32 %v8932_v62, %v17813_v45  ;;  %v17862_v37 = vadd.f32 %v12630_v35, %v12629_v46  ;;  %v9388_v53 = vmax.f32 %v13545_v13, 0.0 }
 0x80f   : > { %v9390_v52 = vmax.f32 %v13546_v20, 0.0 }
 0x810   : > { %v9391_v40 = vmax.f32 %v13547_v61, 0.0 }
 0x811   : > { %v9468_v7 = vpack.c.bf16 %v9390_v52, %v9387_v21 }
 0x812   : > { %v9469_v25 = vpack.c.bf16 %v9391_v40, %v9388_v53  ;;  %v8936_v27 = vpop.f32.mrb[240].mxu0  ;;  %v12632_v47 = vpop.f32.mrb[96].mxu1 }
 0x813   : > { %v13548_v15 = vadd.f32 %v8936_v27, %v17809_v30  ;;  %v8938_v23 = vpop.f32.mrb[241].mxu0  ;;  %v12633_v1 = vpop.f32.mrb[97].mxu1 }
 0x814   : > { %v13549_v63 = vadd.f32 %v8938_v23, %v17813_v45  ;;  %v8940_v56 = vpop.f32.mrb[242].mxu0  ;;  %10063 = vmatprep.mubr.bf16.mxu1 %v9469_v25  ;;  %10439 = vmatprep.mubr.bf16.mxu0 %v9469_v25  ;;  %v17866_v62 = vadd.f32 %v12633_v1, %v12632_v47  ;;  %v12635_v46 = vpop.f32.mrb[98].mxu1 }
 0x815   : > { %v13550_v2 = vadd.f32 %v8940_v56, %v17809_v30  ;;  %v8942_v13 = vpop.f32.mrb[243].mxu0  ;;  %10064 = vmatmul.mubr.bf16.gmra.mrb[156].mxu1 %v9468_v7  ;;  %10440 = vmatmul.mubr.bf16.gmra.mrb[76].mxu0 %v9468_v7  ;;  %v12636_v20 = vpop.f32.mrb[99].mxu1  ;;  %v9393_v21 = vmax.f32 %v13548_v15, 0.0 }
 0x816   : > { %v13551_v35 = vadd.f32 %v8942_v13, %v17813_v45  ;;  %v17870_v61 = vadd.f32 %v12636_v20, %v12635_v46  ;;  %v9394_v53 = vmax.f32 %v13549_v63, 0.0  ;;  %v19004_v20 = vld [vmem:[#allocation64_spill] sm:$0xff] }
 0x817   : > { %v9396_v52 = vmax.f32 %v13550_v2, 0.0  ;;  %v17876_v15 = vrot.slane %v17801_v29, %v19004_v20 }
 0x818   : > { %v9397_v40 = vmax.f32 %v13551_v35, 0.0 }
 0x819   : > { %v9471_v27 = vpack.c.bf16 %v9396_v52, %v9393_v21 }
 0x81a   : > { %v9472_v23 = vpack.c.bf16 %v9397_v40, %v9394_v53  ;;  %v8946_v25 = vpop.f32.mrb[244].mxu0  ;;  %v12638_v47 = vpop.f32.mrb[100].mxu1 }
 0x81b   : > { %v13552_v1 = vadd.f32 %v8946_v25, %v17809_v30  ;;  %v8948_v16 = vpop.f32.mrb[245].mxu0  ;;  %v12639_v56 = vpop.f32.mrb[101].mxu1 }
 0x81c   : > { %v13553_v11 = vadd.f32 %v8948_v16, %v17813_v45  ;;  %v8950_v7 = vpop.f32.mrb[246].mxu0  ;;  %10073 = vmatprep.mubr.bf16.mxu1 %v9472_v23  ;;  %10447 = vmatprep.mubr.bf16.mxu0 %v9472_v23  ;;  %v12640_v13 = vadd.f32 %v12639_v56, %v12638_v47  ;;  %v12641_v46 = vpop.f32.mrb[102].mxu1  ;;  %v9078_v56 = vadd.f32 %v17774_v19, %v17876_v15 }
 0x81d   : > { %v13554_v63 = vadd.f32 %v8950_v7, %v17809_v30  ;;  %v8952_v2 = vpop.f32.mrb[247].mxu0  ;;  %10074 = vmatmul.mubr.bf16.gmra.mrb[160].mxu1 %v9471_v27  ;;  %10448 = vmatmul.mubr.bf16.gmra.mrb[80].mxu0 %v9471_v27  ;;  %v12642_v35 = vpop.f32.mrb[103].mxu1  ;;  %v9399_v53 = vmax.f32 %v13552_v1, 0.0  ;;  %v9073_v19 = vadd.f32 %v17772_v3, %v17876_v15 }
 0x81e   : > { %v13555_v21 = vadd.f32 %v8952_v2, %v17813_v45  ;;  %v12643_v52 = vadd.f32 %v12642_v35, %v12641_v46  ;;  %v17881_v16 = vadd.f32 %v12640_v13, %v17876_v15  ;;  %v9400_v23 = vmax.f32 %v13553_v11, 0.0 }
 0x81f   : > { %v9402_v40 = vmax.f32 %v13554_v63, 0.0  ;;  %v9070_v46 = vadd.f32 %v17770_v10, %v17876_v15  ;;  %v9081_v11 = vadd.f32 %v17776_v36, %v17876_v15 }
 0x820   : > { %v9403_v25 = vmax.f32 %v13555_v21, 0.0  ;;  %v17884_v47 = vadd.f32 %v12643_v52, %v17876_v15 }
 0x821   : > { %v9474_v29 = vpack.c.bf16 %v9402_v40, %v9399_v53 }
 0x822   : > { %v9475_v7 = vpack.c.bf16 %v9403_v25, %v9400_v23  ;;  %v8956_v27 = vpop.f32.mrb[24].mxu0  ;;  %v13110_v20 = vpop.f32.mrb[104].mxu1 }
 0x823   : > { %v13556_v13 = vadd.f32 %v8956_v27, %v17809_v30  ;;  %v9239_v2 = vadd.f32 %v13110_v20, %v9078_v56  ;;  %v8958_v1 = vpop.f32.mrb[25].mxu0  ;;  %v9230_v63 = vpop.f32.mrb[105].mxu1 }
 0x824   : > { %v13557_v35 = vadd.f32 %v8958_v1, %v17813_v45  ;;  %v9231_v21 = vadd.f32 %v9230_v63, %v9070_v46  ;;  %v8960_v52 = vpop.f32.mrb[26].mxu0  ;;  %v13111_v53 = vpop.f32.mrb[106].mxu1  ;;  %10083 = vmatprep.mubr.bf16.mxu1 %v9475_v7  ;;  %10455 = vmatprep.mubr.bf16.mxu0 %v9475_v7 }
 0x825   : > { %v13558_v10 = vadd.f32 %v8960_v52, %v17809_v30  ;;  %v9242_v40 = vadd.f32 %v13111_v53, %v9081_v11  ;;  %v8962_v23 = vpop.f32.mrb[27].mxu0  ;;  %v9233_v20 = vpop.f32.mrb[107].mxu1  ;;  %10084 = vmatmul.mubr.bf16.gmra.mrb[164].mxu1 %v9474_v29  ;;  %10456 = vmatmul.mubr.bf16.gmra.mrb[84].mxu0 %v9474_v29  ;;  %v9405_v56 = vmax.f32 %v13556_v13, 0.0  ;;  %v9365_v27 = vmax.f32 %v9239_v2, 0.0 }
 0x826   : > { %v13559_v25 = vadd.f32 %v8962_v23, %v17813_v45  ;;  %v9234_v36 = vadd.f32 %v9233_v20, %v9073_v19  ;;  %v9406_v63 = vmax.f32 %v13557_v35, 0.0  ;;  %v9359_v44 = vmax.f32 %v9231_v21, 0.0 }
 0x827   : > { %v9408_v46 = vmax.f32 %v13558_v10, 0.0  ;;  %v9368_v1 = vmax.f32 %v9242_v40, 0.0  ;;  %v9094_v11 = vadd.f32 %v17785_v50, %v17876_v15  ;;  %v9086_v13 = vadd.f32 %v17781_v54, %v17876_v15 }
 0x828   : > { %v9409_v7 = vmax.f32 %v13559_v25, 0.0  ;;  %v9362_v0 = vmax.f32 %v9234_v36, 0.0  ;;  %v9097_v10 = vadd.f32 %v17787_v9, %v17876_v15 }
 0x829   : > { %v9477_v14 = vpack.c.bf16 %v9408_v46, %v9405_v56  ;;  %v17898_v3 = vpack.c.bf16 %v9368_v1, %v9365_v27 }
 0x82a   : > { %v9478_v52 = vpack.c.bf16 %v9409_v7, %v9406_v63  ;;  %v17902_v53 = vpack.c.bf16 %v9362_v0, %v9359_v44  ;;  %v8966_v29 = vpop.f32.mrb[28].mxu0  ;;  %v13114_v23 = vpop.f32.mrb[108].mxu1  ;;  %v9089_v0 = vadd.f32 %v17783_v22, %v17876_v15 }
 0x82b   : > { %v13560_v2 = vadd.f32 %v8966_v29, %v17809_v30  ;;  %v9255_v35 = vadd.f32 %v13114_v23, %v9094_v11  ;;  %v8968_v21 = vpop.f32.mrb[29].mxu0  ;;  %v9246_v19 = vpop.f32.mrb[109].mxu1 }
 0x82c   : > { %v13561_v40 = vadd.f32 %v8968_v21, %v17813_v45  ;;  %v9247_v20 = vadd.f32 %v9246_v19, %v9086_v13  ;;  %v8970_v50 = vpop.f32.mrb[30].mxu0  ;;  %v13115_v25 = vpop.f32.mrb[110].mxu1  ;;  %10093 = vmatprep.mubr.bf16.mxu1 %v9478_v52  ;;  %10463 = vmatprep.mubr.bf16.mxu0 %v9478_v52  ;;  %v9110_v21 = vadd.f32 %v17793_v32, %v17876_v15 }
 0x82d   : > { %v13562_v44 = vadd.f32 %v8970_v50, %v17809_v30  ;;  %v9258_v54 = vadd.f32 %v13115_v25, %v9097_v10  ;;  %v8972_v36 = vpop.f32.mrb[31].mxu0  ;;  %v9249_v56 = vpop.f32.mrb[111].mxu1  ;;  %10094 = vmatmul.mubr.bf16.gmra.mrb[168].mxu1 %v9477_v14  ;;  %10464 = vmatmul.mubr.bf16.gmra.mrb[88].mxu0 %v9477_v14  ;;  %v9411_v46 = vmax.f32 %v13560_v2, 0.0  ;;  %v9377_v1 = vmax.f32 %v9255_v35, 0.0 }
 0x82e   : > { %v13563_v27 = vadd.f32 %v8972_v36, %v17813_v45  ;;  %v9250_v9 = vadd.f32 %v9249_v56, %v9089_v0  ;;  %v9412_v11 = vmax.f32 %v13561_v40, 0.0  ;;  %v9371_v29 = vmax.f32 %v9247_v20, 0.0 }
 0x82f   : > { %v9414_v63 = vmax.f32 %v13562_v44, 0.0  ;;  %v9380_v7 = vmax.f32 %v9258_v54, 0.0  ;;  %v9102_v2 = vadd.f32 %v17789_v5, %v17876_v15  ;;  %v9113_v0 = vadd.f32 %v17795_v57, %v17876_v15 }
 0x830   : > { %v9415_v52 = vmax.f32 %v13563_v27, 0.0  ;;  %v9374_v23 = vmax.f32 %v9250_v9, 0.0  ;;  %v9105_v56 = vadd.f32 %v17791_v24, %v17876_v15 }
 0x831   : > { %v9480_v13 = vpack.c.bf16 %v9414_v63, %v9411_v46  ;;  %v17914_v22 = vpack.c.bf16 %v9380_v7, %v9377_v1 }
 0x832   : > { %v9481_v19 = vpack.c.bf16 %v9415_v52, %v9412_v11  ;;  %v17918_v10 = vpack.c.bf16 %v9374_v23, %v9371_v29  ;;  %v8976_v14 = vpop.f32.mrb[32].mxu0  ;;  %v13118_v50 = vpop.f32.mrb[112].mxu1 }
 0x833   : > { %v13564_v35 = vadd.f32 %v8976_v14, %v17809_v30  ;;  %v9271_v40 = vadd.f32 %v13118_v50, %v9110_v21  ;;  %v8978_v20 = vpop.f32.mrb[33].mxu0  ;;  %v9262_v25 = vpop.f32.mrb[113].mxu1  ;;  %v9126_v50 = vadd.f32 %v17803_v8, %v17876_v15 }
 0x834   : > { %v13565_v44 = vadd.f32 %v8978_v20, %v17813_v45  ;;  %v9263_v54 = vadd.f32 %v9262_v25, %v9102_v2  ;;  %v8980_v32 = vpop.f32.mrb[34].mxu0  ;;  %v13119_v36 = vpop.f32.mrb[114].mxu1  ;;  %10103 = vmatprep.mubr.bf16.mxu1 %v9481_v19  ;;  %10471 = vmatprep.mubr.bf16.mxu0 %v9481_v19 }
 0x835   : > { %v13566_v5 = vadd.f32 %v8980_v32, %v17809_v30  ;;  %v9274_v27 = vadd.f32 %v13119_v36, %v9113_v0  ;;  %v8982_v9 = vpop.f32.mrb[35].mxu0  ;;  %v9265_v46 = vpop.f32.mrb[115].mxu1  ;;  %10104 = vmatmul.mubr.bf16.gmra.mrb[172].mxu1 %v9480_v13  ;;  %10472 = vmatmul.mubr.bf16.gmra.mrb[92].mxu0 %v9480_v13  ;;  %v9417_v63 = vmax.f32 %v13564_v35, 0.0  ;;  %v9389_v7 = vmax.f32 %v9271_v40, 0.0 }
 0x836   : > { %v13567_v1 = vadd.f32 %v8982_v9, %v17813_v45  ;;  %v9266_v57 = vadd.f32 %v9265_v46, %v9105_v56  ;;  %v9418_v52 = vmax.f32 %v13565_v44, 0.0  ;;  %v9383_v23 = vmax.f32 %v9263_v54, 0.0 }
 0x837   : > { %v9420_v11 = vmax.f32 %v13566_v5, 0.0  ;;  %v9392_v29 = vmax.f32 %v9274_v27, 0.0  ;;  %v9118_v35 = vadd.f32 %v17797_v58, %v17876_v15  ;;  %v9129_v32 = vadd.f32 %v17805_v12, %v17876_v15 }
 0x838   : > { %v9421_v21 = vmax.f32 %v13567_v1, 0.0  ;;  %v9386_v19 = vmax.f32 %v9266_v57, 0.0  ;;  %v9121_v27 = vadd.f32 %v17799_v31, %v17876_v15 }
 0x839   : > { %v9483_v14 = vpack.c.bf16 %v9420_v11, %v9417_v63  ;;  %v17930_v24 = vpack.c.bf16 %v9392_v29, %v9389_v7 }
 0x83a   : > { %v9484_v2 = vpack.c.bf16 %v9421_v21, %v9418_v52  ;;  %v17934_v20 = vpack.c.bf16 %v9386_v19, %v9383_v23  ;;  %v8986_v13 = vpop.f32.mrb[36].mxu0  ;;  %v13122_v25 = vpop.f32.mrb[116].mxu1 }
 0x83b   : > { %v13568_v40 = vadd.f32 %v8986_v13, %v17809_v30  ;;  %v9287_v0 = vadd.f32 %v13122_v25, %v9126_v50  ;;  %v8988_v44 = vpop.f32.mrb[37].mxu0  ;;  %v9278_v54 = vpop.f32.mrb[117].mxu1 }
 0x83c   : > { %v13569_v36 = vadd.f32 %v8988_v44, %v17813_v45  ;;  %v9279_v56 = vadd.f32 %v9278_v54, %v9118_v35  ;;  %v8990_v8 = vpop.f32.mrb[38].mxu0  ;;  %v13123_v5 = vpop.f32.mrb[118].mxu1  ;;  %10113 = vmatprep.mubr.bf16.mxu1 %v9484_v2  ;;  %10479 = vmatprep.mubr.bf16.mxu0 %v9484_v2  ;;  %v9142_v2 = vadd.f32 %v17825_v48, %v17876_v15 }
 0x83d   : > { %v13570_v58 = vadd.f32 %v8990_v8, %v17809_v30  ;;  %v9290_v9 = vadd.f32 %v13123_v5, %v9129_v32  ;;  %v8992_v46 = vpop.f32.mrb[39].mxu0  ;;  %v9281_v1 = vpop.f32.mrb[119].mxu1  ;;  %10114 = vmatmul.mubr.bf16.gmra.mrb[176].mxu1 %v9483_v14  ;;  %10480 = vmatmul.mubr.bf16.gmra.mrb[96].mxu0 %v9483_v14  ;;  %v9423_v63 = vmax.f32 %v13568_v40, 0.0  ;;  %v9401_v7 = vmax.f32 %v9287_v0, 0.0 }
 0x83e   : > { %v13571_v57 = vadd.f32 %v8992_v46, %v17813_v45  ;;  %v9282_v12 = vadd.f32 %v9281_v1, %v9121_v27  ;;  %v9424_v52 = vmax.f32 %v13569_v36, 0.0  ;;  %v9395_v23 = vmax.f32 %v9279_v56, 0.0 }
 0x83f   : > { %v9426_v11 = vmax.f32 %v13570_v58, 0.0  ;;  %v9404_v29 = vmax.f32 %v9290_v9, 0.0  ;;  %v9134_v40 = vadd.f32 %v17817_v42, %v17876_v15  ;;  %v9145_v36 = vadd.f32 %v17829_v60, %v17876_v15 }
 0x840   : > { %v9427_v21 = vmax.f32 %v13571_v57, 0.0  ;;  %v9398_v19 = vmax.f32 %v9282_v12, 0.0  ;;  %v9137_v27 = vadd.f32 %v17821_v49, %v17876_v15 }
 0x841   : > { %v9486_v50 = vpack.c.bf16 %v9426_v11, %v9423_v63  ;;  %v17946_v31 = vpack.c.bf16 %v9404_v29, %v9401_v7 }
 0x842   : > { %v9487_v13 = vpack.c.bf16 %v9427_v21, %v9424_v52  ;;  %v17950_v25 = vpack.c.bf16 %v9398_v19, %v9395_v23  ;;  %v8996_v14 = vpop.f32.mrb[40].mxu0  ;;  %v13126_v35 = vpop.f32.mrb[120].mxu1  ;;  %v9158_v19 = vadd.f32 %v17842_v6, %v17876_v15 }
 0x843   : > { %v13572_v0 = vadd.f32 %v8996_v14, %v17809_v30  ;;  %v9303_v44 = vadd.f32 %v13126_v35, %v9142_v2  ;;  %v8998_v54 = vpop.f32.mrb[41].mxu0  ;;  %v9294_v32 = vpop.f32.mrb[121].mxu1  ;;  %v9150_v35 = vadd.f32 %v17834_v28, %v17876_v15 }
 0x844   : > { %v13573_v56 = vadd.f32 %v8998_v54, %v17813_v45  ;;  %v9295_v8 = vadd.f32 %v9294_v32, %v9134_v40  ;;  %v9000_v48 = vpop.f32.mrb[42].mxu0  ;;  %v13127_v5 = vpop.f32.mrb[122].mxu1  ;;  %10123 = vmatprep.mubr.bf16.mxu1 %v9487_v13  ;;  %10487 = vmatprep.mubr.bf16.mxu0 %v9487_v13  ;;  %v9161_v32 = vadd.f32 %v17846_v39, %v17876_v15 }
 0x845   : > { %v13574_v42 = vadd.f32 %v9000_v48, %v17809_v30  ;;  %v9306_v58 = vadd.f32 %v13127_v5, %v9145_v36  ;;  %v9002_v9 = vpop.f32.mrb[43].mxu0  ;;  %v9297_v46 = vpop.f32.mrb[123].mxu1  ;;  %10124 = vmatmul.mubr.bf16.gmra.mrb[180].mxu1 %v9486_v50  ;;  %10488 = vmatmul.mubr.bf16.gmra.mrb[100].mxu0 %v9486_v50  ;;  %v9429_v57 = vmax.f32 %v13572_v0, 0.0  ;;  %v9413_v12 = vmax.f32 %v9303_v44, 0.0 }
 0x846   : > { %v13575_v1 = vadd.f32 %v9002_v9, %v17813_v45  ;;  %v9298_v60 = vadd.f32 %v9297_v46, %v9137_v27  ;;  %v9430_v11 = vmax.f32 %v13573_v56, 0.0  ;;  %v9407_v29 = vmax.f32 %v9295_v8, 0.0 }
 0x847   : > { %v9432_v63 = vmax.f32 %v13574_v42, 0.0  ;;  %v9416_v7 = vmax.f32 %v9306_v58, 0.0  ;;  %v9153_v48 = vadd.f32 %v17838_v18, %v17876_v15 }
 0x848   : > { %v9433_v52 = vmax.f32 %v13575_v1, 0.0  ;;  %v9410_v23 = vmax.f32 %v9298_v60, 0.0 }
 0x849   : > { %v9489_v21 = vpack.c.bf16 %v9432_v63, %v9429_v57  ;;  %v17962_v49 = vpack.c.bf16 %v9416_v7, %v9413_v12 }
 0x84a   : > { %v9490_v2 = vpack.c.bf16 %v9433_v52, %v9430_v11  ;;  %v17966_v13 = vpack.c.bf16 %v9410_v23, %v9407_v29  ;;  %v9006_v50 = vpop.f32.mrb[44].mxu0  ;;  %v13130_v14 = vpop.f32.mrb[124].mxu1  ;;  %v9174_v29 = vadd.f32 %v17858_v38, %v17876_v15 }
 0x84b   : > { %v13576_v40 = vadd.f32 %v9006_v50, %v17809_v30  ;;  %v9319_v0 = vadd.f32 %v13130_v14, %v9158_v19  ;;  %v9008_v44 = vpop.f32.mrb[45].mxu0  ;;  %v9310_v54 = vpop.f32.mrb[125].mxu1 }
 0x84c   : > { %v13577_v36 = vadd.f32 %v9008_v44, %v17813_v45  ;;  %v9311_v56 = vadd.f32 %v9310_v54, %v9150_v35  ;;  %v9010_v6 = vpop.f32.mrb[46].mxu0  ;;  %v13131_v8 = vpop.f32.mrb[126].mxu1  ;;  %10133 = vmatprep.mubr.bf16.mxu1 %v9490_v2  ;;  %10495 = vmatprep.mubr.bf16.mxu0 %v9490_v2  ;;  %v9166_v2 = vadd.f32 %v17850_v33, %v17876_v15 }
 0x84d   : > { %v13578_v28 = vadd.f32 %v9010_v6, %v17809_v30  ;;  %v9322_v5 = vadd.f32 %v13131_v8, %v9161_v32  ;;  %v9012_v27 = vpop.f32.mrb[47].mxu0  ;;  %v9313_v42 = vpop.f32.mrb[127].mxu1  ;;  %10134 = vmatmul.mubr.bf16.gmra.mrb[184].mxu1 %v9489_v21  ;;  %10496 = vmatmul.mubr.bf16.gmra.mrb[104].mxu0 %v9489_v21  ;;  %v9435_v9 = vmax.f32 %v13576_v40, 0.0  ;;  %v9425_v46 = vmax.f32 %v9319_v0, 0.0 }
 0x84e   : > { %v13579_v58 = vadd.f32 %v9012_v27, %v17813_v45  ;;  %v9314_v39 = vadd.f32 %v9313_v42, %v9153_v48  ;;  %v9436_v57 = vmax.f32 %v13577_v36, 0.0  ;;  %v9419_v12 = vmax.f32 %v9311_v56, 0.0 }
 0x84f   : > { %v9438_v1 = vmax.f32 %v13578_v28, 0.0  ;;  %v9428_v60 = vmax.f32 %v9322_v5, 0.0  ;;  %v9177_v0 = vadd.f32 %v17862_v37, %v17876_v15  ;;  %v9169_v36 = vadd.f32 %v17854_v4, %v17876_v15 }
 0x850   : > { %v9439_v63 = vmax.f32 %v13579_v58, 0.0  ;;  %v9422_v7 = vmax.f32 %v9314_v39, 0.0 }
 0x851   : > { %v9492_v11 = vpack.c.bf16 %v9438_v1, %v9435_v9  ;;  %v17978_v18 = vpack.c.bf16 %v9428_v60, %v9425_v46 }
 0x852   : > { %v9493_v52 = vpack.c.bf16 %v9439_v63, %v9436_v57  ;;  %v17982_v23 = vpack.c.bf16 %v9422_v7, %v9419_v12  ;;  %v9016_v21 = vpop.f32.mrb[48].mxu0  ;;  %v13134_v19 = vpop.f32.mrb[128].mxu1  ;;  %v9182_v7 = vadd.f32 %v17866_v62, %v17876_v15 }
 0x853   : > { %v13580_v50 = vadd.f32 %v9016_v21, %v17809_v30  ;;  %v9335_v14 = vadd.f32 %v13134_v19, %v9174_v29  ;;  %v9018_v35 = vpop.f32.mrb[49].mxu0  ;;  %v9326_v40 = vpop.f32.mrb[129].mxu1 }
 0x854   : > { %v13581_v44 = vadd.f32 %v9018_v35, %v17813_v45  ;;  %v9327_v54 = vadd.f32 %v9326_v40, %v9166_v2  ;;  %v9020_v38 = vpop.f32.mrb[50].mxu0  ;;  %v13135_v32 = vpop.f32.mrb[130].mxu1  ;;  %10143 = vmatprep.mubr.bf16.mxu1 %v9493_v52  ;;  %10503 = vmatprep.mubr.bf16.mxu0 %v9493_v52  ;;  %v9185_v35 = vadd.f32 %v17870_v61, %v17876_v15 }
 0x855   : > { %v13582_v33 = vadd.f32 %v9020_v38, %v17809_v30  ;;  %v9338_v56 = vadd.f32 %v13135_v32, %v9177_v0  ;;  %v9022_v6 = vpop.f32.mrb[51].mxu0  ;;  %v9329_v8 = vpop.f32.mrb[131].mxu1  ;;  %10144 = vmatmul.mubr.bf16.gmra.mrb[188].mxu1 %v9492_v11  ;;  %10504 = vmatmul.mubr.bf16.gmra.mrb[108].mxu0 %v9492_v11  ;;  %v9441_v28 = vmax.f32 %v13580_v50, 0.0  ;;  %v9437_v5 = vmax.f32 %v9335_v14, 0.0 }
 0x856   : > { %v13583_v48 = vadd.f32 %v9022_v6, %v17813_v45  ;;  %v9330_v37 = vadd.f32 %v9329_v8, %v9169_v36  ;;  %v9442_v58 = vmax.f32 %v13581_v44, 0.0  ;;  %v9431_v39 = vmax.f32 %v9327_v54, 0.0 }
 0x857   : > { %v9444_v27 = vmax.f32 %v13582_v33, 0.0  ;;  %v9440_v42 = vmax.f32 %v9338_v56, 0.0 }
 0x858   : > { %v9445_v9 = vmax.f32 %v13583_v48, 0.0  ;;  %v9434_v46 = vmax.f32 %v9330_v37, 0.0 }
 0x859   : > { %v9495_v1 = vpack.c.bf16 %v9444_v27, %v9441_v28  ;;  %v17994_v4 = vpack.c.bf16 %v9440_v42, %v9437_v5 }
 0x85a   : > { %v9496_v60 = vpack.c.bf16 %v9445_v9, %v9442_v58  ;;  %v17996_v57 = vpack.c.bf16 %v9434_v46, %v9431_v39  ;;  %v9026_v12 = vpop.f32.mrb[52].mxu0  ;;  %v13138_v63 = vpop.f32.mrb[132].mxu1 }
 0x85b   : > { %v13584_v11 = vadd.f32 %v9026_v12, %v17809_v30  ;;  %v9351_v29 = vadd.f32 %v13138_v63, %v17881_v16  ;;  %v9028_v52 = vpop.f32.mrb[53].mxu0  ;;  %v9342_v21 = vpop.f32.mrb[133].mxu1 }
 0x85c   : > { %v13585_v19 = vadd.f32 %v9028_v52, %v17813_v45  ;;  %v9343_v2 = vadd.f32 %v9342_v21, %v9182_v7  ;;  %v9030_v50 = vpop.f32.mrb[54].mxu0  ;;  %v13139_v14 = vpop.f32.mrb[134].mxu1  ;;  %10153 = vmatprep.mubr.bf16.mxu1 %v9496_v60  ;;  %10511 = vmatprep.mubr.bf16.mxu0 %v9496_v60 }
 0x85d   : > { %v9449_v40 = vmax.f32 %v9351_v29, 0.0  ;;  %v13586_v0 = vadd.f32 %v9030_v50, %v17809_v30  ;;  %v9354_v62 = vadd.f32 %v13139_v14, %v17884_v47  ;;  %v9032_v44 = vpop.f32.mrb[55].mxu0  ;;  %v9345_v54 = vpop.f32.mrb[135].mxu1  ;;  %10154 = vmatmul.mubr.bf16.gmra.mrb[192].mxu1 %v9495_v1  ;;  %10512 = vmatmul.mubr.bf16.gmra.mrb[112].mxu0 %v9495_v1  ;;  %v9447_v32 = vmax.f32 %v13584_v11, 0.0 }
 0x85e   : > { %v13587_v16 = vadd.f32 %v9032_v44, %v17813_v45  ;;  %v9346_v38 = vadd.f32 %v9345_v54, %v9185_v35  ;;  %v9448_v56 = vmax.f32 %v13585_v19, 0.0  ;;  %v9443_v6 = vmax.f32 %v9343_v2, 0.0  ;;  %v19006_v19 = vld [vmem:[#allocation79_spill] sm:$0xff]  ;;  %v19008_v44 = vld [vmem:[#allocation81_spill] sm:$0xff] }
 0x85f   : > { %v9450_v36 = vmax.f32 %v13586_v0, 0.0  ;;  %v9452_v33 = vmax.f32 %v9354_v62, 0.0 }
 0x860   : > { %v9451_v8 = vmax.f32 %v13587_v16, 0.0  ;;  %v9446_v48 = vmax.f32 %v9346_v38, 0.0  ;;  %v19009_v16 = vld [vmem:[#allocation84_spill] sm:$0xff] }
 0x861   : > { %v9498_v61 = vpack.c.bf16 %v9450_v36, %v9447_v32  ;;  %v18008_v15 = vpack.c.bf16 %v9452_v33, %v9449_v40 }
 0x862   : > { %v9499_v30 = vpack.c.bf16 %v9451_v8, %v9448_v56  ;;  %v18010_v37 = vpack.c.bf16 %v9446_v48, %v9443_v6  ;;  %v19010_v48 = vld [vmem:[#allocation83_spill] sm:$0xff] }
 0x864   : > { %10163 = vmatprep.mubr.bf16.mxu1 %v9499_v30  ;;  %10519 = vmatprep.mubr.bf16.mxu0 %v9499_v30 }
 0x865   : > { %10164 = vmatmul.mubr.bf16.gmra.mrb[196].mxu1 %v9498_v61  ;;  %10520 = vmatmul.mubr.bf16.gmra.mrb[116].mxu0 %v9498_v61 }
 0x866   : > { %13156 = vmatprep.mubr.bf16.mxu0 %v17902_v53  ;;  %10206 = vmatprep.mubr.bf16.mxu1 %v18696_v55 }
 0x86d   : > { %10207 = vmatmul.mubr.bf16.vlgmr.msra.gmra.mrb[136].mxu1 %v17902_v53  ;;  %13157 = vmatmul.mubr.bf16.vlgmr.msra.gmra.mrb[248].mxu0 %v17898_v3 }
 0x86e   : > { %13160 = vmatprep.mubr.bf16.mxu0 %v17918_v10  ;;  %10216 = vmatprep.mubr.bf16.mxu1 %v18696_v55 }
 0x875   : > { %10217 = vmatmul.mubr.bf16.gmra.mrb[140].mxu1 %v17898_v3  ;;  %13161 = vmatmul.mubr.bf16.gmra.mrb[252].mxu0 %v17914_v22 }
 0x876   : > { %13164 = vmatprep.mubr.bf16.mxu0 %v17934_v20  ;;  %10226 = vmatprep.mubr.bf16.mxu1 %v18696_v55 }
 0x87d   : > { %10227 = vmatmul.mubr.bf16.gmra.mrb[144].mxu1 %v17918_v10  ;;  %13165 = vmatmul.mubr.bf16.gmra.mrb[0].mxu0 %v17930_v24 }
 0x87e   : > { %13168 = vmatprep.mubr.bf16.mxu0 %v17950_v25  ;;  %10236 = vmatprep.mubr.bf16.mxu1 %v18696_v55 }
 0x885   : > { %10237 = vmatmul.mubr.bf16.gmra.mrb[148].mxu1 %v17914_v22  ;;  %13169 = vmatmul.mubr.bf16.gmra.mrb[4].mxu0 %v17946_v31 }
 0x886   : > { %13172 = vmatprep.mubr.bf16.mxu0 %v17966_v13  ;;  %10246 = vmatprep.mubr.bf16.mxu1 %v18696_v55 }
 0x88d   : > { %10247 = vmatmul.mubr.bf16.gmra.mrb[152].mxu1 %v17934_v20  ;;  %13173 = vmatmul.mubr.bf16.gmra.mrb[8].mxu0 %v17962_v49 }
 0x88e   : > { %13176 = vmatprep.mubr.bf16.mxu0 %v17982_v23  ;;  %10256 = vmatprep.mubr.bf16.mxu1 %v18696_v55 }
 0x895   : > { %10257 = vmatmul.mubr.bf16.gmra.mrb[156].mxu1 %v17930_v24  ;;  %13177 = vmatmul.mubr.bf16.gmra.mrb[12].mxu0 %v17978_v18 }
 0x896   : > { %13180 = vmatprep.mubr.bf16.mxu0 %v17996_v57  ;;  %10266 = vmatprep.mubr.bf16.mxu1 %v18696_v55 }
 0x89d   : > { %10267 = vmatmul.mubr.bf16.gmra.mrb[160].mxu1 %v17950_v25  ;;  %13181 = vmatmul.mubr.bf16.gmra.mrb[16].mxu0 %v17994_v4 }
 0x89e   : > { %13184 = vmatprep.mubr.bf16.mxu0 %v18010_v37  ;;  %10276 = vmatprep.mubr.bf16.mxu1 %v18696_v55 }
 0x8a5   : > { %10277 = vmatmul.mubr.bf16.gmra.mrb[164].mxu1 %v17946_v31  ;;  %13185 = vmatmul.mubr.bf16.gmra.mrb[20].mxu0 %v18008_v15 }
 0x8a6   : > { %10286 = vmatprep.mubr.bf16.mxu1 %v18696_v55 }
 0x8ad   : > { %10287 = vmatmul.mubr.bf16.gmra.mrb[168].mxu1 %v17966_v13 }
 0x8ae   : > { %10296 = vmatprep.mubr.bf16.mxu1 %v18696_v55 }
 0x8b5   : > { %10297 = vmatmul.mubr.bf16.gmra.mrb[172].mxu1 %v17962_v49 }
 0x8b6   : > { %10306 = vmatprep.mubr.bf16.mxu1 %v18696_v55 }
 0x8bd   : > { %10307 = vmatmul.mubr.bf16.gmra.mrb[176].mxu1 %v17982_v23 }
 0x8be   : > { %10316 = vmatprep.mubr.bf16.mxu1 %v18696_v55 }
 0x8c0   : > { %v12684_v45 = vpop.f32.mrb[56].mxu0 }
 0x8c1   : > { %v12685_v47 = vpop.f32.mrb[57].mxu0 }
 0x8c2   : > { %v12686_v3 = vadd.f32 %v12685_v47, %v12684_v45  ;;  %v12687_v53 = vpop.f32.mrb[58].mxu0 }
 0x8c3   : > { %v12688_v22 = vpop.f32.mrb[59].mxu0 }
 0x8c4   : > { %v12689_v10 = vadd.f32 %v12688_v22, %v12687_v53  ;;  %v18052_v24 = vadd.f32 %v17560_v26, %v12686_v3 }
 0x8c5   : > { %10317 = vmatmul.mubr.bf16.gmra.mrb[180].mxu1 %v17978_v18 }
 0x8c6   : > { %10326 = vmatprep.mubr.bf16.mxu1 %v18696_v55  ;;  %v18057_v20 = vadd.f32 %v17565_v34, %v12689_v10  ;;  %v19012_v10 = vld [vmem:[#allocation85_spill] sm:$0xff] }
 0x8c8   : > { %v12690_v31 = vpop.f32.mrb[60].mxu0 }
 0x8c9   : > { %v12691_v25 = vpop.f32.mrb[61].mxu0 }
 0x8ca   : > { %v12692_v49 = vadd.f32 %v12691_v25, %v12690_v31  ;;  %v12693_v13 = vpop.f32.mrb[62].mxu0  ;;  %v19013_v25 = vld [vmem:[#allocation21_spill] sm:$0xff] }
 0x8cb   : > { %v12694_v23 = vpop.f32.mrb[63].mxu0 }
 0x8cc   : > { %v12695_v28 = vadd.f32 %v12694_v23, %v12693_v13  ;;  %v18060_v5 = vadd.f32 %v17570_v43, %v12692_v49 }
 0x8cd   : > { %10327 = vmatmul.mubr.bf16.gmra.mrb[184].mxu1 %v17996_v57 }
 0x8ce   : > { %10336 = vmatprep.mubr.bf16.mxu1 %v18696_v55  ;;  %v18065_v26 = vadd.f32 %v17575_v51, %v12695_v28 }
 0x8d0   : > { %v12696_v18 = vpop.f32.mrb[64].mxu0 }
 0x8d1   : > { %v12697_v27 = vpop.f32.mrb[65].mxu0 }
 0x8d2   : > { %v12698_v34 = vadd.f32 %v12697_v27, %v12696_v18  ;;  %v12699_v42 = vpop.f32.mrb[66].mxu0 }
 0x8d3   : > { %v12700_v58 = vpop.f32.mrb[67].mxu0 }
 0x8d4   : > { %v12701_v39 = vadd.f32 %v12700_v58, %v12699_v42  ;;  %v18068_v9 = vadd.f32 %v17580_v17, %v12698_v34  ;;  %v19005_v17 = vld [vmem:[#allocation80_spill] sm:$0xff]  ;;  %v19014_v42 = vld [vmem:[#allocation26_spill] sm:$0xff] }
 0x8d5   : > { %10337 = vmatmul.mubr.bf16.gmra.mrb[188].mxu1 %v17994_v4 }
 0x8d6   : > { %10346 = vmatprep.mubr.bf16.mxu1 %v18696_v55  ;;  %v18073_v43 = vadd.f32 %v17585_v41, %v12701_v39  ;;  %v19015_v39 = vld [vmem:[#allocation28_spill] sm:$0xff] }
 0x8d8   : > { %v12702_v46 = vpop.f32.mrb[68].mxu0 }
 0x8d9   : > { %v12703_v1 = vpop.f32.mrb[69].mxu0 }
 0x8da   : > { %v12704_v51 = vadd.f32 %v12703_v1, %v12702_v46  ;;  %v12705_v60 = vpop.f32.mrb[70].mxu0 }
 0x8db   : > { %v12706_v57 = vpop.f32.mrb[71].mxu0 }
 0x8dc   : > { %v12707_v12 = vadd.f32 %v12706_v57, %v12705_v60  ;;  %v18076_v63 = vadd.f32 %v17590_v59, %v12704_v51  ;;  %v19007_v59 = vld [vmem:[#allocation82_spill] sm:$0xff] }
 0x8dd   : > { %10347 = vmatmul.mubr.bf16.gmra.mrb[192].mxu1 %v18010_v37 }
 0x8de   : > { %10356 = vmatprep.mubr.bf16.mxu1 %v18696_v55  ;;  %v18081_v4 = vadd.f32 %v19005_v17, %v12707_v12 }
 0x8e0   : > { %v12708_v7 = vpop.f32.mrb[72].mxu0 }
 0x8e1   : > { %v12709_v11 = vpop.f32.mrb[73].mxu0 }
 0x8e2   : > { %v12710_v41 = vadd.f32 %v12709_v11, %v12708_v7  ;;  %v12711_v29 = vpop.f32.mrb[74].mxu0  ;;  %v19016_v7 = vld [vmem:[#allocation30_spill] sm:$0xff] }
 0x8e3   : > { %v12712_v52 = vpop.f32.mrb[75].mxu0 }
 0x8e4   : > { %v12713_v21 = vadd.f32 %v12712_v52, %v12711_v29  ;;  %v18084_v2 = vadd.f32 %v19006_v19, %v12710_v41  ;;  %v19017_v41 = vld [vmem:[#allocation38_spill] sm:$0xff] }
 0x8e5   : > { %10357 = vmatmul.mubr.bf16.gmra.mrb[196].mxu1 %v18008_v15  ;;  %v19011_v15 = vld [vmem:[#allocation86_spill] sm:$0xff] }
 0x8e6   : > { %v18088_v50 = vadd.f32 %v19007_v59, %v12713_v21 }
 0x8e8   : > { %v12714_v14 = vpop.f32.mrb[76].mxu0 }
 0x8e9   : > { %v12715_v35 = vpop.f32.mrb[77].mxu0 }
 0x8ea   : > { %v12716_v55 = vadd.f32 %v12715_v35, %v12714_v14  ;;  %v12717_v40 = vpop.f32.mrb[78].mxu0 }
 0x8eb   : > { %v12718_v0 = vpop.f32.mrb[79].mxu0 }
 0x8ec   : > { %v12719_v62 = vadd.f32 %v12718_v0, %v12717_v40  ;;  %v18091_v54 = vadd.f32 %v19008_v44, %v12716_v55  ;;  %v19018_v55 = vld [vmem:[#allocation32_spill] sm:$0xff]  ;;  %v19019_v0 = vld [vmem:[#allocation69_spill] sm:$0xff] }
 0x8ee   : > { %v18094_v38 = vadd.f32 %v19009_v16, %v12719_v62 }
 0x8f0   : > { %v12720_v32 = vpop.f32.mrb[80].mxu0 }
 0x8f1   : > { %v12721_v36 = vpop.f32.mrb[81].mxu0 }
 0x8f2   : > { %v12722_v33 = vadd.f32 %v12721_v36, %v12720_v32  ;;  %v12723_v56 = vpop.f32.mrb[82].mxu0 }
 0x8f3   : > { %v12724_v6 = vpop.f32.mrb[83].mxu0 }
 0x8f4   : > { %v12725_v8 = vadd.f32 %v12724_v6, %v12723_v56  ;;  %v18097_v61 = vadd.f32 %v19010_v48, %v12722_v33  ;;  %v19020_v6 = vld [vmem:[#allocation34_spill] sm:$0xff]  ;;  %v19021_v48 = vld [vmem:[#allocation71_spill] sm:$0xff] }
 0x8f6   : > { %v18100_v30 = vadd.f32 %v19011_v15, %v12725_v8 }
 0x8f8   : > { %v12726_v37 = vpop.f32.mrb[84].mxu0 }
 0x8f9   : > { %v12727_v45 = vpop.f32.mrb[85].mxu0 }
 0x8fa   : > { %v12728_v47 = vadd.f32 %v12727_v45, %v12726_v37  ;;  %v12729_v3 = vpop.f32.mrb[86].mxu0 }
 0x8fb   : > { %v12730_v53 = vpop.f32.mrb[87].mxu0 }
 0x8fc   : > { %v12731_v22 = vadd.f32 %v12730_v53, %v12729_v3  ;;  %v18103_v31 = vadd.f32 %v19012_v10, %v12728_v47  ;;  %v19022_v10 = vld [vmem:[#allocation36_spill] sm:$0xff] }
 0x8fe   : > { %v18106_v49 = vadd.f32 %v19013_v25, %v12731_v22 }
 0x900   : > { %v12732_v13 = vpop.f32.mrb[88].mxu0 }
 0x901   : > { %v12733_v23 = vpop.f32.mrb[89].mxu0 }
 0x902   : > { %v12734_v28 = vadd.f32 %v12733_v23, %v12732_v13  ;;  %v12735_v18 = vpop.f32.mrb[90].mxu0  ;;  %v19023_v13 = vld [vmem:[#allocation74_spill] sm:$0xff] }
 0x903   : > { %v12736_v27 = vpop.f32.mrb[91].mxu0 }
 0x904   : > { %v12737_v34 = vadd.f32 %v12736_v27, %v12735_v18  ;;  %v18109_v58 = vadd.f32 %v19014_v42, %v12734_v28 }
 0x906   : > { %v18112_v46 = vadd.f32 %v19015_v39, %v12737_v34 }
 0x908   : > { %v12738_v1 = vpop.f32.mrb[92].mxu0 }
 0x909   : > { %v12739_v51 = vpop.f32.mrb[93].mxu0 }
 0x90a   : > { %v12740_v60 = vadd.f32 %v12739_v51, %v12738_v1  ;;  %v12741_v57 = vpop.f32.mrb[94].mxu0  ;;  %v19024_v1 = vld [vmem:[#allocation40_spill] sm:$0xff] }
 0x90b   : > { %v12742_v12 = vpop.f32.mrb[95].mxu0 }
 0x90c   : > { %v12743_v17 = vadd.f32 %v12742_v12, %v12741_v57  ;;  %v18115_v11 = vadd.f32 %v19016_v7, %v12740_v60  ;;  %v19025_v60 = vld [vmem:[#allocation76_spill] sm:$0xff] }
 0x90e   : > { %v18118_v29 = vadd.f32 %v19017_v41, %v12743_v17 }
 0x910   : > { %v12744_v52 = vpop.f32.mrb[96].mxu0 }
 0x911   : > { %v12745_v21 = vpop.f32.mrb[97].mxu0 }
 0x912   : > { %v12746_v19 = vadd.f32 %v12745_v21, %v12744_v52  ;;  %v12747_v59 = vpop.f32.mrb[98].mxu0 }
 0x913   : > { %v12748_v14 = vpop.f32.mrb[99].mxu0 }
 0x914   : > { %v12749_v35 = vadd.f32 %v12748_v14, %v12747_v59  ;;  %v18121_v40 = vadd.f32 %v19018_v55, %v12746_v19  ;;  %v19026_v19 = vld [vmem:[#allocation42_spill] sm:$0xff]  ;;  %v19027_v14 = vld [vmem:[#allocation73_spill] sm:$0xff] }
 0x916   : > { %v18124_v62 = vadd.f32 %v19019_v0, %v12749_v35 }
 0x918   : > { %v12750_v44 = vpop.f32.mrb[100].mxu0 }
 0x919   : > { %v12751_v16 = vpop.f32.mrb[101].mxu0 }
 0x91a   : > { %v12752_v32 = vadd.f32 %v12751_v16, %v12750_v44  ;;  %v12753_v36 = vpop.f32.mrb[102].mxu0 }
 0x91b   : > { %v12754_v33 = vpop.f32.mrb[103].mxu0 }
 0x91c   : > { %v12755_v56 = vadd.f32 %v12754_v33, %v12753_v36  ;;  %v18127_v8 = vadd.f32 %v19020_v6, %v12752_v32  ;;  %v10785_v32 = vld [vmem:[#allocation10] sm:$0x7] }
 0x91e   : > { %v18130_v15 = vadd.f32 %v19021_v48, %v12755_v56  ;;  %v19028_v56 = vld [vmem:[#allocation44_spill] sm:$0xff]  ;;  %v19029_v48 = vld [vmem:[#allocation87_spill] sm:$0xff] }
 0x920   : > { %v12756_v37 = vpop.f32.mrb[104].mxu0 }
 0x921   : > { %v12757_v45 = vpop.f32.mrb[105].mxu0 }
 0x922   : > { %v12758_v47 = vadd.f32 %v12757_v45, %v12756_v37  ;;  %v12759_v3 = vpop.f32.mrb[106].mxu0  ;;  %v18154_v37 = vrot.slane %v10785_v32, %v19029_v48  ;;  %v19030_v45 = vld [vmem:[#allocation88_spill] sm:$0xff] }
 0x923   : > { %v12760_v53 = vpop.f32.mrb[107].mxu0 }
 0x924   : > { %v12761_v22 = vadd.f32 %v12760_v53, %v12759_v3  ;;  %v18133_v25 = vadd.f32 %v19022_v10, %v12758_v47  ;;  %v18157_v47 = vrot.slane %v10785_v32, %v19030_v45  ;;  %v19031_v3 = vld [vmem:[#allocation75_spill] sm:$0xff] }
 0x926   : > { %v18136_v23 = vadd.f32 %v19023_v13, %v12761_v22  ;;  %v19032_v22 = vld [vmem:[#allocation64_spill] sm:$0xff] }
 0x927   : > { %v18163_v10 = vrot.slane %v10785_v32, %v19032_v22 }
 0x928   : > { %v12762_v28 = vpop.f32.mrb[108].mxu0 }
 0x929   : > { %v12763_v18 = vpop.f32.mrb[109].mxu0 }
 0x92a   : > { %v12764_v27 = vadd.f32 %v12763_v18, %v12762_v28  ;;  %v12765_v34 = vpop.f32.mrb[110].mxu0 }
 0x92b   : > { %v12766_v42 = vpop.f32.mrb[111].mxu0 }
 0x92c   : > { %v12767_v39 = vadd.f32 %v12766_v42, %v12765_v34  ;;  %v18139_v51 = vadd.f32 %v19024_v1, %v12764_v27 }
 0x92e   : > { %v18142_v57 = vadd.f32 %v19025_v60, %v12767_v39 }
 0x930   : > { %v12768_v12 = vpop.f32.mrb[112].mxu0 }
 0x931   : > { %v12769_v17 = vpop.f32.mrb[113].mxu0 }
 0x932   : > { %v12770_v7 = vadd.f32 %v12769_v17, %v12768_v12  ;;  %v12771_v41 = vpop.f32.mrb[114].mxu0 }
 0x933   : > { %v12772_v52 = vpop.f32.mrb[115].mxu0 }
 0x934   : > { %v12773_v21 = vadd.f32 %v12772_v52, %v12771_v41  ;;  %v18145_v59 = vadd.f32 %v19026_v19, %v12770_v7 }
 0x936   : > { %v18148_v35 = vadd.f32 %v19027_v14, %v12773_v21 }
 0x938   : > { %v12774_v55 = vpop.f32.mrb[116].mxu0 }
 0x939   : > { %v12775_v0 = vpop.f32.mrb[117].mxu0 }
 0x93a   : > { %v12776_v44 = vadd.f32 %v12775_v0, %v12774_v55  ;;  %v12777_v16 = vpop.f32.mrb[118].mxu0 }
 0x93b   : > { %v12778_v36 = vpop.f32.mrb[119].mxu0 }
 0x93c   : > { %v12779_v33 = vadd.f32 %v12778_v36, %v12777_v16  ;;  %v18151_v6 = vadd.f32 %v19028_v56, %v12776_v44 }
 0x93e   : > { %v18160_v53 = vadd.f32 %v19031_v3, %v12779_v33 }
 0x940   : > { %v10208_v13 = vpop.f32.mrb[136].mxu1  ;;  %v13158_v28 = vpop.f32.mrb[248].mxu0 }
 0x941   : > { %v10802_v18 = vadd.f32 %v18154_v37, %v10208_v13  ;;  %v13335_v27 = vadd.f32 %v18060_v5, %v13158_v28  ;;  %v10210_v34 = vpop.f32.mrb[137].mxu1  ;;  %v10562_v42 = vpop.f32.mrb[249].mxu0 }
 0x942   : > { %v10803_v39 = vadd.f32 %v18157_v47, %v10210_v34  ;;  %v13339_v1 = vadd.f32 %v18052_v24, %v10562_v42  ;;  %v10212_v60 = vpop.f32.mrb[138].mxu1  ;;  %v13159_v12 = vpop.f32.mrb[250].mxu0 }
 0x943   : > { %10898 = vst [vmem:[%s18171_s24] sm:$0xff] %v10802_v18  ;;  %v10810_v5 = vadd.f32 %v13335_v27, %v18163_v10  ;;  %v10805_v17 = vadd.f32 %v18154_v37, %v10212_v60  ;;  %v13343_v24 = vadd.f32 %v18065_v26, %v13159_v12  ;;  %v10214_v7 = vpop.f32.mrb[139].mxu1  ;;  %v10565_v41 = vpop.f32.mrb[251].mxu0 }
 0x944   : > { %10899 = vst [vmem:[%s18171_s24 + $0x8] sm:$0xff] %v10803_v39  ;;  %v10804_v52 = vadd.f32 %v13339_v1, %v18163_v10  ;;  %v10806_v21 = vadd.f32 %v18157_v47, %v10214_v7  ;;  %v13347_v19 = vadd.f32 %v18057_v20, %v10565_v41 }
 0x945   : > { %10906 = vst [vmem:[%s18171_s24 + $0x40] sm:$0xff] %v10810_v5  ;;  %10901 = vst [vmem:[%s18171_s24 + $0x18] sm:$0xff] %v10805_v17  ;;  %v10813_v14 = vadd.f32 %v13343_v24, %v18163_v10 }
 0x946   : > { %10900 = vst [vmem:[%s18171_s24 + $0x10] sm:$0xff] %v10804_v52  ;;  %10902 = vst [vmem:[%s18171_s24 + $0x20] sm:$0xff] %v10806_v21  ;;  %v10807_v55 = vadd.f32 %v13347_v19, %v18163_v10 }
 0x947   : > { %10909 = vst [vmem:[%s18171_s24 + $0x58] sm:$0xff] %v10813_v14 }
 0x948   : > { %10903 = vst [vmem:[%s18171_s24 + $0x28] sm:$0xff] %v10807_v55  ;;  %v10218_v26 = vpop.f32.mrb[140].mxu1  ;;  %v13162_v0 = vpop.f32.mrb[252].mxu0 }
 0x949   : > { %v10808_v44 = vadd.f32 %v18154_v37, %v10218_v26  ;;  %v13351_v16 = vadd.f32 %v18076_v63, %v13162_v0  ;;  %v10220_v32 = vpop.f32.mrb[141].mxu1  ;;  %v10578_v20 = vpop.f32.mrb[253].mxu0 }
 0x94a   : > { %v10809_v36 = vadd.f32 %v18157_v47, %v10220_v32  ;;  %v13355_v33 = vadd.f32 %v18068_v9, %v10578_v20  ;;  %v10222_v56 = vpop.f32.mrb[142].mxu1  ;;  %v13163_v48 = vpop.f32.mrb[254].mxu0 }
 0x94b   : > { %10904 = vst [vmem:[%s18171_s24 + $0x30] sm:$0xff] %v10808_v44  ;;  %v10822_v45 = vadd.f32 %v13351_v16, %v18163_v10  ;;  %v10811_v3 = vadd.f32 %v18154_v37, %v10222_v56  ;;  %v13359_v63 = vadd.f32 %v18081_v4, %v13163_v48  ;;  %v10224_v22 = vpop.f32.mrb[143].mxu1  ;;  %v10581_v13 = vpop.f32.mrb[255].mxu0 }
 0x94c   : > { %10905 = vst [vmem:[%s18171_s24 + $0x38] sm:$0xff] %v10809_v36  ;;  %v10816_v28 = vadd.f32 %v13355_v33, %v18163_v10  ;;  %v10812_v9 = vadd.f32 %v18157_v47, %v10224_v22  ;;  %v13363_v18 = vadd.f32 %v18073_v43, %v10581_v13 }
 0x94d   : > { %10918 = vst [vmem:[%s18171_s24 + $0xa0] sm:$0xff] %v10822_v45  ;;  %10907 = vst [vmem:[%s18171_s24 + $0x48] sm:$0xff] %v10811_v3  ;;  %v10825_v27 = vadd.f32 %v13359_v63, %v18163_v10 }
 0x94e   : > { %10912 = vst [vmem:[%s18171_s24 + $0x70] sm:$0xff] %v10816_v28  ;;  %10908 = vst [vmem:[%s18171_s24 + $0x50] sm:$0xff] %v10812_v9  ;;  %v10819_v34 = vadd.f32 %v13363_v18, %v18163_v10 }
 0x94f   : > { %10921 = vst [vmem:[%s18171_s24 + $0xb8] sm:$0xff] %v10825_v27 }
 0x950   : > { %10915 = vst [vmem:[%s18171_s24 + $0x88] sm:$0xff] %v10819_v34  ;;  %v10228_v4 = vpop.f32.mrb[144].mxu1  ;;  %v13166_v42 = vpop.f32.mrb[0].mxu0 }
 0x951   : > { %v10814_v39 = vadd.f32 %v18154_v37, %v10228_v4  ;;  %v13367_v1 = vadd.f32 %v18091_v54, %v13166_v42  ;;  %v10230_v60 = vpop.f32.mrb[145].mxu1  ;;  %v10594_v43 = vpop.f32.mrb[1].mxu0 }
 0x952   : > { %v10815_v12 = vadd.f32 %v18157_v47, %v10230_v60  ;;  %v13371_v5 = vadd.f32 %v18084_v2, %v10594_v43  ;;  %v10232_v17 = vpop.f32.mrb[146].mxu1  ;;  %v13167_v24 = vpop.f32.mrb[2].mxu0 }
 0x953   : > { %10910 = vst [vmem:[%s18171_s24 + $0x60] sm:$0xff] %v10814_v39  ;;  %v10834_v7 = vadd.f32 %v13367_v1, %v18163_v10  ;;  %v10817_v41 = vadd.f32 %v18154_v37, %v10232_v17  ;;  %v13375_v54 = vadd.f32 %v18094_v38, %v13167_v24  ;;  %v10234_v52 = vpop.f32.mrb[147].mxu1  ;;  %v10597_v21 = vpop.f32.mrb[3].mxu0 }
 0x954   : > { %10911 = vst [vmem:[%s18171_s24 + $0x68] sm:$0xff] %v10815_v12  ;;  %v10828_v19 = vadd.f32 %v13371_v5, %v18163_v10  ;;  %v10818_v2 = vadd.f32 %v18157_v47, %v10234_v52  ;;  %v13379_v14 = vadd.f32 %v18088_v50, %v10597_v21 }
 0x955   : > { %10930 = vst [vmem:[%s18171_s24 + $0x100] sm:$0xff] %v10834_v7  ;;  %10913 = vst [vmem:[%s18171_s24 + $0x78] sm:$0xff] %v10817_v41  ;;  %v10837_v55 = vadd.f32 %v13375_v54, %v18163_v10 }
 0x956   : > { %10924 = vst [vmem:[%s18171_s24 + $0xd0] sm:$0xff] %v10828_v19  ;;  %10914 = vst [vmem:[%s18171_s24 + $0x80] sm:$0xff] %v10818_v2  ;;  %v10831_v26 = vadd.f32 %v13379_v14, %v18163_v10 }
 0x957   : > { %10933 = vst [vmem:[%s18171_s24 + $0x118] sm:$0xff] %v10837_v55 }
 0x958   : > { %10927 = vst [vmem:[%s18171_s24 + $0xe8] sm:$0xff] %v10831_v26  ;;  %v10238_v38 = vpop.f32.mrb[148].mxu1  ;;  %v13170_v0 = vpop.f32.mrb[4].mxu0 }
 0x959   : > { %v10820_v44 = vadd.f32 %v18154_v37, %v10238_v38  ;;  %v13383_v16 = vadd.f32 %v18103_v31, %v13170_v0  ;;  %v10240_v32 = vpop.f32.mrb[149].mxu1  ;;  %v10610_v50 = vpop.f32.mrb[5].mxu0 }
 0x95a   : > { %v10821_v20 = vadd.f32 %v18157_v47, %v10240_v32  ;;  %v13387_v36 = vadd.f32 %v18097_v61, %v10610_v50  ;;  %v10242_v33 = vpop.f32.mrb[150].mxu1  ;;  %v13171_v56 = vpop.f32.mrb[6].mxu0 }
 0x95b   : > { %10916 = vst [vmem:[%s18171_s24 + $0x90] sm:$0xff] %v10820_v44  ;;  %v10846_v48 = vadd.f32 %v13383_v16, %v18163_v10  ;;  %v10823_v45 = vadd.f32 %v18154_v37, %v10242_v33  ;;  %v13391_v31 = vadd.f32 %v18106_v49, %v13171_v56  ;;  %v10244_v3 = vpop.f32.mrb[151].mxu1  ;;  %v10613_v63 = vpop.f32.mrb[7].mxu0 }
 0x95c   : > { %10917 = vst [vmem:[%s18171_s24 + $0x98] sm:$0xff] %v10821_v20  ;;  %v10840_v22 = vadd.f32 %v13387_v36, %v18163_v10  ;;  %v10824_v61 = vadd.f32 %v18157_v47, %v10244_v3  ;;  %v13395_v13 = vadd.f32 %v18100_v30, %v10613_v63 }
 0x95d   : > { %10942 = vst [vmem:[%s18171_s24 + $0x160] sm:$0xff] %v10846_v48  ;;  %10919 = vst [vmem:[%s18171_s24 + $0xa8] sm:$0xff] %v10823_v45  ;;  %v10849_v28 = vadd.f32 %v13391_v31, %v18163_v10 }
 0x95e   : > { %10936 = vst [vmem:[%s18171_s24 + $0x130] sm:$0xff] %v10840_v22  ;;  %10920 = vst [vmem:[%s18171_s24 + $0xb0] sm:$0xff] %v10824_v61  ;;  %v10843_v9 = vadd.f32 %v13395_v13, %v18163_v10 }
 0x95f   : > { %10945 = vst [vmem:[%s18171_s24 + $0x178] sm:$0xff] %v10849_v28 }
 0x960   : > { %10939 = vst [vmem:[%s18171_s24 + $0x148] sm:$0xff] %v10843_v9  ;;  %v10248_v49 = vpop.f32.mrb[152].mxu1  ;;  %v13174_v18 = vpop.f32.mrb[8].mxu0 }
 0x961   : > { %v10826_v27 = vadd.f32 %v18154_v37, %v10248_v49  ;;  %v13399_v34 = vadd.f32 %v18115_v11, %v13174_v18  ;;  %v10250_v4 = vpop.f32.mrb[153].mxu1  ;;  %v10626_v30 = vpop.f32.mrb[9].mxu0 }
 0x962   : > { %v10827_v42 = vadd.f32 %v18157_v47, %v10250_v4  ;;  %v13403_v39 = vadd.f32 %v18109_v58, %v10626_v30  ;;  %v10252_v1 = vpop.f32.mrb[154].mxu1  ;;  %v13175_v60 = vpop.f32.mrb[10].mxu0 }
 0x963   : > { %10922 = vst [vmem:[%s18171_s24 + $0xc0] sm:$0xff] %v10826_v27  ;;  %v10858_v43 = vadd.f32 %v13399_v34, %v18163_v10  ;;  %v10829_v12 = vadd.f32 %v18154_v37, %v10252_v1  ;;  %v13407_v11 = vadd.f32 %v18118_v29, %v13175_v60  ;;  %v10254_v5 = vpop.f32.mrb[155].mxu1  ;;  %v10629_v17 = vpop.f32.mrb[11].mxu0 }
 0x964   : > { %10923 = vst [vmem:[%s18171_s24 + $0xc8] sm:$0xff] %v10827_v42  ;;  %v10852_v24 = vadd.f32 %v13403_v39, %v18163_v10  ;;  %v10830_v58 = vadd.f32 %v18157_v47, %v10254_v5  ;;  %v13411_v7 = vadd.f32 %v18112_v46, %v10629_v17 }
 0x965   : > { %10954 = vst [vmem:[%s18171_s24 + $0x1c0] sm:$0xff] %v10858_v43  ;;  %10925 = vst [vmem:[%s18171_s24 + $0xd8] sm:$0xff] %v10829_v12  ;;  %v10861_v41 = vadd.f32 %v13407_v11, %v18163_v10 }
 0x966   : > { %10948 = vst [vmem:[%s18171_s24 + $0x190] sm:$0xff] %v10852_v24  ;;  %10926 = vst [vmem:[%s18171_s24 + $0xe0] sm:$0xff] %v10830_v58  ;;  %v10855_v54 = vadd.f32 %v13411_v7, %v18163_v10 }
 0x967   : > { %10957 = vst [vmem:[%s18171_s24 + $0x1d8] sm:$0xff] %v10861_v41 }
 0x968   : > { %10951 = vst [vmem:[%s18171_s24 + $0x1a8] sm:$0xff] %v10855_v54  ;;  %v10258_v29 = vpop.f32.mrb[156].mxu1  ;;  %v13178_v52 = vpop.f32.mrb[12].mxu0 }
 0x969   : > { %v10832_v21 = vadd.f32 %v18154_v37, %v10258_v29  ;;  %v13415_v19 = vadd.f32 %v18127_v8, %v13178_v52  ;;  %v10260_v2 = vpop.f32.mrb[157].mxu1  ;;  %v10642_v46 = vpop.f32.mrb[13].mxu0 }
 0x96a   : > { %v10833_v14 = vadd.f32 %v18157_v47, %v10260_v2  ;;  %v13419_v55 = vadd.f32 %v18121_v40, %v10642_v46  ;;  %v10262_v26 = vpop.f32.mrb[158].mxu1  ;;  %v13179_v38 = vpop.f32.mrb[14].mxu0 }
 0x96b   : > { %10928 = vst [vmem:[%s18171_s24 + $0xf0] sm:$0xff] %v10832_v21  ;;  %v10870_v0 = vadd.f32 %v13415_v19, %v18163_v10  ;;  %v10835_v44 = vadd.f32 %v18154_v37, %v10262_v26  ;;  %v13423_v8 = vadd.f32 %v18130_v15, %v13179_v38  ;;  %v10264_v16 = vpop.f32.mrb[159].mxu1  ;;  %v10645_v32 = vpop.f32.mrb[15].mxu0 }
 0x96c   : > { %10929 = vst [vmem:[%s18171_s24 + $0xf8] sm:$0xff] %v10833_v14  ;;  %v10864_v50 = vadd.f32 %v13419_v55, %v18163_v10  ;;  %v10836_v40 = vadd.f32 %v18157_v47, %v10264_v16  ;;  %v13427_v20 = vadd.f32 %v18124_v62, %v10645_v32 }
 0x96d   : > { %10966 = vst [vmem:[%s18171_s24 + $0x220] sm:$0xff] %v10870_v0  ;;  %10931 = vst [vmem:[%s18171_s24 + $0x108] sm:$0xff] %v10835_v44  ;;  %v10873_v36 = vadd.f32 %v13423_v8, %v18163_v10 }
 0x96e   : > { %10960 = vst [vmem:[%s18171_s24 + $0x1f0] sm:$0xff] %v10864_v50  ;;  %10932 = vst [vmem:[%s18171_s24 + $0x110] sm:$0xff] %v10836_v40  ;;  %v10867_v33 = vadd.f32 %v13427_v20, %v18163_v10 }
 0x96f   : > { %10969 = vst [vmem:[%s18171_s24 + $0x238] sm:$0xff] %v10873_v36 }
 0x970   : > { %10963 = vst [vmem:[%s18171_s24 + $0x208] sm:$0xff] %v10867_v33  ;;  %v10268_v15 = vpop.f32.mrb[160].mxu1  ;;  %v13182_v56 = vpop.f32.mrb[16].mxu0 }
 0x971   : > { %v10838_v48 = vadd.f32 %v18154_v37, %v10268_v15  ;;  %v13431_v45 = vadd.f32 %v18139_v51, %v13182_v56  ;;  %v10270_v31 = vpop.f32.mrb[161].mxu1  ;;  %v10658_v62 = vpop.f32.mrb[17].mxu0 }
 0x972   : > { %v10839_v3 = vadd.f32 %v18157_v47, %v10270_v31  ;;  %v13435_v63 = vadd.f32 %v18133_v25, %v10658_v62  ;;  %v10272_v22 = vpop.f32.mrb[162].mxu1  ;;  %v13183_v61 = vpop.f32.mrb[18].mxu0 }
 0x973   : > { %10934 = vst [vmem:[%s18171_s24 + $0x120] sm:$0xff] %v10838_v48  ;;  %v10882_v13 = vadd.f32 %v13431_v45, %v18163_v10  ;;  %v10841_v28 = vadd.f32 %v18154_v37, %v10272_v22  ;;  %v13439_v51 = vadd.f32 %v18142_v57, %v13183_v61  ;;  %v10274_v9 = vpop.f32.mrb[163].mxu1  ;;  %v10661_v49 = vpop.f32.mrb[19].mxu0 }
 0x974   : > { %10935 = vst [vmem:[%s18171_s24 + $0x128] sm:$0xff] %v10839_v3  ;;  %v10876_v18 = vadd.f32 %v13435_v63, %v18163_v10  ;;  %v10842_v25 = vadd.f32 %v18157_v47, %v10274_v9  ;;  %v13443_v27 = vadd.f32 %v18136_v23, %v10661_v49 }
 0x975   : > { %10978 = vst [vmem:[%s18171_s24 + $0x280] sm:$0xff] %v10882_v13  ;;  %10937 = vst [vmem:[%s18171_s24 + $0x138] sm:$0xff] %v10841_v28  ;;  %v10885_v34 = vadd.f32 %v13439_v51, %v18163_v10 }
 0x976   : > { %10972 = vst [vmem:[%s18171_s24 + $0x250] sm:$0xff] %v10876_v18  ;;  %10938 = vst [vmem:[%s18171_s24 + $0x140] sm:$0xff] %v10842_v25  ;;  %v10879_v4 = vadd.f32 %v13443_v27, %v18163_v10 }
 0x977   : > { %10981 = vst [vmem:[%s18171_s24 + $0x298] sm:$0xff] %v10885_v34 }
 0x978   : > { %10975 = vst [vmem:[%s18171_s24 + $0x268] sm:$0xff] %v10879_v4  ;;  %v10278_v57 = vpop.f32.mrb[164].mxu1  ;;  %v13186_v30 = vpop.f32.mrb[20].mxu0 }
 0x979   : > { %v10844_v42 = vadd.f32 %v18154_v37, %v10278_v57  ;;  %v13447_v39 = vadd.f32 %v18151_v6, %v13186_v30  ;;  %v10280_v1 = vpop.f32.mrb[165].mxu1  ;;  %v10674_v23 = vpop.f32.mrb[21].mxu0 }
 0x97a   : > { %v10845_v60 = vadd.f32 %v18157_v47, %v10280_v1  ;;  %v13451_v43 = vadd.f32 %v18145_v59, %v10674_v23  ;;  %v10282_v12 = vpop.f32.mrb[166].mxu1  ;;  %v13187_v11 = vpop.f32.mrb[22].mxu0 }
 0x97b   : > { %10940 = vst [vmem:[%s18171_s24 + $0x150] sm:$0xff] %v10844_v42  ;;  %v10894_v5 = vadd.f32 %v13447_v39, %v18163_v10  ;;  %v10847_v17 = vadd.f32 %v18154_v37, %v10282_v12  ;;  %v13455_v6 = vadd.f32 %v18160_v53, %v13187_v11  ;;  %v10284_v24 = vpop.f32.mrb[167].mxu1  ;;  %v10677_v58 = vpop.f32.mrb[23].mxu0 }
 0x97c   : > { %10941 = vst [vmem:[%s18171_s24 + $0x158] sm:$0xff] %v10845_v60  ;;  %v10888_v7 = vadd.f32 %v13451_v43, %v18163_v10  ;;  %v10848_v59 = vadd.f32 %v18157_v47, %v10284_v24  ;;  %v13459_v41 = vadd.f32 %v18148_v35, %v10677_v58 }
 0x97d   : > { %10990 = vst [vmem:[%s18171_s24 + $0x2e0] sm:$0xff] %v10894_v5  ;;  %10943 = vst [vmem:[%s18171_s24 + $0x168] sm:$0xff] %v10847_v17  ;;  %v10897_v54 = vadd.f32 %v13455_v6, %v18163_v10 }
 0x97e   : > { %10984 = vst [vmem:[%s18171_s24 + $0x2b0] sm:$0xff] %v10888_v7  ;;  %10944 = vst [vmem:[%s18171_s24 + $0x170] sm:$0xff] %v10848_v59  ;;  %v10891_v53 = vadd.f32 %v13459_v41, %v18163_v10 }
 0x97f   : > { %10993 = vst [vmem:[%s18171_s24 + $0x2f8] sm:$0xff] %v10897_v54 }
 0x980   : > { %10987 = vst [vmem:[%s18171_s24 + $0x2c8] sm:$0xff] %v10891_v53  ;;  %v10288_v29 = vpop.f32.mrb[168].mxu1 }
 0x981   : > { %v10850_v52 = vadd.f32 %v18154_v37, %v10288_v29  ;;  %v10290_v21 = vpop.f32.mrb[169].mxu1 }
 0x982   : > { %v10851_v35 = vadd.f32 %v18157_v47, %v10290_v21  ;;  %v10292_v19 = vpop.f32.mrb[170].mxu1 }
 0x983   : > { %10946 = vst [vmem:[%s18171_s24 + $0x180] sm:$0xff] %v10850_v52  ;;  %v10853_v2 = vadd.f32 %v18154_v37, %v10292_v19  ;;  %v10294_v46 = vpop.f32.mrb[171].mxu1 }
 0x984   : > { %10947 = vst [vmem:[%s18171_s24 + $0x188] sm:$0xff] %v10851_v35  ;;  %v10854_v10 = vadd.f32 %v18157_v47, %v10294_v46 }
 0x985   : > { %10949 = vst [vmem:[%s18171_s24 + $0x198] sm:$0xff] %v10853_v2 }
 0x986   : > { %10950 = vst [vmem:[%s18171_s24 + $0x1a0] sm:$0xff] %v10854_v10 }
 0x988   : > { %v10298_v14 = vpop.f32.mrb[172].mxu1 }
 0x989   : > { %v10856_v55 = vadd.f32 %v18154_v37, %v10298_v14  ;;  %v10300_v26 = vpop.f32.mrb[173].mxu1 }
 0x98a   : > { %v10857_v38 = vadd.f32 %v18157_v47, %v10300_v26  ;;  %v10302_v0 = vpop.f32.mrb[174].mxu1 }
 0x98b   : > { %10952 = vst [vmem:[%s18171_s24 + $0x1b0] sm:$0xff] %v10856_v55  ;;  %v10859_v44 = vadd.f32 %v18154_v37, %v10302_v0  ;;  %v10304_v8 = vpop.f32.mrb[175].mxu1 }
 0x98c   : > { %10953 = vst [vmem:[%s18171_s24 + $0x1b8] sm:$0xff] %v10857_v38  ;;  %v10860_v16 = vadd.f32 %v18157_v47, %v10304_v8 }
 0x98d   : > { %10955 = vst [vmem:[%s18171_s24 + $0x1c8] sm:$0xff] %v10859_v44 }
 0x98e   : > { %10956 = vst [vmem:[%s18171_s24 + $0x1d0] sm:$0xff] %v10860_v16 }
 0x990   : > { %v10308_v32 = vpop.f32.mrb[176].mxu1 }
 0x991   : > { %v10862_v50 = vadd.f32 %v18154_v37, %v10308_v32  ;;  %v10310_v40 = vpop.f32.mrb[177].mxu1 }
 0x992   : > { %v10863_v20 = vadd.f32 %v18157_v47, %v10310_v40  ;;  %v10312_v36 = vpop.f32.mrb[178].mxu1 }
 0x993   : > { %10958 = vst [vmem:[%s18171_s24 + $0x1e0] sm:$0xff] %v10862_v50  ;;  %v10865_v33 = vadd.f32 %v18154_v37, %v10312_v36  ;;  %v10314_v15 = vpop.f32.mrb[179].mxu1 }
 0x994   : > { %10959 = vst [vmem:[%s18171_s24 + $0x1e8] sm:$0xff] %v10863_v20  ;;  %v10866_v56 = vadd.f32 %v18157_v47, %v10314_v15 }
 0x995   : > { %10961 = vst [vmem:[%s18171_s24 + $0x1f8] sm:$0xff] %v10865_v33 }
 0x996   : > { %10962 = vst [vmem:[%s18171_s24 + $0x200] sm:$0xff] %v10866_v56 }
 0x998   : > { %v10318_v48 = vpop.f32.mrb[180].mxu1 }
 0x999   : > { %v10868_v45 = vadd.f32 %v18154_v37, %v10318_v48  ;;  %v10320_v31 = vpop.f32.mrb[181].mxu1 }
 0x99a   : > { %v10869_v62 = vadd.f32 %v18157_v47, %v10320_v31  ;;  %v10322_v3 = vpop.f32.mrb[182].mxu1 }
 0x99b   : > { %10964 = vst [vmem:[%s18171_s24 + $0x210] sm:$0xff] %v10868_v45  ;;  %v10871_v63 = vadd.f32 %v18154_v37, %v10322_v3  ;;  %v10324_v22 = vpop.f32.mrb[183].mxu1 }
 0x99c   : > { %10965 = vst [vmem:[%s18171_s24 + $0x218] sm:$0xff] %v10869_v62  ;;  %v10872_v61 = vadd.f32 %v18157_v47, %v10324_v22 }
 0x99d   : > { %10967 = vst [vmem:[%s18171_s24 + $0x228] sm:$0xff] %v10871_v63 }
 0x99e   : > { %10968 = vst [vmem:[%s18171_s24 + $0x230] sm:$0xff] %v10872_v61 }
 0x9a0   : > { %v10328_v13 = vpop.f32.mrb[184].mxu1 }
 0x9a1   : > { %v10874_v28 = vadd.f32 %v18154_v37, %v10328_v13  ;;  %v10330_v51 = vpop.f32.mrb[185].mxu1 }
 0x9a2   : > { %v10875_v9 = vadd.f32 %v18157_v47, %v10330_v51  ;;  %v10332_v49 = vpop.f32.mrb[186].mxu1 }
 0x9a3   : > { %10970 = vst [vmem:[%s18171_s24 + $0x240] sm:$0xff] %v10874_v28  ;;  %v10877_v18 = vadd.f32 %v18154_v37, %v10332_v49  ;;  %v10334_v25 = vpop.f32.mrb[187].mxu1 }
 0x9a4   : > { %10971 = vst [vmem:[%s18171_s24 + $0x248] sm:$0xff] %v10875_v9  ;;  %v10878_v27 = vadd.f32 %v18157_v47, %v10334_v25 }
 0x9a5   : > { %10973 = vst [vmem:[%s18171_s24 + $0x258] sm:$0xff] %v10877_v18 }
 0x9a6   : > { %10974 = vst [vmem:[%s18171_s24 + $0x260] sm:$0xff] %v10878_v27 }
 0x9a8   : > { %v10338_v34 = vpop.f32.mrb[188].mxu1 }
 0x9a9   : > { %v10880_v4 = vadd.f32 %v18154_v37, %v10338_v34  ;;  %v10340_v57 = vpop.f32.mrb[189].mxu1 }
 0x9aa   : > { %v10881_v30 = vadd.f32 %v18157_v47, %v10340_v57  ;;  %v10342_v42 = vpop.f32.mrb[190].mxu1 }
 0x9ab   : > { %10976 = vst [vmem:[%s18171_s24 + $0x270] sm:$0xff] %v10880_v4  ;;  %v10883_v39 = vadd.f32 %v18154_v37, %v10342_v42  ;;  %v10344_v1 = vpop.f32.mrb[191].mxu1 }
 0x9ac   : > { %10977 = vst [vmem:[%s18171_s24 + $0x278] sm:$0xff] %v10881_v30  ;;  %v10884_v23 = vadd.f32 %v18157_v47, %v10344_v1 }
 0x9ad   : > { %10979 = vst [vmem:[%s18171_s24 + $0x288] sm:$0xff] %v10883_v39 }
 0x9ae   : > { %10980 = vst [vmem:[%s18171_s24 + $0x290] sm:$0xff] %v10884_v23 }
 0x9b0   : > { %v10348_v60 = vpop.f32.mrb[192].mxu1 }
 0x9b1   : > { %v10886_v43 = vadd.f32 %v18154_v37, %v10348_v60  ;;  %v10350_v12 = vpop.f32.mrb[193].mxu1 }
 0x9b2   : > { %v10887_v11 = vadd.f32 %v18157_v47, %v10350_v12  ;;  %v10352_v5 = vpop.f32.mrb[194].mxu1 }
 0x9b3   : > { %10982 = vst [vmem:[%s18171_s24 + $0x2a0] sm:$0xff] %v10886_v43  ;;  %v10889_v17 = vadd.f32 %v18154_v37, %v10352_v5  ;;  %v10354_v6 = vpop.f32.mrb[195].mxu1 }
 0x9b4   : > { %10983 = vst [vmem:[%s18171_s24 + $0x2a8] sm:$0xff] %v10887_v11  ;;  %v10890_v24 = vadd.f32 %v18157_v47, %v10354_v6 }
 0x9b5   : > { %10985 = vst [vmem:[%s18171_s24 + $0x2b8] sm:$0xff] %v10889_v17 }
 0x9b6   : > { %10986 = vst [vmem:[%s18171_s24 + $0x2c0] sm:$0xff] %v10890_v24 }
 0x9b8   : > { %v10358_v58 = vpop.f32.mrb[196].mxu1 }
 0x9b9   : > { %v10892_v7 = vadd.f32 %v18154_v37, %v10358_v58  ;;  %v10360_v59 = vpop.f32.mrb[197].mxu1 }
 0x9ba   : > { %v10893_v41 = vadd.f32 %v18157_v47, %v10360_v59  ;;  %v10362_v54 = vpop.f32.mrb[198].mxu1 }
 0x9bb   : > { %10988 = vst [vmem:[%s18171_s24 + $0x2d0] sm:$0xff] %v10892_v7  ;;  %v10895_v53 = vadd.f32 %v18154_v37, %v10362_v54  ;;  %v10364_v29 = vpop.f32.mrb[199].mxu1 }
 0x9bc   : > { %10989 = vst [vmem:[%s18171_s24 + $0x2d8] sm:$0xff] %v10893_v41  ;;  %v10896_v52 = vadd.f32 %v18157_v47, %v10364_v29 }
 0x9bd   : > { %10991 = vst [vmem:[%s18171_s24 + $0x2e8] sm:$0xff] %v10895_v53 }
 0x9be   : > { %10992 = vst [vmem:[%s18171_s24 + $0x2f0] sm:$0xff] %v10896_v52 }
 0x9bf   : > { %15427 = shalt.err (!%p15424_p13)
}
 0x9c0   : > { %s15428_s28 = scalar_lea.hbm %s18394_s13, 12288  ;;  %s15432_s7 = scalar_lea.hbm %s18449_s5, 24576 }
 0x9c1   : > { %p15429_p9 = scmp.ne.s32.totalorder %s18394_s13, %s15428_s28  ;;  %p15433_p6 = scmp.lt.u32.totalorder %s18394_s13, %s18449_s5 }
 0x9c2   : > { %p15434_p10 = scmp.lt.u32.totalorder %s15432_s7, %s15428_s28  ;;  %p15436_p4 = scmp.lt.u32.totalorder %s15428_s28, %s18394_s13 }
 0x9c3   : > { %p15430_p0 = pnand %p15429_p9, %p15702_p8 }
 0x9c4   : > { %p15435_p3 = por %p15434_p10, %p15433_p6 }
 0x9c5   : > { %p15431_p11 = pneg %p15430_p0 }
 0x9c6   : > { %p15437_p5 = por %p15436_p4, %p15435_p3 }
 0x9c8   : > { %p15438_p7 = pnand %p15437_p5, %p15431_p11 }
 0x9ca   : > { %15441 = shalt.err (!%p15438_p7)
}
 0x9cb   : > { %s15503_s26 = smov 384   ;;  %s15504_s10 = smov 24  }
 0x9cc   : > { %14410 = dma.vmem_to_hbm [thread:$0]  (%p15702_p8), %s18396_s30, 12288, %s18394_s13, %s10995_s22, %s15503_s26, %s15503_s26, %s15504_s10  }
 0x9cd PF: > { %s11024_s27 = sand.u32 1, %s15476_s18   ;;  %p19033_p12 = scmp.ne.s32.totalorder %s18634_s25, 0 }
 0x9ce   : > { %p19034_p2 = scmp.ge.s32.totalorder %s15488_s21, 2  ;;  %s11025_s17 = scalar_lea.sflag [#allocation4], %s11024_s27 }
 0x9d0   : > { %p14430_p1 = pnand %p19034_p2, %p19033_p12 }
 0x9d2   : > { %15471 = dma.done.wait (!%p14430_p1), %s11025_s17, 12288  }
 0x9d3   : > { %15473 = vsyncadd (!%p14430_p1), %s11025_s17, 4294955008  ;;  %p20_p13 = scmp.ge.s32.totalorder %s15689_s12, 4   ;;  %s19035_s18 = smov %s15480_s19 }
 0x9d4   : > { %s19036_s19 = smov %s15484_s20  ;;  %s19037_s20 = smov %s15698_s15 }
 0x9d5   : > { %s19038_s21 = smov %s15689_s12  ;;  %22 = sbr.rel (!%p20_p13) target bundleno = 7 (0x7), region = 101 }
 0x9dc   :  { %11030 = vsyncpa [#allocation3], 1 }
 0x9dd   :  { %11032 = vsyncpa [#allocation3 + $0x1], 1 }
 0x9de   :  { %11033 = vsyncpa [#allocation6], 1 }
 0x9df   :  { %11034 = vsyncpa [#allocation9], 1 }
 0x9e0   :  { %11035 = vsyncpa [#allocation4], 1 }
 0x9e1   :  { %11037 = vsyncpa [#allocation4 + $0x1], 1 }

</bundles_post_ra>
